<compile_context>
chip_gen: v7x
topology: tpu7x:2x2x1
jax: 0.10.0
libtpu: 0.0.40
codegen_flags: <defaults>
</compile_context>

<pallas_src>
import functools

import jax
import jax.numpy as jnp
from jax.experimental import pallas as pl
from jax.experimental.pallas import tpu as pltpu


def _round_up(x, m):
    return ((x + m - 1) // m) * m


# ---------------------------------------------------------------------------
# Fused im2col-GEMM kernel:  out = act(A @ W + b [+ residual])
# ---------------------------------------------------------------------------

def _gemm_kernel(a_ref, w_ref, b_ref, o_ref, acc_ref, *, apply_relu):
    k = pl.program_id(1)

    @pl.when(k == 0)
    def _():
        acc_ref[...] = jnp.zeros_like(acc_ref)

    acc_ref[...] += jnp.dot(a_ref[...], w_ref[...],
                            preferred_element_type=jnp.float32)

    @pl.when(k == pl.num_programs(1) - 1)
    def _():
        out = acc_ref[...] + b_ref[...]
        if apply_relu:
            out = jnp.maximum(out, 0.0)
        o_ref[...] = out


def _gemm_residual_kernel(a_ref, w_ref, b_ref, r_ref, o_ref, acc_ref, *,
                          apply_relu):
    k = pl.program_id(1)

    @pl.when(k == 0)
    def _():
        acc_ref[...] = jnp.zeros_like(acc_ref)

    acc_ref[...] += jnp.dot(a_ref[...], w_ref[...],
                            preferred_element_type=jnp.float32)

    @pl.when(k == pl.num_programs(1) - 1)
    def _():
        out = acc_ref[...] + b_ref[...] + r_ref[...]
        if apply_relu:
            out = jnp.maximum(out, 0.0)
        o_ref[...] = out


def fused_gemm(a, w, b, residual=None, relu=True, tk=128):
    """a: [M, K] f32, w: [K, C] f32, b: [C] f32, residual: [M, C] f32 or None."""
    M, K = a.shape
    K2, C = w.shape
    assert K2 == K

    Mp = _round_up(M, 8)
    tm = min(Mp, 128)
    Mp = _round_up(Mp, tm)
    Kp = _round_up(K, tk)

    a_p = jnp.pad(a, ((0, Mp - M), (0, Kp - K)))
    w_p = jnp.pad(w, ((0, Kp - K), (0, 0)))
    b_p = b.reshape(1, C).astype(jnp.float32)

    in_specs = [
        pl.BlockSpec((tm, tk), lambda i, k: (i, k)),   # A tile
        pl.BlockSpec((tk, C), lambda i, k: (k, 0)),    # W tile (streamed over K)
        pl.BlockSpec((1, C), lambda i, k: (0, 0)),     # folded-BN bias
    ]
    args = [a_p, w_p, b_p]
    if residual is not None:
        r_p = jnp.pad(residual, ((0, Mp - M), (0, 0)))
        in_specs.append(pl.BlockSpec((tm, C), lambda i, k: (i, 0)))
        args.append(r_p)
        kernel = functools.partial(_gemm_residual_kernel, apply_relu=relu)
    else:
        kernel = functools.partial(_gemm_kernel, apply_relu=relu)

    out = pl.pallas_call(
        kernel,
        out_shape=jax.ShapeDtypeStruct((Mp, C), jnp.float32),
        grid_spec=pltpu.PrefetchScalarGridSpec(
            num_scalar_prefetch=0,
            grid=(Mp // tm, Kp // tk),
            in_specs=in_specs,
            out_specs=pl.BlockSpec((tm, C), lambda i, k: (i, 0)),
            scratch_shapes=[pltpu.VMEM((tm, C), jnp.float32)],
        ),
        compiler_params=pltpu.CompilerParams(
            dimension_semantics=("parallel", "arbitrary")),
    )(*args)
    return out[:M]


# ---------------------------------------------------------------------------
# Head kernel: global average pool + fc (padded to 128 lanes) + log_softmax
# ---------------------------------------------------------------------------

def _head_kernel(x_ref, w_ref, b_ref, o_ref):
    x = x_ref[...]                                              # [N, HW, C]
    pooled = jnp.sum(x, axis=1) * jnp.float32(1.0 / x.shape[1]) # [N, C]
    logits = jnp.dot(pooled, w_ref[...],
                     preferred_element_type=jnp.float32) + b_ref[...]
    m = jnp.max(logits, axis=1, keepdims=True)
    sh = logits - m
    lse = jnp.log(jnp.sum(jnp.exp(sh), axis=1, keepdims=True))
    o_ref[...] = sh - lse


def head_forward(feat, w_fc, b_fc, num_classes):
    N, HW, C = feat.shape
    Cp = _round_up(num_classes, 128)
    w_p = jnp.pad(w_fc, ((0, 0), (0, Cp - num_classes)))
    b_p = jnp.concatenate(
        [b_fc, jnp.full((Cp - num_classes,), -1e30, jnp.float32)]).reshape(1, Cp)
    out = pl.pallas_call(
        _head_kernel,
        out_shape=jax.ShapeDtypeStruct((N, Cp), jnp.float32),
        in_specs=[pl.BlockSpec(memory_space=pltpu.MemorySpace.VMEM)] * 3,
        out_specs=pl.BlockSpec(memory_space=pltpu.MemorySpace.VMEM),
    )(feat, w_p, b_p)
    return out[:, :num_classes]


# ---------------------------------------------------------------------------
# ResNet-18 forward built from the fused kernels
# ---------------------------------------------------------------------------

def _im2col(x, kh, kw, stride, pad):
    """Pure layout work (XLA): NHWC -> [N*Ho*Wo, kh*kw*C] patches."""
    N, H, W, C = x.shape
    if pad:
        x = jnp.pad(x, ((0, 0), (pad, pad), (pad, pad), (0, 0)))
    Ho = (H + 2 * pad - kh) // stride + 1
    Wo = (W + 2 * pad - kw) // stride + 1
    cols = []
    for i in range(kh):
        for j in range(kw):
            cols.append(x[:, i:i + stride * Ho:stride,
                          j:j + stride * Wo:stride, :])
    patches = cols[0] if len(cols) == 1 else jnp.concatenate(cols, axis=-1)
    return patches.reshape(N * Ho * Wo, kh * kw * C), (N, Ho, Wo)


def conv_bn(x, conv_w, bn, stride, pad, relu=True, residual=None):
    """Conv2d(no bias) + BatchNorm(eval, folded) [+ residual] + optional ReLU."""
    gamma, beta, mean, var = bn
    scale = gamma * jax.lax.rsqrt(var + 1e-5)
    w_f = conv_w * scale                       # fold BN scale into conv weights
    b_f = beta - mean * scale                  # fold BN shift into bias
    KH, KW, Cin, Cout = conv_w.shape
    patches, (N, Ho, Wo) = _im2col(x, KH, KW, stride, pad)
    res = residual.reshape(N * Ho * Wo, Cout) if residual is not None else None
    y = fused_gemm(patches, w_f.reshape(KH * KW * Cin, Cout), b_f,
                   residual=res, relu=relu)
    return y.reshape(N, Ho, Wo, Cout)


_LAYER_CFG = (("layer1", 64, 64, 1), ("layer2", 64, 128, 2),
              ("layer3", 128, 256, 2), ("layer4", 256, 512, 2))


def _basic_block(x, p, stride):
    if "down_w" in p:
        shortcut = conv_bn(x, p["down_w"], p["down_bn"], stride, 0, relu=False)
    else:
        shortcut = x
    h = conv_bn(x, p["conv1_w"], p["bn1"], stride, 1, relu=True)
    return conv_bn(h, p["conv2_w"], p["bn2"], 1, 1, relu=True,
                   residual=shortcut)


def resnet18_forward(x, params):
    """x: [N, H, W, 3] f32 -> log-probs [N, 100]."""
    h = conv_bn(x, params["conv1_w"], params["bn1"], 1, 1, relu=True)
    # self.resnet.maxpool = Identity  -> nothing here
    for name, _, _, stride in _LAYER_CFG:
        h = _basic_block(h, params[name][0], stride)
        h = _basic_block(h, params[name][1], 1)
    N, H, W, C = h.shape
    feat = h.reshape(N, H * W, C)
    return head_forward(feat, params["fc_w"], params["fc_b"], 100)


# ---------------------------------------------------------------------------
# Synthetic parameters + pure-JAX reference
# ---------------------------------------------------------------------------

def _conv_init(key, kh, kw, cin, cout):
    fan_in = kh * kw * cin
    return jax.random.normal(key, (kh, kw, cin, cout),
                             jnp.float32) * (2.0 / fan_in) ** 0.5


def _bn_init(key, c):
    k1, k2, k3, k4 = jax.random.split(key, 4)
    gamma = jax.random.uniform(k1, (c,), jnp.float32, 0.8, 1.2)
    beta = 0.05 * jax.random.normal(k2, (c,), jnp.float32)
    mean = 0.05 * jax.random.normal(k3, (c,), jnp.float32)
    var = jax.random.uniform(k4, (c,), jnp.float32, 0.8, 1.2)
    return (gamma, beta, mean, var)


def init_params(key):
    # TODO(synk): pretrained torchvision weights cannot be loaded in-script;
    # deterministic synthetic (kaiming-style) parameters are used instead.
    params = {}
    key, k = jax.random.split(key)
    params["conv1_w"] = _conv_init(k, 3, 3, 3, 64)
    key, k = jax.random.split(key)
    params["bn1"] = _bn_init(k, 64)
    for name, cin, cout, stride in _LAYER_CFG:
        blocks = []
        for b in range(2):
            in_c = cin if b == 0 else cout
            s = stride if b == 0 else 1
            bp = {}
            key, k = jax.random.split(key)
            bp["conv1_w"] = _conv_init(k, 3, 3, in_c, cout)
            key, k = jax.random.split(key)
            bp["bn1"] = _bn_init(k, cout)
            key, k = jax.random.split(key)
            bp["conv2_w"] = _conv_init(k, 3, 3, cout, cout)
            key, k = jax.random.split(key)
            bp["bn2"] = _bn_init(k, cout)
            if s != 1 or in_c != cout:
                key, k = jax.random.split(key)
                bp["down_w"] = _conv_init(k, 1, 1, in_c, cout)
                key, k = jax.random.split(key)
                bp["down_bn"] = _bn_init(k, cout)
            blocks.append(bp)
        params[name] = blocks
    bound = 1.0 / (512 ** 0.5)
    key, k = jax.random.split(key)
    params["fc_w"] = jax.random.uniform(k, (512, 100), jnp.float32, -bound, bound)
    key, k = jax.random.split(key)
    params["fc_b"] = jax.random.uniform(k, (100,), jnp.float32, -bound, bound)
    return params


def reference_forward(x, params):
    hi = jax.lax.Precision.HIGHEST

    def conv(x, w, stride, pad):
        return jax.lax.conv_general_dilated(
            x, w, (stride, stride), [(pad, pad), (pad, pad)],
            dimension_numbers=("NHWC", "HWIO", "NHWC"), precision=hi)

    def bn(x, p):
        g, b, m, v = p
        return (x - m) * jax.lax.rsqrt(v + 1e-5) * g + b

    def cbr(x, w, bnp, stride, pad, relu=True):
        y = bn(conv(x, w, stride, pad), bnp)
        return jnp.maximum(y, 0.0) if relu else y

    def block(x, p, stride):
        sc = (cbr(x, p["down_w"], p["down_bn"], stride, 0, relu=False)
              if "down_w" in p else x)
        h = cbr(x, p["conv1_w"], p["bn1"], stride, 1)
        h = bn(conv(h, p["conv2_w"], 1, 1), p["bn2"])
        return jnp.maximum(h + sc, 0.0)

    h = cbr(x, params["conv1_w"], params["bn1"], 1, 1)
    for name, _, _, stride in _LAYER_CFG:
        h = block(h, params[name][0], stride)
        h = block(h, params[name][1], 1)
    pooled = jnp.mean(h, axis=(1, 2))
    logits = jnp.dot(pooled, params["fc_w"], precision=hi) + params["fc_b"]
    return jax.nn.log_softmax(logits, axis=1)


if __name__ == "__main__":
    key = jax.random.PRNGKey(0)
    k_x, k_p = jax.random.split(key)

    params = init_params(k_p)

    # NCHW input (matching the torch module's interface), transposed to NHWC
    # for the TPU kernels.  Small CIFAR-style shape: batch=2, 3x16x16.
    x_nchw = jax.random.normal(k_x, (2, 3, 16, 16), jnp.float32)
    x = jnp.transpose(x_nchw, (0, 2, 3, 1))

    fwd = jax.jit(resnet18_forward)
    out = jax.block_until_ready(fwd(x, params))

    ref = reference_forward(x, params)
    assert out.shape == (2, 100)
    assert bool(jnp.all(jnp.isfinite(out)))
    assert jnp.allclose(out, ref, atol=5e-2, rtol=5e-2), float(
        jnp.max(jnp.abs(out - ref)))

    print("KERNEL_OK")
</pallas_src>

<mosaic_0001>
module attributes {stable_mosaic.version = 11 : i64} {
  func.func @_gemm_kernel(%arg0: i32, %arg1: i32, %arg2: memref<128x128xf32, #tpu.memory_space<vmem>>, %arg3: memref<128x64xf32, #tpu.memory_space<vmem>>, %arg4: memref<1x64xf32, #tpu.memory_space<vmem>>, %arg5: memref<128x64xf32, #tpu.memory_space<vmem>>, %arg6: memref<128x64xf32, #tpu.memory_space<vmem>>) attributes {dimension_semantics = [#tpu.dimension_semantics<parallel>, #tpu.dimension_semantics<arbitrary>], iteration_bounds = array<i64: 4, 1>, scalar_prefetch = 0 : i64, scratch_operands = 1 : i64, tpu.core_type = #tpu.core_type<tc>, window_params = [{transform_indices = @transform_0, window_bounds = array<i64: 128, 128>}, {transform_indices = @transform_1, window_bounds = array<i64: 128, 64>}, {pipeline_mode = #tpu.pipeline_mode<synchronous>, transform_indices = @transform_2, window_bounds = array<i64: 1, 64>}, {transform_indices = @transform_3, window_bounds = array<i64: 128, 64>}]} {
    %c0_i32 = arith.constant 0 : i32
    %0 = arith.cmpi eq, %arg1, %c0_i32 : i32
    %1 = arith.extui %0 : i1 to i32
    %c0_i32_0 = arith.constant 0 : i32
    %2 = arith.cmpi ne, %1, %c0_i32_0 : i32
    scf.if %2 {
      %cst_10 = arith.constant 0.000000e+00 : f32
      %12 = vector.broadcast %cst_10 : f32 to vector<128x64xf32>
      %c0_11 = arith.constant 0 : index
      %c0_12 = arith.constant 0 : index
      %13 = vector.load %arg6[%c0_11, %c0_12] : memref<128x64xf32, #tpu.memory_space<vmem>>, vector<128x64xf32>
      tpu.vector_store %arg6[%c0_11, %c0_12], %12 {strides = array<i32>} : memref<128x64xf32, #tpu.memory_space<vmem>>, vector<128x64xf32>,
    } else {
    }
    %c0 = arith.constant 0 : index
    %c0_1 = arith.constant 0 : index
    %3 = vector.load %arg6[%c0, %c0_1] : memref<128x64xf32, #tpu.memory_space<vmem>>, vector<128x64xf32>
    %c0_2 = arith.constant 0 : index
    %c0_3 = arith.constant 0 : index
    %4 = vector.load %arg2[%c0_2, %c0_3] : memref<128x128xf32, #tpu.memory_space<vmem>>, vector<128x128xf32>
    %c0_4 = arith.constant 0 : index
    %c0_5 = arith.constant 0 : index
    %5 = vector.load %arg3[%c0_4, %c0_5] : memref<128x64xf32, #tpu.memory_space<vmem>>, vector<128x64xf32>
    %cst = arith.constant dense<0.000000e+00> : vector<128x64xf32>
    %6 = tpu.matmul %4, %5, %cst {dimension_numbers = #tpu.dot_dimension_numbers<[1], [0], [0], [1], [0, 0, 1, 1], [], []>} : vector<128x128xf32>, vector<128x64xf32>, vector<128x64xf32> -> vector<128x64xf32>
    %7 = arith.addf %3, %6 : vector<128x64xf32>
    %c0_6 = arith.constant 0 : index
    %c0_7 = arith.constant 0 : index
    %8 = vector.load %arg6[%c0_6, %c0_7] : memref<128x64xf32, #tpu.memory_space<vmem>>, vector<128x64xf32>
    tpu.vector_store %arg6[%c0_6, %c0_7], %7 {strides = array<i32>} : memref<128x64xf32, #tpu.memory_space<vmem>>, vector<128x64xf32>,
    %c0_i32_8 = arith.constant 0 : i32
    %9 = arith.cmpi eq, %arg1, %c0_i32_8 : i32
    %10 = arith.extui %9 : i1 to i32
    %c0_i32_9 = arith.constant 0 : i32
    %11 = arith.cmpi ne, %10, %c0_i32_9 : i32
    scf.if %11 {
      %c0_10 = arith.constant 0 : index
      %c0_11 = arith.constant 0 : index
      %12 = vector.load %arg6[%c0_10, %c0_11] : memref<128x64xf32, #tpu.memory_space<vmem>>, vector<128x64xf32>
      %c0_12 = arith.constant 0 : index
      %c0_13 = arith.constant 0 : index
      %13 = vector.load %arg4[%c0_12, %c0_13] : memref<1x64xf32, #tpu.memory_space<vmem>>, vector<1x64xf32>
      %14 = vector.broadcast %13 : vector<1x64xf32> to vector<128x64xf32>
      %15 = arith.addf %12, %14 : vector<128x64xf32>
      %cst_14 = arith.constant 0.000000e+00 : f32
      %16 = vector.broadcast %cst_14 : f32 to vector<128x64xf32>
      %17 = arith.maximumf %15, %16 : vector<128x64xf32>
      %c0_15 = arith.constant 0 : index
      %c0_16 = arith.constant 0 : index
      %18 = vector.load %arg5[%c0_15, %c0_16] : memref<128x64xf32, #tpu.memory_space<vmem>>, vector<128x64xf32>
      tpu.vector_store %arg5[%c0_15, %c0_16], %17 {strides = array<i32>} : memref<128x64xf32, #tpu.memory_space<vmem>>, vector<128x64xf32>,
    } else {
    }
    return
  }
  func.func @transform_0(%arg0: i32, %arg1: i32) -> (i32, i32) {
    %c0_i32 = arith.constant 0 : i32
    return %arg0, %arg1 : i32, i32
  }
  func.func @transform_1(%arg0: i32, %arg1: i32) -> (i32, i32) {
    %c0_i32 = arith.constant 0 : i32
    %c0_i32_0 = arith.constant 0 : i32
    return %arg1, %c0_i32 : i32, i32
  }
  func.func @transform_2(%arg0: i32, %arg1: i32) -> (i32, i32) {
    %c0_i32 = arith.constant 0 : i32
    %c0_i32_0 = arith.constant 0 : i32
    %c0_i32_1 = arith.constant 0 : i32
    return %c0_i32, %c0_i32_0 : i32, i32
  }
  func.func @transform_3(%arg0: i32, %arg1: i32) -> (i32, i32) {
    %c0_i32 = arith.constant 0 : i32
    %c0_i32_0 = arith.constant 0 : i32
    return %arg0, %c0_i32 : i32, i32
  }
}

module attributes {stable_mosaic.version = 11 : i64} {
  func.func @_gemm_kernel(%arg0: i32, %arg1: i32, %arg2: memref<128x128xf32, #tpu.memory_space<vmem>>, %arg3: memref<128x64xf32, #tpu.memory_space<vmem>>, %arg4: memref<1x64xf32, #tpu.memory_space<vmem>>, %arg5: memref<128x64xf32, #tpu.memory_space<vmem>>, %arg6: memref<128x64xf32, #tpu.memory_space<vmem>>) attributes {dimension_semantics = [#tpu.dimension_semantics<parallel>, #tpu.dimension_semantics<arbitrary>], iteration_bounds = array<i64: 4, 5>, scalar_prefetch = 0 : i64, scratch_operands = 1 : i64, tpu.core_type = #tpu.core_type<tc>, window_params = [{transform_indices = @transform_0, window_bounds = array<i64: 128, 128>}, {transform_indices = @transform_1, window_bounds = array<i64: 128, 64>}, {pipeline_mode = #tpu.pipeline_mode<synchronous>, transform_indices = @transform_2, window_bounds = array<i64: 1, 64>}, {transform_indices = @transform_3, window_bounds = array<i64: 128, 64>}]} {
    %c0_i32 = arith.constant 0 : i32
    %0 = arith.cmpi eq, %arg1, %c0_i32 : i32
    %1 = arith.extui %0 : i1 to i32
    %c0_i32_0 = arith.constant 0 : i32
    %2 = arith.cmpi ne, %1, %c0_i32_0 : i32
    scf.if %2 {
      %cst_9 = arith.constant 0.000000e+00 : f32
      %12 = vector.broadcast %cst_9 : f32 to vector<128x64xf32>
      %c0_10 = arith.constant 0 : index
      %c0_11 = arith.constant 0 : index
      %13 = vector.load %arg6[%c0_10, %c0_11] : memref<128x64xf32, #tpu.memory_space<vmem>>, vector<128x64xf32>
      tpu.vector_store %arg6[%c0_10, %c0_11], %12 {strides = array<i32>} : memref<128x64xf32, #tpu.memory_space<vmem>>, vector<128x64xf32>,
    } else {
    }
    %c0 = arith.constant 0 : index
    %c0_1 = arith.constant 0 : index
    %3 = vector.load %arg6[%c0, %c0_1] : memref<128x64xf32, #tpu.memory_space<vmem>>, vector<128x64xf32>
    %c0_2 = arith.constant 0 : index
    %c0_3 = arith.constant 0 : index
    %4 = vector.load %arg2[%c0_2, %c0_3] : memref<128x128xf32, #tpu.memory_space<vmem>>, vector<128x128xf32>
    %c0_4 = arith.constant 0 : index
    %c0_5 = arith.constant 0 : index
    %5 = vector.load %arg3[%c0_4, %c0_5] : memref<128x64xf32, #tpu.memory_space<vmem>>, vector<128x64xf32>
    %cst = arith.constant dense<0.000000e+00> : vector<128x64xf32>
    %6 = tpu.matmul %4, %5, %cst {dimension_numbers = #tpu.dot_dimension_numbers<[1], [0], [0], [1], [0, 0, 1, 1], [], []>} : vector<128x128xf32>, vector<128x64xf32>, vector<128x64xf32> -> vector<128x64xf32>
    %7 = arith.addf %3, %6 : vector<128x64xf32>
    %c0_6 = arith.constant 0 : index
    %c0_7 = arith.constant 0 : index
    %8 = vector.load %arg6[%c0_6, %c0_7] : memref<128x64xf32, #tpu.memory_space<vmem>>, vector<128x64xf32>
    tpu.vector_store %arg6[%c0_6, %c0_7], %7 {strides = array<i32>} : memref<128x64xf32, #tpu.memory_space<vmem>>, vector<128x64xf32>,
    %c4_i32 = arith.constant 4 : i32
    %9 = arith.cmpi eq, %arg1, %c4_i32 : i32
    %10 = arith.extui %9 : i1 to i32
    %c0_i32_8 = arith.constant 0 : i32
    %11 = arith.cmpi ne, %10, %c0_i32_8 : i32
    scf.if %11 {
      %c0_9 = arith.constant 0 : index
      %c0_10 = arith.constant 0 : index
      %12 = vector.load %arg6[%c0_9, %c0_10] : memref<128x64xf32, #tpu.memory_space<vmem>>, vector<128x64xf32>
      %c0_11 = arith.constant 0 : index
      %c0_12 = arith.constant 0 : index
      %13 = vector.load %arg4[%c0_11, %c0_12] : memref<1x64xf32, #tpu.memory_space<vmem>>, vector<1x64xf32>
      %14 = vector.broadcast %13 : vector<1x64xf32> to vector<128x64xf32>
      %15 = arith.addf %12, %14 : vector<128x64xf32>
      %cst_13 = arith.constant 0.000000e+00 : f32
      %16 = vector.broadcast %cst_13 : f32 to vector<128x64xf32>
      %17 = arith.maximumf %15, %16 : vector<128x64xf32>
      %c0_14 = arith.constant 0 : index
      %c0_15 = arith.constant 0 : index
      %18 = vector.load %arg5[%c0_14, %c0_15] : memref<128x64xf32, #tpu.memory_space<vmem>>, vector<128x64xf32>
      tpu.vector_store %arg5[%c0_14, %c0_15], %17 {strides = array<i32>} : memref<128x64xf32, #tpu.memory_space<vmem>>, vector<128x64xf32>,
    } else {
    }
    return
  }
  func.func @transform_0(%arg0: i32, %arg1: i32) -> (i32, i32) {
    %c0_i32 = arith.constant 0 : i32
    return %arg0, %arg1 : i32, i32
  }
  func.func @transform_1(%arg0: i32, %arg1: i32) -> (i32, i32) {
    %c0_i32 = arith.constant 0 : i32
    %c0_i32_0 = arith.constant 0 : i32
    return %arg1, %c0_i32 : i32, i32
  }
  func.func @transform_2(%arg0: i32, %arg1: i32) -> (i32, i32) {
    %c0_i32 = arith.constant 0 : i32
    %c0_i32_0 = arith.constant 0 : i32
    %c0_i32_1 = arith.constant 0 : i32
    return %c0_i32, %c0_i32_0 : i32, i32
  }
  func.func @transform_3(%arg0: i32, %arg1: i32) -> (i32, i32) {
    %c0_i32 = arith.constant 0 : i32
    %c0_i32_0 = arith.constant 0 : i32
    return %arg0, %c0_i32 : i32, i32
  }
}

module attributes {stable_mosaic.version = 11 : i64} {
  func.func @_gemm_residual_kernel(%arg0: i32, %arg1: i32, %arg2: memref<128x128xf32, #tpu.memory_space<vmem>>, %arg3: memref<128x64xf32, #tpu.memory_space<vmem>>, %arg4: memref<1x64xf32, #tpu.memory_space<vmem>>, %arg5: memref<128x64xf32, #tpu.memory_space<vmem>>, %arg6: memref<128x64xf32, #tpu.memory_space<vmem>>, %arg7: memref<128x64xf32, #tpu.memory_space<vmem>>) attributes {dimension_semantics = [#tpu.dimension_semantics<parallel>, #tpu.dimension_semantics<arbitrary>], iteration_bounds = array<i64: 4, 5>, scalar_prefetch = 0 : i64, scratch_operands = 1 : i64, tpu.core_type = #tpu.core_type<tc>, window_params = [{transform_indices = @transform_0, window_bounds = array<i64: 128, 128>}, {transform_indices = @transform_1, window_bounds = array<i64: 128, 64>}, {pipeline_mode = #tpu.pipeline_mode<synchronous>, transform_indices = @transform_2, window_bounds = array<i64: 1, 64>}, {transform_indices = @transform_3, window_bounds = array<i64: 128, 64>}, {transform_indices = @transform_4, window_bounds = array<i64: 128, 64>}]} {
    %c0_i32 = arith.constant 0 : i32
    %0 = arith.cmpi eq, %arg1, %c0_i32 : i32
    %1 = arith.extui %0 : i1 to i32
    %c0_i32_0 = arith.constant 0 : i32
    %2 = arith.cmpi ne, %1, %c0_i32_0 : i32
    scf.if %2 {
      %cst_9 = arith.constant 0.000000e+00 : f32
      %12 = vector.broadcast %cst_9 : f32 to vector<128x64xf32>
      %c0_10 = arith.constant 0 : index
      %c0_11 = arith.constant 0 : index
      %13 = vector.load %arg7[%c0_10, %c0_11] : memref<128x64xf32, #tpu.memory_space<vmem>>, vector<128x64xf32>
      tpu.vector_store %arg7[%c0_10, %c0_11], %12 {strides = array<i32>} : memref<128x64xf32, #tpu.memory_space<vmem>>, vector<128x64xf32>,
    } else {
    }
    %c0 = arith.constant 0 : index
    %c0_1 = arith.constant 0 : index
    %3 = vector.load %arg7[%c0, %c0_1] : memref<128x64xf32, #tpu.memory_space<vmem>>, vector<128x64xf32>
    %c0_2 = arith.constant 0 : index
    %c0_3 = arith.constant 0 : index
    %4 = vector.load %arg2[%c0_2, %c0_3] : memref<128x128xf32, #tpu.memory_space<vmem>>, vector<128x128xf32>
    %c0_4 = arith.constant 0 : index
    %c0_5 = arith.constant 0 : index
    %5 = vector.load %arg3[%c0_4, %c0_5] : memref<128x64xf32, #tpu.memory_space<vmem>>, vector<128x64xf32>
    %cst = arith.constant dense<0.000000e+00> : vector<128x64xf32>
    %6 = tpu.matmul %4, %5, %cst {dimension_numbers = #tpu.dot_dimension_numbers<[1], [0], [0], [1], [0, 0, 1, 1], [], []>} : vector<128x128xf32>, vector<128x64xf32>, vector<128x64xf32> -> vector<128x64xf32>
    %7 = arith.addf %3, %6 : vector<128x64xf32>
    %c0_6 = arith.constant 0 : index
    %c0_7 = arith.constant 0 : index
    %8 = vector.load %arg7[%c0_6, %c0_7] : memref<128x64xf32, #tpu.memory_space<vmem>>, vector<128x64xf32>
    tpu.vector_store %arg7[%c0_6, %c0_7], %7 {strides = array<i32>} : memref<128x64xf32, #tpu.memory_space<vmem>>, vector<128x64xf32>,
    %c4_i32 = arith.constant 4 : i32
    %9 = arith.cmpi eq, %arg1, %c4_i32 : i32
    %10 = arith.extui %9 : i1 to i32
    %c0_i32_8 = arith.constant 0 : i32
    %11 = arith.cmpi ne, %10, %c0_i32_8 : i32
    scf.if %11 {
      %c0_9 = arith.constant 0 : index
      %c0_10 = arith.constant 0 : index
      %12 = vector.load %arg7[%c0_9, %c0_10] : memref<128x64xf32, #tpu.memory_space<vmem>>, vector<128x64xf32>
      %c0_11 = arith.constant 0 : index
      %c0_12 = arith.constant 0 : index
      %13 = vector.load %arg4[%c0_11, %c0_12] : memref<1x64xf32, #tpu.memory_space<vmem>>, vector<1x64xf32>
      %14 = vector.broadcast %13 : vector<1x64xf32> to vector<128x64xf32>
      %15 = arith.addf %12, %14 : vector<128x64xf32>
      %c0_13 = arith.constant 0 : index
      %c0_14 = arith.constant 0 : index
      %16 = vector.load %arg5[%c0_13, %c0_14] : memref<128x64xf32, #tpu.memory_space<vmem>>, vector<128x64xf32>
      %17 = arith.addf %15, %16 : vector<128x64xf32>
      %cst_15 = arith.constant 0.000000e+00 : f32
      %18 = vector.broadcast %cst_15 : f32 to vector<128x64xf32>
      %19 = arith.maximumf %17, %18 : vector<128x64xf32>
      %c0_16 = arith.constant 0 : index
      %c0_17 = arith.constant 0 : index
      %20 = vector.load %arg6[%c0_16, %c0_17] : memref<128x64xf32, #tpu.memory_space<vmem>>, vector<128x64xf32>
      tpu.vector_store %arg6[%c0_16, %c0_17], %19 {strides = array<i32>} : memref<128x64xf32, #tpu.memory_space<vmem>>, vector<128x64xf32>,
    } else {
    }
    return
  }
  func.func @transform_0(%arg0: i32, %arg1: i32) -> (i32, i32) {
    %c0_i32 = arith.constant 0 : i32
    return %arg0, %arg1 : i32, i32
  }
  func.func @transform_1(%arg0: i32, %arg1: i32) -> (i32, i32) {
    %c0_i32 = arith.constant 0 : i32
    %c0_i32_0 = arith.constant 0 : i32
    return %arg1, %c0_i32 : i32, i32
  }
  func.func @transform_2(%arg0: i32, %arg1: i32) -> (i32, i32) {
    %c0_i32 = arith.constant 0 : i32
    %c0_i32_0 = arith.constant 0 : i32
    %c0_i32_1 = arith.constant 0 : i32
    return %c0_i32, %c0_i32_0 : i32, i32
  }
  func.func @transform_3(%arg0: i32, %arg1: i32) -> (i32, i32) {
    %c0_i32 = arith.constant 0 : i32
    %c0_i32_0 = arith.constant 0 : i32
    return %arg0, %c0_i32 : i32, i32
  }
  func.func @transform_4(%arg0: i32, %arg1: i32) -> (i32, i32) {
    %c0_i32 = arith.constant 0 : i32
    %c0_i32_0 = arith.constant 0 : i32
    return %arg0, %c0_i32 : i32, i32
  }
}

module attributes {stable_mosaic.version = 11 : i64} {
  func.func @_gemm_kernel(%arg0: i32, %arg1: i32, %arg2: memref<128x128xf32, #tpu.memory_space<vmem>>, %arg3: memref<128x128xf32, #tpu.memory_space<vmem>>, %arg4: memref<1x128xf32, #tpu.memory_space<vmem>>, %arg5: memref<128x128xf32, #tpu.memory_space<vmem>>, %arg6: memref<128x128xf32, #tpu.memory_space<vmem>>) attributes {dimension_semantics = [#tpu.dimension_semantics<parallel>, #tpu.dimension_semantics<arbitrary>], iteration_bounds = array<i64: 1, 5>, scalar_prefetch = 0 : i64, scratch_operands = 1 : i64, tpu.core_type = #tpu.core_type<tc>, window_params = [{transform_indices = @transform_0, window_bounds = array<i64: 128, 128>}, {transform_indices = @transform_1, window_bounds = array<i64: 128, 128>}, {pipeline_mode = #tpu.pipeline_mode<synchronous>, transform_indices = @transform_2, window_bounds = array<i64: 1, 128>}, {transform_indices = @transform_3, window_bounds = array<i64: 128, 128>}]} {
    %c0_i32 = arith.constant 0 : i32
    %0 = arith.cmpi eq, %arg1, %c0_i32 : i32
    %1 = arith.extui %0 : i1 to i32
    %c0_i32_0 = arith.constant 0 : i32
    %2 = arith.cmpi ne, %1, %c0_i32_0 : i32
    scf.if %2 {
      %cst_9 = arith.constant 0.000000e+00 : f32
      %12 = vector.broadcast %cst_9 : f32 to vector<128x128xf32>
      %c0_10 = arith.constant 0 : index
      %c0_11 = arith.constant 0 : index
      %13 = vector.load %arg6[%c0_10, %c0_11] : memref<128x128xf32, #tpu.memory_space<vmem>>, vector<128x128xf32>
      tpu.vector_store %arg6[%c0_10, %c0_11], %12 {strides = array<i32>} : memref<128x128xf32, #tpu.memory_space<vmem>>, vector<128x128xf32>,
    } else {
    }
    %c0 = arith.constant 0 : index
    %c0_1 = arith.constant 0 : index
    %3 = vector.load %arg6[%c0, %c0_1] : memref<128x128xf32, #tpu.memory_space<vmem>>, vector<128x128xf32>
    %c0_2 = arith.constant 0 : index
    %c0_3 = arith.constant 0 : index
    %4 = vector.load %arg2[%c0_2, %c0_3] : memref<128x128xf32, #tpu.memory_space<vmem>>, vector<128x128xf32>
    %c0_4 = arith.constant 0 : index
    %c0_5 = arith.constant 0 : index
    %5 = vector.load %arg3[%c0_4, %c0_5] : memref<128x128xf32, #tpu.memory_space<vmem>>, vector<128x128xf32>
    %cst = arith.constant dense<0.000000e+00> : vector<128x128xf32>
    %6 = tpu.matmul %4, %5, %cst {dimension_numbers = #tpu.dot_dimension_numbers<[1], [0], [0], [1], [0, 0, 1, 1], [], []>} : vector<128x128xf32>, vector<128x128xf32>, vector<128x128xf32> -> vector<128x128xf32>
    %7 = arith.addf %3, %6 : vector<128x128xf32>
    %c0_6 = arith.constant 0 : index
    %c0_7 = arith.constant 0 : index
    %8 = vector.load %arg6[%c0_6, %c0_7] : memref<128x128xf32, #tpu.memory_space<vmem>>, vector<128x128xf32>
    tpu.vector_store %arg6[%c0_6, %c0_7], %7 {strides = array<i32>} : memref<128x128xf32, #tpu.memory_space<vmem>>, vector<128x128xf32>,
    %c4_i32 = arith.constant 4 : i32
    %9 = arith.cmpi eq, %arg1, %c4_i32 : i32
    %10 = arith.extui %9 : i1 to i32
    %c0_i32_8 = arith.constant 0 : i32
    %11 = arith.cmpi ne, %10, %c0_i32_8 : i32
    scf.if %11 {
      %c0_9 = arith.constant 0 : index
      %c0_10 = arith.constant 0 : index
      %12 = vector.load %arg6[%c0_9, %c0_10] : memref<128x128xf32, #tpu.memory_space<vmem>>, vector<128x128xf32>
      %c0_11 = arith.constant 0 : index
      %c0_12 = arith.constant 0 : index
      %13 = vector.load %arg4[%c0_11, %c0_12] : memref<1x128xf32, #tpu.memory_space<vmem>>, vector<1x128xf32>
      %14 = vector.broadcast %13 : vector<1x128xf32> to vector<128x128xf32>
      %15 = arith.addf %12, %14 : vector<128x128xf32>
      %cst_13 = arith.constant 0.000000e+00 : f32
      %16 = vector.broadcast %cst_13 : f32 to vector<128x128xf32>
      %17 = arith.maximumf %15, %16 : vector<128x128xf32>
      %c0_14 = arith.constant 0 : index
      %c0_15 = arith.constant 0 : index
      %18 = vector.load %arg5[%c0_14, %c0_15] : memref<128x128xf32, #tpu.memory_space<vmem>>, vector<128x128xf32>
      tpu.vector_store %arg5[%c0_14, %c0_15], %17 {strides = array<i32>} : memref<128x128xf32, #tpu.memory_space<vmem>>, vector<128x128xf32>,
    } else {
    }
    return
  }
  func.func @transform_0(%arg0: i32, %arg1: i32) -> (i32, i32) {
    %c0_i32 = arith.constant 0 : i32
    return %arg0, %arg1 : i32, i32
  }
  func.func @transform_1(%arg0: i32, %arg1: i32) -> (i32, i32) {
    %c0_i32 = arith.constant 0 : i32
    %c0_i32_0 = arith.constant 0 : i32
    return %arg1, %c0_i32 : i32, i32
  }
  func.func @transform_2(%arg0: i32, %arg1: i32) -> (i32, i32) {
    %c0_i32 = arith.constant 0 : i32
    %c0_i32_0 = arith.constant 0 : i32
    %c0_i32_1 = arith.constant 0 : i32
    return %c0_i32, %c0_i32_0 : i32, i32
  }
  func.func @transform_3(%arg0: i32, %arg1: i32) -> (i32, i32) {
    %c0_i32 = arith.constant 0 : i32
    %c0_i32_0 = arith.constant 0 : i32
    return %arg0, %c0_i32 : i32, i32
  }
}

module attributes {stable_mosaic.version = 11 : i64} {
  func.func @_gemm_residual_kernel(%arg0: i32, %arg1: i32, %arg2: memref<128x128xf32, #tpu.memory_space<vmem>>, %arg3: memref<128x128xf32, #tpu.memory_space<vmem>>, %arg4: memref<1x128xf32, #tpu.memory_space<vmem>>, %arg5: memref<128x128xf32, #tpu.memory_space<vmem>>, %arg6: memref<128x128xf32, #tpu.memory_space<vmem>>, %arg7: memref<128x128xf32, #tpu.memory_space<vmem>>) attributes {dimension_semantics = [#tpu.dimension_semantics<parallel>, #tpu.dimension_semantics<arbitrary>], iteration_bounds = array<i64: 1, 9>, scalar_prefetch = 0 : i64, scratch_operands = 1 : i64, tpu.core_type = #tpu.core_type<tc>, window_params = [{transform_indices = @transform_0, window_bounds = array<i64: 128, 128>}, {transform_indices = @transform_1, window_bounds = array<i64: 128, 128>}, {pipeline_mode = #tpu.pipeline_mode<synchronous>, transform_indices = @transform_2, window_bounds = array<i64: 1, 128>}, {transform_indices = @transform_3, window_bounds = array<i64: 128, 128>}, {transform_indices = @transform_4, window_bounds = array<i64: 128, 128>}]} {
    %c0_i32 = arith.constant 0 : i32
    %0 = arith.cmpi eq, %arg1, %c0_i32 : i32
    %1 = arith.extui %0 : i1 to i32
    %c0_i32_0 = arith.constant 0 : i32
    %2 = arith.cmpi ne, %1, %c0_i32_0 : i32
    scf.if %2 {
      %cst_9 = arith.constant 0.000000e+00 : f32
      %12 = vector.broadcast %cst_9 : f32 to vector<128x128xf32>
      %c0_10 = arith.constant 0 : index
      %c0_11 = arith.constant 0 : index
      %13 = vector.load %arg7[%c0_10, %c0_11] : memref<128x128xf32, #tpu.memory_space<vmem>>, vector<128x128xf32>
      tpu.vector_store %arg7[%c0_10, %c0_11], %12 {strides = array<i32>} : memref<128x128xf32, #tpu.memory_space<vmem>>, vector<128x128xf32>,
    } else {
    }
    %c0 = arith.constant 0 : index
    %c0_1 = arith.constant 0 : index
    %3 = vector.load %arg7[%c0, %c0_1] : memref<128x128xf32, #tpu.memory_space<vmem>>, vector<128x128xf32>
    %c0_2 = arith.constant 0 : index
    %c0_3 = arith.constant 0 : index
    %4 = vector.load %arg2[%c0_2, %c0_3] : memref<128x128xf32, #tpu.memory_space<vmem>>, vector<128x128xf32>
    %c0_4 = arith.constant 0 : index
    %c0_5 = arith.constant 0 : index
    %5 = vector.load %arg3[%c0_4, %c0_5] : memref<128x128xf32, #tpu.memory_space<vmem>>, vector<128x128xf32>
    %cst = arith.constant dense<0.000000e+00> : vector<128x128xf32>
    %6 = tpu.matmul %4, %5, %cst {dimension_numbers = #tpu.dot_dimension_numbers<[1], [0], [0], [1], [0, 0, 1, 1], [], []>} : vector<128x128xf32>, vector<128x128xf32>, vector<128x128xf32> -> vector<128x128xf32>
    %7 = arith.addf %3, %6 : vector<128x128xf32>
    %c0_6 = arith.constant 0 : index
    %c0_7 = arith.constant 0 : index
    %8 = vector.load %arg7[%c0_6, %c0_7] : memref<128x128xf32, #tpu.memory_space<vmem>>, vector<128x128xf32>
    tpu.vector_store %arg7[%c0_6, %c0_7], %7 {strides = array<i32>} : memref<128x128xf32, #tpu.memory_space<vmem>>, vector<128x128xf32>,
    %c8_i32 = arith.constant 8 : i32
    %9 = arith.cmpi eq, %arg1, %c8_i32 : i32
    %10 = arith.extui %9 : i1 to i32
    %c0_i32_8 = arith.constant 0 : i32
    %11 = arith.cmpi ne, %10, %c0_i32_8 : i32
    scf.if %11 {
      %c0_9 = arith.constant 0 : index
      %c0_10 = arith.constant 0 : index
      %12 = vector.load %arg7[%c0_9, %c0_10] : memref<128x128xf32, #tpu.memory_space<vmem>>, vector<128x128xf32>
      %c0_11 = arith.constant 0 : index
      %c0_12 = arith.constant 0 : index
      %13 = vector.load %arg4[%c0_11, %c0_12] : memref<1x128xf32, #tpu.memory_space<vmem>>, vector<1x128xf32>
      %14 = vector.broadcast %13 : vector<1x128xf32> to vector<128x128xf32>
      %15 = arith.addf %12, %14 : vector<128x128xf32>
      %c0_13 = arith.constant 0 : index
      %c0_14 = arith.constant 0 : index
      %16 = vector.load %arg5[%c0_13, %c0_14] : memref<128x128xf32, #tpu.memory_space<vmem>>, vector<128x128xf32>
      %17 = arith.addf %15, %16 : vector<128x128xf32>
      %cst_15 = arith.constant 0.000000e+00 : f32
      %18 = vector.broadcast %cst_15 : f32 to vector<128x128xf32>
      %19 = arith.maximumf %17, %18 : vector<128x128xf32>
      %c0_16 = arith.constant 0 : index
      %c0_17 = arith.constant 0 : index
      %20 = vector.load %arg6[%c0_16, %c0_17] : memref<128x128xf32, #tpu.memory_space<vmem>>, vector<128x128xf32>
      tpu.vector_store %arg6[%c0_16, %c0_17], %19 {strides = array<i32>} : memref<128x128xf32, #tpu.memory_space<vmem>>, vector<128x128xf32>,
    } else {
    }
    return
  }
  func.func @transform_0(%arg0: i32, %arg1: i32) -> (i32, i32) {
    %c0_i32 = arith.constant 0 : i32
    return %arg0, %arg1 : i32, i32
  }
  func.func @transform_1(%arg0: i32, %arg1: i32) -> (i32, i32) {
    %c0_i32 = arith.constant 0 : i32
    %c0_i32_0 = arith.constant 0 : i32
    return %arg1, %c0_i32 : i32, i32
  }
  func.func @transform_2(%arg0: i32, %arg1: i32) -> (i32, i32) {
    %c0_i32 = arith.constant 0 : i32
    %c0_i32_0 = arith.constant 0 : i32
    %c0_i32_1 = arith.constant 0 : i32
    return %c0_i32, %c0_i32_0 : i32, i32
  }
  func.func @transform_3(%arg0: i32, %arg1: i32) -> (i32, i32) {
    %c0_i32 = arith.constant 0 : i32
    %c0_i32_0 = arith.constant 0 : i32
    return %arg0, %c0_i32 : i32, i32
  }
  func.func @transform_4(%arg0: i32, %arg1: i32) -> (i32, i32) {
    %c0_i32 = arith.constant 0 : i32
    %c0_i32_0 = arith.constant 0 : i32
    return %arg0, %c0_i32 : i32, i32
  }
}

module attributes {stable_mosaic.version = 11 : i64} {
  func.func @_gemm_kernel(%arg0: i32, %arg1: i32, %arg2: memref<128x128xf32, #tpu.memory_space<vmem>>, %arg3: memref<128x128xf32, #tpu.memory_space<vmem>>, %arg4: memref<1x128xf32, #tpu.memory_space<vmem>>, %arg5: memref<128x128xf32, #tpu.memory_space<vmem>>, %arg6: memref<128x128xf32, #tpu.memory_space<vmem>>) attributes {dimension_semantics = [#tpu.dimension_semantics<parallel>, #tpu.dimension_semantics<arbitrary>], iteration_bounds = array<i64: 1, 1>, scalar_prefetch = 0 : i64, scratch_operands = 1 : i64, tpu.core_type = #tpu.core_type<tc>, window_params = [{transform_indices = @transform_0, window_bounds = array<i64: 128, 128>}, {transform_indices = @transform_1, window_bounds = array<i64: 128, 128>}, {pipeline_mode = #tpu.pipeline_mode<synchronous>, transform_indices = @transform_2, window_bounds = array<i64: 1, 128>}, {transform_indices = @transform_3, window_bounds = array<i64: 128, 128>}]} {
    %c0_i32 = arith.constant 0 : i32
    %0 = arith.cmpi eq, %arg1, %c0_i32 : i32
    %1 = arith.extui %0 : i1 to i32
    %c0_i32_0 = arith.constant 0 : i32
    %2 = arith.cmpi ne, %1, %c0_i32_0 : i32
    scf.if %2 {
      %cst_10 = arith.constant 0.000000e+00 : f32
      %12 = vector.broadcast %cst_10 : f32 to vector<128x128xf32>
      %c0_11 = arith.constant 0 : index
      %c0_12 = arith.constant 0 : index
      %13 = vector.load %arg6[%c0_11, %c0_12] : memref<128x128xf32, #tpu.memory_space<vmem>>, vector<128x128xf32>
      tpu.vector_store %arg6[%c0_11, %c0_12], %12 {strides = array<i32>} : memref<128x128xf32, #tpu.memory_space<vmem>>, vector<128x128xf32>,
    } else {
    }
    %c0 = arith.constant 0 : index
    %c0_1 = arith.constant 0 : index
    %3 = vector.load %arg6[%c0, %c0_1] : memref<128x128xf32, #tpu.memory_space<vmem>>, vector<128x128xf32>
    %c0_2 = arith.constant 0 : index
    %c0_3 = arith.constant 0 : index
    %4 = vector.load %arg2[%c0_2, %c0_3] : memref<128x128xf32, #tpu.memory_space<vmem>>, vector<128x128xf32>
    %c0_4 = arith.constant 0 : index
    %c0_5 = arith.constant 0 : index
    %5 = vector.load %arg3[%c0_4, %c0_5] : memref<128x128xf32, #tpu.memory_space<vmem>>, vector<128x128xf32>
    %cst = arith.constant dense<0.000000e+00> : vector<128x128xf32>
    %6 = tpu.matmul %4, %5, %cst {dimension_numbers = #tpu.dot_dimension_numbers<[1], [0], [0], [1], [0, 0, 1, 1], [], []>} : vector<128x128xf32>, vector<128x128xf32>, vector<128x128xf32> -> vector<128x128xf32>
    %7 = arith.addf %3, %6 : vector<128x128xf32>
    %c0_6 = arith.constant 0 : index
    %c0_7 = arith.constant 0 : index
    %8 = vector.load %arg6[%c0_6, %c0_7] : memref<128x128xf32, #tpu.memory_space<vmem>>, vector<128x128xf32>
    tpu.vector_store %arg6[%c0_6, %c0_7], %7 {strides = array<i32>} : memref<128x128xf32, #tpu.memory_space<vmem>>, vector<128x128xf32>,
    %c0_i32_8 = arith.constant 0 : i32
    %9 = arith.cmpi eq, %arg1, %c0_i32_8 : i32
    %10 = arith.extui %9 : i1 to i32
    %c0_i32_9 = arith.constant 0 : i32
    %11 = arith.cmpi ne, %10, %c0_i32_9 : i32
    scf.if %11 {
      %c0_10 = arith.constant 0 : index
      %c0_11 = arith.constant 0 : index
      %12 = vector.load %arg6[%c0_10, %c0_11] : memref<128x128xf32, #tpu.memory_space<vmem>>, vector<128x128xf32>
      %c0_12 = arith.constant 0 : index
      %c0_13 = arith.constant 0 : index
      %13 = vector.load %arg4[%c0_12, %c0_13] : memref<1x128xf32, #tpu.memory_space<vmem>>, vector<1x128xf32>
      %14 = vector.broadcast %13 : vector<1x128xf32> to vector<128x128xf32>
      %15 = arith.addf %12, %14 : vector<128x128xf32>
      %c0_14 = arith.constant 0 : index
      %c0_15 = arith.constant 0 : index
      %16 = vector.load %arg5[%c0_14, %c0_15] : memref<128x128xf32, #tpu.memory_space<vmem>>, vector<128x128xf32>
      tpu.vector_store %arg5[%c0_14, %c0_15], %15 {strides = array<i32>} : memref<128x128xf32, #tpu.memory_space<vmem>>, vector<128x128xf32>,
    } else {
    }
    return
  }
  func.func @transform_0(%arg0: i32, %arg1: i32) -> (i32, i32) {
    %c0_i32 = arith.constant 0 : i32
    return %arg0, %arg1 : i32, i32
  }
  func.func @transform_1(%arg0: i32, %arg1: i32) -> (i32, i32) {
    %c0_i32 = arith.constant 0 : i32
    %c0_i32_0 = arith.constant 0 : i32
    return %arg1, %c0_i32 : i32, i32
  }
  func.func @transform_2(%arg0: i32, %arg1: i32) -> (i32, i32) {
    %c0_i32 = arith.constant 0 : i32
    %c0_i32_0 = arith.constant 0 : i32
    %c0_i32_1 = arith.constant 0 : i32
    return %c0_i32, %c0_i32_0 : i32, i32
  }
  func.func @transform_3(%arg0: i32, %arg1: i32) -> (i32, i32) {
    %c0_i32 = arith.constant 0 : i32
    %c0_i32_0 = arith.constant 0 : i32
    return %arg0, %c0_i32 : i32, i32
  }
}

module attributes {stable_mosaic.version = 11 : i64} {
  func.func @_gemm_kernel(%arg0: i32, %arg1: i32, %arg2: memref<128x128xf32, #tpu.memory_space<vmem>>, %arg3: memref<128x128xf32, #tpu.memory_space<vmem>>, %arg4: memref<1x128xf32, #tpu.memory_space<vmem>>, %arg5: memref<128x128xf32, #tpu.memory_space<vmem>>, %arg6: memref<128x128xf32, #tpu.memory_space<vmem>>) attributes {dimension_semantics = [#tpu.dimension_semantics<parallel>, #tpu.dimension_semantics<arbitrary>], iteration_bounds = array<i64: 1, 9>, scalar_prefetch = 0 : i64, scratch_operands = 1 : i64, tpu.core_type = #tpu.core_type<tc>, window_params = [{transform_indices = @transform_0, window_bounds = array<i64: 128, 128>}, {transform_indices = @transform_1, window_bounds = array<i64: 128, 128>}, {pipeline_mode = #tpu.pipeline_mode<synchronous>, transform_indices = @transform_2, window_bounds = array<i64: 1, 128>}, {transform_indices = @transform_3, window_bounds = array<i64: 128, 128>}]} {
    %c0_i32 = arith.constant 0 : i32
    %0 = arith.cmpi eq, %arg1, %c0_i32 : i32
    %1 = arith.extui %0 : i1 to i32
    %c0_i32_0 = arith.constant 0 : i32
    %2 = arith.cmpi ne, %1, %c0_i32_0 : i32
    scf.if %2 {
      %cst_9 = arith.constant 0.000000e+00 : f32
      %12 = vector.broadcast %cst_9 : f32 to vector<128x128xf32>
      %c0_10 = arith.constant 0 : index
      %c0_11 = arith.constant 0 : index
      %13 = vector.load %arg6[%c0_10, %c0_11] : memref<128x128xf32, #tpu.memory_space<vmem>>, vector<128x128xf32>
      tpu.vector_store %arg6[%c0_10, %c0_11], %12 {strides = array<i32>} : memref<128x128xf32, #tpu.memory_space<vmem>>, vector<128x128xf32>,
    } else {
    }
    %c0 = arith.constant 0 : index
    %c0_1 = arith.constant 0 : index
    %3 = vector.load %arg6[%c0, %c0_1] : memref<128x128xf32, #tpu.memory_space<vmem>>, vector<128x128xf32>
    %c0_2 = arith.constant 0 : index
    %c0_3 = arith.constant 0 : index
    %4 = vector.load %arg2[%c0_2, %c0_3] : memref<128x128xf32, #tpu.memory_space<vmem>>, vector<128x128xf32>
    %c0_4 = arith.constant 0 : index
    %c0_5 = arith.constant 0 : index
    %5 = vector.load %arg3[%c0_4, %c0_5] : memref<128x128xf32, #tpu.memory_space<vmem>>, vector<128x128xf32>
    %cst = arith.constant dense<0.000000e+00> : vector<128x128xf32>
    %6 = tpu.matmul %4, %5, %cst {dimension_numbers = #tpu.dot_dimension_numbers<[1], [0], [0], [1], [0, 0, 1, 1], [], []>} : vector<128x128xf32>, vector<128x128xf32>, vector<128x128xf32> -> vector<128x128xf32>
    %7 = arith.addf %3, %6 : vector<128x128xf32>
    %c0_6 = arith.constant 0 : index
    %c0_7 = arith.constant 0 : index
    %8 = vector.load %arg6[%c0_6, %c0_7] : memref<128x128xf32, #tpu.memory_space<vmem>>, vector<128x128xf32>
    tpu.vector_store %arg6[%c0_6, %c0_7], %7 {strides = array<i32>} : memref<128x128xf32, #tpu.memory_space<vmem>>, vector<128x128xf32>,
    %c8_i32 = arith.constant 8 : i32
    %9 = arith.cmpi eq, %arg1, %c8_i32 : i32
    %10 = arith.extui %9 : i1 to i32
    %c0_i32_8 = arith.constant 0 : i32
    %11 = arith.cmpi ne, %10, %c0_i32_8 : i32
    scf.if %11 {
      %c0_9 = arith.constant 0 : index
      %c0_10 = arith.constant 0 : index
      %12 = vector.load %arg6[%c0_9, %c0_10] : memref<128x128xf32, #tpu.memory_space<vmem>>, vector<128x128xf32>
      %c0_11 = arith.constant 0 : index
      %c0_12 = arith.constant 0 : index
      %13 = vector.load %arg4[%c0_11, %c0_12] : memref<1x128xf32, #tpu.memory_space<vmem>>, vector<1x128xf32>
      %14 = vector.broadcast %13 : vector<1x128xf32> to vector<128x128xf32>
      %15 = arith.addf %12, %14 : vector<128x128xf32>
      %cst_13 = arith.constant 0.000000e+00 : f32
      %16 = vector.broadcast %cst_13 : f32 to vector<128x128xf32>
      %17 = arith.maximumf %15, %16 : vector<128x128xf32>
      %c0_14 = arith.constant 0 : index
      %c0_15 = arith.constant 0 : index
      %18 = vector.load %arg5[%c0_14, %c0_15] : memref<128x128xf32, #tpu.memory_space<vmem>>, vector<128x128xf32>
      tpu.vector_store %arg5[%c0_14, %c0_15], %17 {strides = array<i32>} : memref<128x128xf32, #tpu.memory_space<vmem>>, vector<128x128xf32>,
    } else {
    }
    return
  }
  func.func @transform_0(%arg0: i32, %arg1: i32) -> (i32, i32) {
    %c0_i32 = arith.constant 0 : i32
    return %arg0, %arg1 : i32, i32
  }
  func.func @transform_1(%arg0: i32, %arg1: i32) -> (i32, i32) {
    %c0_i32 = arith.constant 0 : i32
    %c0_i32_0 = arith.constant 0 : i32
    return %arg1, %c0_i32 : i32, i32
  }
  func.func @transform_2(%arg0: i32, %arg1: i32) -> (i32, i32) {
    %c0_i32 = arith.constant 0 : i32
    %c0_i32_0 = arith.constant 0 : i32
    %c0_i32_1 = arith.constant 0 : i32
    return %c0_i32, %c0_i32_0 : i32, i32
  }
  func.func @transform_3(%arg0: i32, %arg1: i32) -> (i32, i32) {
    %c0_i32 = arith.constant 0 : i32
    %c0_i32_0 = arith.constant 0 : i32
    return %arg0, %c0_i32 : i32, i32
  }
}

module attributes {stable_mosaic.version = 11 : i64} {
  func.func @_gemm_kernel(%arg0: i32, %arg1: i32, %arg2: memref<32x128xf32, #tpu.memory_space<vmem>>, %arg3: memref<128x256xf32, #tpu.memory_space<vmem>>, %arg4: memref<1x256xf32, #tpu.memory_space<vmem>>, %arg5: memref<32x256xf32, #tpu.memory_space<vmem>>, %arg6: memref<32x256xf32, #tpu.memory_space<vmem>>) attributes {dimension_semantics = [#tpu.dimension_semantics<parallel>, #tpu.dimension_semantics<arbitrary>], iteration_bounds = array<i64: 1, 9>, scalar_prefetch = 0 : i64, scratch_operands = 1 : i64, tpu.core_type = #tpu.core_type<tc>, window_params = [{transform_indices = @transform_0, window_bounds = array<i64: 32, 128>}, {transform_indices = @transform_1, window_bounds = array<i64: 128, 256>}, {pipeline_mode = #tpu.pipeline_mode<synchronous>, transform_indices = @transform_2, window_bounds = array<i64: 1, 256>}, {transform_indices = @transform_3, window_bounds = array<i64: 32, 256>}]} {
    %c0_i32 = arith.constant 0 : i32
    %0 = arith.cmpi eq, %arg1, %c0_i32 : i32
    %1 = arith.extui %0 : i1 to i32
    %c0_i32_0 = arith.constant 0 : i32
    %2 = arith.cmpi ne, %1, %c0_i32_0 : i32
    scf.if %2 {
      %cst_9 = arith.constant 0.000000e+00 : f32
      %12 = vector.broadcast %cst_9 : f32 to vector<32x256xf32>
      %c0_10 = arith.constant 0 : index
      %c0_11 = arith.constant 0 : index
      %13 = vector.load %arg6[%c0_10, %c0_11] : memref<32x256xf32, #tpu.memory_space<vmem>>, vector<32x256xf32>
      tpu.vector_store %arg6[%c0_10, %c0_11], %12 {strides = array<i32>} : memref<32x256xf32, #tpu.memory_space<vmem>>, vector<32x256xf32>,
    } else {
    }
    %c0 = arith.constant 0 : index
    %c0_1 = arith.constant 0 : index
    %3 = vector.load %arg6[%c0, %c0_1] : memref<32x256xf32, #tpu.memory_space<vmem>>, vector<32x256xf32>
    %c0_2 = arith.constant 0 : index
    %c0_3 = arith.constant 0 : index
    %4 = vector.load %arg2[%c0_2, %c0_3] : memref<32x128xf32, #tpu.memory_space<vmem>>, vector<32x128xf32>
    %c0_4 = arith.constant 0 : index
    %c0_5 = arith.constant 0 : index
    %5 = vector.load %arg3[%c0_4, %c0_5] : memref<128x256xf32, #tpu.memory_space<vmem>>, vector<128x256xf32>
    %cst = arith.constant dense<0.000000e+00> : vector<32x256xf32>
    %6 = tpu.matmul %4, %5, %cst {dimension_numbers = #tpu.dot_dimension_numbers<[1], [0], [0], [1], [0, 0, 1, 1], [], []>} : vector<32x128xf32>, vector<128x256xf32>, vector<32x256xf32> -> vector<32x256xf32>
    %7 = arith.addf %3, %6 : vector<32x256xf32>
    %c0_6 = arith.constant 0 : index
    %c0_7 = arith.constant 0 : index
    %8 = vector.load %arg6[%c0_6, %c0_7] : memref<32x256xf32, #tpu.memory_space<vmem>>, vector<32x256xf32>
    tpu.vector_store %arg6[%c0_6, %c0_7], %7 {strides = array<i32>} : memref<32x256xf32, #tpu.memory_space<vmem>>, vector<32x256xf32>,
    %c8_i32 = arith.constant 8 : i32
    %9 = arith.cmpi eq, %arg1, %c8_i32 : i32
    %10 = arith.extui %9 : i1 to i32
    %c0_i32_8 = arith.constant 0 : i32
    %11 = arith.cmpi ne, %10, %c0_i32_8 : i32
    scf.if %11 {
      %c0_9 = arith.constant 0 : index
      %c0_10 = arith.constant 0 : index
      %12 = vector.load %arg6[%c0_9, %c0_10] : memref<32x256xf32, #tpu.memory_space<vmem>>, vector<32x256xf32>
      %c0_11 = arith.constant 0 : index
      %c0_12 = arith.constant 0 : index
      %13 = vector.load %arg4[%c0_11, %c0_12] : memref<1x256xf32, #tpu.memory_space<vmem>>, vector<1x256xf32>
      %14 = vector.broadcast %13 : vector<1x256xf32> to vector<32x256xf32>
      %15 = arith.addf %12, %14 : vector<32x256xf32>
      %cst_13 = arith.constant 0.000000e+00 : f32
      %16 = vector.broadcast %cst_13 : f32 to vector<32x256xf32>
      %17 = arith.maximumf %15, %16 : vector<32x256xf32>
      %c0_14 = arith.constant 0 : index
      %c0_15 = arith.constant 0 : index
      %18 = vector.load %arg5[%c0_14, %c0_15] : memref<32x256xf32, #tpu.memory_space<vmem>>, vector<32x256xf32>
      tpu.vector_store %arg5[%c0_14, %c0_15], %17 {strides = array<i32>} : memref<32x256xf32, #tpu.memory_space<vmem>>, vector<32x256xf32>,
    } else {
    }
    return
  }
  func.func @transform_0(%arg0: i32, %arg1: i32) -> (i32, i32) {
    %c0_i32 = arith.constant 0 : i32
    return %arg0, %arg1 : i32, i32
  }
  func.func @transform_1(%arg0: i32, %arg1: i32) -> (i32, i32) {
    %c0_i32 = arith.constant 0 : i32
    %c0_i32_0 = arith.constant 0 : i32
    return %arg1, %c0_i32 : i32, i32
  }
  func.func @transform_2(%arg0: i32, %arg1: i32) -> (i32, i32) {
    %c0_i32 = arith.constant 0 : i32
    %c0_i32_0 = arith.constant 0 : i32
    %c0_i32_1 = arith.constant 0 : i32
    return %c0_i32, %c0_i32_0 : i32, i32
  }
  func.func @transform_3(%arg0: i32, %arg1: i32) -> (i32, i32) {
    %c0_i32 = arith.constant 0 : i32
    %c0_i32_0 = arith.constant 0 : i32
    return %arg0, %c0_i32 : i32, i32
  }
}

module attributes {stable_mosaic.version = 11 : i64} {
  func.func @_gemm_kernel(%arg0: i32, %arg1: i32, %arg2: memref<32x128xf32, #tpu.memory_space<vmem>>, %arg3: memref<128x256xf32, #tpu.memory_space<vmem>>, %arg4: memref<1x256xf32, #tpu.memory_space<vmem>>, %arg5: memref<32x256xf32, #tpu.memory_space<vmem>>, %arg6: memref<32x256xf32, #tpu.memory_space<vmem>>) attributes {dimension_semantics = [#tpu.dimension_semantics<parallel>, #tpu.dimension_semantics<arbitrary>], iteration_bounds = array<i64: 1, 1>, scalar_prefetch = 0 : i64, scratch_operands = 1 : i64, tpu.core_type = #tpu.core_type<tc>, window_params = [{transform_indices = @transform_0, window_bounds = array<i64: 32, 128>}, {transform_indices = @transform_1, window_bounds = array<i64: 128, 256>}, {pipeline_mode = #tpu.pipeline_mode<synchronous>, transform_indices = @transform_2, window_bounds = array<i64: 1, 256>}, {transform_indices = @transform_3, window_bounds = array<i64: 32, 256>}]} {
    %c0_i32 = arith.constant 0 : i32
    %0 = arith.cmpi eq, %arg1, %c0_i32 : i32
    %1 = arith.extui %0 : i1 to i32
    %c0_i32_0 = arith.constant 0 : i32
    %2 = arith.cmpi ne, %1, %c0_i32_0 : i32
    scf.if %2 {
      %cst_10 = arith.constant 0.000000e+00 : f32
      %12 = vector.broadcast %cst_10 : f32 to vector<32x256xf32>
      %c0_11 = arith.constant 0 : index
      %c0_12 = arith.constant 0 : index
      %13 = vector.load %arg6[%c0_11, %c0_12] : memref<32x256xf32, #tpu.memory_space<vmem>>, vector<32x256xf32>
      tpu.vector_store %arg6[%c0_11, %c0_12], %12 {strides = array<i32>} : memref<32x256xf32, #tpu.memory_space<vmem>>, vector<32x256xf32>,
    } else {
    }
    %c0 = arith.constant 0 : index
    %c0_1 = arith.constant 0 : index
    %3 = vector.load %arg6[%c0, %c0_1] : memref<32x256xf32, #tpu.memory_space<vmem>>, vector<32x256xf32>
    %c0_2 = arith.constant 0 : index
    %c0_3 = arith.constant 0 : index
    %4 = vector.load %arg2[%c0_2, %c0_3] : memref<32x128xf32, #tpu.memory_space<vmem>>, vector<32x128xf32>
    %c0_4 = arith.constant 0 : index
    %c0_5 = arith.constant 0 : index
    %5 = vector.load %arg3[%c0_4, %c0_5] : memref<128x256xf32, #tpu.memory_space<vmem>>, vector<128x256xf32>
    %cst = arith.constant dense<0.000000e+00> : vector<32x256xf32>
    %6 = tpu.matmul %4, %5, %cst {dimension_numbers = #tpu.dot_dimension_numbers<[1], [0], [0], [1], [0, 0, 1, 1], [], []>} : vector<32x128xf32>, vector<128x256xf32>, vector<32x256xf32> -> vector<32x256xf32>
    %7 = arith.addf %3, %6 : vector<32x256xf32>
    %c0_6 = arith.constant 0 : index
    %c0_7 = arith.constant 0 : index
    %8 = vector.load %arg6[%c0_6, %c0_7] : memref<32x256xf32, #tpu.memory_space<vmem>>, vector<32x256xf32>
    tpu.vector_store %arg6[%c0_6, %c0_7], %7 {strides = array<i32>} : memref<32x256xf32, #tpu.memory_space<vmem>>, vector<32x256xf32>,
    %c0_i32_8 = arith.constant 0 : i32
    %9 = arith.cmpi eq, %arg1, %c0_i32_8 : i32
    %10 = arith.extui %9 : i1 to i32
    %c0_i32_9 = arith.constant 0 : i32
    %11 = arith.cmpi ne, %10, %c0_i32_9 : i32
    scf.if %11 {
      %c0_10 = arith.constant 0 : index
      %c0_11 = arith.constant 0 : index
      %12 = vector.load %arg6[%c0_10, %c0_11] : memref<32x256xf32, #tpu.memory_space<vmem>>, vector<32x256xf32>
      %c0_12 = arith.constant 0 : index
      %c0_13 = arith.constant 0 : index
      %13 = vector.load %arg4[%c0_12, %c0_13] : memref<1x256xf32, #tpu.memory_space<vmem>>, vector<1x256xf32>
      %14 = vector.broadcast %13 : vector<1x256xf32> to vector<32x256xf32>
      %15 = arith.addf %12, %14 : vector<32x256xf32>
      %c0_14 = arith.constant 0 : index
      %c0_15 = arith.constant 0 : index
      %16 = vector.load %arg5[%c0_14, %c0_15] : memref<32x256xf32, #tpu.memory_space<vmem>>, vector<32x256xf32>
      tpu.vector_store %arg5[%c0_14, %c0_15], %15 {strides = array<i32>} : memref<32x256xf32, #tpu.memory_space<vmem>>, vector<32x256xf32>,
    } else {
    }
    return
  }
  func.func @transform_0(%arg0: i32, %arg1: i32) -> (i32, i32) {
    %c0_i32 = arith.constant 0 : i32
    return %arg0, %arg1 : i32, i32
  }
  func.func @transform_1(%arg0: i32, %arg1: i32) -> (i32, i32) {
    %c0_i32 = arith.constant 0 : i32
    %c0_i32_0 = arith.constant 0 : i32
    return %arg1, %c0_i32 : i32, i32
  }
  func.func @transform_2(%arg0: i32, %arg1: i32) -> (i32, i32) {
    %c0_i32 = arith.constant 0 : i32
    %c0_i32_0 = arith.constant 0 : i32
    %c0_i32_1 = arith.constant 0 : i32
    return %c0_i32, %c0_i32_0 : i32, i32
  }
  func.func @transform_3(%arg0: i32, %arg1: i32) -> (i32, i32) {
    %c0_i32 = arith.constant 0 : i32
    %c0_i32_0 = arith.constant 0 : i32
    return %arg0, %c0_i32 : i32, i32
  }
}

module attributes {stable_mosaic.version = 11 : i64} {
  func.func @_gemm_residual_kernel(%arg0: i32, %arg1: i32, %arg2: memref<32x128xf32, #tpu.memory_space<vmem>>, %arg3: memref<128x256xf32, #tpu.memory_space<vmem>>, %arg4: memref<1x256xf32, #tpu.memory_space<vmem>>, %arg5: memref<32x256xf32, #tpu.memory_space<vmem>>, %arg6: memref<32x256xf32, #tpu.memory_space<vmem>>, %arg7: memref<32x256xf32, #tpu.memory_space<vmem>>) attributes {dimension_semantics = [#tpu.dimension_semantics<parallel>, #tpu.dimension_semantics<arbitrary>], iteration_bounds = array<i64: 1, 18>, scalar_prefetch = 0 : i64, scratch_operands = 1 : i64, tpu.core_type = #tpu.core_type<tc>, window_params = [{transform_indices = @transform_0, window_bounds = array<i64: 32, 128>}, {transform_indices = @transform_1, window_bounds = array<i64: 128, 256>}, {pipeline_mode = #tpu.pipeline_mode<synchronous>, transform_indices = @transform_2, window_bounds = array<i64: 1, 256>}, {transform_indices = @transform_3, window_bounds = array<i64: 32, 256>}, {transform_indices = @transform_4, window_bounds = array<i64: 32, 256>}]} {
    %c0_i32 = arith.constant 0 : i32
    %0 = arith.cmpi eq, %arg1, %c0_i32 : i32
    %1 = arith.extui %0 : i1 to i32
    %c0_i32_0 = arith.constant 0 : i32
    %2 = arith.cmpi ne, %1, %c0_i32_0 : i32
    scf.if %2 {
      %cst_9 = arith.constant 0.000000e+00 : f32
      %12 = vector.broadcast %cst_9 : f32 to vector<32x256xf32>
      %c0_10 = arith.constant 0 : index
      %c0_11 = arith.constant 0 : index
      %13 = vector.load %arg7[%c0_10, %c0_11] : memref<32x256xf32, #tpu.memory_space<vmem>>, vector<32x256xf32>
      tpu.vector_store %arg7[%c0_10, %c0_11], %12 {strides = array<i32>} : memref<32x256xf32, #tpu.memory_space<vmem>>, vector<32x256xf32>,
    } else {
    }
    %c0 = arith.constant 0 : index
    %c0_1 = arith.constant 0 : index
    %3 = vector.load %arg7[%c0, %c0_1] : memref<32x256xf32, #tpu.memory_space<vmem>>, vector<32x256xf32>
    %c0_2 = arith.constant 0 : index
    %c0_3 = arith.constant 0 : index
    %4 = vector.load %arg2[%c0_2, %c0_3] : memref<32x128xf32, #tpu.memory_space<vmem>>, vector<32x128xf32>
    %c0_4 = arith.constant 0 : index
    %c0_5 = arith.constant 0 : index
    %5 = vector.load %arg3[%c0_4, %c0_5] : memref<128x256xf32, #tpu.memory_space<vmem>>, vector<128x256xf32>
    %cst = arith.constant dense<0.000000e+00> : vector<32x256xf32>
    %6 = tpu.matmul %4, %5, %cst {dimension_numbers = #tpu.dot_dimension_numbers<[1], [0], [0], [1], [0, 0, 1, 1], [], []>} : vector<32x128xf32>, vector<128x256xf32>, vector<32x256xf32> -> vector<32x256xf32>
    %7 = arith.addf %3, %6 : vector<32x256xf32>
    %c0_6 = arith.constant 0 : index
    %c0_7 = arith.constant 0 : index
    %8 = vector.load %arg7[%c0_6, %c0_7] : memref<32x256xf32, #tpu.memory_space<vmem>>, vector<32x256xf32>
    tpu.vector_store %arg7[%c0_6, %c0_7], %7 {strides = array<i32>} : memref<32x256xf32, #tpu.memory_space<vmem>>, vector<32x256xf32>,
    %c17_i32 = arith.constant 17 : i32
    %9 = arith.cmpi eq, %arg1, %c17_i32 : i32
    %10 = arith.extui %9 : i1 to i32
    %c0_i32_8 = arith.constant 0 : i32
    %11 = arith.cmpi ne, %10, %c0_i32_8 : i32
    scf.if %11 {
      %c0_9 = arith.constant 0 : index
      %c0_10 = arith.constant 0 : index
      %12 = vector.load %arg7[%c0_9, %c0_10] : memref<32x256xf32, #tpu.memory_space<vmem>>, vector<32x256xf32>
      %c0_11 = arith.constant 0 : index
      %c0_12 = arith.constant 0 : index
      %13 = vector.load %arg4[%c0_11, %c0_12] : memref<1x256xf32, #tpu.memory_space<vmem>>, vector<1x256xf32>
      %14 = vector.broadcast %13 : vector<1x256xf32> to vector<32x256xf32>
      %15 = arith.addf %12, %14 : vector<32x256xf32>
      %c0_13 = arith.constant 0 : index
      %c0_14 = arith.constant 0 : index
      %16 = vector.load %arg5[%c0_13, %c0_14] : memref<32x256xf32, #tpu.memory_space<vmem>>, vector<32x256xf32>
      %17 = arith.addf %15, %16 : vector<32x256xf32>
      %cst_15 = arith.constant 0.000000e+00 : f32
      %18 = vector.broadcast %cst_15 : f32 to vector<32x256xf32>
      %19 = arith.maximumf %17, %18 : vector<32x256xf32>
      %c0_16 = arith.constant 0 : index
      %c0_17 = arith.constant 0 : index
      %20 = vector.load %arg6[%c0_16, %c0_17] : memref<32x256xf32, #tpu.memory_space<vmem>>, vector<32x256xf32>
      tpu.vector_store %arg6[%c0_16, %c0_17], %19 {strides = array<i32>} : memref<32x256xf32, #tpu.memory_space<vmem>>, vector<32x256xf32>,
    } else {
    }
    return
  }
  func.func @transform_0(%arg0: i32, %arg1: i32) -> (i32, i32) {
    %c0_i32 = arith.constant 0 : i32
    return %arg0, %arg1 : i32, i32
  }
  func.func @transform_1(%arg0: i32, %arg1: i32) -> (i32, i32) {
    %c0_i32 = arith.constant 0 : i32
    %c0_i32_0 = arith.constant 0 : i32
    return %arg1, %c0_i32 : i32, i32
  }
  func.func @transform_2(%arg0: i32, %arg1: i32) -> (i32, i32) {
    %c0_i32 = arith.constant 0 : i32
    %c0_i32_0 = arith.constant 0 : i32
    %c0_i32_1 = arith.constant 0 : i32
    return %c0_i32, %c0_i32_0 : i32, i32
  }
  func.func @transform_3(%arg0: i32, %arg1: i32) -> (i32, i32) {
    %c0_i32 = arith.constant 0 : i32
    %c0_i32_0 = arith.constant 0 : i32
    return %arg0, %c0_i32 : i32, i32
  }
  func.func @transform_4(%arg0: i32, %arg1: i32) -> (i32, i32) {
    %c0_i32 = arith.constant 0 : i32
    %c0_i32_0 = arith.constant 0 : i32
    return %arg0, %c0_i32 : i32, i32
  }
}

module attributes {stable_mosaic.version = 11 : i64} {
  func.func @_gemm_kernel(%arg0: i32, %arg1: i32, %arg2: memref<32x128xf32, #tpu.memory_space<vmem>>, %arg3: memref<128x256xf32, #tpu.memory_space<vmem>>, %arg4: memref<1x256xf32, #tpu.memory_space<vmem>>, %arg5: memref<32x256xf32, #tpu.memory_space<vmem>>, %arg6: memref<32x256xf32, #tpu.memory_space<vmem>>) attributes {dimension_semantics = [#tpu.dimension_semantics<parallel>, #tpu.dimension_semantics<arbitrary>], iteration_bounds = array<i64: 1, 18>, scalar_prefetch = 0 : i64, scratch_operands = 1 : i64, tpu.core_type = #tpu.core_type<tc>, window_params = [{transform_indices = @transform_0, window_bounds = array<i64: 32, 128>}, {transform_indices = @transform_1, window_bounds = array<i64: 128, 256>}, {pipeline_mode = #tpu.pipeline_mode<synchronous>, transform_indices = @transform_2, window_bounds = array<i64: 1, 256>}, {transform_indices = @transform_3, window_bounds = array<i64: 32, 256>}]} {
    %c0_i32 = arith.constant 0 : i32
    %0 = arith.cmpi eq, %arg1, %c0_i32 : i32
    %1 = arith.extui %0 : i1 to i32
    %c0_i32_0 = arith.constant 0 : i32
    %2 = arith.cmpi ne, %1, %c0_i32_0 : i32
    scf.if %2 {
      %cst_9 = arith.constant 0.000000e+00 : f32
      %12 = vector.broadcast %cst_9 : f32 to vector<32x256xf32>
      %c0_10 = arith.constant 0 : index
      %c0_11 = arith.constant 0 : index
      %13 = vector.load %arg6[%c0_10, %c0_11] : memref<32x256xf32, #tpu.memory_space<vmem>>, vector<32x256xf32>
      tpu.vector_store %arg6[%c0_10, %c0_11], %12 {strides = array<i32>} : memref<32x256xf32, #tpu.memory_space<vmem>>, vector<32x256xf32>,
    } else {
    }
    %c0 = arith.constant 0 : index
    %c0_1 = arith.constant 0 : index
    %3 = vector.load %arg6[%c0, %c0_1] : memref<32x256xf32, #tpu.memory_space<vmem>>, vector<32x256xf32>
    %c0_2 = arith.constant 0 : index
    %c0_3 = arith.constant 0 : index
    %4 = vector.load %arg2[%c0_2, %c0_3] : memref<32x128xf32, #tpu.memory_space<vmem>>, vector<32x128xf32>
    %c0_4 = arith.constant 0 : index
    %c0_5 = arith.constant 0 : index
    %5 = vector.load %arg3[%c0_4, %c0_5] : memref<128x256xf32, #tpu.memory_space<vmem>>, vector<128x256xf32>
    %cst = arith.constant dense<0.000000e+00> : vector<32x256xf32>
    %6 = tpu.matmul %4, %5, %cst {dimension_numbers = #tpu.dot_dimension_numbers<[1], [0], [0], [1], [0, 0, 1, 1], [], []>} : vector<32x128xf32>, vector<128x256xf32>, vector<32x256xf32> -> vector<32x256xf32>
    %7 = arith.addf %3, %6 : vector<32x256xf32>
    %c0_6 = arith.constant 0 : index
    %c0_7 = arith.constant 0 : index
    %8 = vector.load %arg6[%c0_6, %c0_7] : memref<32x256xf32, #tpu.memory_space<vmem>>, vector<32x256xf32>
    tpu.vector_store %arg6[%c0_6, %c0_7], %7 {strides = array<i32>} : memref<32x256xf32, #tpu.memory_space<vmem>>, vector<32x256xf32>,
    %c17_i32 = arith.constant 17 : i32
    %9 = arith.cmpi eq, %arg1, %c17_i32 : i32
    %10 = arith.extui %9 : i1 to i32
    %c0_i32_8 = arith.constant 0 : i32
    %11 = arith.cmpi ne, %10, %c0_i32_8 : i32
    scf.if %11 {
      %c0_9 = arith.constant 0 : index
      %c0_10 = arith.constant 0 : index
      %12 = vector.load %arg6[%c0_9, %c0_10] : memref<32x256xf32, #tpu.memory_space<vmem>>, vector<32x256xf32>
      %c0_11 = arith.constant 0 : index
      %c0_12 = arith.constant 0 : index
      %13 = vector.load %arg4[%c0_11, %c0_12] : memref<1x256xf32, #tpu.memory_space<vmem>>, vector<1x256xf32>
      %14 = vector.broadcast %13 : vector<1x256xf32> to vector<32x256xf32>
      %15 = arith.addf %12, %14 : vector<32x256xf32>
      %cst_13 = arith.constant 0.000000e+00 : f32
      %16 = vector.broadcast %cst_13 : f32 to vector<32x256xf32>
      %17 = arith.maximumf %15, %16 : vector<32x256xf32>
      %c0_14 = arith.constant 0 : index
      %c0_15 = arith.constant 0 : index
      %18 = vector.load %arg5[%c0_14, %c0_15] : memref<32x256xf32, #tpu.memory_space<vmem>>, vector<32x256xf32>
      tpu.vector_store %arg5[%c0_14, %c0_15], %17 {strides = array<i32>} : memref<32x256xf32, #tpu.memory_space<vmem>>, vector<32x256xf32>,
    } else {
    }
    return
  }
  func.func @transform_0(%arg0: i32, %arg1: i32) -> (i32, i32) {
    %c0_i32 = arith.constant 0 : i32
    return %arg0, %arg1 : i32, i32
  }
  func.func @transform_1(%arg0: i32, %arg1: i32) -> (i32, i32) {
    %c0_i32 = arith.constant 0 : i32
    %c0_i32_0 = arith.constant 0 : i32
    return %arg1, %c0_i32 : i32, i32
  }
  func.func @transform_2(%arg0: i32, %arg1: i32) -> (i32, i32) {
    %c0_i32 = arith.constant 0 : i32
    %c0_i32_0 = arith.constant 0 : i32
    %c0_i32_1 = arith.constant 0 : i32
    return %c0_i32, %c0_i32_0 : i32, i32
  }
  func.func @transform_3(%arg0: i32, %arg1: i32) -> (i32, i32) {
    %c0_i32 = arith.constant 0 : i32
    %c0_i32_0 = arith.constant 0 : i32
    return %arg0, %c0_i32 : i32, i32
  }
}

module attributes {stable_mosaic.version = 11 : i64} {
  func.func @_gemm_kernel(%arg0: i32, %arg1: i32, %arg2: memref<8x128xf32, #tpu.memory_space<vmem>>, %arg3: memref<128x512xf32, #tpu.memory_space<vmem>>, %arg4: memref<1x512xf32, #tpu.memory_space<vmem>>, %arg5: memref<8x512xf32, #tpu.memory_space<vmem>>, %arg6: memref<8x512xf32, #tpu.memory_space<vmem>>) attributes {dimension_semantics = [#tpu.dimension_semantics<parallel>, #tpu.dimension_semantics<arbitrary>], iteration_bounds = array<i64: 1, 18>, scalar_prefetch = 0 : i64, scratch_operands = 1 : i64, tpu.core_type = #tpu.core_type<tc>, window_params = [{transform_indices = @transform_0, window_bounds = array<i64: 8, 128>}, {transform_indices = @transform_1, window_bounds = array<i64: 128, 512>}, {pipeline_mode = #tpu.pipeline_mode<synchronous>, transform_indices = @transform_2, window_bounds = array<i64: 1, 512>}, {transform_indices = @transform_3, window_bounds = array<i64: 8, 512>}]} {
    %c0_i32 = arith.constant 0 : i32
    %0 = arith.cmpi eq, %arg1, %c0_i32 : i32
    %1 = arith.extui %0 : i1 to i32
    %c0_i32_0 = arith.constant 0 : i32
    %2 = arith.cmpi ne, %1, %c0_i32_0 : i32
    scf.if %2 {
      %cst_9 = arith.constant 0.000000e+00 : f32
      %12 = vector.broadcast %cst_9 : f32 to vector<8x512xf32>
      %c0_10 = arith.constant 0 : index
      %c0_11 = arith.constant 0 : index
      %13 = vector.load %arg6[%c0_10, %c0_11] : memref<8x512xf32, #tpu.memory_space<vmem>>, vector<8x512xf32>
      tpu.vector_store %arg6[%c0_10, %c0_11], %12 {strides = array<i32>} : memref<8x512xf32, #tpu.memory_space<vmem>>, vector<8x512xf32>,
    } else {
    }
    %c0 = arith.constant 0 : index
    %c0_1 = arith.constant 0 : index
    %3 = vector.load %arg6[%c0, %c0_1] : memref<8x512xf32, #tpu.memory_space<vmem>>, vector<8x512xf32>
    %c0_2 = arith.constant 0 : index
    %c0_3 = arith.constant 0 : index
    %4 = vector.load %arg2[%c0_2, %c0_3] : memref<8x128xf32, #tpu.memory_space<vmem>>, vector<8x128xf32>
    %c0_4 = arith.constant 0 : index
    %c0_5 = arith.constant 0 : index
    %5 = vector.load %arg3[%c0_4, %c0_5] : memref<128x512xf32, #tpu.memory_space<vmem>>, vector<128x512xf32>
    %cst = arith.constant dense<0.000000e+00> : vector<8x512xf32>
    %6 = tpu.matmul %4, %5, %cst {dimension_numbers = #tpu.dot_dimension_numbers<[1], [0], [0], [1], [0, 0, 1, 1], [], []>} : vector<8x128xf32>, vector<128x512xf32>, vector<8x512xf32> -> vector<8x512xf32>
    %7 = arith.addf %3, %6 : vector<8x512xf32>
    %c0_6 = arith.constant 0 : index
    %c0_7 = arith.constant 0 : index
    %8 = vector.load %arg6[%c0_6, %c0_7] : memref<8x512xf32, #tpu.memory_space<vmem>>, vector<8x512xf32>
    tpu.vector_store %arg6[%c0_6, %c0_7], %7 {strides = array<i32>} : memref<8x512xf32, #tpu.memory_space<vmem>>, vector<8x512xf32>,
    %c17_i32 = arith.constant 17 : i32
    %9 = arith.cmpi eq, %arg1, %c17_i32 : i32
    %10 = arith.extui %9 : i1 to i32
    %c0_i32_8 = arith.constant 0 : i32
    %11 = arith.cmpi ne, %10, %c0_i32_8 : i32
    scf.if %11 {
      %c0_9 = arith.constant 0 : index
      %c0_10 = arith.constant 0 : index
      %12 = vector.load %arg6[%c0_9, %c0_10] : memref<8x512xf32, #tpu.memory_space<vmem>>, vector<8x512xf32>
      %c0_11 = arith.constant 0 : index
      %c0_12 = arith.constant 0 : index
      %13 = vector.load %arg4[%c0_11, %c0_12] : memref<1x512xf32, #tpu.memory_space<vmem>>, vector<1x512xf32>
      %14 = vector.broadcast %13 : vector<1x512xf32> to vector<8x512xf32>
      %15 = arith.addf %12, %14 : vector<8x512xf32>
      %cst_13 = arith.constant 0.000000e+00 : f32
      %16 = vector.broadcast %cst_13 : f32 to vector<8x512xf32>
      %17 = arith.maximumf %15, %16 : vector<8x512xf32>
      %c0_14 = arith.constant 0 : index
      %c0_15 = arith.constant 0 : index
      %18 = vector.load %arg5[%c0_14, %c0_15] : memref<8x512xf32, #tpu.memory_space<vmem>>, vector<8x512xf32>
      tpu.vector_store %arg5[%c0_14, %c0_15], %17 {strides = array<i32>} : memref<8x512xf32, #tpu.memory_space<vmem>>, vector<8x512xf32>,
    } else {
    }
    return
  }
  func.func @transform_0(%arg0: i32, %arg1: i32) -> (i32, i32) {
    %c0_i32 = arith.constant 0 : i32
    return %arg0, %arg1 : i32, i32
  }
  func.func @transform_1(%arg0: i32, %arg1: i32) -> (i32, i32) {
    %c0_i32 = arith.constant 0 : i32
    %c0_i32_0 = arith.constant 0 : i32
    return %arg1, %c0_i32 : i32, i32
  }
  func.func @transform_2(%arg0: i32, %arg1: i32) -> (i32, i32) {
    %c0_i32 = arith.constant 0 : i32
    %c0_i32_0 = arith.constant 0 : i32
    %c0_i32_1 = arith.constant 0 : i32
    return %c0_i32, %c0_i32_0 : i32, i32
  }
  func.func @transform_3(%arg0: i32, %arg1: i32) -> (i32, i32) {
    %c0_i32 = arith.constant 0 : i32
    %c0_i32_0 = arith.constant 0 : i32
    return %arg0, %c0_i32 : i32, i32
  }
}

module attributes {stable_mosaic.version = 11 : i64} {
  func.func @_gemm_kernel(%arg0: i32, %arg1: i32, %arg2: memref<8x128xf32, #tpu.memory_space<vmem>>, %arg3: memref<128x512xf32, #tpu.memory_space<vmem>>, %arg4: memref<1x512xf32, #tpu.memory_space<vmem>>, %arg5: memref<8x512xf32, #tpu.memory_space<vmem>>, %arg6: memref<8x512xf32, #tpu.memory_space<vmem>>) attributes {dimension_semantics = [#tpu.dimension_semantics<parallel>, #tpu.dimension_semantics<arbitrary>], iteration_bounds = array<i64: 1, 2>, scalar_prefetch = 0 : i64, scratch_operands = 1 : i64, tpu.core_type = #tpu.core_type<tc>, window_params = [{transform_indices = @transform_0, window_bounds = array<i64: 8, 128>}, {transform_indices = @transform_1, window_bounds = array<i64: 128, 512>}, {pipeline_mode = #tpu.pipeline_mode<synchronous>, transform_indices = @transform_2, window_bounds = array<i64: 1, 512>}, {transform_indices = @transform_3, window_bounds = array<i64: 8, 512>}]} {
    %c0_i32 = arith.constant 0 : i32
    %0 = arith.cmpi eq, %arg1, %c0_i32 : i32
    %1 = arith.extui %0 : i1 to i32
    %c0_i32_0 = arith.constant 0 : i32
    %2 = arith.cmpi ne, %1, %c0_i32_0 : i32
    scf.if %2 {
      %cst_9 = arith.constant 0.000000e+00 : f32
      %12 = vector.broadcast %cst_9 : f32 to vector<8x512xf32>
      %c0_10 = arith.constant 0 : index
      %c0_11 = arith.constant 0 : index
      %13 = vector.load %arg6[%c0_10, %c0_11] : memref<8x512xf32, #tpu.memory_space<vmem>>, vector<8x512xf32>
      tpu.vector_store %arg6[%c0_10, %c0_11], %12 {strides = array<i32>} : memref<8x512xf32, #tpu.memory_space<vmem>>, vector<8x512xf32>,
    } else {
    }
    %c0 = arith.constant 0 : index
    %c0_1 = arith.constant 0 : index
    %3 = vector.load %arg6[%c0, %c0_1] : memref<8x512xf32, #tpu.memory_space<vmem>>, vector<8x512xf32>
    %c0_2 = arith.constant 0 : index
    %c0_3 = arith.constant 0 : index
    %4 = vector.load %arg2[%c0_2, %c0_3] : memref<8x128xf32, #tpu.memory_space<vmem>>, vector<8x128xf32>
    %c0_4 = arith.constant 0 : index
    %c0_5 = arith.constant 0 : index
    %5 = vector.load %arg3[%c0_4, %c0_5] : memref<128x512xf32, #tpu.memory_space<vmem>>, vector<128x512xf32>
    %cst = arith.constant dense<0.000000e+00> : vector<8x512xf32>
    %6 = tpu.matmul %4, %5, %cst {dimension_numbers = #tpu.dot_dimension_numbers<[1], [0], [0], [1], [0, 0, 1, 1], [], []>} : vector<8x128xf32>, vector<128x512xf32>, vector<8x512xf32> -> vector<8x512xf32>
    %7 = arith.addf %3, %6 : vector<8x512xf32>
    %c0_6 = arith.constant 0 : index
    %c0_7 = arith.constant 0 : index
    %8 = vector.load %arg6[%c0_6, %c0_7] : memref<8x512xf32, #tpu.memory_space<vmem>>, vector<8x512xf32>
    tpu.vector_store %arg6[%c0_6, %c0_7], %7 {strides = array<i32>} : memref<8x512xf32, #tpu.memory_space<vmem>>, vector<8x512xf32>,
    %c1_i32 = arith.constant 1 : i32
    %9 = arith.cmpi eq, %arg1, %c1_i32 : i32
    %10 = arith.extui %9 : i1 to i32
    %c0_i32_8 = arith.constant 0 : i32
    %11 = arith.cmpi ne, %10, %c0_i32_8 : i32
    scf.if %11 {
      %c0_9 = arith.constant 0 : index
      %c0_10 = arith.constant 0 : index
      %12 = vector.load %arg6[%c0_9, %c0_10] : memref<8x512xf32, #tpu.memory_space<vmem>>, vector<8x512xf32>
      %c0_11 = arith.constant 0 : index
      %c0_12 = arith.constant 0 : index
      %13 = vector.load %arg4[%c0_11, %c0_12] : memref<1x512xf32, #tpu.memory_space<vmem>>, vector<1x512xf32>
      %14 = vector.broadcast %13 : vector<1x512xf32> to vector<8x512xf32>
      %15 = arith.addf %12, %14 : vector<8x512xf32>
      %c0_13 = arith.constant 0 : index
      %c0_14 = arith.constant 0 : index
      %16 = vector.load %arg5[%c0_13, %c0_14] : memref<8x512xf32, #tpu.memory_space<vmem>>, vector<8x512xf32>
      tpu.vector_store %arg5[%c0_13, %c0_14], %15 {strides = array<i32>} : memref<8x512xf32, #tpu.memory_space<vmem>>, vector<8x512xf32>,
    } else {
    }
    return
  }
  func.func @transform_0(%arg0: i32, %arg1: i32) -> (i32, i32) {
    %c0_i32 = arith.constant 0 : i32
    return %arg0, %arg1 : i32, i32
  }
  func.func @transform_1(%arg0: i32, %arg1: i32) -> (i32, i32) {
    %c0_i32 = arith.constant 0 : i32
    %c0_i32_0 = arith.constant 0 : i32
    return %arg1, %c0_i32 : i32, i32
  }
  func.func @transform_2(%arg0: i32, %arg1: i32) -> (i32, i32) {
    %c0_i32 = arith.constant 0 : i32
    %c0_i32_0 = arith.constant 0 : i32
    %c0_i32_1 = arith.constant 0 : i32
    return %c0_i32, %c0_i32_0 : i32, i32
  }
  func.func @transform_3(%arg0: i32, %arg1: i32) -> (i32, i32) {
    %c0_i32 = arith.constant 0 : i32
    %c0_i32_0 = arith.constant 0 : i32
    return %arg0, %c0_i32 : i32, i32
  }
}

module attributes {stable_mosaic.version = 11 : i64} {
  func.func @_gemm_residual_kernel(%arg0: i32, %arg1: i32, %arg2: memref<8x128xf32, #tpu.memory_space<vmem>>, %arg3: memref<128x512xf32, #tpu.memory_space<vmem>>, %arg4: memref<1x512xf32, #tpu.memory_space<vmem>>, %arg5: memref<8x512xf32, #tpu.memory_space<vmem>>, %arg6: memref<8x512xf32, #tpu.memory_space<vmem>>, %arg7: memref<8x512xf32, #tpu.memory_space<vmem>>) attributes {dimension_semantics = [#tpu.dimension_semantics<parallel>, #tpu.dimension_semantics<arbitrary>], iteration_bounds = array<i64: 1, 36>, scalar_prefetch = 0 : i64, scratch_operands = 1 : i64, tpu.core_type = #tpu.core_type<tc>, window_params = [{transform_indices = @transform_0, window_bounds = array<i64: 8, 128>}, {transform_indices = @transform_1, window_bounds = array<i64: 128, 512>}, {pipeline_mode = #tpu.pipeline_mode<synchronous>, transform_indices = @transform_2, window_bounds = array<i64: 1, 512>}, {transform_indices = @transform_3, window_bounds = array<i64: 8, 512>}, {transform_indices = @transform_4, window_bounds = array<i64: 8, 512>}]} {
    %c0_i32 = arith.constant 0 : i32
    %0 = arith.cmpi eq, %arg1, %c0_i32 : i32
    %1 = arith.extui %0 : i1 to i32
    %c0_i32_0 = arith.constant 0 : i32
    %2 = arith.cmpi ne, %1, %c0_i32_0 : i32
    scf.if %2 {
      %cst_9 = arith.constant 0.000000e+00 : f32
      %12 = vector.broadcast %cst_9 : f32 to vector<8x512xf32>
      %c0_10 = arith.constant 0 : index
      %c0_11 = arith.constant 0 : index
      %13 = vector.load %arg7[%c0_10, %c0_11] : memref<8x512xf32, #tpu.memory_space<vmem>>, vector<8x512xf32>
      tpu.vector_store %arg7[%c0_10, %c0_11], %12 {strides = array<i32>} : memref<8x512xf32, #tpu.memory_space<vmem>>, vector<8x512xf32>,
    } else {
    }
    %c0 = arith.constant 0 : index
    %c0_1 = arith.constant 0 : index
    %3 = vector.load %arg7[%c0, %c0_1] : memref<8x512xf32, #tpu.memory_space<vmem>>, vector<8x512xf32>
    %c0_2 = arith.constant 0 : index
    %c0_3 = arith.constant 0 : index
    %4 = vector.load %arg2[%c0_2, %c0_3] : memref<8x128xf32, #tpu.memory_space<vmem>>, vector<8x128xf32>
    %c0_4 = arith.constant 0 : index
    %c0_5 = arith.constant 0 : index
    %5 = vector.load %arg3[%c0_4, %c0_5] : memref<128x512xf32, #tpu.memory_space<vmem>>, vector<128x512xf32>
    %cst = arith.constant dense<0.000000e+00> : vector<8x512xf32>
    %6 = tpu.matmul %4, %5, %cst {dimension_numbers = #tpu.dot_dimension_numbers<[1], [0], [0], [1], [0, 0, 1, 1], [], []>} : vector<8x128xf32>, vector<128x512xf32>, vector<8x512xf32> -> vector<8x512xf32>
    %7 = arith.addf %3, %6 : vector<8x512xf32>
    %c0_6 = arith.constant 0 : index
    %c0_7 = arith.constant 0 : index
    %8 = vector.load %arg7[%c0_6, %c0_7] : memref<8x512xf32, #tpu.memory_space<vmem>>, vector<8x512xf32>
    tpu.vector_store %arg7[%c0_6, %c0_7], %7 {strides = array<i32>} : memref<8x512xf32, #tpu.memory_space<vmem>>, vector<8x512xf32>,
    %c35_i32 = arith.constant 35 : i32
    %9 = arith.cmpi eq, %arg1, %c35_i32 : i32
    %10 = arith.extui %9 : i1 to i32
    %c0_i32_8 = arith.constant 0 : i32
    %11 = arith.cmpi ne, %10, %c0_i32_8 : i32
    scf.if %11 {
      %c0_9 = arith.constant 0 : index
      %c0_10 = arith.constant 0 : index
      %12 = vector.load %arg7[%c0_9, %c0_10] : memref<8x512xf32, #tpu.memory_space<vmem>>, vector<8x512xf32>
      %c0_11 = arith.constant 0 : index
      %c0_12 = arith.constant 0 : index
      %13 = vector.load %arg4[%c0_11, %c0_12] : memref<1x512xf32, #tpu.memory_space<vmem>>, vector<1x512xf32>
      %14 = vector.broadcast %13 : vector<1x512xf32> to vector<8x512xf32>
      %15 = arith.addf %12, %14 : vector<8x512xf32>
      %c0_13 = arith.constant 0 : index
      %c0_14 = arith.constant 0 : index
      %16 = vector.load %arg5[%c0_13, %c0_14] : memref<8x512xf32, #tpu.memory_space<vmem>>, vector<8x512xf32>
      %17 = arith.addf %15, %16 : vector<8x512xf32>
      %cst_15 = arith.constant 0.000000e+00 : f32
      %18 = vector.broadcast %cst_15 : f32 to vector<8x512xf32>
      %19 = arith.maximumf %17, %18 : vector<8x512xf32>
      %c0_16 = arith.constant 0 : index
      %c0_17 = arith.constant 0 : index
      %20 = vector.load %arg6[%c0_16, %c0_17] : memref<8x512xf32, #tpu.memory_space<vmem>>, vector<8x512xf32>
      tpu.vector_store %arg6[%c0_16, %c0_17], %19 {strides = array<i32>} : memref<8x512xf32, #tpu.memory_space<vmem>>, vector<8x512xf32>,
    } else {
    }
    return
  }
  func.func @transform_0(%arg0: i32, %arg1: i32) -> (i32, i32) {
    %c0_i32 = arith.constant 0 : i32
    return %arg0, %arg1 : i32, i32
  }
  func.func @transform_1(%arg0: i32, %arg1: i32) -> (i32, i32) {
    %c0_i32 = arith.constant 0 : i32
    %c0_i32_0 = arith.constant 0 : i32
    return %arg1, %c0_i32 : i32, i32
  }
  func.func @transform_2(%arg0: i32, %arg1: i32) -> (i32, i32) {
    %c0_i32 = arith.constant 0 : i32
    %c0_i32_0 = arith.constant 0 : i32
    %c0_i32_1 = arith.constant 0 : i32
    return %c0_i32, %c0_i32_0 : i32, i32
  }
  func.func @transform_3(%arg0: i32, %arg1: i32) -> (i32, i32) {
    %c0_i32 = arith.constant 0 : i32
    %c0_i32_0 = arith.constant 0 : i32
    return %arg0, %c0_i32 : i32, i32
  }
  func.func @transform_4(%arg0: i32, %arg1: i32) -> (i32, i32) {
    %c0_i32 = arith.constant 0 : i32
    %c0_i32_0 = arith.constant 0 : i32
    return %arg0, %c0_i32 : i32, i32
  }
}

module attributes {stable_mosaic.version = 11 : i64} {
  func.func @_gemm_kernel(%arg0: i32, %arg1: i32, %arg2: memref<8x128xf32, #tpu.memory_space<vmem>>, %arg3: memref<128x512xf32, #tpu.memory_space<vmem>>, %arg4: memref<1x512xf32, #tpu.memory_space<vmem>>, %arg5: memref<8x512xf32, #tpu.memory_space<vmem>>, %arg6: memref<8x512xf32, #tpu.memory_space<vmem>>) attributes {dimension_semantics = [#tpu.dimension_semantics<parallel>, #tpu.dimension_semantics<arbitrary>], iteration_bounds = array<i64: 1, 36>, scalar_prefetch = 0 : i64, scratch_operands = 1 : i64, tpu.core_type = #tpu.core_type<tc>, window_params = [{transform_indices = @transform_0, window_bounds = array<i64: 8, 128>}, {transform_indices = @transform_1, window_bounds = array<i64: 128, 512>}, {pipeline_mode = #tpu.pipeline_mode<synchronous>, transform_indices = @transform_2, window_bounds = array<i64: 1, 512>}, {transform_indices = @transform_3, window_bounds = array<i64: 8, 512>}]} {
    %c0_i32 = arith.constant 0 : i32
    %0 = arith.cmpi eq, %arg1, %c0_i32 : i32
    %1 = arith.extui %0 : i1 to i32
    %c0_i32_0 = arith.constant 0 : i32
    %2 = arith.cmpi ne, %1, %c0_i32_0 : i32
    scf.if %2 {
      %cst_9 = arith.constant 0.000000e+00 : f32
      %12 = vector.broadcast %cst_9 : f32 to vector<8x512xf32>
      %c0_10 = arith.constant 0 : index
      %c0_11 = arith.constant 0 : index
      %13 = vector.load %arg6[%c0_10, %c0_11] : memref<8x512xf32, #tpu.memory_space<vmem>>, vector<8x512xf32>
      tpu.vector_store %arg6[%c0_10, %c0_11], %12 {strides = array<i32>} : memref<8x512xf32, #tpu.memory_space<vmem>>, vector<8x512xf32>,
    } else {
    }
    %c0 = arith.constant 0 : index
    %c0_1 = arith.constant 0 : index
    %3 = vector.load %arg6[%c0, %c0_1] : memref<8x512xf32, #tpu.memory_space<vmem>>, vector<8x512xf32>
    %c0_2 = arith.constant 0 : index
    %c0_3 = arith.constant 0 : index
    %4 = vector.load %arg2[%c0_2, %c0_3] : memref<8x128xf32, #tpu.memory_space<vmem>>, vector<8x128xf32>
    %c0_4 = arith.constant 0 : index
    %c0_5 = arith.constant 0 : index
    %5 = vector.load %arg3[%c0_4, %c0_5] : memref<128x512xf32, #tpu.memory_space<vmem>>, vector<128x512xf32>
    %cst = arith.constant dense<0.000000e+00> : vector<8x512xf32>
    %6 = tpu.matmul %4, %5, %cst {dimension_numbers = #tpu.dot_dimension_numbers<[1], [0], [0], [1], [0, 0, 1, 1], [], []>} : vector<8x128xf32>, vector<128x512xf32>, vector<8x512xf32> -> vector<8x512xf32>
    %7 = arith.addf %3, %6 : vector<8x512xf32>
    %c0_6 = arith.constant 0 : index
    %c0_7 = arith.constant 0 : index
    %8 = vector.load %arg6[%c0_6, %c0_7] : memref<8x512xf32, #tpu.memory_space<vmem>>, vector<8x512xf32>
    tpu.vector_store %arg6[%c0_6, %c0_7], %7 {strides = array<i32>} : memref<8x512xf32, #tpu.memory_space<vmem>>, vector<8x512xf32>,
    %c35_i32 = arith.constant 35 : i32
    %9 = arith.cmpi eq, %arg1, %c35_i32 : i32
    %10 = arith.extui %9 : i1 to i32
    %c0_i32_8 = arith.constant 0 : i32
    %11 = arith.cmpi ne, %10, %c0_i32_8 : i32
    scf.if %11 {
      %c0_9 = arith.constant 0 : index
      %c0_10 = arith.constant 0 : index
      %12 = vector.load %arg6[%c0_9, %c0_10] : memref<8x512xf32, #tpu.memory_space<vmem>>, vector<8x512xf32>
      %c0_11 = arith.constant 0 : index
      %c0_12 = arith.constant 0 : index
      %13 = vector.load %arg4[%c0_11, %c0_12] : memref<1x512xf32, #tpu.memory_space<vmem>>, vector<1x512xf32>
      %14 = vector.broadcast %13 : vector<1x512xf32> to vector<8x512xf32>
      %15 = arith.addf %12, %14 : vector<8x512xf32>
      %cst_13 = arith.constant 0.000000e+00 : f32
      %16 = vector.broadcast %cst_13 : f32 to vector<8x512xf32>
      %17 = arith.maximumf %15, %16 : vector<8x512xf32>
      %c0_14 = arith.constant 0 : index
      %c0_15 = arith.constant 0 : index
      %18 = vector.load %arg5[%c0_14, %c0_15] : memref<8x512xf32, #tpu.memory_space<vmem>>, vector<8x512xf32>
      tpu.vector_store %arg5[%c0_14, %c0_15], %17 {strides = array<i32>} : memref<8x512xf32, #tpu.memory_space<vmem>>, vector<8x512xf32>,
    } else {
    }
    return
  }
  func.func @transform_0(%arg0: i32, %arg1: i32) -> (i32, i32) {
    %c0_i32 = arith.constant 0 : i32
    return %arg0, %arg1 : i32, i32
  }
  func.func @transform_1(%arg0: i32, %arg1: i32) -> (i32, i32) {
    %c0_i32 = arith.constant 0 : i32
    %c0_i32_0 = arith.constant 0 : i32
    return %arg1, %c0_i32 : i32, i32
  }
  func.func @transform_2(%arg0: i32, %arg1: i32) -> (i32, i32) {
    %c0_i32 = arith.constant 0 : i32
    %c0_i32_0 = arith.constant 0 : i32
    %c0_i32_1 = arith.constant 0 : i32
    return %c0_i32, %c0_i32_0 : i32, i32
  }
  func.func @transform_3(%arg0: i32, %arg1: i32) -> (i32, i32) {
    %c0_i32 = arith.constant 0 : i32
    %c0_i32_0 = arith.constant 0 : i32
    return %arg0, %c0_i32 : i32, i32
  }
}

module attributes {stable_mosaic.version = 11 : i64} {
  func.func @_head_kernel(%arg0: memref<2x4x512xf32, #tpu.memory_space<vmem>>, %arg1: memref<512x128xf32, #tpu.memory_space<vmem>>, %arg2: memref<1x128xf32, #tpu.memory_space<vmem>>, %arg3: memref<2x128xf32, #tpu.memory_space<vmem>>) attributes {dimension_semantics = [], scalar_prefetch = 0 : i64, scratch_operands = 0 : i64, tpu.core_type = #tpu.core_type<tc>} {
    %c0 = arith.constant 0 : index
    %c0_0 = arith.constant 0 : index
    %c0_1 = arith.constant 0 : index
    %0 = vector.load %arg0[%c0, %c0_0, %c0_1] : memref<2x4x512xf32, #tpu.memory_space<vmem>>, vector<2x4x512xf32>
    %cst = arith.constant dense<0.000000e+00> : vector<2x512xf32>
    %1 = vector.multi_reduction <add>, %0, %cst [1] : vector<2x4x512xf32> to vector<2x512xf32>
    %cst_2 = arith.constant 2.500000e-01 : f32
    %2 = vector.broadcast %cst_2 : f32 to vector<2x512xf32>
    %3 = arith.mulf %1, %2 : vector<2x512xf32>
    %c0_3 = arith.constant 0 : index
    %c0_4 = arith.constant 0 : index
    %4 = vector.load %arg1[%c0_3, %c0_4] : memref<512x128xf32, #tpu.memory_space<vmem>>, vector<512x128xf32>
    %cst_5 = arith.constant dense<0.000000e+00> : vector<2x128xf32>
    %5 = tpu.matmul %3, %4, %cst_5 {dimension_numbers = #tpu.dot_dimension_numbers<[1], [0], [0], [1], [0, 0, 1, 1], [], []>} : vector<2x512xf32>, vector<512x128xf32>, vector<2x128xf32> -> vector<2x128xf32>
    %c0_6 = arith.constant 0 : index
    %c0_7 = arith.constant 0 : index
    %6 = vector.load %arg2[%c0_6, %c0_7] : memref<1x128xf32, #tpu.memory_space<vmem>>, vector<1x128xf32>
    %7 = vector.broadcast %6 : vector<1x128xf32> to vector<2x128xf32>
    %8 = arith.addf %5, %7 : vector<2x128xf32>
    %cst_8 = arith.constant dense<0xFF800000> : vector<2xf32>
    %9 = vector.multi_reduction <maximumf>, %8, %cst_8 [1] : vector<2x128xf32> to vector<2xf32>
    %10 = vector.shape_cast %9 : vector<2xf32> to vector<2x1xf32>
    %11 = vector.broadcast %10 : vector<2x1xf32> to vector<2x128xf32>
    %12 = arith.subf %8, %11 : vector<2x128xf32>
    %13 = math.exp %12 : vector<2x128xf32>
    %cst_9 = arith.constant dense<0.000000e+00> : vector<2xf32>
    %14 = vector.multi_reduction <add>, %13, %cst_9 [1] : vector<2x128xf32> to vector<2xf32>
    %15 = vector.shape_cast %14 : vector<2xf32> to vector<2x1xf32>
    %16 = math.log %15 : vector<2x1xf32>
    %17 = vector.broadcast %16 : vector<2x1xf32> to vector<2x128xf32>
    %18 = arith.subf %12, %17 : vector<2x128xf32>
    %c0_10 = arith.constant 0 : index
    %c0_11 = arith.constant 0 : index
    %19 = vector.load %arg3[%c0_10, %c0_11] : memref<2x128xf32, #tpu.memory_space<vmem>>, vector<2x128xf32>
    tpu.vector_store %arg3[%c0_10, %c0_11], %18 {strides = array<i32>} : memref<2x128xf32, #tpu.memory_space<vmem>>, vector<2x128xf32>,
    return
  }
}

</mosaic_0001>

<bundles_post_ra>
// kernel: resnet18_forward.21
= control target key start
LH: loop header
LB: loop body
LE: loop exit
PB: predicated region body
PF: predicated region fallthrough
CT: control target
= control target key end

     0   :  { %s842_s12 = smov 0   ;;  %s844_s13 = smov 0   ;;  %s1044_s0 = inlined_call_operand.vmem [shape: f32[512,128], index: 0, kind: input, shape index: {}]   ;;  %s1045_s1 = inlined_call_operand.vmem [shape: f32[128,64], index: 1, kind: input, shape index: {}]   ;;  %s1046_s2 = inlined_call_operand.vmem [shape: f32[1,64], index: 2, kind: input, shape index: {}]   ;;  %s1047_s3 = inlined_call_operand.vmem [shape: f32[512,64], index: 3, kind: output, shape index: {}]  }
   0x1   :  { %s846_s14 = smov 0  }
   0x2 LB: > { %s25_s15 = sadd.s32 1, %s815_s13  ;;  %p628_p0 = scmp.ge.s32.totalorder %s819_s14, 1  ;;  %s819_s14 = sphi %s846_s14, %s13_s14   ;;  %s815_s13 = sphi %s844_s13, %s1050_s13   ;;  %s811_s12 = sphi %s842_s12, %s1049_s12  }
   0x3   : > { %p27_p1 = scmp.ge.s32.totalorder %s25_s15, 4  ;;  %p166_p2 = scmp.lt.s32.totalorder %s819_s14, 5 }
   0x5   : > { %s1052_s15 = smov (%p27_p1, %s25_s15), 0  ;;  %p167_p3 = pnand %p628_p0, %p166_p2 }
   0x6   : > { %v272_v0 = vld [vmem:[%s1045_s1] sm:$0xff] (!%p167_p3)  ;;  %v273_v1 = vld [vmem:[%s1045_s1 + $0x8] sm:$0xff] (!%p167_p3)  ;;  %v274_v2 = vld [vmem:[%s1045_s1 + $0x10] sm:$0xff] (!%p167_p3)  ;;  %s629_s22 = sshll.u32 (!%p167_p3), %s811_s12, 4  ;;  %vm223_vm0 = vcmask (!%p167_p3), 523264   ;;  %v821_v5 = vmov (!%p167_p3), 0.0  }
   0x7   : > { %170 = sbr.rel (%p167_p3) target bundleno = 284 (0x11c), region = 32  ;;  %v724_v3 = vpack.c.bf16 (!%p167_p3), %v273_v1, %v272_v0  ;;  %v275_v4 = vld [vmem:[%s1045_s1 + $0x18] sm:$0xff] (!%p167_p3)  ;;  %p875_p4 = scmp.lt.s32.totalorder (!%p167_p3), %s629_s22, 63  ;;  %225 = vst.msk [vmem:[#allocation2 + $0x8] sm:$0xff] (!%p167_p3), %vm223_vm0, %v821_v5  ;;  %224 = vst.msk [vmem:[#allocation2] sm:$0xff] (!%p167_p3), %vm223_vm0, %v821_v5  ;;  %v276_v7 = vld [vmem:[%s1045_s1 + $0x20] sm:$0xff] (!%p167_p3) }
   0x8   : > { %226 = vst.msk [vmem:[#allocation2 + $0x10] sm:$0xff] (!%p167_p3), %vm223_vm0, %v821_v5  ;;  %227 = vst.msk [vmem:[#allocation2 + $0x18] sm:$0xff] (!%p167_p3), %vm223_vm0, %v821_v5  ;;  %v728_v6 = vpack.c.bf16 (!%p167_p3), %v275_v4, %v274_v2  ;;  %v277_v8 = vld [vmem:[%s1045_s1 + $0x28] sm:$0xff] (!%p167_p3)  ;;  %v278_v10 = vld [vmem:[%s1045_s1 + $0x30] sm:$0xff] (!%p167_p3) }
   0x9   : > { %228 = vst.msk [vmem:[#allocation2 + $0x20] sm:$0xff] (!%p167_p3), %vm223_vm0, %v821_v5  ;;  %229 = vst.msk [vmem:[#allocation2 + $0x28] sm:$0xff] (!%p167_p3), %vm223_vm0, %v821_v5  ;;  %725 = vmatprep.subr.bf16.mxu0 (!%p167_p3), %v724_v3  ;;  %756 = vmatprep.subr.bf16.mxu1 (!%p167_p3), %v724_v3  ;;  %v732_v9 = vpack.c.bf16 (!%p167_p3), %v277_v8, %v276_v7  ;;  %v279_v11 = vld [vmem:[%s1045_s1 + $0x38] sm:$0xff] (!%p167_p3)  ;;  %v280_v15 = vld [vmem:[%s1045_s1 + $0x40] sm:$0xff] (!%p167_p3) }
   0xa   : > { %230 = vst.msk [vmem:[#allocation2 + $0x30] sm:$0xff] (!%p167_p3), %vm223_vm0, %v821_v5  ;;  %231 = vst.msk [vmem:[#allocation2 + $0x38] sm:$0xff] (!%p167_p3), %vm223_vm0, %v821_v5  ;;  %727 = vmatpush3.bf16.msra.mxu0 (!%p167_p3), %v724_v3  ;;  %764 = vmatpush3.bf16.msra.mxu1 (!%p167_p3), %v724_v3  ;;  %v736_v14 = vpack.c.bf16 (!%p167_p3), %v279_v11, %v278_v10  ;;  %v281_v16 = vld [vmem:[%s1045_s1 + $0x48] sm:$0xff] (!%p167_p3)  ;;  %v282_v18 = vld [vmem:[%s1045_s1 + $0x50] sm:$0xff] (!%p167_p3) }
   0xb   : > { %232 = vst.msk [vmem:[#allocation2 + $0x40] sm:$0xff] (!%p167_p3), %vm223_vm0, %v821_v5  ;;  %233 = vst.msk [vmem:[#allocation2 + $0x48] sm:$0xff] (!%p167_p3), %vm223_vm0, %v821_v5  ;;  %729 = vmatprep.subr.bf16.mxu0 (!%p167_p3), %v728_v6  ;;  %757 = vmatprep.subr.bf16.mxu1 (!%p167_p3), %v728_v6  ;;  %v740_v17 = vpack.c.bf16 (!%p167_p3), %v281_v16, %v280_v15  ;;  %v283_v19 = vld [vmem:[%s1045_s1 + $0x58] sm:$0xff] (!%p167_p3)  ;;  %v284_v21 = vld [vmem:[%s1045_s1 + $0x60] sm:$0xff] (!%p167_p3) }
   0xc   : > { %234 = vst.msk [vmem:[#allocation2 + $0x50] sm:$0xff] (!%p167_p3), %vm223_vm0, %v821_v5  ;;  %235 = vst.msk [vmem:[#allocation2 + $0x58] sm:$0xff] (!%p167_p3), %vm223_vm0, %v821_v5  ;;  %v744_v20 = vpack.c.bf16 (!%p167_p3), %v283_v19, %v282_v18  ;;  %v285_v22 = vld [vmem:[%s1045_s1 + $0x68] sm:$0xff] (!%p167_p3)  ;;  %v286_v24 = vld [vmem:[%s1045_s1 + $0x70] sm:$0xff] (!%p167_p3) }
   0xd   : > { %236 = vst.msk [vmem:[#allocation2 + $0x60] sm:$0xff] (!%p167_p3), %vm223_vm0, %v821_v5  ;;  %237 = vst.msk [vmem:[#allocation2 + $0x68] sm:$0xff] (!%p167_p3), %vm223_vm0, %v821_v5  ;;  %v748_v23 = vpack.c.bf16 (!%p167_p3), %v285_v22, %v284_v21  ;;  %v287_v25 = vld [vmem:[%s1045_s1 + $0x78] sm:$0xff] (!%p167_p3) }
   0xe   : > { %238 = vst.msk [vmem:[#allocation2 + $0x70] sm:$0xff] %vm223_vm0, %v821_v5  ;;  %239 = vst.msk [vmem:[#allocation2 + $0x78] sm:$0xff] %vm223_vm0, %v821_v5  ;;  %s1054_s22 = smov (!%p875_p4, %s629_s22), 63  ;;  %731 = vmatpush3.bf16.msra.mxu0 %v728_v6  ;;  %765 = vmatpush3.bf16.msra.mxu1 %v728_v6  ;;  %v752_v26 = vpack.c.bf16 %v287_v25, %v286_v24  ;;  %v241_v41 = vld [vmem:[#allocation2 + $0x8] sm:$0xff]  ;;  %v240_v43 = vld [vmem:[#allocation2] sm:$0xff] }
   0xf   : > { %s630_s30 = sshll.u32 %s1054_s22, 3  ;;  %733 = vmatprep.subr.bf16.mxu0 %v732_v9  ;;  %758 = vmatprep.subr.bf16.mxu1 %v732_v9  ;;  %v243_v53 = vld [vmem:[#allocation2 + $0x18] sm:$0xff]  ;;  %v242_v55 = vld [vmem:[#allocation2 + $0x10] sm:$0xff]  ;;  %v968_v5 = vld [vmem:[%s1046_s2] ss:$0 sm:$0xff] }
  0x10   : > { %s917_s10 = scalar_lea.vmem %s1044_s0, %s630_s30  ;;  %v245_v1 = vld [vmem:[#allocation2 + $0x28] sm:$0xff]  ;;  %v244_v3 = vld [vmem:[#allocation2 + $0x20] sm:$0xff]  ;;  %s981_s9 = scalar_lea.vmem %s1047_s3, %s630_s30 }
  0x11   : > { %v256_v12 = vld [vmem:[%s917_s10] sm:$0xff]  ;;  %v257_v27 = vld [vmem:[%s917_s10 + $0x8] sm:$0xff]  ;;  %v258_v29 = vld [vmem:[%s917_s10 + $0x10] sm:$0xff] }
  0x12   : > { %v264_v13 = vld [vmem:[%s917_s10 + $0x40] sm:$0xff]  ;;  %700 = vmatprep.mubr.f32.mxu0 %v256_v12  ;;  %735 = vmatpush3.bf16.msra.mxu0 %v732_v9  ;;  %v265_v28 = vld [vmem:[%s917_s10 + $0x48] sm:$0xff]  ;;  %v266_v30 = vld [vmem:[%s917_s10 + $0x50] sm:$0xff] }
  0x13   : > { %712 = vmatprep.mubr.f32.mxu1 %v264_v13  ;;  %766 = vmatpush3.bf16.msra.mxu1 %v732_v9  ;;  %v259_v31 = vld [vmem:[%s917_s10 + $0x18] sm:$0xff]  ;;  %v260_v33 = vld [vmem:[%s917_s10 + $0x20] sm:$0xff]  ;;  %v261_v35 = vld [vmem:[%s917_s10 + $0x28] sm:$0xff] }
  0x14   : > { %737 = vmatprep.subr.bf16.mxu0 %v736_v14  ;;  %759 = vmatprep.subr.bf16.mxu1 %v736_v14  ;;  %v267_v32 = vld [vmem:[%s917_s10 + $0x58] sm:$0xff]  ;;  %v268_v34 = vld [vmem:[%s917_s10 + $0x60] sm:$0xff]  ;;  %v269_v36 = vld [vmem:[%s917_s10 + $0x68] sm:$0xff] }
  0x15   : > { %v262_v37 = vld [vmem:[%s917_s10 + $0x30] sm:$0xff]  ;;  %v263_v39 = vld [vmem:[%s917_s10 + $0x38] sm:$0xff]  ;;  %v249_v42 = vld [vmem:[#allocation2 + $0x48] sm:$0xff] }
  0x16   : > { %739 = vmatpush3.bf16.msra.mxu0 %v736_v14  ;;  %v270_v38 = vld [vmem:[%s917_s10 + $0x70] sm:$0xff]  ;;  %v271_v40 = vld [vmem:[%s917_s10 + $0x78] sm:$0xff]  ;;  %v248_v44 = vld [vmem:[#allocation2 + $0x40] sm:$0xff] }
  0x17   : > { %767 = vmatpush3.bf16.msra.mxu1 %v736_v14  ;;  %741 = vmatprep.subr.bf16.mxu0 %v740_v17  ;;  %v251_v54 = vld [vmem:[#allocation2 + $0x58] sm:$0xff]  ;;  %v250_v56 = vld [vmem:[#allocation2 + $0x50] sm:$0xff]  ;;  %v253_v2 = vld [vmem:[#allocation2 + $0x68] sm:$0xff] }
  0x18   : > { %760 = vmatprep.subr.bf16.mxu1 %v740_v17  ;;  %v252_v4 = vld [vmem:[#allocation2 + $0x60] sm:$0xff]  ;;  %v247_v12 = vld [vmem:[#allocation2 + $0x38] sm:$0xff]  ;;  %v246_v18 = vld [vmem:[#allocation2 + $0x30] sm:$0xff] }
  0x19   : > { %v255_v13 = vld [vmem:[#allocation2 + $0x78] sm:$0xff] }
  0x1a   : > { %743 = vmatpush3.bf16.msra.mxu0 %v740_v17 }
  0x1b   : > { %768 = vmatpush3.bf16.msra.mxu1 %v740_v17  ;;  %745 = vmatprep.subr.bf16.mxu0 %v744_v20 }
  0x1c   : > { %761 = vmatprep.subr.bf16.mxu1 %v744_v20 }
  0x1e   : > { %747 = vmatpush3.bf16.msra.mxu0 %v744_v20 }
  0x1f   : > { %769 = vmatpush3.bf16.msra.mxu1 %v744_v20  ;;  %749 = vmatprep.subr.bf16.mxu0 %v748_v23 }
  0x20   : > { %762 = vmatprep.subr.bf16.mxu1 %v748_v23 }
  0x22   : > { %751 = vmatpush3.bf16.msra.mxu0 %v748_v23 }
  0x23   : > { %770 = vmatpush3.bf16.msra.mxu1 %v748_v23  ;;  %753 = vmatprep.subr.bf16.mxu0 %v752_v26  ;;  %v254_v23 = vld [vmem:[#allocation2 + $0x70] sm:$0xff] }
  0x24   : > { %763 = vmatprep.subr.bf16.mxu1 %v752_v26 }
  0x26   : > { %755 = vmatpush3.bf16.msra.mxu0 %v752_v26 }
  0x27   : > { %771 = vmatpush3.bf16.msra.mxu1 %v752_v26 }
  0x29   : > { %701 = vmatmul.mubr.f32.vlgmr.msra.gmra.mrb[0].mxu0 %v257_v27 }
  0x2a   : > { %713 = vmatmul.mubr.f32.vlgmr.msra.gmra.mrb[0].mxu1 %v265_v28  ;;  %703 = vmatprep.mubr.f32.mxu0 %v258_v29 }
  0x2b   : > { %715 = vmatprep.mubr.f32.mxu1 %v266_v30 }
  0x2d   : > { %704 = vmatmul.mubr.f32.gmra.mrb[2].mxu0 %v259_v31 }
  0x2e   : > { %716 = vmatmul.mubr.f32.gmra.mrb[2].mxu1 %v267_v32  ;;  %706 = vmatprep.mubr.f32.mxu0 %v260_v33 }
  0x2f   : > { %718 = vmatprep.mubr.f32.mxu1 %v268_v34 }
  0x31   : > { %707 = vmatmul.mubr.f32.gmra.mrb[4].mxu0 %v261_v35 }
  0x32   : > { %719 = vmatmul.mubr.f32.gmra.mrb[4].mxu1 %v269_v36  ;;  %709 = vmatprep.mubr.f32.mxu0 %v262_v37 }
  0x33   : > { %721 = vmatprep.mubr.f32.mxu1 %v270_v38 }
  0x35   : > { %710 = vmatmul.mubr.f32.gmra.mrb[6].mxu0 %v263_v39 }
  0x36   : > { %722 = vmatmul.mubr.f32.gmra.mrb[6].mxu1 %v271_v40 }
  0xfc   : > { %v702_v45 = vpop.f32.mrb[0].mxu0 }
  0xfd   : > { %v714_v46 = vpop.f32.mrb[0].mxu1  ;;  %v434_v47 = vadd.f32 %v702_v45, %v241_v41  ;;  %v354_v49 = vpop.f32.mrb[1].mxu0 }
  0xfe   : > { %v442_v48 = vadd.f32 %v714_v46, %v249_v42  ;;  %v394_v50 = vpop.f32.mrb[1].mxu1  ;;  %v433_v51 = vadd.f32 %v354_v49, %v240_v43 }
  0xff   : > { %v441_v52 = vadd.f32 %v394_v50, %v248_v44  ;;  %451 = vst.msk [vmem:[#allocation2 + $0x8] sm:$0xff] %vm223_vm0, %v434_v47 }
 0x100   : > { %459 = vst.msk [vmem:[#allocation2 + $0x48] sm:$0xff] %vm223_vm0, %v442_v48  ;;  %450 = vst.msk [vmem:[#allocation2] sm:$0xff] %vm223_vm0, %v433_v51  ;;  %v705_v57 = vpop.f32.mrb[2].mxu0 }
 0x101   : > { %458 = vst.msk [vmem:[#allocation2 + $0x40] sm:$0xff] %vm223_vm0, %v441_v52  ;;  %v717_v58 = vpop.f32.mrb[2].mxu1  ;;  %v436_v59 = vadd.f32 %v705_v57, %v243_v53  ;;  %v364_v61 = vpop.f32.mrb[3].mxu0 }
 0x102   : > { %v444_v60 = vadd.f32 %v717_v58, %v251_v54  ;;  %v404_v62 = vpop.f32.mrb[3].mxu1  ;;  %v435_v63 = vadd.f32 %v364_v61, %v242_v55 }
 0x103   : > { %v443_v0 = vadd.f32 %v404_v62, %v250_v56  ;;  %453 = vst.msk [vmem:[#allocation2 + $0x18] sm:$0xff] %vm223_vm0, %v436_v59 }
 0x104   : > { %461 = vst.msk [vmem:[#allocation2 + $0x58] sm:$0xff] %vm223_vm0, %v444_v60  ;;  %452 = vst.msk [vmem:[#allocation2 + $0x10] sm:$0xff] %vm223_vm0, %v435_v63  ;;  %v708_v6 = vpop.f32.mrb[4].mxu0 }
 0x105   : > { %460 = vst.msk [vmem:[#allocation2 + $0x50] sm:$0xff] %vm223_vm0, %v443_v0  ;;  %v720_v7 = vpop.f32.mrb[4].mxu1  ;;  %v438_v8 = vadd.f32 %v708_v6, %v245_v1  ;;  %v374_v10 = vpop.f32.mrb[5].mxu0 }
 0x106   : > { %v446_v9 = vadd.f32 %v720_v7, %v253_v2  ;;  %v414_v11 = vpop.f32.mrb[5].mxu1  ;;  %v470_v14 = vld [vmem:[#allocation2 + $0x8] sm:$0xff]  ;;  %v437_v16 = vadd.f32 %v374_v10, %v244_v3 }
 0x107   : > { %v478_v15 = vld [vmem:[#allocation2 + $0x48] sm:$0xff]  ;;  %v445_v17 = vadd.f32 %v414_v11, %v252_v4  ;;  %v493_v19 = vadd.f32 %v968_v5, %v470_v14  ;;  %v469_v21 = vld [vmem:[#allocation2] sm:$0xff]  ;;  %455 = vst.msk [vmem:[#allocation2 + $0x28] sm:$0xff] %vm223_vm0, %v438_v8 }
 0x108   : > { %v501_v20 = vadd.f32 %v968_v5, %v478_v15  ;;  %v477_v22 = vld [vmem:[#allocation2 + $0x40] sm:$0xff]  ;;  %463 = vst.msk [vmem:[#allocation2 + $0x68] sm:$0xff] %vm223_vm0, %v446_v9  ;;  %v492_v24 = vadd.f32 %v968_v5, %v469_v21  ;;  %454 = vst.msk [vmem:[#allocation2 + $0x20] sm:$0xff] %vm223_vm0, %v437_v16  ;;  %v711_v26 = vpop.f32.mrb[6].mxu0 }
 0x109   : > { %v500_v25 = vadd.f32 %v968_v5, %v477_v22  ;;  %462 = vst.msk [vmem:[#allocation2 + $0x60] sm:$0xff] %vm223_vm0, %v445_v17  ;;  %v723_v27 = vpop.f32.mrb[6].mxu1  ;;  %v509_v28 = vmax.f32 %v493_v19, 0.0  ;;  %v440_v30 = vadd.f32 %v711_v26, %v247_v12  ;;  %v384_v32 = vpop.f32.mrb[7].mxu0 }
 0x10a   : > { %v517_v29 = vmax.f32 %v501_v20, 0.0  ;;  %v448_v31 = vadd.f32 %v723_v27, %v255_v13  ;;  %v424_v33 = vpop.f32.mrb[7].mxu1  ;;  %v508_v34 = vmax.f32 %v492_v24, 0.0  ;;  %v472_v36 = vld [vmem:[#allocation2 + $0x18] sm:$0xff]  ;;  %v439_v38 = vadd.f32 %v384_v32, %v246_v18 }
 0x10b   : > { %v516_v35 = vmax.f32 %v500_v25, 0.0  ;;  %v480_v37 = vld [vmem:[#allocation2 + $0x58] sm:$0xff]  ;;  %v447_v39 = vadd.f32 %v424_v33, %v254_v23  ;;  %525 = vst.msk [vmem:[%s981_s9 + $0x8] sm:$0xff] %vm223_vm0, %v509_v28  ;;  %v495_v40 = vadd.f32 %v968_v5, %v472_v36  ;;  %v471_v42 = vld [vmem:[#allocation2 + $0x10] sm:$0xff]  ;;  %457 = vst.msk [vmem:[#allocation2 + $0x38] sm:$0xff] %vm223_vm0, %v440_v30 }
 0x10c   : > { %533 = vst.msk [vmem:[%s981_s9 + $0x48] sm:$0xff] %vm223_vm0, %v517_v29  ;;  %v503_v41 = vadd.f32 %v968_v5, %v480_v37  ;;  %v479_v43 = vld [vmem:[#allocation2 + $0x50] sm:$0xff]  ;;  %465 = vst.msk [vmem:[#allocation2 + $0x78] sm:$0xff] %vm223_vm0, %v448_v31  ;;  %v494_v44 = vadd.f32 %v968_v5, %v471_v42 }
 0x10d   : > { %524 = vst.msk [vmem:[%s981_s9] sm:$0xff] %vm223_vm0, %v508_v34  ;;  %532 = vst.msk [vmem:[%s981_s9 + $0x40] sm:$0xff] %vm223_vm0, %v516_v35  ;;  %v502_v45 = vadd.f32 %v968_v5, %v479_v43  ;;  %v511_v46 = vmax.f32 %v495_v40, 0.0 }
 0x10e   : > { %456 = vst.msk [vmem:[#allocation2 + $0x30] sm:$0xff] %vm223_vm0, %v439_v38  ;;  %464 = vst.msk [vmem:[#allocation2 + $0x70] sm:$0xff] %vm223_vm0, %v447_v39  ;;  %v519_v47 = vmax.f32 %v503_v41, 0.0  ;;  %v510_v48 = vmax.f32 %v494_v44, 0.0  ;;  %v474_v50 = vld [vmem:[#allocation2 + $0x28] sm:$0xff] }
 0x10f   : > { %v518_v49 = vmax.f32 %v502_v45, 0.0  ;;  %v482_v51 = vld [vmem:[#allocation2 + $0x68] sm:$0xff]  ;;  %527 = vst.msk [vmem:[%s981_s9 + $0x18] sm:$0xff] %vm223_vm0, %v511_v46  ;;  %v497_v52 = vadd.f32 %v968_v5, %v474_v50  ;;  %v473_v54 = vld [vmem:[#allocation2 + $0x20] sm:$0xff] }
 0x110   : > { %535 = vst.msk [vmem:[%s981_s9 + $0x58] sm:$0xff] %vm223_vm0, %v519_v47  ;;  %v505_v53 = vadd.f32 %v968_v5, %v482_v51  ;;  %v481_v55 = vld [vmem:[#allocation2 + $0x60] sm:$0xff]  ;;  %526 = vst.msk [vmem:[%s981_s9 + $0x10] sm:$0xff] %vm223_vm0, %v510_v48  ;;  %v496_v56 = vadd.f32 %v968_v5, %v473_v54 }
 0x111   : > { %534 = vst.msk [vmem:[%s981_s9 + $0x50] sm:$0xff] %vm223_vm0, %v518_v49  ;;  %v504_v57 = vadd.f32 %v968_v5, %v481_v55  ;;  %v513_v58 = vmax.f32 %v497_v52, 0.0 }
 0x112   : > { %v521_v59 = vmax.f32 %v505_v53, 0.0  ;;  %v512_v60 = vmax.f32 %v496_v56, 0.0  ;;  %v476_v62 = vld [vmem:[#allocation2 + $0x38] sm:$0xff] }
 0x113   : > { %v520_v61 = vmax.f32 %v504_v57, 0.0  ;;  %v484_v63 = vld [vmem:[#allocation2 + $0x78] sm:$0xff]  ;;  %529 = vst.msk [vmem:[%s981_s9 + $0x28] sm:$0xff] %vm223_vm0, %v513_v58  ;;  %v499_v0 = vadd.f32 %v968_v5, %v476_v62 }
 0x114   : > { %537 = vst.msk [vmem:[%s981_s9 + $0x68] sm:$0xff] %vm223_vm0, %v521_v59  ;;  %v507_v1 = vadd.f32 %v968_v5, %v484_v63  ;;  %528 = vst.msk [vmem:[%s981_s9 + $0x20] sm:$0xff] %vm223_vm0, %v512_v60 }
 0x115   : > { %v475_v2 = vld [vmem:[#allocation2 + $0x30] sm:$0xff]  ;;  %536 = vst.msk [vmem:[%s981_s9 + $0x60] sm:$0xff] %vm223_vm0, %v520_v61  ;;  %v515_v7 = vmax.f32 %v499_v0, 0.0 }
 0x116   : > { %v483_v3 = vld [vmem:[#allocation2 + $0x70] sm:$0xff]  ;;  %v498_v4 = vadd.f32 %v968_v5, %v475_v2  ;;  %v523_v8 = vmax.f32 %v507_v1, 0.0 }
 0x117   : > { %v506_v6 = vadd.f32 %v968_v5, %v483_v3  ;;  %531 = vst.msk [vmem:[%s981_s9 + $0x38] sm:$0xff] %vm223_vm0, %v515_v7 }
 0x118   : > { %v514_v9 = vmax.f32 %v498_v4, 0.0  ;;  %539 = vst.msk [vmem:[%s981_s9 + $0x78] sm:$0xff] %vm223_vm0, %v523_v8 }
 0x119   : > { %v522_v10 = vmax.f32 %v506_v6, 0.0 }
 0x11a   : > { %530 = vst.msk [vmem:[%s981_s9 + $0x30] sm:$0xff] %vm223_vm0, %v514_v9 }
 0x11b   : > { %538 = vst.msk [vmem:[%s981_s9 + $0x70] sm:$0xff] %vm223_vm0, %v522_v10 }
 0x11c PF: > { %s13_s14 = sadd.s32 1, %s819_s14   ;;  %s1049_s12 = smov %s815_s13 }
 0x11d   : > { %p10_p5 = scmp.ge.s32.totalorder %s13_s14, 6   ;;  %s1050_s13 = smov %s1052_s15 }
 0x11f   :  { %12 = sbr.rel (!%p10_p5) target bundleno = 2 (0x2), region = 73 }

// kernel: resnet18_forward.22
= control target key start
LH: loop header
LB: loop body
LE: loop exit
PB: predicated region body
PF: predicated region fallthrough
CT: control target
= control target key end

     0   :  { %s1006_s12 = smov 0   ;;  %s1008_s13 = smov 0   ;;  %s1223_s0 = inlined_call_operand.vmem [shape: f32[512,640], index: 0, kind: input, shape index: {}]   ;;  %s1224_s1 = inlined_call_operand.vmem [shape: f32[640,64], index: 1, kind: input, shape index: {}]   ;;  %s1225_s2 = inlined_call_operand.vmem [shape: f32[1,64], index: 2, kind: input, shape index: {}]   ;;  %s1226_s3 = inlined_call_operand.vmem [shape: f32[512,64], index: 3, kind: output, shape index: {}]  }
   0x1   :  { %s1010_s14 = smov 0   ;;  %s1012_s15 = smov 0  }
   0x2   :  { %s1014_s16 = smov 0   ;;  %s1016_s17 = smov 0  }
   0x3   :  { %s1018_s18 = smov 0  }
   0x4 LB: > { %s22_s19 = sadd.s32 1, %s975_s16  ;;  %s25_s20 = sadd.s32 1, %s979_s17  ;;  %s983_s18 = sphi %s1018_s18, %s13_s18   ;;  %s979_s17 = sphi %s1016_s17, %s1232_s17   ;;  %s975_s16 = sphi %s1014_s16, %s1231_s16   ;;  %s971_s15 = sphi %s1012_s15, %s1230_s15   ;;  %s967_s14 = sphi %s1010_s14, %s1229_s14   ;;  %s963_s13 = sphi %s1008_s13, %s1228_s13   ;;  %s959_s12 = sphi %s1006_s12, %s1227_s12  }
   0x5   : > { %p23_p0 = scmp.ge.s32.totalorder %s22_s19, 5  ;;  %p41_p1 = scmp.ne.s32.totalorder %s963_s13, %s959_s12 }
   0x6   : > { %p42_p2 = scmp.eq.s32.totalorder %s983_s18, 0  ;;  %s34_s24 = sadd.s32 1, %s963_s13 }
   0x7   : > { %s1234_s19 = smov (%p23_p0, %s22_s19), 0  ;;  %s1236_s20 = smov (!%p23_p0, %s25_s20), %s979_s17 }
   0x8   : > { %p43_p3 = por %p42_p2, %p41_p1  ;;  %p27_p4 = scmp.ge.s32.totalorder %s1236_s20, 4 }
   0x9   : > { %s30_s21 = ssub.s32 %s975_s16, %s1234_s19  ;;  %p719_p6 = scmp.ge.s32.totalorder %s983_s18, 20 }
   0xa   : > { %s1238_s20 = smov (%p27_p4, %s1236_s20), 0 }
   0xb   : > { %s29_s22 = ssub.s32 %s979_s17, %s1238_s20  ;;  %143 = sbr.rel (%p719_p6) target bundleno = 33 (0x21), region = 20 }
   0xc   : > { %s31_s23 = sor.u32 %s30_s21, %s29_s22 }
   0xd   : > { %p32_p5 = scmp.eq.s32.totalorder %s31_s23, 0 }
   0xf   : > { %s1057_s25 = scalar_select %p32_p5, %s963_s13, %s34_s24  }
  0x12   : > { %146 = sbr.rel (!%p43_p3) target bundleno = 33 (0x21), region = 24  ;;  %s148_s26 = sand.u32 (%p43_p3), 1, %s963_s13  }
  0x13   : > { %s871_s27 = smul.u32 (%p43_p3), 80, %s979_s17  ;;  %s720_s28 = sshll.u32 (%p43_p3), %s148_s26, 7 }
  0x14   : > { %s150_s7 = scalar_lea.vmem (%p43_p3), [#allocation3], %s720_s28 }
  0x15   : > { %s153_s29 = sadd.s32 (%p43_p3), %s975_s16, %s871_s27 }
  0x16   : > { %s723_s30 = sshll.u32 (%p43_p3), %s153_s29, 3 }
  0x17   : > { %s1066_s6 = scalar_lea.vmem (%p43_p3), %s1223_s0, %s723_s30 }
  0x18   : > { %v213_v0 = vld [vmem:[%s1066_s6] sm:$0xff] (%p43_p3)  ;;  %v215_v1 = vld [vmem:[%s1066_s6 + $0x28] sm:$0xff] (%p43_p3)  ;;  %v217_v2 = vld [vmem:[%s1066_s6 + $0x50] sm:$0xff] (%p43_p3) }
  0x19   : > { %214 = vst [vmem:[%s150_s7] sm:$0xff] %v213_v0  ;;  %216 = vst [vmem:[%s150_s7 + $0x8] sm:$0xff] %v215_v1  ;;  %v219_v3 = vld [vmem:[%s1066_s6 + $0x78] sm:$0xff]  ;;  %v221_v4 = vld [vmem:[%s1066_s6 + $0xa0] sm:$0xff] }
  0x1a   : > { %218 = vst [vmem:[%s150_s7 + $0x10] sm:$0xff] %v217_v2  ;;  %v223_v5 = vld [vmem:[%s1066_s6 + $0xc8] sm:$0xff]  ;;  %220 = vst [vmem:[%s150_s7 + $0x18] sm:$0xff] %v219_v3  ;;  %v225_v6 = vld [vmem:[%s1066_s6 + $0xf0] sm:$0xff] }
  0x1b   : > { %222 = vst [vmem:[%s150_s7 + $0x20] sm:$0xff] %v221_v4  ;;  %224 = vst [vmem:[%s150_s7 + $0x28] sm:$0xff] %v223_v5  ;;  %v227_v7 = vld [vmem:[%s1066_s6 + $0x118] sm:$0xff]  ;;  %v229_v8 = vld [vmem:[%s1066_s6 + $0x140] sm:$0xff] }
  0x1c   : > { %226 = vst [vmem:[%s150_s7 + $0x30] sm:$0xff] %v225_v6  ;;  %228 = vst [vmem:[%s150_s7 + $0x38] sm:$0xff] %v227_v7  ;;  %v231_v9 = vld [vmem:[%s1066_s6 + $0x168] sm:$0xff]  ;;  %v233_v10 = vld [vmem:[%s1066_s6 + $0x190] sm:$0xff] }
  0x1d   : > { %230 = vst [vmem:[%s150_s7 + $0x40] sm:$0xff] %v229_v8  ;;  %v235_v11 = vld [vmem:[%s1066_s6 + $0x1b8] sm:$0xff]  ;;  %232 = vst [vmem:[%s150_s7 + $0x48] sm:$0xff] %v231_v9  ;;  %v237_v12 = vld [vmem:[%s1066_s6 + $0x1e0] sm:$0xff] }
  0x1e   : > { %234 = vst [vmem:[%s150_s7 + $0x50] sm:$0xff] %v233_v10  ;;  %236 = vst [vmem:[%s150_s7 + $0x58] sm:$0xff] %v235_v11  ;;  %v239_v13 = vld [vmem:[%s1066_s6 + $0x208] sm:$0xff]  ;;  %v241_v14 = vld [vmem:[%s1066_s6 + $0x230] sm:$0xff] }
  0x1f   : > { %238 = vst [vmem:[%s150_s7 + $0x60] sm:$0xff] %v237_v12  ;;  %240 = vst [vmem:[%s150_s7 + $0x68] sm:$0xff] %v239_v13  ;;  %v243_v15 = vld [vmem:[%s1066_s6 + $0x258] sm:$0xff] }
  0x20   : > { %242 = vst [vmem:[%s150_s7 + $0x70] sm:$0xff] %v241_v14  ;;  %244 = vst [vmem:[%s150_s7 + $0x78] sm:$0xff] %v243_v15 }
  0x21 PF: > { %p724_p7 = scmp.ge.s32.totalorder %s983_s18, 1  ;;  %p258_p8 = scmp.lt.s32.totalorder %s983_s18, 21 }
  0x23   : > { %p259_p9 = pnand %p724_p7, %p258_p8 }
  0x24   : > { %s265_s8 = sand.u32 (!%p259_p9), 1, %s959_s12   ;;  %s726_s9 = sshll.u32 (!%p259_p9), %s967_s14, 4 }
  0x25   : > { %262 = sbr.rel (%p259_p9) target bundleno = 330 (0x14a), region = 66  ;;  %s725_s10 = sshll.u32 (!%p259_p9), %s265_s8, 7 }
  0x26   : > { %p295_p10 = scmp.lt.s32.totalorder (!%p259_p9), %s726_s9, 79  ;;  %s728_s11 = sshll.u32 (!%p259_p9), %s971_s15, 4 }
  0x27   : > { %p301_p11 = scmp.lt.s32.totalorder (!%p259_p9), %s728_s11, 63  ;;  %s1099_s12 = scalar_lea.vmem (!%p259_p9), [#allocation3], %s725_s10 }
  0x28   : > { %p730_p12 = scmp.ne.s32.totalorder (!%p259_p9), %s967_s14, 0 }
  0x2c   : > { %s1240_s9 = smov (!%p295_p10, %s726_s9), 79  ;;  %s1242_s11 = smov (!%p301_p11, %s728_s11), 63 }
  0x2d   : > { %s727_s21 = sshll.u32 %s1240_s9, 3  ;;  %s729_s26 = sshll.u32 %s1242_s11, 3  ;;  %vm310_vm0 = vcmask (!%p730_p12), 523264   ;;  %v985_v16 = vmov (!%p730_p12), 0.0  }
  0x2e   : > { %s1092_s24 = scalar_lea.vmem %s1224_s1, %s727_s21  ;;  %s1097_s29 = scalar_lea.vmem %s1226_s3, %s729_s26  ;;  %311 = vst.msk [vmem:[#allocation2] sm:$0xff] (!%p730_p12), %vm310_vm0, %v985_v16  ;;  %312 = vst.msk [vmem:[#allocation2 + $0x8] sm:$0xff] (!%p730_p12), %vm310_vm0, %v985_v16 }
  0x2f   : > { %309 = sbr.rel (%p730_p12) target bundleno = 54 (0x36), region = 74  ;;  %313 = vst.msk [vmem:[#allocation2 + $0x10] sm:$0xff] (!%p730_p12), %vm310_vm0, %v985_v16  ;;  %314 = vst.msk [vmem:[#allocation2 + $0x18] sm:$0xff] (!%p730_p12), %vm310_vm0, %v985_v16 }
  0x30   : > { %315 = vst.msk [vmem:[#allocation2 + $0x20] sm:$0xff] (!%p730_p12), %vm310_vm0, %v985_v16  ;;  %316 = vst.msk [vmem:[#allocation2 + $0x28] sm:$0xff] (!%p730_p12), %vm310_vm0, %v985_v16 }
  0x31   : > { %317 = vst.msk [vmem:[#allocation2 + $0x30] sm:$0xff] (!%p730_p12), %vm310_vm0, %v985_v16  ;;  %318 = vst.msk [vmem:[#allocation2 + $0x38] sm:$0xff] (!%p730_p12), %vm310_vm0, %v985_v16 }
  0x32   : > { %319 = vst.msk [vmem:[#allocation2 + $0x40] sm:$0xff] (!%p730_p12), %vm310_vm0, %v985_v16  ;;  %320 = vst.msk [vmem:[#allocation2 + $0x48] sm:$0xff] (!%p730_p12), %vm310_vm0, %v985_v16 }
  0x33   : > { %321 = vst.msk [vmem:[#allocation2 + $0x50] sm:$0xff] (!%p730_p12), %vm310_vm0, %v985_v16  ;;  %322 = vst.msk [vmem:[#allocation2 + $0x58] sm:$0xff] (!%p730_p12), %vm310_vm0, %v985_v16 }
  0x34   : > { %323 = vst.msk [vmem:[#allocation2 + $0x60] sm:$0xff] (!%p730_p12), %vm310_vm0, %v985_v16  ;;  %324 = vst.msk [vmem:[#allocation2 + $0x68] sm:$0xff] (!%p730_p12), %vm310_vm0, %v985_v16 }
  0x35   : > { %325 = vst.msk [vmem:[#allocation2 + $0x70] sm:$0xff] (!%p730_p12), %vm310_vm0, %v985_v16  ;;  %326 = vst.msk [vmem:[#allocation2 + $0x78] sm:$0xff] (!%p730_p12), %vm310_vm0, %v985_v16 }
  0x36 PF: > { %v359_v17 = vld [vmem:[%s1092_s24] sm:$0xff]  ;;  %v360_v18 = vld [vmem:[%s1092_s24 + $0x8] sm:$0xff]  ;;  %v361_v19 = vld [vmem:[%s1092_s24 + $0x10] sm:$0xff]  ;;  %vm536_vm1 = vcmask 523264   ;;  %p731_p13 = scmp.ne.s32.totalorder %s967_s14, 4 }
  0x37   : > { %v823_v20 = vpack.c.bf16 %v360_v18, %v359_v17  ;;  %v362_v21 = vld [vmem:[%s1092_s24 + $0x18] sm:$0xff]  ;;  %v363_v23 = vld [vmem:[%s1092_s24 + $0x20] sm:$0xff]  ;;  %v364_v24 = vld [vmem:[%s1092_s24 + $0x28] sm:$0xff] }
  0x38   : > { %v827_v22 = vpack.c.bf16 %v362_v21, %v361_v19  ;;  %v831_v25 = vpack.c.bf16 %v364_v24, %v363_v23  ;;  %v343_v26 = vld [vmem:[%s1099_s12] sm:$0xff]  ;;  %v365_v28 = vld [vmem:[%s1092_s24 + $0x30] sm:$0xff]  ;;  %v366_v29 = vld [vmem:[%s1092_s24 + $0x38] sm:$0xff] }
  0x39   : > { %824 = vmatprep.subr.bf16.mxu0 %v823_v20  ;;  %855 = vmatprep.subr.bf16.mxu1 %v823_v20  ;;  %v351_v27 = vld [vmem:[%s1099_s12 + $0x40] sm:$0xff]  ;;  %v835_v30 = vpack.c.bf16 %v366_v29, %v365_v28  ;;  %v368_v32 = vld [vmem:[%s1092_s24 + $0x48] sm:$0xff]  ;;  %v369_v34 = vld [vmem:[%s1092_s24 + $0x50] sm:$0xff] }
  0x3a   : > { %826 = vmatpush3.bf16.msra.mxu0 %v823_v20  ;;  %863 = vmatpush3.bf16.msra.mxu1 %v823_v20  ;;  %v367_v31 = vld [vmem:[%s1092_s24 + $0x40] sm:$0xff]  ;;  %v370_v35 = vld [vmem:[%s1092_s24 + $0x58] sm:$0xff]  ;;  %v372_v38 = vld [vmem:[%s1092_s24 + $0x68] sm:$0xff] }
  0x3b   : > { %828 = vmatprep.subr.bf16.mxu0 %v827_v22  ;;  %856 = vmatprep.subr.bf16.mxu1 %v827_v22  ;;  %v839_v33 = vpack.c.bf16 %v368_v32, %v367_v31  ;;  %v843_v36 = vpack.c.bf16 %v370_v35, %v369_v34  ;;  %v371_v37 = vld [vmem:[%s1092_s24 + $0x60] sm:$0xff]  ;;  %v373_v40 = vld [vmem:[%s1092_s24 + $0x70] sm:$0xff]  ;;  %v374_v41 = vld [vmem:[%s1092_s24 + $0x78] sm:$0xff] }
  0x3c   : > { %799 = vmatprep.mubr.f32.mxu0 %v343_v26  ;;  %811 = vmatprep.mubr.f32.mxu1 %v351_v27  ;;  %v847_v39 = vpack.c.bf16 %v372_v38, %v371_v37  ;;  %v851_v42 = vpack.c.bf16 %v374_v41, %v373_v40  ;;  %v344_v43 = vld [vmem:[%s1099_s12 + $0x8] sm:$0xff]  ;;  %v345_v45 = vld [vmem:[%s1099_s12 + $0x10] sm:$0xff]  ;;  %v346_v47 = vld [vmem:[%s1099_s12 + $0x18] sm:$0xff] }
  0x3d   : > { %v352_v44 = vld [vmem:[%s1099_s12 + $0x48] sm:$0xff]  ;;  %v353_v46 = vld [vmem:[%s1099_s12 + $0x50] sm:$0xff]  ;;  %v354_v48 = vld [vmem:[%s1099_s12 + $0x58] sm:$0xff] }
  0x3e   : > { %830 = vmatpush3.bf16.msra.mxu0 %v827_v22  ;;  %864 = vmatpush3.bf16.msra.mxu1 %v827_v22  ;;  %v347_v49 = vld [vmem:[%s1099_s12 + $0x20] sm:$0xff]  ;;  %v348_v51 = vld [vmem:[%s1099_s12 + $0x28] sm:$0xff]  ;;  %v349_v53 = vld [vmem:[%s1099_s12 + $0x30] sm:$0xff] }
  0x3f   : > { %832 = vmatprep.subr.bf16.mxu0 %v831_v25  ;;  %857 = vmatprep.subr.bf16.mxu1 %v831_v25  ;;  %v355_v50 = vld [vmem:[%s1099_s12 + $0x60] sm:$0xff]  ;;  %v356_v52 = vld [vmem:[%s1099_s12 + $0x68] sm:$0xff]  ;;  %v357_v54 = vld [vmem:[%s1099_s12 + $0x70] sm:$0xff] }
  0x40   : > { %v350_v55 = vld [vmem:[%s1099_s12 + $0x38] sm:$0xff]  ;;  %v328_v57 = vld [vmem:[#allocation2 + $0x8] sm:$0xff]  ;;  %v327_v59 = vld [vmem:[#allocation2] sm:$0xff] }
  0x41   : > { %v358_v56 = vld [vmem:[%s1099_s12 + $0x78] sm:$0xff]  ;;  %v336_v58 = vld [vmem:[#allocation2 + $0x48] sm:$0xff]  ;;  %v335_v60 = vld [vmem:[#allocation2 + $0x40] sm:$0xff] }
  0x42   : > { %834 = vmatpush3.bf16.msra.mxu0 %v831_v25  ;;  %865 = vmatpush3.bf16.msra.mxu1 %v831_v25  ;;  %v330_v5 = vld [vmem:[#allocation2 + $0x18] sm:$0xff]  ;;  %v329_v7 = vld [vmem:[#allocation2 + $0x10] sm:$0xff]  ;;  %v332_v17 = vld [vmem:[#allocation2 + $0x28] sm:$0xff] }
  0x43   : > { %836 = vmatprep.subr.bf16.mxu0 %v835_v30  ;;  %858 = vmatprep.subr.bf16.mxu1 %v835_v30  ;;  %v338_v6 = vld [vmem:[#allocation2 + $0x58] sm:$0xff]  ;;  %v337_v8 = vld [vmem:[#allocation2 + $0x50] sm:$0xff]  ;;  %v340_v18 = vld [vmem:[#allocation2 + $0x68] sm:$0xff] }
  0x44   : > { %v331_v19 = vld [vmem:[#allocation2 + $0x20] sm:$0xff]  ;;  %v334_v29 = vld [vmem:[#allocation2 + $0x38] sm:$0xff]  ;;  %v333_v31 = vld [vmem:[#allocation2 + $0x30] sm:$0xff] }
  0x45   : > { %v339_v20 = vld [vmem:[#allocation2 + $0x60] sm:$0xff]  ;;  %v341_v32 = vld [vmem:[#allocation2 + $0x70] sm:$0xff] }
  0x46   : > { %838 = vmatpush3.bf16.msra.mxu0 %v835_v30  ;;  %866 = vmatpush3.bf16.msra.mxu1 %v835_v30  ;;  %v342_v30 = vld [vmem:[#allocation2 + $0x78] sm:$0xff] }
  0x47   : > { %840 = vmatprep.subr.bf16.mxu0 %v839_v33  ;;  %859 = vmatprep.subr.bf16.mxu1 %v839_v33 }
  0x4a   : > { %842 = vmatpush3.bf16.msra.mxu0 %v839_v33  ;;  %867 = vmatpush3.bf16.msra.mxu1 %v839_v33 }
  0x4b   : > { %844 = vmatprep.subr.bf16.mxu0 %v843_v36  ;;  %860 = vmatprep.subr.bf16.mxu1 %v843_v36 }
  0x4e   : > { %846 = vmatpush3.bf16.msra.mxu0 %v843_v36  ;;  %868 = vmatpush3.bf16.msra.mxu1 %v843_v36 }
  0x4f   : > { %848 = vmatprep.subr.bf16.mxu0 %v847_v39  ;;  %861 = vmatprep.subr.bf16.mxu1 %v847_v39 }
  0x52   : > { %850 = vmatpush3.bf16.msra.mxu0 %v847_v39  ;;  %869 = vmatpush3.bf16.msra.mxu1 %v847_v39 }
  0x53   : > { %852 = vmatprep.subr.bf16.mxu0 %v851_v42  ;;  %862 = vmatprep.subr.bf16.mxu1 %v851_v42 }
  0x56   : > { %854 = vmatpush3.bf16.msra.mxu0 %v851_v42  ;;  %870 = vmatpush3.bf16.msra.mxu1 %v851_v42  ;;  %v732_v42 = vld [vmem:[%s1225_s2] ss:$0 sm:$0xff] (!%p731_p13) }
  0x59   : > { %800 = vmatmul.mubr.f32.vlgmr.msra.gmra.mrb[0].mxu0 %v344_v43  ;;  %812 = vmatmul.mubr.f32.vlgmr.msra.gmra.mrb[0].mxu1 %v352_v44 }
  0x5a   : > { %802 = vmatprep.mubr.f32.mxu0 %v345_v45  ;;  %814 = vmatprep.mubr.f32.mxu1 %v353_v46 }
  0x5d   : > { %803 = vmatmul.mubr.f32.gmra.mrb[2].mxu0 %v346_v47  ;;  %815 = vmatmul.mubr.f32.gmra.mrb[2].mxu1 %v354_v48 }
  0x5e   : > { %805 = vmatprep.mubr.f32.mxu0 %v347_v49  ;;  %817 = vmatprep.mubr.f32.mxu1 %v355_v50 }
  0x61   : > { %806 = vmatmul.mubr.f32.gmra.mrb[4].mxu0 %v348_v51  ;;  %818 = vmatmul.mubr.f32.gmra.mrb[4].mxu1 %v356_v52 }
  0x62   : > { %808 = vmatprep.mubr.f32.mxu0 %v349_v53  ;;  %820 = vmatprep.mubr.f32.mxu1 %v357_v54 }
  0x65   : > { %809 = vmatmul.mubr.f32.gmra.mrb[6].mxu0 %v350_v55  ;;  %821 = vmatmul.mubr.f32.gmra.mrb[6].mxu1 %v358_v56 }
 0x12c   : > { %v801_v61 = vpop.f32.mrb[0].mxu0  ;;  %v813_v62 = vpop.f32.mrb[0].mxu1 }
 0x12d   : > { %v521_v63 = vadd.f32 %v801_v61, %v328_v57  ;;  %v529_v0 = vadd.f32 %v813_v62, %v336_v58  ;;  %v441_v1 = vpop.f32.mrb[1].mxu0  ;;  %v481_v2 = vpop.f32.mrb[1].mxu1 }
 0x12e   : > { %v520_v3 = vadd.f32 %v441_v1, %v327_v59  ;;  %v528_v4 = vadd.f32 %v481_v2, %v335_v60 }
 0x12f   : > { %538 = vst.msk [vmem:[#allocation2 + $0x8] sm:$0xff] %vm536_vm1, %v521_v63  ;;  %546 = vst.msk [vmem:[#allocation2 + $0x48] sm:$0xff] %vm536_vm1, %v529_v0 }
 0x130   : > { %537 = vst.msk [vmem:[#allocation2] sm:$0xff] %vm536_vm1, %v520_v3  ;;  %545 = vst.msk [vmem:[#allocation2 + $0x40] sm:$0xff] %vm536_vm1, %v528_v4  ;;  %v804_v9 = vpop.f32.mrb[2].mxu0  ;;  %v816_v10 = vpop.f32.mrb[2].mxu1 }
 0x131   : > { %v523_v11 = vadd.f32 %v804_v9, %v330_v5  ;;  %v531_v12 = vadd.f32 %v816_v10, %v338_v6  ;;  %v451_v13 = vpop.f32.mrb[3].mxu0  ;;  %v491_v14 = vpop.f32.mrb[3].mxu1 }
 0x132   : > { %v522_v15 = vadd.f32 %v451_v13, %v329_v7  ;;  %v530_v16 = vadd.f32 %v491_v14, %v337_v8 }
 0x133   : > { %540 = vst.msk [vmem:[#allocation2 + $0x18] sm:$0xff] %vm536_vm1, %v523_v11  ;;  %548 = vst.msk [vmem:[#allocation2 + $0x58] sm:$0xff] %vm536_vm1, %v531_v12 }
 0x134   : > { %539 = vst.msk [vmem:[#allocation2 + $0x10] sm:$0xff] %vm536_vm1, %v522_v15  ;;  %547 = vst.msk [vmem:[#allocation2 + $0x50] sm:$0xff] %vm536_vm1, %v530_v16  ;;  %v807_v21 = vpop.f32.mrb[4].mxu0  ;;  %v819_v22 = vpop.f32.mrb[4].mxu1 }
 0x135   : > { %v525_v23 = vadd.f32 %v807_v21, %v332_v17  ;;  %v533_v24 = vadd.f32 %v819_v22, %v340_v18  ;;  %v461_v25 = vpop.f32.mrb[5].mxu0  ;;  %v501_v26 = vpop.f32.mrb[5].mxu1 }
 0x136   : > { %v524_v27 = vadd.f32 %v461_v25, %v331_v19  ;;  %v532_v28 = vadd.f32 %v501_v26, %v339_v20  ;;  %556 = sbr.rel (%p731_p13) target bundleno = 330 (0x14a), region = 78  ;;  %v558_v43 = vld [vmem:[#allocation2 + $0x8] sm:$0xff] (!%p731_p13) }
 0x137   : > { %542 = vst.msk [vmem:[#allocation2 + $0x28] sm:$0xff] %vm536_vm1, %v525_v23  ;;  %550 = vst.msk [vmem:[#allocation2 + $0x68] sm:$0xff] %vm536_vm1, %v533_v24  ;;  %v557_v41 = vld [vmem:[#allocation2] sm:$0xff] (!%p731_p13)  ;;  %v581_v45 = vadd.f32 (!%p731_p13), %v732_v42, %v558_v43  ;;  %v566_v60 = vld [vmem:[#allocation2 + $0x48] sm:$0xff] (!%p731_p13) }
 0x138   : > { %541 = vst.msk [vmem:[#allocation2 + $0x20] sm:$0xff] %vm536_vm1, %v524_v27  ;;  %549 = vst.msk [vmem:[#allocation2 + $0x60] sm:$0xff] %vm536_vm1, %v532_v28  ;;  %v810_v33 = vpop.f32.mrb[6].mxu0  ;;  %v822_v34 = vpop.f32.mrb[6].mxu1  ;;  %v580_v44 = vadd.f32 (!%p731_p13), %v732_v42, %v557_v41  ;;  %v565_v59 = vld [vmem:[#allocation2 + $0x40] sm:$0xff] (!%p731_p13)  ;;  %v589_v8 = vadd.f32 (!%p731_p13), %v732_v42, %v566_v60 }
 0x139   : > { %v527_v35 = vadd.f32 %v810_v33, %v334_v29  ;;  %v535_v36 = vadd.f32 %v822_v34, %v342_v30  ;;  %v471_v37 = vpop.f32.mrb[7].mxu0  ;;  %v511_v38 = vpop.f32.mrb[7].mxu1  ;;  %v597_v56 = vmax.f32 (!%p731_p13), %v581_v45, 0.0  ;;  %v588_v7 = vadd.f32 (!%p731_p13), %v732_v42, %v565_v59 }
 0x13a   : > { %v526_v39 = vadd.f32 %v471_v37, %v333_v31  ;;  %v534_v40 = vadd.f32 %v511_v38, %v341_v32  ;;  %v560_v47 = vld [vmem:[#allocation2 + $0x18] sm:$0xff] (!%p731_p13)  ;;  %v596_v55 = vmax.f32 (!%p731_p13), %v580_v44, 0.0  ;;  %v605_v16 = vmax.f32 (!%p731_p13), %v589_v8, 0.0 }
 0x13b   : > { %544 = vst.msk [vmem:[#allocation2 + $0x38] sm:$0xff] %vm536_vm1, %v527_v35  ;;  %552 = vst.msk [vmem:[#allocation2 + $0x78] sm:$0xff] %vm536_vm1, %v535_v36  ;;  %v559_v46 = vld [vmem:[#allocation2 + $0x10] sm:$0xff] (!%p731_p13)  ;;  %v583_v50 = vadd.f32 (!%p731_p13), %v732_v42, %v560_v47  ;;  %v568_v2 = vld [vmem:[#allocation2 + $0x58] sm:$0xff] (!%p731_p13)  ;;  %v604_v15 = vmax.f32 (!%p731_p13), %v588_v7, 0.0 }
 0x13c   : > { %543 = vst.msk [vmem:[#allocation2 + $0x30] sm:$0xff] %vm536_vm1, %v526_v39  ;;  %551 = vst.msk [vmem:[#allocation2 + $0x70] sm:$0xff] %vm536_vm1, %v534_v40  ;;  %v582_v49 = vadd.f32 (!%p731_p13), %v732_v42, %v559_v46  ;;  %v567_v61 = vld [vmem:[#allocation2 + $0x50] sm:$0xff] (!%p731_p13)  ;;  %v591_v13 = vadd.f32 (!%p731_p13), %v732_v42, %v568_v2 }
 0x13d   : > { %v599_v63 = vmax.f32 %v583_v50, 0.0  ;;  %612 = vst.msk [vmem:[%s1097_s29] sm:$0xff] %vm536_vm1, %v596_v55  ;;  %613 = vst.msk [vmem:[%s1097_s29 + $0x8] sm:$0xff] %vm536_vm1, %v597_v56  ;;  %v590_v12 = vadd.f32 %v732_v42, %v567_v61 }
 0x13e   : > { %v562_v52 = vld [vmem:[#allocation2 + $0x28] sm:$0xff]  ;;  %v598_v62 = vmax.f32 %v582_v49, 0.0  ;;  %v607_v20 = vmax.f32 %v591_v13, 0.0  ;;  %620 = vst.msk [vmem:[%s1097_s29 + $0x40] sm:$0xff] %vm536_vm1, %v604_v15  ;;  %621 = vst.msk [vmem:[%s1097_s29 + $0x48] sm:$0xff] %vm536_vm1, %v605_v16 }
 0x13f   : > { %v561_v48 = vld [vmem:[#allocation2 + $0x20] sm:$0xff]  ;;  %v585_v57 = vadd.f32 %v732_v42, %v562_v52  ;;  %v570_v4 = vld [vmem:[#allocation2 + $0x68] sm:$0xff]  ;;  %615 = vst.msk [vmem:[%s1097_s29 + $0x18] sm:$0xff] %vm536_vm1, %v599_v63  ;;  %v606_v19 = vmax.f32 %v590_v12, 0.0 }
 0x140   : > { %v584_v51 = vadd.f32 %v732_v42, %v561_v48  ;;  %v569_v3 = vld [vmem:[#allocation2 + $0x60] sm:$0xff]  ;;  %614 = vst.msk [vmem:[%s1097_s29 + $0x10] sm:$0xff] %vm536_vm1, %v598_v62  ;;  %v593_v17 = vadd.f32 %v732_v42, %v570_v4  ;;  %623 = vst.msk [vmem:[%s1097_s29 + $0x58] sm:$0xff] %vm536_vm1, %v607_v20 }
 0x141   : > { %v601_v5 = vmax.f32 %v585_v57, 0.0  ;;  %v592_v14 = vadd.f32 %v732_v42, %v569_v3  ;;  %622 = vst.msk [vmem:[%s1097_s29 + $0x50] sm:$0xff] %vm536_vm1, %v606_v19 }
 0x142   : > { %v564_v54 = vld [vmem:[#allocation2 + $0x38] sm:$0xff]  ;;  %v600_v0 = vmax.f32 %v584_v51, 0.0  ;;  %v609_v23 = vmax.f32 %v593_v17, 0.0 }
 0x143   : > { %v563_v53 = vld [vmem:[#allocation2 + $0x30] sm:$0xff]  ;;  %v587_v1 = vadd.f32 %v732_v42, %v564_v54  ;;  %v572_v10 = vld [vmem:[#allocation2 + $0x78] sm:$0xff]  ;;  %617 = vst.msk [vmem:[%s1097_s29 + $0x28] sm:$0xff] %vm536_vm1, %v601_v5  ;;  %v608_v21 = vmax.f32 %v592_v14, 0.0 }
 0x144   : > { %v586_v58 = vadd.f32 %v732_v42, %v563_v53  ;;  %v571_v9 = vld [vmem:[#allocation2 + $0x70] sm:$0xff]  ;;  %616 = vst.msk [vmem:[%s1097_s29 + $0x20] sm:$0xff] %vm536_vm1, %v600_v0  ;;  %v595_v22 = vadd.f32 %v732_v42, %v572_v10  ;;  %625 = vst.msk [vmem:[%s1097_s29 + $0x68] sm:$0xff] %vm536_vm1, %v609_v23 }
 0x145   : > { %v603_v11 = vmax.f32 %v587_v1, 0.0  ;;  %v594_v18 = vadd.f32 %v732_v42, %v571_v9  ;;  %624 = vst.msk [vmem:[%s1097_s29 + $0x60] sm:$0xff] %vm536_vm1, %v608_v21 }
 0x146   : > { %v602_v6 = vmax.f32 %v586_v58, 0.0  ;;  %v611_v25 = vmax.f32 %v595_v22, 0.0 }
 0x147   : > { %619 = vst.msk [vmem:[%s1097_s29 + $0x38] sm:$0xff] %vm536_vm1, %v603_v11  ;;  %v610_v24 = vmax.f32 %v594_v18, 0.0 }
 0x148   : > { %618 = vst.msk [vmem:[%s1097_s29 + $0x30] sm:$0xff] %vm536_vm1, %v602_v6  ;;  %627 = vst.msk [vmem:[%s1097_s29 + $0x78] sm:$0xff] %vm536_vm1, %v611_v25 }
 0x149   : > { %626 = vst.msk [vmem:[%s1097_s29 + $0x70] sm:$0xff] %vm536_vm1, %v610_v24 }
 0x14a PF: > { %s13_s18 = sadd.s32 1, %s983_s18   ;;  %s1227_s12 = smov %s963_s13 }
 0x14b   : > { %p10_p0 = scmp.ge.s32.totalorder %s13_s18, 22   ;;  %s1228_s13 = smov %s1057_s25 }
 0x14c   : > { %s1229_s14 = smov %s975_s16  ;;  %s1230_s15 = smov %s979_s17 }
 0x14d   : > { %s1231_s16 = smov %s1234_s19  ;;  %s1232_s17 = smov %s1238_s20 }
 0x14e   :  { %12 = sbr.rel (!%p10_p0) target bundleno = 4 (0x4), region = 116 }

// kernel: resnet18_forward.23
= control target key start
LH: loop header
LB: loop body
LE: loop exit
PB: predicated region body
PF: predicated region fallthrough
CT: control target
= control target key end

     0   :  { %s1106_s15 = smov 0   ;;  %s1108_s16 = smov 0   ;;  %s1362_s0 = inlined_call_operand.vmem [shape: f32[512,640], index: 0, kind: input, shape index: {}]   ;;  %s1363_s1 = inlined_call_operand.vmem [shape: f32[640,64], index: 1, kind: input, shape index: {}]   ;;  %s1364_s2 = inlined_call_operand.vmem [shape: f32[1,64], index: 2, kind: input, shape index: {}]   ;;  %s1365_s3 = inlined_call_operand.vmem [shape: f32[512,64], index: 3, kind: input, shape index: {}]   ;;  %s1366_s4 = inlined_call_operand.vmem [shape: f32[512,64], index: 4, kind: output, shape index: {}]  }
   0x1   :  { %s1110_s17 = smov 0   ;;  %s1112_s18 = smov 0  }
   0x2   :  { %s1114_s19 = smov 0   ;;  %s1116_s20 = smov 0  }
   0x3   :  { %s1118_s21 = smov 0  }
   0x4 LB: > { %s23_s22 = sadd.s32 1, %s1070_s19  ;;  %s26_s23 = sadd.s32 1, %s1074_s20  ;;  %s1078_s21 = sphi %s1118_s21, %s14_s21   ;;  %s1074_s20 = sphi %s1116_s20, %s1372_s20   ;;  %s1070_s19 = sphi %s1114_s19, %s1371_s19   ;;  %s1066_s18 = sphi %s1112_s18, %s1370_s18   ;;  %s1062_s17 = sphi %s1110_s17, %s1369_s17   ;;  %s1058_s16 = sphi %s1108_s16, %s1368_s16   ;;  %s1054_s15 = sphi %s1106_s15, %s1367_s15  }
   0x5   : > { %p24_p0 = scmp.ge.s32.totalorder %s23_s22, 5  ;;  %p42_p1 = scmp.ne.s32.totalorder %s1058_s16, %s1054_s15 }
   0x6   : > { %p43_p2 = scmp.eq.s32.totalorder %s1078_s21, 0  ;;  %s35_s27 = sadd.s32 1, %s1058_s16 }
   0x7   : > { %s1374_s22 = smov (%p24_p0, %s23_s22), 0  ;;  %s1376_s23 = smov (!%p24_p0, %s26_s23), %s1074_s20 }
   0x8   : > { %p44_p3 = por %p43_p2, %p42_p1  ;;  %p28_p4 = scmp.ge.s32.totalorder %s1376_s23, 4 }
   0x9   : > { %s31_s24 = ssub.s32 %s1070_s19, %s1374_s22  ;;  %p812_p6 = scmp.ge.s32.totalorder %s1078_s21, 20 }
   0xa   : > { %s1378_s23 = smov (%p28_p4, %s1376_s23), 0 }
   0xb   : > { %s30_s25 = ssub.s32 %s1074_s20, %s1378_s23  ;;  %170 = sbr.rel (%p812_p6) target bundleno = 33 (0x21), region = 20 }
   0xc   : > { %s32_s26 = sor.u32 %s31_s24, %s30_s25 }
   0xd   : > { %p33_p5 = scmp.eq.s32.totalorder %s32_s26, 0 }
   0xf   : > { %s1157_s28 = scalar_select %p33_p5, %s1058_s16, %s35_s27  }
  0x12   : > { %173 = sbr.rel (!%p44_p3) target bundleno = 33 (0x21), region = 24  ;;  %s175_s29 = sand.u32 (%p44_p3), 1, %s1058_s16  }
  0x13   : > { %s966_s30 = smul.u32 (%p44_p3), 80, %s1074_s20  ;;  %s813_s5 = sshll.u32 (%p44_p3), %s175_s29, 7 }
  0x14   : > { %s177_s11 = scalar_lea.vmem (%p44_p3), [#allocation3], %s813_s5 }
  0x15   : > { %s180_s6 = sadd.s32 (%p44_p3), %s1070_s19, %s966_s30 }
  0x16   : > { %s816_s7 = sshll.u32 (%p44_p3), %s180_s6, 3 }
  0x17   : > { %s1166_s10 = scalar_lea.vmem (%p44_p3), %s1362_s0, %s816_s7 }
  0x18   : > { %v240_v0 = vld [vmem:[%s1166_s10] sm:$0xff] (%p44_p3)  ;;  %v242_v1 = vld [vmem:[%s1166_s10 + $0x28] sm:$0xff] (%p44_p3)  ;;  %v244_v2 = vld [vmem:[%s1166_s10 + $0x50] sm:$0xff] (%p44_p3) }
  0x19   : > { %241 = vst [vmem:[%s177_s11] sm:$0xff] %v240_v0  ;;  %243 = vst [vmem:[%s177_s11 + $0x8] sm:$0xff] %v242_v1  ;;  %v246_v3 = vld [vmem:[%s1166_s10 + $0x78] sm:$0xff]  ;;  %v248_v4 = vld [vmem:[%s1166_s10 + $0xa0] sm:$0xff] }
  0x1a   : > { %245 = vst [vmem:[%s177_s11 + $0x10] sm:$0xff] %v244_v2  ;;  %v250_v5 = vld [vmem:[%s1166_s10 + $0xc8] sm:$0xff]  ;;  %247 = vst [vmem:[%s177_s11 + $0x18] sm:$0xff] %v246_v3  ;;  %v252_v6 = vld [vmem:[%s1166_s10 + $0xf0] sm:$0xff] }
  0x1b   : > { %249 = vst [vmem:[%s177_s11 + $0x20] sm:$0xff] %v248_v4  ;;  %251 = vst [vmem:[%s177_s11 + $0x28] sm:$0xff] %v250_v5  ;;  %v254_v7 = vld [vmem:[%s1166_s10 + $0x118] sm:$0xff]  ;;  %v256_v8 = vld [vmem:[%s1166_s10 + $0x140] sm:$0xff] }
  0x1c   : > { %253 = vst [vmem:[%s177_s11 + $0x30] sm:$0xff] %v252_v6  ;;  %255 = vst [vmem:[%s177_s11 + $0x38] sm:$0xff] %v254_v7  ;;  %v258_v9 = vld [vmem:[%s1166_s10 + $0x168] sm:$0xff]  ;;  %v260_v10 = vld [vmem:[%s1166_s10 + $0x190] sm:$0xff] }
  0x1d   : > { %257 = vst [vmem:[%s177_s11 + $0x40] sm:$0xff] %v256_v8  ;;  %v262_v11 = vld [vmem:[%s1166_s10 + $0x1b8] sm:$0xff]  ;;  %259 = vst [vmem:[%s177_s11 + $0x48] sm:$0xff] %v258_v9  ;;  %v264_v12 = vld [vmem:[%s1166_s10 + $0x1e0] sm:$0xff] }
  0x1e   : > { %261 = vst [vmem:[%s177_s11 + $0x50] sm:$0xff] %v260_v10  ;;  %263 = vst [vmem:[%s177_s11 + $0x58] sm:$0xff] %v262_v11  ;;  %v266_v13 = vld [vmem:[%s1166_s10 + $0x208] sm:$0xff]  ;;  %v268_v14 = vld [vmem:[%s1166_s10 + $0x230] sm:$0xff] }
  0x1f   : > { %265 = vst [vmem:[%s177_s11 + $0x60] sm:$0xff] %v264_v12  ;;  %267 = vst [vmem:[%s177_s11 + $0x68] sm:$0xff] %v266_v13  ;;  %v270_v15 = vld [vmem:[%s1166_s10 + $0x258] sm:$0xff] }
  0x20   : > { %269 = vst [vmem:[%s177_s11 + $0x70] sm:$0xff] %v268_v14  ;;  %271 = vst [vmem:[%s177_s11 + $0x78] sm:$0xff] %v270_v15 }
  0x21 PF: > { %p817_p7 = scmp.ge.s32.totalorder %s1078_s21, 1  ;;  %p294_p8 = scmp.lt.s32.totalorder %s1078_s21, 21 }
  0x23   : > { %p295_p9 = pnand %p817_p7, %p294_p8 }
  0x24   : > { %s301_s12 = sand.u32 (!%p295_p9), 1, %s1054_s15   ;;  %s819_s13 = sshll.u32 (!%p295_p9), %s1062_s17, 4 }
  0x25   : > { %298 = sbr.rel (%p295_p9) target bundleno = 332 (0x14c), region = 70  ;;  %s818_s14 = sshll.u32 (!%p295_p9), %s301_s12, 7 }
  0x26   : > { %p338_p10 = scmp.lt.s32.totalorder (!%p295_p9), %s819_s13, 79  ;;  %s821_s24 = sshll.u32 (!%p295_p9), %s1066_s18, 4 }
  0x27   : > { %p344_p11 = scmp.lt.s32.totalorder (!%p295_p9), %s821_s24, 63  ;;  %s1204_s18 = scalar_lea.vmem (!%p295_p9), [#allocation3], %s818_s14 }
  0x28   : > { %p825_p12 = scmp.ne.s32.totalorder (!%p295_p9), %s1062_s17, 0 }
  0x2c   : > { %s1380_s13 = smov (!%p338_p10, %s819_s13), 79  ;;  %s1382_s24 = smov (!%p344_p11, %s821_s24), 63 }
  0x2d   : > { %s820_s25 = sshll.u32 %s1380_s13, 3  ;;  %s822_s30 = sshll.u32 %s1382_s24, 3  ;;  %vm359_vm0 = vcmask (!%p825_p12), 523264   ;;  %v1080_v16 = vmov (!%p825_p12), 0.0  }
  0x2e   : > { %s1192_s29 = scalar_lea.vmem %s1363_s1, %s820_s25  ;;  %s1197_s7 = scalar_lea.vmem %s1365_s3, %s822_s30  ;;  %360 = vst.msk [vmem:[#allocation2] sm:$0xff] (!%p825_p12), %vm359_vm0, %v1080_v16  ;;  %361 = vst.msk [vmem:[#allocation2 + $0x8] sm:$0xff] (!%p825_p12), %vm359_vm0, %v1080_v16 }
  0x2f   : > { %s1202_s9 = scalar_lea.vmem %s1366_s4, %s822_s30  ;;  %358 = sbr.rel (%p825_p12) target bundleno = 54 (0x36), region = 78  ;;  %362 = vst.msk [vmem:[#allocation2 + $0x10] sm:$0xff] (!%p825_p12), %vm359_vm0, %v1080_v16  ;;  %363 = vst.msk [vmem:[#allocation2 + $0x18] sm:$0xff] (!%p825_p12), %vm359_vm0, %v1080_v16 }
  0x30   : > { %364 = vst.msk [vmem:[#allocation2 + $0x20] sm:$0xff] (!%p825_p12), %vm359_vm0, %v1080_v16  ;;  %365 = vst.msk [vmem:[#allocation2 + $0x28] sm:$0xff] (!%p825_p12), %vm359_vm0, %v1080_v16 }
  0x31   : > { %366 = vst.msk [vmem:[#allocation2 + $0x30] sm:$0xff] (!%p825_p12), %vm359_vm0, %v1080_v16  ;;  %367 = vst.msk [vmem:[#allocation2 + $0x38] sm:$0xff] (!%p825_p12), %vm359_vm0, %v1080_v16 }
  0x32   : > { %368 = vst.msk [vmem:[#allocation2 + $0x40] sm:$0xff] (!%p825_p12), %vm359_vm0, %v1080_v16  ;;  %369 = vst.msk [vmem:[#allocation2 + $0x48] sm:$0xff] (!%p825_p12), %vm359_vm0, %v1080_v16 }
  0x33   : > { %370 = vst.msk [vmem:[#allocation2 + $0x50] sm:$0xff] (!%p825_p12), %vm359_vm0, %v1080_v16  ;;  %371 = vst.msk [vmem:[#allocation2 + $0x58] sm:$0xff] (!%p825_p12), %vm359_vm0, %v1080_v16 }
  0x34   : > { %372 = vst.msk [vmem:[#allocation2 + $0x60] sm:$0xff] (!%p825_p12), %vm359_vm0, %v1080_v16  ;;  %373 = vst.msk [vmem:[#allocation2 + $0x68] sm:$0xff] (!%p825_p12), %vm359_vm0, %v1080_v16 }
  0x35   : > { %374 = vst.msk [vmem:[#allocation2 + $0x70] sm:$0xff] (!%p825_p12), %vm359_vm0, %v1080_v16  ;;  %375 = vst.msk [vmem:[#allocation2 + $0x78] sm:$0xff] (!%p825_p12), %vm359_vm0, %v1080_v16 }
  0x36 PF: > { %v408_v17 = vld [vmem:[%s1192_s29] sm:$0xff]  ;;  %v409_v18 = vld [vmem:[%s1192_s29 + $0x8] sm:$0xff]  ;;  %v410_v19 = vld [vmem:[%s1192_s29 + $0x10] sm:$0xff]  ;;  %vm585_vm1 = vcmask 523264   ;;  %p826_p13 = scmp.ne.s32.totalorder %s1062_s17, 4 }
  0x37   : > { %v918_v20 = vpack.c.bf16 %v409_v18, %v408_v17  ;;  %v411_v21 = vld [vmem:[%s1192_s29 + $0x18] sm:$0xff]  ;;  %v412_v23 = vld [vmem:[%s1192_s29 + $0x20] sm:$0xff]  ;;  %v413_v24 = vld [vmem:[%s1192_s29 + $0x28] sm:$0xff] }
  0x38   : > { %v922_v22 = vpack.c.bf16 %v411_v21, %v410_v19  ;;  %v926_v25 = vpack.c.bf16 %v413_v24, %v412_v23  ;;  %v392_v26 = vld [vmem:[%s1204_s18] sm:$0xff]  ;;  %v414_v28 = vld [vmem:[%s1192_s29 + $0x30] sm:$0xff]  ;;  %v415_v29 = vld [vmem:[%s1192_s29 + $0x38] sm:$0xff] }
  0x39   : > { %919 = vmatprep.subr.bf16.mxu0 %v918_v20  ;;  %950 = vmatprep.subr.bf16.mxu1 %v918_v20  ;;  %v400_v27 = vld [vmem:[%s1204_s18 + $0x40] sm:$0xff]  ;;  %v930_v30 = vpack.c.bf16 %v415_v29, %v414_v28  ;;  %v417_v32 = vld [vmem:[%s1192_s29 + $0x48] sm:$0xff]  ;;  %v418_v34 = vld [vmem:[%s1192_s29 + $0x50] sm:$0xff] }
  0x3a   : > { %921 = vmatpush3.bf16.msra.mxu0 %v918_v20  ;;  %958 = vmatpush3.bf16.msra.mxu1 %v918_v20  ;;  %v416_v31 = vld [vmem:[%s1192_s29 + $0x40] sm:$0xff]  ;;  %v419_v35 = vld [vmem:[%s1192_s29 + $0x58] sm:$0xff]  ;;  %v421_v38 = vld [vmem:[%s1192_s29 + $0x68] sm:$0xff] }
  0x3b   : > { %923 = vmatprep.subr.bf16.mxu0 %v922_v22  ;;  %951 = vmatprep.subr.bf16.mxu1 %v922_v22  ;;  %v934_v33 = vpack.c.bf16 %v417_v32, %v416_v31  ;;  %v938_v36 = vpack.c.bf16 %v419_v35, %v418_v34  ;;  %v420_v37 = vld [vmem:[%s1192_s29 + $0x60] sm:$0xff]  ;;  %v422_v40 = vld [vmem:[%s1192_s29 + $0x70] sm:$0xff]  ;;  %v423_v41 = vld [vmem:[%s1192_s29 + $0x78] sm:$0xff] }
  0x3c   : > { %894 = vmatprep.mubr.f32.mxu0 %v392_v26  ;;  %906 = vmatprep.mubr.f32.mxu1 %v400_v27  ;;  %v942_v39 = vpack.c.bf16 %v421_v38, %v420_v37  ;;  %v946_v42 = vpack.c.bf16 %v423_v41, %v422_v40  ;;  %v393_v43 = vld [vmem:[%s1204_s18 + $0x8] sm:$0xff]  ;;  %v394_v45 = vld [vmem:[%s1204_s18 + $0x10] sm:$0xff]  ;;  %v395_v47 = vld [vmem:[%s1204_s18 + $0x18] sm:$0xff] }
  0x3d   : > { %v401_v44 = vld [vmem:[%s1204_s18 + $0x48] sm:$0xff]  ;;  %v402_v46 = vld [vmem:[%s1204_s18 + $0x50] sm:$0xff]  ;;  %v403_v48 = vld [vmem:[%s1204_s18 + $0x58] sm:$0xff] }
  0x3e   : > { %925 = vmatpush3.bf16.msra.mxu0 %v922_v22  ;;  %959 = vmatpush3.bf16.msra.mxu1 %v922_v22  ;;  %v396_v49 = vld [vmem:[%s1204_s18 + $0x20] sm:$0xff]  ;;  %v397_v51 = vld [vmem:[%s1204_s18 + $0x28] sm:$0xff]  ;;  %v398_v53 = vld [vmem:[%s1204_s18 + $0x30] sm:$0xff] }
  0x3f   : > { %927 = vmatprep.subr.bf16.mxu0 %v926_v25  ;;  %952 = vmatprep.subr.bf16.mxu1 %v926_v25  ;;  %v404_v50 = vld [vmem:[%s1204_s18 + $0x60] sm:$0xff]  ;;  %v405_v52 = vld [vmem:[%s1204_s18 + $0x68] sm:$0xff]  ;;  %v406_v54 = vld [vmem:[%s1204_s18 + $0x70] sm:$0xff] }
  0x40   : > { %v399_v55 = vld [vmem:[%s1204_s18 + $0x38] sm:$0xff]  ;;  %v377_v57 = vld [vmem:[#allocation2 + $0x8] sm:$0xff]  ;;  %v376_v59 = vld [vmem:[#allocation2] sm:$0xff] }
  0x41   : > { %v407_v56 = vld [vmem:[%s1204_s18 + $0x78] sm:$0xff]  ;;  %v385_v58 = vld [vmem:[#allocation2 + $0x48] sm:$0xff]  ;;  %v384_v60 = vld [vmem:[#allocation2 + $0x40] sm:$0xff] }
  0x42   : > { %929 = vmatpush3.bf16.msra.mxu0 %v926_v25  ;;  %960 = vmatpush3.bf16.msra.mxu1 %v926_v25  ;;  %v379_v5 = vld [vmem:[#allocation2 + $0x18] sm:$0xff]  ;;  %v378_v7 = vld [vmem:[#allocation2 + $0x10] sm:$0xff]  ;;  %v381_v17 = vld [vmem:[#allocation2 + $0x28] sm:$0xff] }
  0x43   : > { %931 = vmatprep.subr.bf16.mxu0 %v930_v30  ;;  %953 = vmatprep.subr.bf16.mxu1 %v930_v30  ;;  %v387_v6 = vld [vmem:[#allocation2 + $0x58] sm:$0xff]  ;;  %v386_v8 = vld [vmem:[#allocation2 + $0x50] sm:$0xff]  ;;  %v389_v18 = vld [vmem:[#allocation2 + $0x68] sm:$0xff] }
  0x44   : > { %v380_v19 = vld [vmem:[#allocation2 + $0x20] sm:$0xff]  ;;  %v383_v29 = vld [vmem:[#allocation2 + $0x38] sm:$0xff]  ;;  %v382_v31 = vld [vmem:[#allocation2 + $0x30] sm:$0xff] }
  0x45   : > { %v388_v20 = vld [vmem:[#allocation2 + $0x60] sm:$0xff]  ;;  %v390_v32 = vld [vmem:[#allocation2 + $0x70] sm:$0xff] }
  0x46   : > { %933 = vmatpush3.bf16.msra.mxu0 %v930_v30  ;;  %961 = vmatpush3.bf16.msra.mxu1 %v930_v30  ;;  %v391_v30 = vld [vmem:[#allocation2 + $0x78] sm:$0xff] }
  0x47   : > { %935 = vmatprep.subr.bf16.mxu0 %v934_v33  ;;  %954 = vmatprep.subr.bf16.mxu1 %v934_v33 }
  0x4a   : > { %937 = vmatpush3.bf16.msra.mxu0 %v934_v33  ;;  %962 = vmatpush3.bf16.msra.mxu1 %v934_v33 }
  0x4b   : > { %939 = vmatprep.subr.bf16.mxu0 %v938_v36  ;;  %955 = vmatprep.subr.bf16.mxu1 %v938_v36 }
  0x4e   : > { %941 = vmatpush3.bf16.msra.mxu0 %v938_v36  ;;  %963 = vmatpush3.bf16.msra.mxu1 %v938_v36 }
  0x4f   : > { %943 = vmatprep.subr.bf16.mxu0 %v942_v39  ;;  %956 = vmatprep.subr.bf16.mxu1 %v942_v39 }
  0x52   : > { %945 = vmatpush3.bf16.msra.mxu0 %v942_v39  ;;  %964 = vmatpush3.bf16.msra.mxu1 %v942_v39 }
  0x53   : > { %947 = vmatprep.subr.bf16.mxu0 %v946_v42  ;;  %957 = vmatprep.subr.bf16.mxu1 %v946_v42 }
  0x56   : > { %949 = vmatpush3.bf16.msra.mxu0 %v946_v42  ;;  %965 = vmatpush3.bf16.msra.mxu1 %v946_v42  ;;  %v1275_v42 = vld [vmem:[%s1364_s2] ss:$0 sm:$0xff] (!%p826_p13) }
  0x59   : > { %895 = vmatmul.mubr.f32.vlgmr.msra.gmra.mrb[0].mxu0 %v393_v43  ;;  %907 = vmatmul.mubr.f32.vlgmr.msra.gmra.mrb[0].mxu1 %v401_v44  ;;  %v645_v43 = vld [vmem:[%s1197_s7] sm:$0xff] (!%p826_p13) }
  0x5a   : > { %897 = vmatprep.mubr.f32.mxu0 %v394_v45  ;;  %909 = vmatprep.mubr.f32.mxu1 %v402_v46  ;;  %v646_v46 = vld [vmem:[%s1197_s7 + $0x8] sm:$0xff] (!%p826_p13) }
  0x5d   : > { %898 = vmatmul.mubr.f32.gmra.mrb[2].mxu0 %v395_v47  ;;  %910 = vmatmul.mubr.f32.gmra.mrb[2].mxu1 %v403_v48 }
  0x5e   : > { %900 = vmatprep.mubr.f32.mxu0 %v396_v49  ;;  %912 = vmatprep.mubr.f32.mxu1 %v404_v50  ;;  %v647_v50 = vld [vmem:[%s1197_s7 + $0x10] sm:$0xff] (!%p826_p13) }
  0x61   : > { %901 = vmatmul.mubr.f32.gmra.mrb[4].mxu0 %v397_v51  ;;  %913 = vmatmul.mubr.f32.gmra.mrb[4].mxu1 %v405_v52  ;;  %v648_v52 = vld [vmem:[%s1197_s7 + $0x18] sm:$0xff] (!%p826_p13) }
  0x62   : > { %903 = vmatprep.mubr.f32.mxu0 %v398_v53  ;;  %915 = vmatprep.mubr.f32.mxu1 %v406_v54 }
  0x65   : > { %904 = vmatmul.mubr.f32.gmra.mrb[6].mxu0 %v399_v55  ;;  %916 = vmatmul.mubr.f32.gmra.mrb[6].mxu1 %v407_v56  ;;  %v649_v56 = vld [vmem:[%s1197_s7 + $0x20] sm:$0xff] (!%p826_p13) }
 0x12c   : > { %v896_v61 = vpop.f32.mrb[0].mxu0  ;;  %v908_v62 = vpop.f32.mrb[0].mxu1 }
 0x12d   : > { %v570_v63 = vadd.f32 %v896_v61, %v377_v57  ;;  %v578_v0 = vadd.f32 %v908_v62, %v385_v58  ;;  %v490_v1 = vpop.f32.mrb[1].mxu0  ;;  %v530_v2 = vpop.f32.mrb[1].mxu1  ;;  %v650_v62 = vld [vmem:[%s1197_s7 + $0x28] sm:$0xff] (!%p826_p13) }
 0x12e   : > { %v569_v3 = vadd.f32 %v490_v1, %v376_v59  ;;  %v577_v4 = vadd.f32 %v530_v2, %v384_v60 }
 0x12f   : > { %587 = vst.msk [vmem:[#allocation2 + $0x8] sm:$0xff] %vm585_vm1, %v570_v63  ;;  %595 = vst.msk [vmem:[#allocation2 + $0x48] sm:$0xff] %vm585_vm1, %v578_v0  ;;  %v651_v0 = vld [vmem:[%s1197_s7 + $0x30] sm:$0xff] (!%p826_p13) }
 0x130   : > { %586 = vst.msk [vmem:[#allocation2] sm:$0xff] %vm585_vm1, %v569_v3  ;;  %594 = vst.msk [vmem:[#allocation2 + $0x40] sm:$0xff] %vm585_vm1, %v577_v4  ;;  %v899_v9 = vpop.f32.mrb[2].mxu0  ;;  %v911_v10 = vpop.f32.mrb[2].mxu1 }
 0x131   : > { %v572_v11 = vadd.f32 %v899_v9, %v379_v5  ;;  %v580_v12 = vadd.f32 %v911_v10, %v387_v6  ;;  %v500_v13 = vpop.f32.mrb[3].mxu0  ;;  %v540_v14 = vpop.f32.mrb[3].mxu1  ;;  %v652_v5 = vld [vmem:[%s1197_s7 + $0x38] sm:$0xff] (!%p826_p13) }
 0x132   : > { %v571_v15 = vadd.f32 %v500_v13, %v378_v7  ;;  %v579_v16 = vadd.f32 %v540_v14, %v386_v8  ;;  %v654_v13 = vld [vmem:[%s1197_s7 + $0x48] sm:$0xff] (!%p826_p13) }
 0x133   : > { %589 = vst.msk [vmem:[#allocation2 + $0x18] sm:$0xff] %vm585_vm1, %v572_v11  ;;  %597 = vst.msk [vmem:[#allocation2 + $0x58] sm:$0xff] %vm585_vm1, %v580_v12  ;;  %v653_v11 = vld [vmem:[%s1197_s7 + $0x40] sm:$0xff] (!%p826_p13) }
 0x134   : > { %588 = vst.msk [vmem:[#allocation2 + $0x10] sm:$0xff] %vm585_vm1, %v571_v15  ;;  %596 = vst.msk [vmem:[#allocation2 + $0x50] sm:$0xff] %vm585_vm1, %v579_v16  ;;  %v902_v21 = vpop.f32.mrb[4].mxu0  ;;  %v914_v22 = vpop.f32.mrb[4].mxu1 }
 0x135   : > { %v574_v23 = vadd.f32 %v902_v21, %v381_v17  ;;  %v582_v24 = vadd.f32 %v914_v22, %v389_v18  ;;  %v510_v25 = vpop.f32.mrb[5].mxu0  ;;  %v550_v26 = vpop.f32.mrb[5].mxu1 }
 0x136   : > { %v573_v27 = vadd.f32 %v510_v25, %v380_v19  ;;  %v581_v28 = vadd.f32 %v550_v26, %v388_v20  ;;  %605 = sbr.rel (%p826_p13) target bundleno = 332 (0x14c), region = 82  ;;  %v607_v45 = vld [vmem:[#allocation2 + $0x8] sm:$0xff] (!%p826_p13)  ;;  %v655_v19 = vld [vmem:[%s1197_s7 + $0x50] sm:$0xff] (!%p826_p13)  ;;  %v656_v25 = vld [vmem:[%s1197_s7 + $0x58] sm:$0xff] (!%p826_p13) }
 0x137   : > { %591 = vst.msk [vmem:[#allocation2 + $0x28] sm:$0xff] %vm585_vm1, %v574_v23  ;;  %599 = vst.msk [vmem:[#allocation2 + $0x68] sm:$0xff] %vm585_vm1, %v582_v24  ;;  %v606_v41 = vld [vmem:[#allocation2] sm:$0xff] (!%p826_p13)  ;;  %v630_v48 = vadd.f32 (!%p826_p13), %v1275_v42, %v607_v45  ;;  %v615_v12 = vld [vmem:[#allocation2 + $0x48] sm:$0xff] (!%p826_p13) }
 0x138   : > { %590 = vst.msk [vmem:[#allocation2 + $0x20] sm:$0xff] %vm585_vm1, %v573_v27  ;;  %598 = vst.msk [vmem:[#allocation2 + $0x60] sm:$0xff] %vm585_vm1, %v581_v28  ;;  %v905_v33 = vpop.f32.mrb[6].mxu0  ;;  %v917_v34 = vpop.f32.mrb[6].mxu1  ;;  %v629_v44 = vadd.f32 (!%p826_p13), %v1275_v42, %v606_v41  ;;  %v614_v6 = vld [vmem:[#allocation2 + $0x40] sm:$0xff] (!%p826_p13)  ;;  %v638_v23 = vadd.f32 (!%p826_p13), %v1275_v42, %v615_v12 }
 0x139   : > { %v576_v35 = vadd.f32 %v905_v33, %v383_v29  ;;  %v584_v36 = vadd.f32 %v917_v34, %v391_v30  ;;  %v520_v37 = vpop.f32.mrb[7].mxu0  ;;  %v560_v38 = vpop.f32.mrb[7].mxu1  ;;  %v662_v58 = vadd.f32 (!%p826_p13), %v646_v46, %v630_v48  ;;  %v637_v17 = vadd.f32 (!%p826_p13), %v1275_v42, %v614_v6  ;;  %v657_v27 = vld [vmem:[%s1197_s7 + $0x60] sm:$0xff] (!%p826_p13)  ;;  %v658_v33 = vld [vmem:[%s1197_s7 + $0x68] sm:$0xff] (!%p826_p13) }
 0x13a   : > { %v575_v39 = vadd.f32 %v520_v37, %v382_v31  ;;  %v583_v40 = vadd.f32 %v560_v38, %v390_v32  ;;  %v609_v51 = vld [vmem:[#allocation2 + $0x18] sm:$0xff] (!%p826_p13)  ;;  %v661_v53 = vadd.f32 (!%p826_p13), %v645_v43, %v629_v44 }
 0x13b   : > { %593 = vst.msk [vmem:[#allocation2 + $0x38] sm:$0xff] %vm585_vm1, %v576_v35  ;;  %601 = vst.msk [vmem:[#allocation2 + $0x78] sm:$0xff] %vm585_vm1, %v584_v36  ;;  %v608_v47 = vld [vmem:[#allocation2 + $0x10] sm:$0xff] (!%p826_p13)  ;;  %v632_v54 = vadd.f32 (!%p826_p13), %v1275_v42, %v609_v51  ;;  %v678_v7 = vmax.f32 (!%p826_p13), %v662_v58, 0.0  ;;  %v617_v20 = vld [vmem:[#allocation2 + $0x58] sm:$0xff] (!%p826_p13)  ;;  %v669_v30 = vadd.f32 (!%p826_p13), %v653_v11, %v637_v17  ;;  %v670_v35 = vadd.f32 (!%p826_p13), %v654_v13, %v638_v23 }
 0x13c   : > { %592 = vst.msk [vmem:[#allocation2 + $0x30] sm:$0xff] %vm585_vm1, %v575_v39  ;;  %600 = vst.msk [vmem:[#allocation2 + $0x70] sm:$0xff] %vm585_vm1, %v583_v40  ;;  %v631_v49 = vadd.f32 (!%p826_p13), %v1275_v42, %v608_v47  ;;  %v677_v1 = vmax.f32 (!%p826_p13), %v661_v53, 0.0  ;;  %v616_v18 = vld [vmem:[#allocation2 + $0x50] sm:$0xff] (!%p826_p13)  ;;  %v640_v31 = vadd.f32 (!%p826_p13), %v1275_v42, %v617_v20 }
 0x13d   : > { %v664_v2 = vadd.f32 %v648_v52, %v632_v54  ;;  %694 = vst.msk [vmem:[%s1202_s9 + $0x8] sm:$0xff] %vm585_vm1, %v678_v7  ;;  %v639_v24 = vadd.f32 %v1275_v42, %v616_v18  ;;  %v659_v39 = vld [vmem:[%s1197_s7 + $0x70] sm:$0xff]  ;;  %v685_v43 = vmax.f32 %v669_v30, 0.0  ;;  %v686_v46 = vmax.f32 %v670_v35, 0.0 }
 0x13e   : > { %v611_v57 = vld [vmem:[#allocation2 + $0x28] sm:$0xff]  ;;  %v663_v59 = vadd.f32 %v647_v50, %v631_v49  ;;  %693 = vst.msk [vmem:[%s1202_s9] sm:$0xff] %vm585_vm1, %v677_v1  ;;  %v672_v44 = vadd.f32 %v656_v25, %v640_v31  ;;  %v660_v50 = vld [vmem:[%s1197_s7 + $0x78] sm:$0xff] }
 0x13f   : > { %v610_v55 = vld [vmem:[#allocation2 + $0x20] sm:$0xff]  ;;  %v634_v61 = vadd.f32 %v1275_v42, %v611_v57  ;;  %v680_v14 = vmax.f32 %v664_v2, 0.0  ;;  %v619_v32 = vld [vmem:[#allocation2 + $0x68] sm:$0xff]  ;;  %v671_v36 = vadd.f32 %v655_v19, %v639_v24  ;;  %701 = vst.msk [vmem:[%s1202_s9 + $0x40] sm:$0xff] %vm585_vm1, %v685_v43  ;;  %702 = vst.msk [vmem:[%s1202_s9 + $0x48] sm:$0xff] %vm585_vm1, %v686_v46 }
 0x140   : > { %v633_v60 = vadd.f32 %v1275_v42, %v610_v55  ;;  %v679_v8 = vmax.f32 %v663_v59, 0.0  ;;  %v618_v26 = vld [vmem:[#allocation2 + $0x60] sm:$0xff]  ;;  %v642_v38 = vadd.f32 %v1275_v42, %v619_v32  ;;  %v688_v51 = vmax.f32 %v672_v44, 0.0 }
 0x141   : > { %v666_v10 = vadd.f32 %v650_v62, %v634_v61  ;;  %696 = vst.msk [vmem:[%s1202_s9 + $0x18] sm:$0xff] %vm585_vm1, %v680_v14  ;;  %v641_v37 = vadd.f32 %v1275_v42, %v618_v26  ;;  %v687_v47 = vmax.f32 %v671_v36, 0.0 }
 0x142   : > { %v613_v4 = vld [vmem:[#allocation2 + $0x38] sm:$0xff]  ;;  %v665_v9 = vadd.f32 %v649_v56, %v633_v60  ;;  %695 = vst.msk [vmem:[%s1202_s9 + $0x10] sm:$0xff] %vm585_vm1, %v679_v8  ;;  %v674_v49 = vadd.f32 %v658_v33, %v642_v38  ;;  %704 = vst.msk [vmem:[%s1202_s9 + $0x58] sm:$0xff] %vm585_vm1, %v688_v51 }
 0x143   : > { %v612_v63 = vld [vmem:[#allocation2 + $0x30] sm:$0xff]  ;;  %v636_v16 = vadd.f32 %v1275_v42, %v613_v4  ;;  %v682_v22 = vmax.f32 %v666_v10, 0.0  ;;  %v621_v40 = vld [vmem:[#allocation2 + $0x78] sm:$0xff]  ;;  %v673_v48 = vadd.f32 %v657_v27, %v641_v37  ;;  %703 = vst.msk [vmem:[%s1202_s9 + $0x50] sm:$0xff] %vm585_vm1, %v687_v47 }
 0x144   : > { %v635_v3 = vadd.f32 %v1275_v42, %v612_v63  ;;  %v681_v21 = vmax.f32 %v665_v9, 0.0  ;;  %v620_v34 = vld [vmem:[#allocation2 + $0x70] sm:$0xff]  ;;  %v644_v53 = vadd.f32 %v1275_v42, %v621_v40  ;;  %v690_v55 = vmax.f32 %v674_v49, 0.0 }
 0x145   : > { %v668_v29 = vadd.f32 %v652_v5, %v636_v16  ;;  %698 = vst.msk [vmem:[%s1202_s9 + $0x28] sm:$0xff] %vm585_vm1, %v682_v22  ;;  %v643_v45 = vadd.f32 %v1275_v42, %v620_v34  ;;  %v689_v54 = vmax.f32 %v673_v48, 0.0 }
 0x146   : > { %v667_v15 = vadd.f32 %v651_v0, %v635_v3  ;;  %697 = vst.msk [vmem:[%s1202_s9 + $0x20] sm:$0xff] %vm585_vm1, %v681_v21  ;;  %v676_v57 = vadd.f32 %v660_v50, %v644_v53  ;;  %706 = vst.msk [vmem:[%s1202_s9 + $0x68] sm:$0xff] %vm585_vm1, %v690_v55 }
 0x147   : > { %v684_v41 = vmax.f32 %v668_v29, 0.0  ;;  %v675_v52 = vadd.f32 %v659_v39, %v643_v45  ;;  %705 = vst.msk [vmem:[%s1202_s9 + $0x60] sm:$0xff] %vm585_vm1, %v689_v54 }
 0x148   : > { %v683_v28 = vmax.f32 %v667_v15, 0.0  ;;  %v692_v58 = vmax.f32 %v676_v57, 0.0 }
 0x149   : > { %700 = vst.msk [vmem:[%s1202_s9 + $0x38] sm:$0xff] %vm585_vm1, %v684_v41  ;;  %v691_v56 = vmax.f32 %v675_v52, 0.0 }
 0x14a   : > { %699 = vst.msk [vmem:[%s1202_s9 + $0x30] sm:$0xff] %vm585_vm1, %v683_v28  ;;  %708 = vst.msk [vmem:[%s1202_s9 + $0x78] sm:$0xff] %vm585_vm1, %v692_v58 }
 0x14b   : > { %707 = vst.msk [vmem:[%s1202_s9 + $0x70] sm:$0xff] %vm585_vm1, %v691_v56 }
 0x14c PF: > { %s14_s21 = sadd.s32 1, %s1078_s21   ;;  %s1367_s15 = smov %s1058_s16 }
 0x14d   : > { %p11_p0 = scmp.ge.s32.totalorder %s14_s21, 22   ;;  %s1368_s16 = smov %s1157_s28 }
 0x14e   : > { %s1369_s17 = smov %s1070_s19  ;;  %s1370_s18 = smov %s1074_s20 }
 0x14f   : > { %s1371_s19 = smov %s1374_s22  ;;  %s1372_s20 = smov %s1378_s23 }
 0x150   :  { %13 = sbr.rel (!%p11_p0) target bundleno = 4 (0x4), region = 123 }

// kernel: resnet18_forward.27
= control target key start
LH: loop header
LB: loop body
LE: loop exit
PB: predicated region body
PF: predicated region fallthrough
CT: control target
= control target key end

     0   :  { %s962_s12 = smov 0   ;;  %s964_s13 = smov 0   ;;  %s1134_s0 = inlined_call_operand.vmem [shape: f32[128,640], index: 0, kind: input, shape index: {}]   ;;  %s1135_s1 = inlined_call_operand.vmem [shape: f32[640,128], index: 1, kind: input, shape index: {}]   ;;  %s1136_s2 = inlined_call_operand.vmem [shape: f32[1,128], index: 2, kind: input, shape index: {}]   ;;  %s1137_s3 = inlined_call_operand.vmem [shape: f32[128,128], index: 3, kind: output, shape index: {}]  }
   0x1   :  { %s966_s14 = smov 0   ;;  %s968_s15 = smov 0  }
   0x2   :  { %s970_s16 = smov 0  }
   0x3 LB: > { %s22_s17 = sadd.s32 1, %s935_s15  ;;  %p41_p1 = scmp.ne.s32.totalorder %s927_s13, %s923_s12  ;;  %s939_s16 = sphi %s970_s16, %s13_s16   ;;  %s935_s15 = sphi %s968_s15, %s1141_s15   ;;  %s931_s14 = sphi %s966_s14, %s1140_s14   ;;  %s927_s13 = sphi %s964_s13, %s1139_s13   ;;  %s923_s12 = sphi %s962_s12, %s1138_s12  }
   0x4   : > { %p23_p0 = scmp.ge.s32.totalorder %s22_s17, 5  ;;  %p42_p2 = scmp.eq.s32.totalorder %s939_s16, 0 }
   0x5   : > { %s34_s19 = sadd.s32 1, %s927_s13  ;;  %p710_p5 = scmp.ge.s32.totalorder %s939_s16, 5 }
   0x6   : > { %s1143_s17 = smov (%p23_p0, %s22_s17), 0  ;;  %p43_p3 = por %p42_p2, %p41_p1 }
   0x7   : > { %s30_s18 = ssub.s32 %s935_s15, %s1143_s17  ;;  %143 = sbr.rel (%p710_p5) target bundleno = 26 (0x1a), region = 20 }
   0x8   : > { %p32_p4 = scmp.eq.s32.totalorder %s30_s18, 0 }
   0xa   : > { %s997_s20 = scalar_select %p32_p4, %s927_s13, %s34_s19  }
   0xe   : > { %146 = sbr.rel (!%p43_p3) target bundleno = 26 (0x1a), region = 24  ;;  %s148_s21 = sand.u32 (%p43_p3), 1, %s927_s13  }
   0xf   : > { %s712_s22 = sshll.u32 (%p43_p3), %s935_s15, 3  ;;  %s711_s23 = sshll.u32 (%p43_p3), %s148_s21, 7 }
  0x10   : > { %s1005_s26 = scalar_lea.vmem (%p43_p3), %s1134_s0, %s712_s22  ;;  %s150_s27 = scalar_lea.vmem (%p43_p3), [#allocation3], %s711_s23 }
  0x11   : > { %v213_v0 = vld [vmem:[%s1005_s26] sm:$0xff] (%p43_p3)  ;;  %v215_v1 = vld [vmem:[%s1005_s26 + $0x28] sm:$0xff] (%p43_p3)  ;;  %v217_v2 = vld [vmem:[%s1005_s26 + $0x50] sm:$0xff] (%p43_p3) }
  0x12   : > { %214 = vst [vmem:[%s150_s27] sm:$0xff] (%p43_p3), %v213_v0  ;;  %216 = vst [vmem:[%s150_s27 + $0x8] sm:$0xff] (%p43_p3), %v215_v1  ;;  %v219_v3 = vld [vmem:[%s1005_s26 + $0x78] sm:$0xff] (%p43_p3)  ;;  %v221_v4 = vld [vmem:[%s1005_s26 + $0xa0] sm:$0xff] (%p43_p3) }
  0x13   : > { %218 = vst [vmem:[%s150_s27 + $0x10] sm:$0xff] (%p43_p3), %v217_v2  ;;  %v223_v5 = vld [vmem:[%s1005_s26 + $0xc8] sm:$0xff] (%p43_p3)  ;;  %220 = vst [vmem:[%s150_s27 + $0x18] sm:$0xff] (%p43_p3), %v219_v3  ;;  %v225_v6 = vld [vmem:[%s1005_s26 + $0xf0] sm:$0xff] (%p43_p3) }
  0x14   : > { %222 = vst [vmem:[%s150_s27 + $0x20] sm:$0xff] (%p43_p3), %v221_v4  ;;  %224 = vst [vmem:[%s150_s27 + $0x28] sm:$0xff] (%p43_p3), %v223_v5  ;;  %v227_v7 = vld [vmem:[%s1005_s26 + $0x118] sm:$0xff] (%p43_p3)  ;;  %v229_v8 = vld [vmem:[%s1005_s26 + $0x140] sm:$0xff] (%p43_p3) }
  0x15   : > { %226 = vst [vmem:[%s150_s27 + $0x30] sm:$0xff] %v225_v6  ;;  %228 = vst [vmem:[%s150_s27 + $0x38] sm:$0xff] %v227_v7  ;;  %v231_v9 = vld [vmem:[%s1005_s26 + $0x168] sm:$0xff]  ;;  %v233_v10 = vld [vmem:[%s1005_s26 + $0x190] sm:$0xff] }
  0x16   : > { %230 = vst [vmem:[%s150_s27 + $0x40] sm:$0xff] %v229_v8  ;;  %v235_v11 = vld [vmem:[%s1005_s26 + $0x1b8] sm:$0xff]  ;;  %232 = vst [vmem:[%s150_s27 + $0x48] sm:$0xff] %v231_v9  ;;  %v237_v12 = vld [vmem:[%s1005_s26 + $0x1e0] sm:$0xff] }
  0x17   : > { %234 = vst [vmem:[%s150_s27 + $0x50] sm:$0xff] %v233_v10  ;;  %236 = vst [vmem:[%s150_s27 + $0x58] sm:$0xff] %v235_v11  ;;  %v239_v13 = vld [vmem:[%s1005_s26 + $0x208] sm:$0xff]  ;;  %v241_v14 = vld [vmem:[%s1005_s26 + $0x230] sm:$0xff] }
  0x18   : > { %238 = vst [vmem:[%s150_s27 + $0x60] sm:$0xff] %v237_v12  ;;  %240 = vst [vmem:[%s150_s27 + $0x68] sm:$0xff] %v239_v13  ;;  %v243_v15 = vld [vmem:[%s1005_s26 + $0x258] sm:$0xff] }
  0x19   : > { %242 = vst [vmem:[%s150_s27 + $0x70] sm:$0xff] %v241_v14  ;;  %244 = vst [vmem:[%s150_s27 + $0x78] sm:$0xff] %v243_v15 }
  0x1a PF: > { %p713_p6 = scmp.ge.s32.totalorder %s939_s16, 1  ;;  %p258_p7 = scmp.lt.s32.totalorder %s939_s16, 6 }
  0x1c   : > { %p259_p8 = pnand %p713_p6, %p258_p7 }
  0x1d   : > { %s265_s28 = sand.u32 (!%p259_p8), 1, %s923_s12   ;;  %s715_s29 = sshll.u32 (!%p259_p8), %s931_s14, 4 }
  0x1e   : > { %262 = sbr.rel (%p259_p8) target bundleno = 323 (0x143), region = 66  ;;  %s714_s30 = sshll.u32 (!%p259_p8), %s265_s28, 7 }
  0x1f   : > { %p295_p9 = scmp.lt.s32.totalorder (!%p259_p8), %s715_s29, 79  ;;  %s1032_s8 = scalar_lea.vmem (!%p259_p8), [#allocation3], %s714_s30 }
  0x20   : > { %p717_p10 = scmp.ne.s32.totalorder (!%p259_p8), %s931_s14, 0 }
  0x25   : > { %s1145_s29 = smov (!%p295_p9, %s715_s29), 79  ;;  %309 = sbr.rel (%p717_p10) target bundleno = 47 (0x2f), region = 74 }
  0x26   : > { %s716_s4 = sshll.u32 %s1145_s29, 3  ;;  %v941_v16 = vmov (!%p717_p10), 0.0  }
  0x27   : > { %s1030_s7 = scalar_lea.vmem %s1135_s1, %s716_s4  ;;  %310 = vst [vmem:[#allocation2] sm:$0xff] (!%p717_p10), %v941_v16  ;;  %311 = vst [vmem:[#allocation2 + $0x8] sm:$0xff] (!%p717_p10), %v941_v16 }
  0x28   : > { %312 = vst [vmem:[#allocation2 + $0x10] sm:$0xff] (!%p717_p10), %v941_v16  ;;  %313 = vst [vmem:[#allocation2 + $0x18] sm:$0xff] (!%p717_p10), %v941_v16 }
  0x29   : > { %314 = vst [vmem:[#allocation2 + $0x20] sm:$0xff] (!%p717_p10), %v941_v16  ;;  %315 = vst [vmem:[#allocation2 + $0x28] sm:$0xff] (!%p717_p10), %v941_v16 }
  0x2a   : > { %316 = vst [vmem:[#allocation2 + $0x30] sm:$0xff] (!%p717_p10), %v941_v16  ;;  %317 = vst [vmem:[#allocation2 + $0x38] sm:$0xff] (!%p717_p10), %v941_v16 }
  0x2b   : > { %318 = vst [vmem:[#allocation2 + $0x40] sm:$0xff] (!%p717_p10), %v941_v16  ;;  %319 = vst [vmem:[#allocation2 + $0x48] sm:$0xff] (!%p717_p10), %v941_v16 }
  0x2c   : > { %320 = vst [vmem:[#allocation2 + $0x50] sm:$0xff] %v941_v16  ;;  %321 = vst [vmem:[#allocation2 + $0x58] sm:$0xff] %v941_v16 }
  0x2d   : > { %322 = vst [vmem:[#allocation2 + $0x60] sm:$0xff] %v941_v16  ;;  %323 = vst [vmem:[#allocation2 + $0x68] sm:$0xff] %v941_v16 }
  0x2e   : > { %324 = vst [vmem:[#allocation2 + $0x70] sm:$0xff] %v941_v16  ;;  %325 = vst [vmem:[#allocation2 + $0x78] sm:$0xff] %v941_v16 }
  0x2f PF: > { %v358_v17 = vld [vmem:[%s1030_s7] sm:$0xff]  ;;  %v359_v18 = vld [vmem:[%s1030_s7 + $0x8] sm:$0xff]  ;;  %v360_v19 = vld [vmem:[%s1030_s7 + $0x10] sm:$0xff]  ;;  %p718_p11 = scmp.ne.s32.totalorder %s931_s14, 4 }
  0x30   : > { %v812_v20 = vpack.c.bf16 %v359_v18, %v358_v17  ;;  %v361_v21 = vld [vmem:[%s1030_s7 + $0x18] sm:$0xff]  ;;  %v362_v23 = vld [vmem:[%s1030_s7 + $0x20] sm:$0xff]  ;;  %v363_v24 = vld [vmem:[%s1030_s7 + $0x28] sm:$0xff] }
  0x31   : > { %v816_v22 = vpack.c.bf16 %v361_v21, %v360_v19  ;;  %v820_v25 = vpack.c.bf16 %v363_v24, %v362_v23  ;;  %v342_v26 = vld [vmem:[%s1032_s8] sm:$0xff]  ;;  %v364_v28 = vld [vmem:[%s1030_s7 + $0x30] sm:$0xff]  ;;  %v365_v29 = vld [vmem:[%s1030_s7 + $0x38] sm:$0xff] }
  0x32   : > { %813 = vmatprep.subr.bf16.mxu0 %v812_v20  ;;  %844 = vmatprep.subr.bf16.mxu1 %v812_v20  ;;  %v350_v27 = vld [vmem:[%s1032_s8 + $0x40] sm:$0xff]  ;;  %v824_v30 = vpack.c.bf16 %v365_v29, %v364_v28  ;;  %v367_v32 = vld [vmem:[%s1030_s7 + $0x48] sm:$0xff]  ;;  %v368_v34 = vld [vmem:[%s1030_s7 + $0x50] sm:$0xff] }
  0x33   : > { %815 = vmatpush3.bf16.msra.mxu0 %v812_v20  ;;  %852 = vmatpush3.bf16.msra.mxu1 %v812_v20  ;;  %v366_v31 = vld [vmem:[%s1030_s7 + $0x40] sm:$0xff]  ;;  %v369_v35 = vld [vmem:[%s1030_s7 + $0x58] sm:$0xff]  ;;  %v371_v38 = vld [vmem:[%s1030_s7 + $0x68] sm:$0xff] }
  0x34   : > { %817 = vmatprep.subr.bf16.mxu0 %v816_v22  ;;  %845 = vmatprep.subr.bf16.mxu1 %v816_v22  ;;  %v828_v33 = vpack.c.bf16 %v367_v32, %v366_v31  ;;  %v832_v36 = vpack.c.bf16 %v369_v35, %v368_v34  ;;  %v370_v37 = vld [vmem:[%s1030_s7 + $0x60] sm:$0xff]  ;;  %v372_v40 = vld [vmem:[%s1030_s7 + $0x70] sm:$0xff]  ;;  %v373_v41 = vld [vmem:[%s1030_s7 + $0x78] sm:$0xff] }
  0x35   : > { %788 = vmatprep.mubr.f32.mxu0 %v342_v26  ;;  %800 = vmatprep.mubr.f32.mxu1 %v350_v27  ;;  %v836_v39 = vpack.c.bf16 %v371_v38, %v370_v37  ;;  %v840_v42 = vpack.c.bf16 %v373_v41, %v372_v40  ;;  %v343_v43 = vld [vmem:[%s1032_s8 + $0x8] sm:$0xff]  ;;  %v344_v45 = vld [vmem:[%s1032_s8 + $0x10] sm:$0xff]  ;;  %v345_v47 = vld [vmem:[%s1032_s8 + $0x18] sm:$0xff] }
  0x36   : > { %v351_v44 = vld [vmem:[%s1032_s8 + $0x48] sm:$0xff]  ;;  %v352_v46 = vld [vmem:[%s1032_s8 + $0x50] sm:$0xff]  ;;  %v353_v48 = vld [vmem:[%s1032_s8 + $0x58] sm:$0xff] }
  0x37   : > { %819 = vmatpush3.bf16.msra.mxu0 %v816_v22  ;;  %853 = vmatpush3.bf16.msra.mxu1 %v816_v22  ;;  %v346_v49 = vld [vmem:[%s1032_s8 + $0x20] sm:$0xff]  ;;  %v347_v51 = vld [vmem:[%s1032_s8 + $0x28] sm:$0xff]  ;;  %v348_v53 = vld [vmem:[%s1032_s8 + $0x30] sm:$0xff] }
  0x38   : > { %821 = vmatprep.subr.bf16.mxu0 %v820_v25  ;;  %846 = vmatprep.subr.bf16.mxu1 %v820_v25  ;;  %v354_v50 = vld [vmem:[%s1032_s8 + $0x60] sm:$0xff]  ;;  %v355_v52 = vld [vmem:[%s1032_s8 + $0x68] sm:$0xff]  ;;  %v356_v54 = vld [vmem:[%s1032_s8 + $0x70] sm:$0xff] }
  0x39   : > { %v349_v55 = vld [vmem:[%s1032_s8 + $0x38] sm:$0xff]  ;;  %v327_v57 = vld [vmem:[#allocation2 + $0x8] sm:$0xff]  ;;  %v326_v59 = vld [vmem:[#allocation2] sm:$0xff] }
  0x3a   : > { %v357_v56 = vld [vmem:[%s1032_s8 + $0x78] sm:$0xff]  ;;  %v335_v58 = vld [vmem:[#allocation2 + $0x48] sm:$0xff]  ;;  %v334_v60 = vld [vmem:[#allocation2 + $0x40] sm:$0xff] }
  0x3b   : > { %823 = vmatpush3.bf16.msra.mxu0 %v820_v25  ;;  %854 = vmatpush3.bf16.msra.mxu1 %v820_v25  ;;  %v329_v5 = vld [vmem:[#allocation2 + $0x18] sm:$0xff]  ;;  %v328_v7 = vld [vmem:[#allocation2 + $0x10] sm:$0xff]  ;;  %v331_v17 = vld [vmem:[#allocation2 + $0x28] sm:$0xff] }
  0x3c   : > { %825 = vmatprep.subr.bf16.mxu0 %v824_v30  ;;  %847 = vmatprep.subr.bf16.mxu1 %v824_v30  ;;  %v337_v6 = vld [vmem:[#allocation2 + $0x58] sm:$0xff]  ;;  %v336_v8 = vld [vmem:[#allocation2 + $0x50] sm:$0xff]  ;;  %v339_v18 = vld [vmem:[#allocation2 + $0x68] sm:$0xff] }
  0x3d   : > { %v330_v19 = vld [vmem:[#allocation2 + $0x20] sm:$0xff]  ;;  %v333_v29 = vld [vmem:[#allocation2 + $0x38] sm:$0xff]  ;;  %v332_v31 = vld [vmem:[#allocation2 + $0x30] sm:$0xff] }
  0x3e   : > { %v338_v20 = vld [vmem:[#allocation2 + $0x60] sm:$0xff]  ;;  %v340_v32 = vld [vmem:[#allocation2 + $0x70] sm:$0xff] }
  0x3f   : > { %827 = vmatpush3.bf16.msra.mxu0 %v824_v30  ;;  %855 = vmatpush3.bf16.msra.mxu1 %v824_v30  ;;  %v341_v30 = vld [vmem:[#allocation2 + $0x78] sm:$0xff] }
  0x40   : > { %829 = vmatprep.subr.bf16.mxu0 %v828_v33  ;;  %848 = vmatprep.subr.bf16.mxu1 %v828_v33 }
  0x43   : > { %831 = vmatpush3.bf16.msra.mxu0 %v828_v33  ;;  %856 = vmatpush3.bf16.msra.mxu1 %v828_v33 }
  0x44   : > { %833 = vmatprep.subr.bf16.mxu0 %v832_v36  ;;  %849 = vmatprep.subr.bf16.mxu1 %v832_v36 }
  0x47   : > { %835 = vmatpush3.bf16.msra.mxu0 %v832_v36  ;;  %857 = vmatpush3.bf16.msra.mxu1 %v832_v36 }
  0x48   : > { %837 = vmatprep.subr.bf16.mxu0 %v836_v39  ;;  %850 = vmatprep.subr.bf16.mxu1 %v836_v39 }
  0x4b   : > { %839 = vmatpush3.bf16.msra.mxu0 %v836_v39  ;;  %858 = vmatpush3.bf16.msra.mxu1 %v836_v39 }
  0x4c   : > { %841 = vmatprep.subr.bf16.mxu0 %v840_v42  ;;  %851 = vmatprep.subr.bf16.mxu1 %v840_v42 }
  0x4f   : > { %843 = vmatpush3.bf16.msra.mxu0 %v840_v42  ;;  %859 = vmatpush3.bf16.msra.mxu1 %v840_v42  ;;  %v719_v42 = vld [vmem:[%s1136_s2] ss:$0 sm:$0xff] (!%p718_p11) }
  0x52   : > { %789 = vmatmul.mubr.f32.vlgmr.msra.gmra.mrb[0].mxu0 %v343_v43  ;;  %801 = vmatmul.mubr.f32.vlgmr.msra.gmra.mrb[0].mxu1 %v351_v44 }
  0x53   : > { %791 = vmatprep.mubr.f32.mxu0 %v344_v45  ;;  %803 = vmatprep.mubr.f32.mxu1 %v352_v46 }
  0x56   : > { %792 = vmatmul.mubr.f32.gmra.mrb[2].mxu0 %v345_v47  ;;  %804 = vmatmul.mubr.f32.gmra.mrb[2].mxu1 %v353_v48 }
  0x57   : > { %794 = vmatprep.mubr.f32.mxu0 %v346_v49  ;;  %806 = vmatprep.mubr.f32.mxu1 %v354_v50 }
  0x5a   : > { %795 = vmatmul.mubr.f32.gmra.mrb[4].mxu0 %v347_v51  ;;  %807 = vmatmul.mubr.f32.gmra.mrb[4].mxu1 %v355_v52 }
  0x5b   : > { %797 = vmatprep.mubr.f32.mxu0 %v348_v53  ;;  %809 = vmatprep.mubr.f32.mxu1 %v356_v54 }
  0x5e   : > { %798 = vmatmul.mubr.f32.gmra.mrb[6].mxu0 %v349_v55  ;;  %810 = vmatmul.mubr.f32.gmra.mrb[6].mxu1 %v357_v56 }
 0x125   : > { %v790_v61 = vpop.f32.mrb[0].mxu0  ;;  %v802_v62 = vpop.f32.mrb[0].mxu1 }
 0x126   : > { %v520_v63 = vadd.f32 %v790_v61, %v327_v57  ;;  %v528_v0 = vadd.f32 %v802_v62, %v335_v58  ;;  %v440_v1 = vpop.f32.mrb[1].mxu0  ;;  %v480_v2 = vpop.f32.mrb[1].mxu1 }
 0x127   : > { %v519_v3 = vadd.f32 %v440_v1, %v326_v59  ;;  %v527_v4 = vadd.f32 %v480_v2, %v334_v60 }
 0x128   : > { %536 = vst [vmem:[#allocation2 + $0x8] sm:$0xff] %v520_v63  ;;  %544 = vst [vmem:[#allocation2 + $0x48] sm:$0xff] %v528_v0 }
 0x129   : > { %535 = vst [vmem:[#allocation2] sm:$0xff] %v519_v3  ;;  %543 = vst [vmem:[#allocation2 + $0x40] sm:$0xff] %v527_v4  ;;  %v793_v9 = vpop.f32.mrb[2].mxu0  ;;  %v805_v10 = vpop.f32.mrb[2].mxu1 }
 0x12a   : > { %v522_v11 = vadd.f32 %v793_v9, %v329_v5  ;;  %v530_v12 = vadd.f32 %v805_v10, %v337_v6  ;;  %v450_v13 = vpop.f32.mrb[3].mxu0  ;;  %v490_v14 = vpop.f32.mrb[3].mxu1 }
 0x12b   : > { %v521_v15 = vadd.f32 %v450_v13, %v328_v7  ;;  %v529_v16 = vadd.f32 %v490_v14, %v336_v8 }
 0x12c   : > { %538 = vst [vmem:[#allocation2 + $0x18] sm:$0xff] %v522_v11  ;;  %546 = vst [vmem:[#allocation2 + $0x58] sm:$0xff] %v530_v12 }
 0x12d   : > { %537 = vst [vmem:[#allocation2 + $0x10] sm:$0xff] %v521_v15  ;;  %545 = vst [vmem:[#allocation2 + $0x50] sm:$0xff] %v529_v16  ;;  %v796_v21 = vpop.f32.mrb[4].mxu0  ;;  %v808_v22 = vpop.f32.mrb[4].mxu1 }
 0x12e   : > { %v524_v23 = vadd.f32 %v796_v21, %v331_v17  ;;  %v532_v24 = vadd.f32 %v808_v22, %v339_v18  ;;  %v460_v25 = vpop.f32.mrb[5].mxu0  ;;  %v500_v26 = vpop.f32.mrb[5].mxu1 }
 0x12f   : > { %v523_v27 = vadd.f32 %v460_v25, %v330_v19  ;;  %v531_v28 = vadd.f32 %v500_v26, %v338_v20  ;;  %554 = sbr.rel (%p718_p11) target bundleno = 323 (0x143), region = 78  ;;  %v556_v43 = vld [vmem:[#allocation2 + $0x8] sm:$0xff] (!%p718_p11) }
 0x130   : > { %540 = vst [vmem:[#allocation2 + $0x28] sm:$0xff] %v524_v23  ;;  %548 = vst [vmem:[#allocation2 + $0x68] sm:$0xff] %v532_v24  ;;  %v555_v41 = vld [vmem:[#allocation2] sm:$0xff] (!%p718_p11)  ;;  %v579_v45 = vadd.f32 (!%p718_p11), %v719_v42, %v556_v43  ;;  %v564_v60 = vld [vmem:[#allocation2 + $0x48] sm:$0xff] (!%p718_p11) }
 0x131   : > { %539 = vst [vmem:[#allocation2 + $0x20] sm:$0xff] %v523_v27  ;;  %547 = vst [vmem:[#allocation2 + $0x60] sm:$0xff] %v531_v28  ;;  %v799_v33 = vpop.f32.mrb[6].mxu0  ;;  %v811_v34 = vpop.f32.mrb[6].mxu1  ;;  %v578_v44 = vadd.f32 (!%p718_p11), %v719_v42, %v555_v41  ;;  %v563_v59 = vld [vmem:[#allocation2 + $0x40] sm:$0xff] (!%p718_p11)  ;;  %v587_v8 = vadd.f32 (!%p718_p11), %v719_v42, %v564_v60 }
 0x132   : > { %v526_v35 = vadd.f32 %v799_v33, %v333_v29  ;;  %v534_v36 = vadd.f32 %v811_v34, %v341_v30  ;;  %v470_v37 = vpop.f32.mrb[7].mxu0  ;;  %v510_v38 = vpop.f32.mrb[7].mxu1  ;;  %v595_v56 = vmax.f32 (!%p718_p11), %v579_v45, 0.0  ;;  %v586_v7 = vadd.f32 (!%p718_p11), %v719_v42, %v563_v59 }
 0x133   : > { %v525_v39 = vadd.f32 %v470_v37, %v332_v31  ;;  %v533_v40 = vadd.f32 %v510_v38, %v340_v32  ;;  %v558_v47 = vld [vmem:[#allocation2 + $0x18] sm:$0xff] (!%p718_p11)  ;;  %v594_v55 = vmax.f32 (!%p718_p11), %v578_v44, 0.0  ;;  %v603_v16 = vmax.f32 (!%p718_p11), %v587_v8, 0.0 }
 0x134   : > { %542 = vst [vmem:[#allocation2 + $0x38] sm:$0xff] %v526_v35  ;;  %550 = vst [vmem:[#allocation2 + $0x78] sm:$0xff] %v534_v36  ;;  %v557_v46 = vld [vmem:[#allocation2 + $0x10] sm:$0xff] (!%p718_p11)  ;;  %v581_v50 = vadd.f32 (!%p718_p11), %v719_v42, %v558_v47  ;;  %v566_v2 = vld [vmem:[#allocation2 + $0x58] sm:$0xff] (!%p718_p11)  ;;  %v602_v15 = vmax.f32 (!%p718_p11), %v586_v7, 0.0 }
 0x135   : > { %541 = vst [vmem:[#allocation2 + $0x30] sm:$0xff] %v525_v39  ;;  %549 = vst [vmem:[#allocation2 + $0x70] sm:$0xff] %v533_v40  ;;  %v580_v49 = vadd.f32 (!%p718_p11), %v719_v42, %v557_v46  ;;  %v565_v61 = vld [vmem:[#allocation2 + $0x50] sm:$0xff] (!%p718_p11)  ;;  %v589_v13 = vadd.f32 (!%p718_p11), %v719_v42, %v566_v2 }
 0x136   : > { %v597_v63 = vmax.f32 %v581_v50, 0.0  ;;  %610 = vst [vmem:[%s1137_s3] sm:$0xff] %v594_v55  ;;  %611 = vst [vmem:[%s1137_s3 + $0x8] sm:$0xff] %v595_v56  ;;  %v588_v12 = vadd.f32 %v719_v42, %v565_v61 }
 0x137   : > { %v560_v52 = vld [vmem:[#allocation2 + $0x28] sm:$0xff]  ;;  %v596_v62 = vmax.f32 %v580_v49, 0.0  ;;  %v605_v20 = vmax.f32 %v589_v13, 0.0  ;;  %618 = vst [vmem:[%s1137_s3 + $0x40] sm:$0xff] %v602_v15  ;;  %619 = vst [vmem:[%s1137_s3 + $0x48] sm:$0xff] %v603_v16 }
 0x138   : > { %v559_v48 = vld [vmem:[#allocation2 + $0x20] sm:$0xff]  ;;  %v583_v57 = vadd.f32 %v719_v42, %v560_v52  ;;  %v568_v4 = vld [vmem:[#allocation2 + $0x68] sm:$0xff]  ;;  %613 = vst [vmem:[%s1137_s3 + $0x18] sm:$0xff] %v597_v63  ;;  %v604_v19 = vmax.f32 %v588_v12, 0.0 }
 0x139   : > { %v582_v51 = vadd.f32 %v719_v42, %v559_v48  ;;  %v567_v3 = vld [vmem:[#allocation2 + $0x60] sm:$0xff]  ;;  %612 = vst [vmem:[%s1137_s3 + $0x10] sm:$0xff] %v596_v62  ;;  %v591_v17 = vadd.f32 %v719_v42, %v568_v4  ;;  %621 = vst [vmem:[%s1137_s3 + $0x58] sm:$0xff] %v605_v20 }
 0x13a   : > { %v599_v5 = vmax.f32 %v583_v57, 0.0  ;;  %v590_v14 = vadd.f32 %v719_v42, %v567_v3  ;;  %620 = vst [vmem:[%s1137_s3 + $0x50] sm:$0xff] %v604_v19 }
 0x13b   : > { %v562_v54 = vld [vmem:[#allocation2 + $0x38] sm:$0xff]  ;;  %v598_v0 = vmax.f32 %v582_v51, 0.0  ;;  %v607_v23 = vmax.f32 %v591_v17, 0.0 }
 0x13c   : > { %v561_v53 = vld [vmem:[#allocation2 + $0x30] sm:$0xff]  ;;  %v585_v1 = vadd.f32 %v719_v42, %v562_v54  ;;  %v570_v10 = vld [vmem:[#allocation2 + $0x78] sm:$0xff]  ;;  %615 = vst [vmem:[%s1137_s3 + $0x28] sm:$0xff] %v599_v5  ;;  %v606_v21 = vmax.f32 %v590_v14, 0.0 }
 0x13d   : > { %v584_v58 = vadd.f32 %v719_v42, %v561_v53  ;;  %v569_v9 = vld [vmem:[#allocation2 + $0x70] sm:$0xff]  ;;  %614 = vst [vmem:[%s1137_s3 + $0x20] sm:$0xff] %v598_v0  ;;  %v593_v22 = vadd.f32 %v719_v42, %v570_v10  ;;  %623 = vst [vmem:[%s1137_s3 + $0x68] sm:$0xff] %v607_v23 }
 0x13e   : > { %v601_v11 = vmax.f32 %v585_v1, 0.0  ;;  %v592_v18 = vadd.f32 %v719_v42, %v569_v9  ;;  %622 = vst [vmem:[%s1137_s3 + $0x60] sm:$0xff] %v606_v21 }
 0x13f   : > { %v600_v6 = vmax.f32 %v584_v58, 0.0  ;;  %v609_v25 = vmax.f32 %v593_v22, 0.0 }
 0x140   : > { %617 = vst [vmem:[%s1137_s3 + $0x38] sm:$0xff] %v601_v11  ;;  %v608_v24 = vmax.f32 %v592_v18, 0.0 }
 0x141   : > { %616 = vst [vmem:[%s1137_s3 + $0x30] sm:$0xff] %v600_v6  ;;  %625 = vst [vmem:[%s1137_s3 + $0x78] sm:$0xff] %v609_v25 }
 0x142   : > { %624 = vst [vmem:[%s1137_s3 + $0x70] sm:$0xff] %v608_v24 }
 0x143 PF: > { %s13_s16 = sadd.s32 1, %s939_s16   ;;  %s1138_s12 = smov %s927_s13 }
 0x144   : > { %p10_p12 = scmp.ge.s32.totalorder %s13_s16, 7   ;;  %s1139_s13 = smov %s997_s20 }
 0x145   : > { %s1140_s14 = smov %s935_s15  ;;  %s1141_s15 = smov %s1143_s17 }
 0x146   :  { %12 = sbr.rel (!%p10_p12) target bundleno = 3 (0x3), region = 116 }

// kernel: resnet18_forward.28
= control target key start
LH: loop header
LB: loop body
LE: loop exit
PB: predicated region body
PF: predicated region fallthrough
CT: control target
= control target key end

     0   :  { %s1064_s15 = smov 0   ;;  %s1066_s16 = smov 0   ;;  %s1302_s0 = inlined_call_operand.vmem [shape: f32[128,1152], index: 0, kind: input, shape index: {}]   ;;  %s1303_s1 = inlined_call_operand.vmem [shape: f32[1152,128], index: 1, kind: input, shape index: {}]   ;;  %s1304_s2 = inlined_call_operand.vmem [shape: f32[1,128], index: 2, kind: input, shape index: {}]   ;;  %s1305_s3 = inlined_call_operand.vmem [shape: f32[128,128], index: 3, kind: input, shape index: {}]   ;;  %s1306_s4 = inlined_call_operand.vmem [shape: f32[128,128], index: 4, kind: output, shape index: {}]  }
   0x1   :  { %s1068_s17 = smov 0   ;;  %s1070_s18 = smov 0  }
   0x2   :  { %s1072_s19 = smov 0  }
   0x3 LB: > { %s23_s20 = sadd.s32 1, %s1032_s18  ;;  %p42_p1 = scmp.ne.s32.totalorder %s1024_s16, %s1020_s15  ;;  %s1036_s19 = sphi %s1072_s19, %s14_s19   ;;  %s1032_s18 = sphi %s1070_s18, %s1310_s18   ;;  %s1028_s17 = sphi %s1068_s17, %s1309_s17   ;;  %s1024_s16 = sphi %s1066_s16, %s1308_s16   ;;  %s1020_s15 = sphi %s1064_s15, %s1307_s15  }
   0x4   : > { %p24_p0 = scmp.ge.s32.totalorder %s23_s20, 9  ;;  %p43_p2 = scmp.eq.s32.totalorder %s1036_s19, 0 }
   0x5   : > { %s35_s22 = sadd.s32 1, %s1024_s16  ;;  %p807_p5 = scmp.ge.s32.totalorder %s1036_s19, 9 }
   0x6   : > { %s1312_s20 = smov (%p24_p0, %s23_s20), 0  ;;  %p44_p3 = por %p43_p2, %p42_p1 }
   0x7   : > { %s31_s21 = ssub.s32 %s1032_s18, %s1312_s20  ;;  %179 = sbr.rel (%p807_p5) target bundleno = 26 (0x1a), region = 24 }
   0x8   : > { %p33_p4 = scmp.eq.s32.totalorder %s31_s21, 0 }
   0xa   : > { %s1099_s23 = scalar_select %p33_p4, %s1024_s16, %s35_s22  }
   0xe   : > { %182 = sbr.rel (!%p44_p3) target bundleno = 26 (0x1a), region = 28  ;;  %s184_s24 = sand.u32 (%p44_p3), 1, %s1024_s16  }
   0xf   : > { %s809_s25 = sshll.u32 (%p44_p3), %s1032_s18, 3  ;;  %s808_s26 = sshll.u32 (%p44_p3), %s184_s24, 7 }
  0x10   : > { %s1107_s29 = scalar_lea.vmem (%p44_p3), %s1302_s0, %s809_s25  ;;  %s186_s30 = scalar_lea.vmem (%p44_p3), [#allocation3], %s808_s26 }
  0x11   : > { %v249_v0 = vld [vmem:[%s1107_s29] sm:$0xff] (%p44_p3)  ;;  %v251_v1 = vld [vmem:[%s1107_s29 + $0x48] sm:$0xff] (%p44_p3)  ;;  %v253_v2 = vld [vmem:[%s1107_s29 + $0x90] sm:$0xff] (%p44_p3) }
  0x12   : > { %250 = vst [vmem:[%s186_s30] sm:$0xff] (%p44_p3), %v249_v0  ;;  %252 = vst [vmem:[%s186_s30 + $0x8] sm:$0xff] (%p44_p3), %v251_v1  ;;  %v255_v3 = vld [vmem:[%s1107_s29 + $0xd8] sm:$0xff] (%p44_p3)  ;;  %v257_v4 = vld [vmem:[%s1107_s29 + $0x120] sm:$0xff] (%p44_p3) }
  0x13   : > { %254 = vst [vmem:[%s186_s30 + $0x10] sm:$0xff] (%p44_p3), %v253_v2  ;;  %v259_v5 = vld [vmem:[%s1107_s29 + $0x168] sm:$0xff] (%p44_p3)  ;;  %256 = vst [vmem:[%s186_s30 + $0x18] sm:$0xff] (%p44_p3), %v255_v3  ;;  %v261_v6 = vld [vmem:[%s1107_s29 + $0x1b0] sm:$0xff] (%p44_p3) }
  0x14   : > { %258 = vst [vmem:[%s186_s30 + $0x20] sm:$0xff] (%p44_p3), %v257_v4  ;;  %260 = vst [vmem:[%s186_s30 + $0x28] sm:$0xff] (%p44_p3), %v259_v5  ;;  %v263_v7 = vld [vmem:[%s1107_s29 + $0x1f8] sm:$0xff] (%p44_p3)  ;;  %v265_v8 = vld [vmem:[%s1107_s29 + $0x240] sm:$0xff] (%p44_p3) }
  0x15   : > { %262 = vst [vmem:[%s186_s30 + $0x30] sm:$0xff] %v261_v6  ;;  %264 = vst [vmem:[%s186_s30 + $0x38] sm:$0xff] %v263_v7  ;;  %v267_v9 = vld [vmem:[%s1107_s29 + $0x288] sm:$0xff]  ;;  %v269_v10 = vld [vmem:[%s1107_s29 + $0x2d0] sm:$0xff] }
  0x16   : > { %266 = vst [vmem:[%s186_s30 + $0x40] sm:$0xff] %v265_v8  ;;  %v271_v11 = vld [vmem:[%s1107_s29 + $0x318] sm:$0xff]  ;;  %268 = vst [vmem:[%s186_s30 + $0x48] sm:$0xff] %v267_v9  ;;  %v273_v12 = vld [vmem:[%s1107_s29 + $0x360] sm:$0xff] }
  0x17   : > { %270 = vst [vmem:[%s186_s30 + $0x50] sm:$0xff] %v269_v10  ;;  %272 = vst [vmem:[%s186_s30 + $0x58] sm:$0xff] %v271_v11  ;;  %v275_v13 = vld [vmem:[%s1107_s29 + $0x3a8] sm:$0xff]  ;;  %v277_v14 = vld [vmem:[%s1107_s29 + $0x3f0] sm:$0xff] }
  0x18   : > { %274 = vst [vmem:[%s186_s30 + $0x60] sm:$0xff] %v273_v12  ;;  %276 = vst [vmem:[%s186_s30 + $0x68] sm:$0xff] %v275_v13  ;;  %v279_v15 = vld [vmem:[%s1107_s29 + $0x438] sm:$0xff] }
  0x19   : > { %278 = vst [vmem:[%s186_s30 + $0x70] sm:$0xff] %v277_v14  ;;  %280 = vst [vmem:[%s186_s30 + $0x78] sm:$0xff] %v279_v15 }
  0x1a PF: > { %p810_p6 = scmp.ge.s32.totalorder %s1036_s19, 1  ;;  %p294_p7 = scmp.lt.s32.totalorder %s1036_s19, 10 }
  0x1c   : > { %p295_p8 = pnand %p810_p6, %p294_p7 }
  0x1d   : > { %s301_s5 = sand.u32 (!%p295_p8), 1, %s1020_s15   ;;  %s812_s6 = sshll.u32 (!%p295_p8), %s1028_s17, 4 }
  0x1e   : > { %298 = sbr.rel (%p295_p8) target bundleno = 325 (0x145), region = 70  ;;  %s811_s7 = sshll.u32 (!%p295_p8), %s301_s5, 7 }
  0x1f   : > { %p338_p9 = scmp.lt.s32.totalorder (!%p295_p8), %s812_s6, 143  ;;  %s1134_s12 = scalar_lea.vmem (!%p295_p8), [#allocation3], %s811_s7 }
  0x20   : > { %p814_p10 = scmp.ne.s32.totalorder (!%p295_p8), %s1028_s17, 0 }
  0x25   : > { %s1314_s6 = smov (!%p338_p9, %s812_s6), 143  ;;  %358 = sbr.rel (%p814_p10) target bundleno = 47 (0x2f), region = 78 }
  0x26   : > { %s813_s8 = sshll.u32 %s1314_s6, 3  ;;  %v1038_v16 = vmov (!%p814_p10), 0.0  }
  0x27   : > { %s1132_s11 = scalar_lea.vmem %s1303_s1, %s813_s8  ;;  %359 = vst [vmem:[#allocation2] sm:$0xff] (!%p814_p10), %v1038_v16  ;;  %360 = vst [vmem:[#allocation2 + $0x8] sm:$0xff] (!%p814_p10), %v1038_v16 }
  0x28   : > { %361 = vst [vmem:[#allocation2 + $0x10] sm:$0xff] (!%p814_p10), %v1038_v16  ;;  %362 = vst [vmem:[#allocation2 + $0x18] sm:$0xff] (!%p814_p10), %v1038_v16 }
  0x29   : > { %363 = vst [vmem:[#allocation2 + $0x20] sm:$0xff] (!%p814_p10), %v1038_v16  ;;  %364 = vst [vmem:[#allocation2 + $0x28] sm:$0xff] (!%p814_p10), %v1038_v16 }
  0x2a   : > { %365 = vst [vmem:[#allocation2 + $0x30] sm:$0xff] (!%p814_p10), %v1038_v16  ;;  %366 = vst [vmem:[#allocation2 + $0x38] sm:$0xff] (!%p814_p10), %v1038_v16 }
  0x2b   : > { %367 = vst [vmem:[#allocation2 + $0x40] sm:$0xff] (!%p814_p10), %v1038_v16  ;;  %368 = vst [vmem:[#allocation2 + $0x48] sm:$0xff] (!%p814_p10), %v1038_v16 }
  0x2c   : > { %369 = vst [vmem:[#allocation2 + $0x50] sm:$0xff] %v1038_v16  ;;  %370 = vst [vmem:[#allocation2 + $0x58] sm:$0xff] %v1038_v16 }
  0x2d   : > { %371 = vst [vmem:[#allocation2 + $0x60] sm:$0xff] %v1038_v16  ;;  %372 = vst [vmem:[#allocation2 + $0x68] sm:$0xff] %v1038_v16 }
  0x2e   : > { %373 = vst [vmem:[#allocation2 + $0x70] sm:$0xff] %v1038_v16  ;;  %374 = vst [vmem:[#allocation2 + $0x78] sm:$0xff] %v1038_v16 }
  0x2f PF: > { %v407_v17 = vld [vmem:[%s1132_s11] sm:$0xff]  ;;  %v408_v18 = vld [vmem:[%s1132_s11 + $0x8] sm:$0xff]  ;;  %v409_v19 = vld [vmem:[%s1132_s11 + $0x10] sm:$0xff]  ;;  %p815_p11 = scmp.ne.s32.totalorder %s1028_s17, 8 }
  0x30   : > { %v909_v20 = vpack.c.bf16 %v408_v18, %v407_v17  ;;  %v410_v21 = vld [vmem:[%s1132_s11 + $0x18] sm:$0xff]  ;;  %v411_v23 = vld [vmem:[%s1132_s11 + $0x20] sm:$0xff]  ;;  %v412_v24 = vld [vmem:[%s1132_s11 + $0x28] sm:$0xff] }
  0x31   : > { %v913_v22 = vpack.c.bf16 %v410_v21, %v409_v19  ;;  %v917_v25 = vpack.c.bf16 %v412_v24, %v411_v23  ;;  %v391_v26 = vld [vmem:[%s1134_s12] sm:$0xff]  ;;  %v413_v28 = vld [vmem:[%s1132_s11 + $0x30] sm:$0xff]  ;;  %v414_v29 = vld [vmem:[%s1132_s11 + $0x38] sm:$0xff] }
  0x32   : > { %910 = vmatprep.subr.bf16.mxu0 %v909_v20  ;;  %941 = vmatprep.subr.bf16.mxu1 %v909_v20  ;;  %v399_v27 = vld [vmem:[%s1134_s12 + $0x40] sm:$0xff]  ;;  %v921_v30 = vpack.c.bf16 %v414_v29, %v413_v28  ;;  %v416_v32 = vld [vmem:[%s1132_s11 + $0x48] sm:$0xff]  ;;  %v417_v34 = vld [vmem:[%s1132_s11 + $0x50] sm:$0xff] }
  0x33   : > { %912 = vmatpush3.bf16.msra.mxu0 %v909_v20  ;;  %949 = vmatpush3.bf16.msra.mxu1 %v909_v20  ;;  %v415_v31 = vld [vmem:[%s1132_s11 + $0x40] sm:$0xff]  ;;  %v418_v35 = vld [vmem:[%s1132_s11 + $0x58] sm:$0xff]  ;;  %v420_v38 = vld [vmem:[%s1132_s11 + $0x68] sm:$0xff] }
  0x34   : > { %914 = vmatprep.subr.bf16.mxu0 %v913_v22  ;;  %942 = vmatprep.subr.bf16.mxu1 %v913_v22  ;;  %v925_v33 = vpack.c.bf16 %v416_v32, %v415_v31  ;;  %v929_v36 = vpack.c.bf16 %v418_v35, %v417_v34  ;;  %v419_v37 = vld [vmem:[%s1132_s11 + $0x60] sm:$0xff]  ;;  %v421_v40 = vld [vmem:[%s1132_s11 + $0x70] sm:$0xff]  ;;  %v422_v41 = vld [vmem:[%s1132_s11 + $0x78] sm:$0xff] }
  0x35   : > { %885 = vmatprep.mubr.f32.mxu0 %v391_v26  ;;  %897 = vmatprep.mubr.f32.mxu1 %v399_v27  ;;  %v933_v39 = vpack.c.bf16 %v420_v38, %v419_v37  ;;  %v937_v42 = vpack.c.bf16 %v422_v41, %v421_v40  ;;  %v392_v43 = vld [vmem:[%s1134_s12 + $0x8] sm:$0xff]  ;;  %v393_v45 = vld [vmem:[%s1134_s12 + $0x10] sm:$0xff]  ;;  %v394_v47 = vld [vmem:[%s1134_s12 + $0x18] sm:$0xff] }
  0x36   : > { %v400_v44 = vld [vmem:[%s1134_s12 + $0x48] sm:$0xff]  ;;  %v401_v46 = vld [vmem:[%s1134_s12 + $0x50] sm:$0xff]  ;;  %v402_v48 = vld [vmem:[%s1134_s12 + $0x58] sm:$0xff] }
  0x37   : > { %916 = vmatpush3.bf16.msra.mxu0 %v913_v22  ;;  %950 = vmatpush3.bf16.msra.mxu1 %v913_v22  ;;  %v395_v49 = vld [vmem:[%s1134_s12 + $0x20] sm:$0xff]  ;;  %v396_v51 = vld [vmem:[%s1134_s12 + $0x28] sm:$0xff]  ;;  %v397_v53 = vld [vmem:[%s1134_s12 + $0x30] sm:$0xff] }
  0x38   : > { %918 = vmatprep.subr.bf16.mxu0 %v917_v25  ;;  %943 = vmatprep.subr.bf16.mxu1 %v917_v25  ;;  %v403_v50 = vld [vmem:[%s1134_s12 + $0x60] sm:$0xff]  ;;  %v404_v52 = vld [vmem:[%s1134_s12 + $0x68] sm:$0xff]  ;;  %v405_v54 = vld [vmem:[%s1134_s12 + $0x70] sm:$0xff] }
  0x39   : > { %v398_v55 = vld [vmem:[%s1134_s12 + $0x38] sm:$0xff]  ;;  %v376_v57 = vld [vmem:[#allocation2 + $0x8] sm:$0xff]  ;;  %v375_v59 = vld [vmem:[#allocation2] sm:$0xff] }
  0x3a   : > { %v406_v56 = vld [vmem:[%s1134_s12 + $0x78] sm:$0xff]  ;;  %v384_v58 = vld [vmem:[#allocation2 + $0x48] sm:$0xff]  ;;  %v383_v60 = vld [vmem:[#allocation2 + $0x40] sm:$0xff] }
  0x3b   : > { %920 = vmatpush3.bf16.msra.mxu0 %v917_v25  ;;  %951 = vmatpush3.bf16.msra.mxu1 %v917_v25  ;;  %v378_v5 = vld [vmem:[#allocation2 + $0x18] sm:$0xff]  ;;  %v377_v7 = vld [vmem:[#allocation2 + $0x10] sm:$0xff]  ;;  %v380_v17 = vld [vmem:[#allocation2 + $0x28] sm:$0xff] }
  0x3c   : > { %922 = vmatprep.subr.bf16.mxu0 %v921_v30  ;;  %944 = vmatprep.subr.bf16.mxu1 %v921_v30  ;;  %v386_v6 = vld [vmem:[#allocation2 + $0x58] sm:$0xff]  ;;  %v385_v8 = vld [vmem:[#allocation2 + $0x50] sm:$0xff]  ;;  %v388_v18 = vld [vmem:[#allocation2 + $0x68] sm:$0xff] }
  0x3d   : > { %v379_v19 = vld [vmem:[#allocation2 + $0x20] sm:$0xff]  ;;  %v382_v29 = vld [vmem:[#allocation2 + $0x38] sm:$0xff]  ;;  %v381_v31 = vld [vmem:[#allocation2 + $0x30] sm:$0xff] }
  0x3e   : > { %v387_v20 = vld [vmem:[#allocation2 + $0x60] sm:$0xff]  ;;  %v389_v32 = vld [vmem:[#allocation2 + $0x70] sm:$0xff] }
  0x3f   : > { %924 = vmatpush3.bf16.msra.mxu0 %v921_v30  ;;  %952 = vmatpush3.bf16.msra.mxu1 %v921_v30  ;;  %v390_v30 = vld [vmem:[#allocation2 + $0x78] sm:$0xff] }
  0x40   : > { %926 = vmatprep.subr.bf16.mxu0 %v925_v33  ;;  %945 = vmatprep.subr.bf16.mxu1 %v925_v33 }
  0x43   : > { %928 = vmatpush3.bf16.msra.mxu0 %v925_v33  ;;  %953 = vmatpush3.bf16.msra.mxu1 %v925_v33 }
  0x44   : > { %930 = vmatprep.subr.bf16.mxu0 %v929_v36  ;;  %946 = vmatprep.subr.bf16.mxu1 %v929_v36 }
  0x47   : > { %932 = vmatpush3.bf16.msra.mxu0 %v929_v36  ;;  %954 = vmatpush3.bf16.msra.mxu1 %v929_v36 }
  0x48   : > { %934 = vmatprep.subr.bf16.mxu0 %v933_v39  ;;  %947 = vmatprep.subr.bf16.mxu1 %v933_v39 }
  0x4b   : > { %936 = vmatpush3.bf16.msra.mxu0 %v933_v39  ;;  %955 = vmatpush3.bf16.msra.mxu1 %v933_v39 }
  0x4c   : > { %938 = vmatprep.subr.bf16.mxu0 %v937_v42  ;;  %948 = vmatprep.subr.bf16.mxu1 %v937_v42 }
  0x4f   : > { %940 = vmatpush3.bf16.msra.mxu0 %v937_v42  ;;  %956 = vmatpush3.bf16.msra.mxu1 %v937_v42  ;;  %v1173_v42 = vld [vmem:[%s1304_s2] ss:$0 sm:$0xff] (!%p815_p11) }
  0x52   : > { %886 = vmatmul.mubr.f32.vlgmr.msra.gmra.mrb[0].mxu0 %v392_v43  ;;  %898 = vmatmul.mubr.f32.vlgmr.msra.gmra.mrb[0].mxu1 %v400_v44  ;;  %v643_v43 = vld [vmem:[%s1305_s3] sm:$0xff] (!%p815_p11) }
  0x53   : > { %888 = vmatprep.mubr.f32.mxu0 %v393_v45  ;;  %900 = vmatprep.mubr.f32.mxu1 %v401_v46  ;;  %v644_v46 = vld [vmem:[%s1305_s3 + $0x8] sm:$0xff] (!%p815_p11) }
  0x56   : > { %889 = vmatmul.mubr.f32.gmra.mrb[2].mxu0 %v394_v47  ;;  %901 = vmatmul.mubr.f32.gmra.mrb[2].mxu1 %v402_v48 }
  0x57   : > { %891 = vmatprep.mubr.f32.mxu0 %v395_v49  ;;  %903 = vmatprep.mubr.f32.mxu1 %v403_v50  ;;  %v645_v50 = vld [vmem:[%s1305_s3 + $0x10] sm:$0xff] (!%p815_p11) }
  0x5a   : > { %892 = vmatmul.mubr.f32.gmra.mrb[4].mxu0 %v396_v51  ;;  %904 = vmatmul.mubr.f32.gmra.mrb[4].mxu1 %v404_v52  ;;  %v646_v52 = vld [vmem:[%s1305_s3 + $0x18] sm:$0xff] (!%p815_p11) }
  0x5b   : > { %894 = vmatprep.mubr.f32.mxu0 %v397_v53  ;;  %906 = vmatprep.mubr.f32.mxu1 %v405_v54 }
  0x5e   : > { %895 = vmatmul.mubr.f32.gmra.mrb[6].mxu0 %v398_v55  ;;  %907 = vmatmul.mubr.f32.gmra.mrb[6].mxu1 %v406_v56  ;;  %v647_v56 = vld [vmem:[%s1305_s3 + $0x20] sm:$0xff] (!%p815_p11) }
 0x125   : > { %v887_v61 = vpop.f32.mrb[0].mxu0  ;;  %v899_v62 = vpop.f32.mrb[0].mxu1 }
 0x126   : > { %v569_v63 = vadd.f32 %v887_v61, %v376_v57  ;;  %v577_v0 = vadd.f32 %v899_v62, %v384_v58  ;;  %v489_v1 = vpop.f32.mrb[1].mxu0  ;;  %v529_v2 = vpop.f32.mrb[1].mxu1  ;;  %v648_v62 = vld [vmem:[%s1305_s3 + $0x28] sm:$0xff] (!%p815_p11) }
 0x127   : > { %v568_v3 = vadd.f32 %v489_v1, %v375_v59  ;;  %v576_v4 = vadd.f32 %v529_v2, %v383_v60 }
 0x128   : > { %585 = vst [vmem:[#allocation2 + $0x8] sm:$0xff] %v569_v63  ;;  %593 = vst [vmem:[#allocation2 + $0x48] sm:$0xff] %v577_v0  ;;  %v649_v0 = vld [vmem:[%s1305_s3 + $0x30] sm:$0xff] (!%p815_p11) }
 0x129   : > { %584 = vst [vmem:[#allocation2] sm:$0xff] %v568_v3  ;;  %592 = vst [vmem:[#allocation2 + $0x40] sm:$0xff] %v576_v4  ;;  %v890_v9 = vpop.f32.mrb[2].mxu0  ;;  %v902_v10 = vpop.f32.mrb[2].mxu1 }
 0x12a   : > { %v571_v11 = vadd.f32 %v890_v9, %v378_v5  ;;  %v579_v12 = vadd.f32 %v902_v10, %v386_v6  ;;  %v499_v13 = vpop.f32.mrb[3].mxu0  ;;  %v539_v14 = vpop.f32.mrb[3].mxu1  ;;  %v650_v5 = vld [vmem:[%s1305_s3 + $0x38] sm:$0xff] (!%p815_p11) }
 0x12b   : > { %v570_v15 = vadd.f32 %v499_v13, %v377_v7  ;;  %v578_v16 = vadd.f32 %v539_v14, %v385_v8  ;;  %v652_v13 = vld [vmem:[%s1305_s3 + $0x48] sm:$0xff] (!%p815_p11) }
 0x12c   : > { %587 = vst [vmem:[#allocation2 + $0x18] sm:$0xff] %v571_v11  ;;  %595 = vst [vmem:[#allocation2 + $0x58] sm:$0xff] %v579_v12  ;;  %v651_v11 = vld [vmem:[%s1305_s3 + $0x40] sm:$0xff] (!%p815_p11) }
 0x12d   : > { %586 = vst [vmem:[#allocation2 + $0x10] sm:$0xff] %v570_v15  ;;  %594 = vst [vmem:[#allocation2 + $0x50] sm:$0xff] %v578_v16  ;;  %v893_v21 = vpop.f32.mrb[4].mxu0  ;;  %v905_v22 = vpop.f32.mrb[4].mxu1 }
 0x12e   : > { %v573_v23 = vadd.f32 %v893_v21, %v380_v17  ;;  %v581_v24 = vadd.f32 %v905_v22, %v388_v18  ;;  %v509_v25 = vpop.f32.mrb[5].mxu0  ;;  %v549_v26 = vpop.f32.mrb[5].mxu1 }
 0x12f   : > { %v572_v27 = vadd.f32 %v509_v25, %v379_v19  ;;  %v580_v28 = vadd.f32 %v549_v26, %v387_v20  ;;  %603 = sbr.rel (%p815_p11) target bundleno = 325 (0x145), region = 82  ;;  %v605_v45 = vld [vmem:[#allocation2 + $0x8] sm:$0xff] (!%p815_p11)  ;;  %v653_v19 = vld [vmem:[%s1305_s3 + $0x50] sm:$0xff] (!%p815_p11)  ;;  %v654_v25 = vld [vmem:[%s1305_s3 + $0x58] sm:$0xff] (!%p815_p11) }
 0x130   : > { %589 = vst [vmem:[#allocation2 + $0x28] sm:$0xff] %v573_v23  ;;  %597 = vst [vmem:[#allocation2 + $0x68] sm:$0xff] %v581_v24  ;;  %v604_v41 = vld [vmem:[#allocation2] sm:$0xff] (!%p815_p11)  ;;  %v628_v48 = vadd.f32 (!%p815_p11), %v1173_v42, %v605_v45  ;;  %v613_v12 = vld [vmem:[#allocation2 + $0x48] sm:$0xff] (!%p815_p11) }
 0x131   : > { %588 = vst [vmem:[#allocation2 + $0x20] sm:$0xff] %v572_v27  ;;  %596 = vst [vmem:[#allocation2 + $0x60] sm:$0xff] %v580_v28  ;;  %v896_v33 = vpop.f32.mrb[6].mxu0  ;;  %v908_v34 = vpop.f32.mrb[6].mxu1  ;;  %v627_v44 = vadd.f32 (!%p815_p11), %v1173_v42, %v604_v41  ;;  %v612_v6 = vld [vmem:[#allocation2 + $0x40] sm:$0xff] (!%p815_p11)  ;;  %v636_v23 = vadd.f32 (!%p815_p11), %v1173_v42, %v613_v12 }
 0x132   : > { %v575_v35 = vadd.f32 %v896_v33, %v382_v29  ;;  %v583_v36 = vadd.f32 %v908_v34, %v390_v30  ;;  %v519_v37 = vpop.f32.mrb[7].mxu0  ;;  %v559_v38 = vpop.f32.mrb[7].mxu1  ;;  %v660_v58 = vadd.f32 (!%p815_p11), %v644_v46, %v628_v48  ;;  %v635_v17 = vadd.f32 (!%p815_p11), %v1173_v42, %v612_v6  ;;  %v655_v27 = vld [vmem:[%s1305_s3 + $0x60] sm:$0xff] (!%p815_p11)  ;;  %v656_v33 = vld [vmem:[%s1305_s3 + $0x68] sm:$0xff] (!%p815_p11) }
 0x133   : > { %v574_v39 = vadd.f32 %v519_v37, %v381_v31  ;;  %v582_v40 = vadd.f32 %v559_v38, %v389_v32  ;;  %v607_v51 = vld [vmem:[#allocation2 + $0x18] sm:$0xff] (!%p815_p11)  ;;  %v659_v53 = vadd.f32 (!%p815_p11), %v643_v43, %v627_v44 }
 0x134   : > { %591 = vst [vmem:[#allocation2 + $0x38] sm:$0xff] %v575_v35  ;;  %599 = vst [vmem:[#allocation2 + $0x78] sm:$0xff] %v583_v36  ;;  %v606_v47 = vld [vmem:[#allocation2 + $0x10] sm:$0xff] (!%p815_p11)  ;;  %v630_v54 = vadd.f32 (!%p815_p11), %v1173_v42, %v607_v51  ;;  %v676_v7 = vmax.f32 (!%p815_p11), %v660_v58, 0.0  ;;  %v615_v20 = vld [vmem:[#allocation2 + $0x58] sm:$0xff] (!%p815_p11)  ;;  %v667_v30 = vadd.f32 (!%p815_p11), %v651_v11, %v635_v17  ;;  %v668_v35 = vadd.f32 (!%p815_p11), %v652_v13, %v636_v23 }
 0x135   : > { %590 = vst [vmem:[#allocation2 + $0x30] sm:$0xff] %v574_v39  ;;  %598 = vst [vmem:[#allocation2 + $0x70] sm:$0xff] %v582_v40  ;;  %v629_v49 = vadd.f32 (!%p815_p11), %v1173_v42, %v606_v47  ;;  %v675_v1 = vmax.f32 (!%p815_p11), %v659_v53, 0.0  ;;  %v614_v18 = vld [vmem:[#allocation2 + $0x50] sm:$0xff] (!%p815_p11)  ;;  %v638_v31 = vadd.f32 (!%p815_p11), %v1173_v42, %v615_v20 }
 0x136   : > { %v662_v2 = vadd.f32 %v646_v52, %v630_v54  ;;  %692 = vst [vmem:[%s1306_s4 + $0x8] sm:$0xff] %v676_v7  ;;  %v637_v24 = vadd.f32 %v1173_v42, %v614_v18  ;;  %v657_v39 = vld [vmem:[%s1305_s3 + $0x70] sm:$0xff]  ;;  %v683_v43 = vmax.f32 %v667_v30, 0.0  ;;  %v684_v46 = vmax.f32 %v668_v35, 0.0 }
 0x137   : > { %v609_v57 = vld [vmem:[#allocation2 + $0x28] sm:$0xff]  ;;  %v661_v59 = vadd.f32 %v645_v50, %v629_v49  ;;  %691 = vst [vmem:[%s1306_s4] sm:$0xff] %v675_v1  ;;  %v670_v44 = vadd.f32 %v654_v25, %v638_v31  ;;  %v658_v50 = vld [vmem:[%s1305_s3 + $0x78] sm:$0xff] }
 0x138   : > { %v608_v55 = vld [vmem:[#allocation2 + $0x20] sm:$0xff]  ;;  %v632_v61 = vadd.f32 %v1173_v42, %v609_v57  ;;  %v678_v14 = vmax.f32 %v662_v2, 0.0  ;;  %v617_v32 = vld [vmem:[#allocation2 + $0x68] sm:$0xff]  ;;  %v669_v36 = vadd.f32 %v653_v19, %v637_v24  ;;  %699 = vst [vmem:[%s1306_s4 + $0x40] sm:$0xff] %v683_v43  ;;  %700 = vst [vmem:[%s1306_s4 + $0x48] sm:$0xff] %v684_v46 }
 0x139   : > { %v631_v60 = vadd.f32 %v1173_v42, %v608_v55  ;;  %v677_v8 = vmax.f32 %v661_v59, 0.0  ;;  %v616_v26 = vld [vmem:[#allocation2 + $0x60] sm:$0xff]  ;;  %v640_v38 = vadd.f32 %v1173_v42, %v617_v32  ;;  %v686_v51 = vmax.f32 %v670_v44, 0.0 }
 0x13a   : > { %v664_v10 = vadd.f32 %v648_v62, %v632_v61  ;;  %694 = vst [vmem:[%s1306_s4 + $0x18] sm:$0xff] %v678_v14  ;;  %v639_v37 = vadd.f32 %v1173_v42, %v616_v26  ;;  %v685_v47 = vmax.f32 %v669_v36, 0.0 }
 0x13b   : > { %v611_v4 = vld [vmem:[#allocation2 + $0x38] sm:$0xff]  ;;  %v663_v9 = vadd.f32 %v647_v56, %v631_v60  ;;  %693 = vst [vmem:[%s1306_s4 + $0x10] sm:$0xff] %v677_v8  ;;  %v672_v49 = vadd.f32 %v656_v33, %v640_v38  ;;  %702 = vst [vmem:[%s1306_s4 + $0x58] sm:$0xff] %v686_v51 }
 0x13c   : > { %v610_v63 = vld [vmem:[#allocation2 + $0x30] sm:$0xff]  ;;  %v634_v16 = vadd.f32 %v1173_v42, %v611_v4  ;;  %v680_v22 = vmax.f32 %v664_v10, 0.0  ;;  %v619_v40 = vld [vmem:[#allocation2 + $0x78] sm:$0xff]  ;;  %v671_v48 = vadd.f32 %v655_v27, %v639_v37  ;;  %701 = vst [vmem:[%s1306_s4 + $0x50] sm:$0xff] %v685_v47 }
 0x13d   : > { %v633_v3 = vadd.f32 %v1173_v42, %v610_v63  ;;  %v679_v21 = vmax.f32 %v663_v9, 0.0  ;;  %v618_v34 = vld [vmem:[#allocation2 + $0x70] sm:$0xff]  ;;  %v642_v53 = vadd.f32 %v1173_v42, %v619_v40  ;;  %v688_v55 = vmax.f32 %v672_v49, 0.0 }
 0x13e   : > { %v666_v29 = vadd.f32 %v650_v5, %v634_v16  ;;  %696 = vst [vmem:[%s1306_s4 + $0x28] sm:$0xff] %v680_v22  ;;  %v641_v45 = vadd.f32 %v1173_v42, %v618_v34  ;;  %v687_v54 = vmax.f32 %v671_v48, 0.0 }
 0x13f   : > { %v665_v15 = vadd.f32 %v649_v0, %v633_v3  ;;  %695 = vst [vmem:[%s1306_s4 + $0x20] sm:$0xff] %v679_v21  ;;  %v674_v57 = vadd.f32 %v658_v50, %v642_v53  ;;  %704 = vst [vmem:[%s1306_s4 + $0x68] sm:$0xff] %v688_v55 }
 0x140   : > { %v682_v41 = vmax.f32 %v666_v29, 0.0  ;;  %v673_v52 = vadd.f32 %v657_v39, %v641_v45  ;;  %703 = vst [vmem:[%s1306_s4 + $0x60] sm:$0xff] %v687_v54 }
 0x141   : > { %v681_v28 = vmax.f32 %v665_v15, 0.0  ;;  %v690_v42 = vmax.f32 %v674_v57, 0.0 }
 0x142   : > { %698 = vst [vmem:[%s1306_s4 + $0x38] sm:$0xff] %v682_v41  ;;  %v689_v56 = vmax.f32 %v673_v52, 0.0 }
 0x143   : > { %697 = vst [vmem:[%s1306_s4 + $0x30] sm:$0xff] %v681_v28  ;;  %706 = vst [vmem:[%s1306_s4 + $0x78] sm:$0xff] %v690_v42 }
 0x144   : > { %705 = vst [vmem:[%s1306_s4 + $0x70] sm:$0xff] %v689_v56 }
 0x145 PF: > { %s14_s19 = sadd.s32 1, %s1036_s19   ;;  %s1307_s15 = smov %s1024_s16 }
 0x146   : > { %p11_p12 = scmp.ge.s32.totalorder %s14_s19, 11   ;;  %s1308_s16 = smov %s1099_s23 }
 0x147   : > { %s1309_s17 = smov %s1032_s18  ;;  %s1310_s18 = smov %s1312_s20 }
 0x148   :  { %13 = sbr.rel (!%p11_p12) target bundleno = 3 (0x3), region = 123 }

// kernel: resnet18_forward.29
= control target key start
LH: loop header
LB: loop body
LE: loop exit
PB: predicated region body
PF: predicated region fallthrough
CT: control target
= control target key end

     0   :  { %s962_s12 = smov 0   ;;  %s964_s13 = smov 0   ;;  %s1134_s0 = inlined_call_operand.vmem [shape: f32[128,1152], index: 0, kind: input, shape index: {}]   ;;  %s1135_s1 = inlined_call_operand.vmem [shape: f32[1152,128], index: 1, kind: input, shape index: {}]   ;;  %s1136_s2 = inlined_call_operand.vmem [shape: f32[1,128], index: 2, kind: input, shape index: {}]   ;;  %s1137_s3 = inlined_call_operand.vmem [shape: f32[128,128], index: 3, kind: output, shape index: {}]  }
   0x1   :  { %s966_s14 = smov 0   ;;  %s968_s15 = smov 0  }
   0x2   :  { %s970_s16 = smov 0  }
   0x3 LB: > { %s22_s17 = sadd.s32 1, %s935_s15  ;;  %p41_p1 = scmp.ne.s32.totalorder %s927_s13, %s923_s12  ;;  %s939_s16 = sphi %s970_s16, %s13_s16   ;;  %s935_s15 = sphi %s968_s15, %s1141_s15   ;;  %s931_s14 = sphi %s966_s14, %s1140_s14   ;;  %s927_s13 = sphi %s964_s13, %s1139_s13   ;;  %s923_s12 = sphi %s962_s12, %s1138_s12  }
   0x4   : > { %p23_p0 = scmp.ge.s32.totalorder %s22_s17, 9  ;;  %p42_p2 = scmp.eq.s32.totalorder %s939_s16, 0 }
   0x5   : > { %s34_s19 = sadd.s32 1, %s927_s13  ;;  %p710_p5 = scmp.ge.s32.totalorder %s939_s16, 9 }
   0x6   : > { %s1143_s17 = smov (%p23_p0, %s22_s17), 0  ;;  %p43_p3 = por %p42_p2, %p41_p1 }
   0x7   : > { %s30_s18 = ssub.s32 %s935_s15, %s1143_s17  ;;  %143 = sbr.rel (%p710_p5) target bundleno = 26 (0x1a), region = 20 }
   0x8   : > { %p32_p4 = scmp.eq.s32.totalorder %s30_s18, 0 }
   0xa   : > { %s997_s20 = scalar_select %p32_p4, %s927_s13, %s34_s19  }
   0xe   : > { %146 = sbr.rel (!%p43_p3) target bundleno = 26 (0x1a), region = 24  ;;  %s148_s21 = sand.u32 (%p43_p3), 1, %s927_s13  }
   0xf   : > { %s712_s22 = sshll.u32 (%p43_p3), %s935_s15, 3  ;;  %s711_s23 = sshll.u32 (%p43_p3), %s148_s21, 7 }
  0x10   : > { %s1005_s26 = scalar_lea.vmem (%p43_p3), %s1134_s0, %s712_s22  ;;  %s150_s27 = scalar_lea.vmem (%p43_p3), [#allocation3], %s711_s23 }
  0x11   : > { %v213_v0 = vld [vmem:[%s1005_s26] sm:$0xff] (%p43_p3)  ;;  %v215_v1 = vld [vmem:[%s1005_s26 + $0x48] sm:$0xff] (%p43_p3)  ;;  %v217_v2 = vld [vmem:[%s1005_s26 + $0x90] sm:$0xff] (%p43_p3) }
  0x12   : > { %214 = vst [vmem:[%s150_s27] sm:$0xff] (%p43_p3), %v213_v0  ;;  %216 = vst [vmem:[%s150_s27 + $0x8] sm:$0xff] (%p43_p3), %v215_v1  ;;  %v219_v3 = vld [vmem:[%s1005_s26 + $0xd8] sm:$0xff] (%p43_p3)  ;;  %v221_v4 = vld [vmem:[%s1005_s26 + $0x120] sm:$0xff] (%p43_p3) }
  0x13   : > { %218 = vst [vmem:[%s150_s27 + $0x10] sm:$0xff] (%p43_p3), %v217_v2  ;;  %v223_v5 = vld [vmem:[%s1005_s26 + $0x168] sm:$0xff] (%p43_p3)  ;;  %220 = vst [vmem:[%s150_s27 + $0x18] sm:$0xff] (%p43_p3), %v219_v3  ;;  %v225_v6 = vld [vmem:[%s1005_s26 + $0x1b0] sm:$0xff] (%p43_p3) }
  0x14   : > { %222 = vst [vmem:[%s150_s27 + $0x20] sm:$0xff] (%p43_p3), %v221_v4  ;;  %224 = vst [vmem:[%s150_s27 + $0x28] sm:$0xff] (%p43_p3), %v223_v5  ;;  %v227_v7 = vld [vmem:[%s1005_s26 + $0x1f8] sm:$0xff] (%p43_p3)  ;;  %v229_v8 = vld [vmem:[%s1005_s26 + $0x240] sm:$0xff] (%p43_p3) }
  0x15   : > { %226 = vst [vmem:[%s150_s27 + $0x30] sm:$0xff] %v225_v6  ;;  %228 = vst [vmem:[%s150_s27 + $0x38] sm:$0xff] %v227_v7  ;;  %v231_v9 = vld [vmem:[%s1005_s26 + $0x288] sm:$0xff]  ;;  %v233_v10 = vld [vmem:[%s1005_s26 + $0x2d0] sm:$0xff] }
  0x16   : > { %230 = vst [vmem:[%s150_s27 + $0x40] sm:$0xff] %v229_v8  ;;  %v235_v11 = vld [vmem:[%s1005_s26 + $0x318] sm:$0xff]  ;;  %232 = vst [vmem:[%s150_s27 + $0x48] sm:$0xff] %v231_v9  ;;  %v237_v12 = vld [vmem:[%s1005_s26 + $0x360] sm:$0xff] }
  0x17   : > { %234 = vst [vmem:[%s150_s27 + $0x50] sm:$0xff] %v233_v10  ;;  %236 = vst [vmem:[%s150_s27 + $0x58] sm:$0xff] %v235_v11  ;;  %v239_v13 = vld [vmem:[%s1005_s26 + $0x3a8] sm:$0xff]  ;;  %v241_v14 = vld [vmem:[%s1005_s26 + $0x3f0] sm:$0xff] }
  0x18   : > { %238 = vst [vmem:[%s150_s27 + $0x60] sm:$0xff] %v237_v12  ;;  %240 = vst [vmem:[%s150_s27 + $0x68] sm:$0xff] %v239_v13  ;;  %v243_v15 = vld [vmem:[%s1005_s26 + $0x438] sm:$0xff] }
  0x19   : > { %242 = vst [vmem:[%s150_s27 + $0x70] sm:$0xff] %v241_v14  ;;  %244 = vst [vmem:[%s150_s27 + $0x78] sm:$0xff] %v243_v15 }
  0x1a PF: > { %p713_p6 = scmp.ge.s32.totalorder %s939_s16, 1  ;;  %p258_p7 = scmp.lt.s32.totalorder %s939_s16, 10 }
  0x1c   : > { %p259_p8 = pnand %p713_p6, %p258_p7 }
  0x1d   : > { %s265_s28 = sand.u32 (!%p259_p8), 1, %s923_s12   ;;  %s715_s29 = sshll.u32 (!%p259_p8), %s931_s14, 4 }
  0x1e   : > { %262 = sbr.rel (%p259_p8) target bundleno = 323 (0x143), region = 66  ;;  %s714_s30 = sshll.u32 (!%p259_p8), %s265_s28, 7 }
  0x1f   : > { %p295_p9 = scmp.lt.s32.totalorder (!%p259_p8), %s715_s29, 143  ;;  %s1032_s8 = scalar_lea.vmem (!%p259_p8), [#allocation3], %s714_s30 }
  0x20   : > { %p717_p10 = scmp.ne.s32.totalorder (!%p259_p8), %s931_s14, 0 }
  0x25   : > { %s1145_s29 = smov (!%p295_p9, %s715_s29), 143  ;;  %309 = sbr.rel (%p717_p10) target bundleno = 47 (0x2f), region = 74 }
  0x26   : > { %s716_s4 = sshll.u32 %s1145_s29, 3  ;;  %v941_v16 = vmov (!%p717_p10), 0.0  }
  0x27   : > { %s1030_s7 = scalar_lea.vmem %s1135_s1, %s716_s4  ;;  %310 = vst [vmem:[#allocation2] sm:$0xff] (!%p717_p10), %v941_v16  ;;  %311 = vst [vmem:[#allocation2 + $0x8] sm:$0xff] (!%p717_p10), %v941_v16 }
  0x28   : > { %312 = vst [vmem:[#allocation2 + $0x10] sm:$0xff] (!%p717_p10), %v941_v16  ;;  %313 = vst [vmem:[#allocation2 + $0x18] sm:$0xff] (!%p717_p10), %v941_v16 }
  0x29   : > { %314 = vst [vmem:[#allocation2 + $0x20] sm:$0xff] (!%p717_p10), %v941_v16  ;;  %315 = vst [vmem:[#allocation2 + $0x28] sm:$0xff] (!%p717_p10), %v941_v16 }
  0x2a   : > { %316 = vst [vmem:[#allocation2 + $0x30] sm:$0xff] (!%p717_p10), %v941_v16  ;;  %317 = vst [vmem:[#allocation2 + $0x38] sm:$0xff] (!%p717_p10), %v941_v16 }
  0x2b   : > { %318 = vst [vmem:[#allocation2 + $0x40] sm:$0xff] (!%p717_p10), %v941_v16  ;;  %319 = vst [vmem:[#allocation2 + $0x48] sm:$0xff] (!%p717_p10), %v941_v16 }
  0x2c   : > { %320 = vst [vmem:[#allocation2 + $0x50] sm:$0xff] %v941_v16  ;;  %321 = vst [vmem:[#allocation2 + $0x58] sm:$0xff] %v941_v16 }
  0x2d   : > { %322 = vst [vmem:[#allocation2 + $0x60] sm:$0xff] %v941_v16  ;;  %323 = vst [vmem:[#allocation2 + $0x68] sm:$0xff] %v941_v16 }
  0x2e   : > { %324 = vst [vmem:[#allocation2 + $0x70] sm:$0xff] %v941_v16  ;;  %325 = vst [vmem:[#allocation2 + $0x78] sm:$0xff] %v941_v16 }
  0x2f PF: > { %v358_v17 = vld [vmem:[%s1030_s7] sm:$0xff]  ;;  %v359_v18 = vld [vmem:[%s1030_s7 + $0x8] sm:$0xff]  ;;  %v360_v19 = vld [vmem:[%s1030_s7 + $0x10] sm:$0xff]  ;;  %p718_p11 = scmp.ne.s32.totalorder %s931_s14, 8 }
  0x30   : > { %v812_v20 = vpack.c.bf16 %v359_v18, %v358_v17  ;;  %v361_v21 = vld [vmem:[%s1030_s7 + $0x18] sm:$0xff]  ;;  %v362_v23 = vld [vmem:[%s1030_s7 + $0x20] sm:$0xff]  ;;  %v363_v24 = vld [vmem:[%s1030_s7 + $0x28] sm:$0xff] }
  0x31   : > { %v816_v22 = vpack.c.bf16 %v361_v21, %v360_v19  ;;  %v820_v25 = vpack.c.bf16 %v363_v24, %v362_v23  ;;  %v342_v26 = vld [vmem:[%s1032_s8] sm:$0xff]  ;;  %v364_v28 = vld [vmem:[%s1030_s7 + $0x30] sm:$0xff]  ;;  %v365_v29 = vld [vmem:[%s1030_s7 + $0x38] sm:$0xff] }
  0x32   : > { %813 = vmatprep.subr.bf16.mxu0 %v812_v20  ;;  %844 = vmatprep.subr.bf16.mxu1 %v812_v20  ;;  %v350_v27 = vld [vmem:[%s1032_s8 + $0x40] sm:$0xff]  ;;  %v824_v30 = vpack.c.bf16 %v365_v29, %v364_v28  ;;  %v367_v32 = vld [vmem:[%s1030_s7 + $0x48] sm:$0xff]  ;;  %v368_v34 = vld [vmem:[%s1030_s7 + $0x50] sm:$0xff] }
  0x33   : > { %815 = vmatpush3.bf16.msra.mxu0 %v812_v20  ;;  %852 = vmatpush3.bf16.msra.mxu1 %v812_v20  ;;  %v366_v31 = vld [vmem:[%s1030_s7 + $0x40] sm:$0xff]  ;;  %v369_v35 = vld [vmem:[%s1030_s7 + $0x58] sm:$0xff]  ;;  %v371_v38 = vld [vmem:[%s1030_s7 + $0x68] sm:$0xff] }
  0x34   : > { %817 = vmatprep.subr.bf16.mxu0 %v816_v22  ;;  %845 = vmatprep.subr.bf16.mxu1 %v816_v22  ;;  %v828_v33 = vpack.c.bf16 %v367_v32, %v366_v31  ;;  %v832_v36 = vpack.c.bf16 %v369_v35, %v368_v34  ;;  %v370_v37 = vld [vmem:[%s1030_s7 + $0x60] sm:$0xff]  ;;  %v372_v40 = vld [vmem:[%s1030_s7 + $0x70] sm:$0xff]  ;;  %v373_v41 = vld [vmem:[%s1030_s7 + $0x78] sm:$0xff] }
  0x35   : > { %788 = vmatprep.mubr.f32.mxu0 %v342_v26  ;;  %800 = vmatprep.mubr.f32.mxu1 %v350_v27  ;;  %v836_v39 = vpack.c.bf16 %v371_v38, %v370_v37  ;;  %v840_v42 = vpack.c.bf16 %v373_v41, %v372_v40  ;;  %v343_v43 = vld [vmem:[%s1032_s8 + $0x8] sm:$0xff]  ;;  %v344_v45 = vld [vmem:[%s1032_s8 + $0x10] sm:$0xff]  ;;  %v345_v47 = vld [vmem:[%s1032_s8 + $0x18] sm:$0xff] }
  0x36   : > { %v351_v44 = vld [vmem:[%s1032_s8 + $0x48] sm:$0xff]  ;;  %v352_v46 = vld [vmem:[%s1032_s8 + $0x50] sm:$0xff]  ;;  %v353_v48 = vld [vmem:[%s1032_s8 + $0x58] sm:$0xff] }
  0x37   : > { %819 = vmatpush3.bf16.msra.mxu0 %v816_v22  ;;  %853 = vmatpush3.bf16.msra.mxu1 %v816_v22  ;;  %v346_v49 = vld [vmem:[%s1032_s8 + $0x20] sm:$0xff]  ;;  %v347_v51 = vld [vmem:[%s1032_s8 + $0x28] sm:$0xff]  ;;  %v348_v53 = vld [vmem:[%s1032_s8 + $0x30] sm:$0xff] }
  0x38   : > { %821 = vmatprep.subr.bf16.mxu0 %v820_v25  ;;  %846 = vmatprep.subr.bf16.mxu1 %v820_v25  ;;  %v354_v50 = vld [vmem:[%s1032_s8 + $0x60] sm:$0xff]  ;;  %v355_v52 = vld [vmem:[%s1032_s8 + $0x68] sm:$0xff]  ;;  %v356_v54 = vld [vmem:[%s1032_s8 + $0x70] sm:$0xff] }
  0x39   : > { %v349_v55 = vld [vmem:[%s1032_s8 + $0x38] sm:$0xff]  ;;  %v327_v57 = vld [vmem:[#allocation2 + $0x8] sm:$0xff]  ;;  %v326_v59 = vld [vmem:[#allocation2] sm:$0xff] }
  0x3a   : > { %v357_v56 = vld [vmem:[%s1032_s8 + $0x78] sm:$0xff]  ;;  %v335_v58 = vld [vmem:[#allocation2 + $0x48] sm:$0xff]  ;;  %v334_v60 = vld [vmem:[#allocation2 + $0x40] sm:$0xff] }
  0x3b   : > { %823 = vmatpush3.bf16.msra.mxu0 %v820_v25  ;;  %854 = vmatpush3.bf16.msra.mxu1 %v820_v25  ;;  %v329_v5 = vld [vmem:[#allocation2 + $0x18] sm:$0xff]  ;;  %v328_v7 = vld [vmem:[#allocation2 + $0x10] sm:$0xff]  ;;  %v331_v17 = vld [vmem:[#allocation2 + $0x28] sm:$0xff] }
  0x3c   : > { %825 = vmatprep.subr.bf16.mxu0 %v824_v30  ;;  %847 = vmatprep.subr.bf16.mxu1 %v824_v30  ;;  %v337_v6 = vld [vmem:[#allocation2 + $0x58] sm:$0xff]  ;;  %v336_v8 = vld [vmem:[#allocation2 + $0x50] sm:$0xff]  ;;  %v339_v18 = vld [vmem:[#allocation2 + $0x68] sm:$0xff] }
  0x3d   : > { %v330_v19 = vld [vmem:[#allocation2 + $0x20] sm:$0xff]  ;;  %v333_v29 = vld [vmem:[#allocation2 + $0x38] sm:$0xff]  ;;  %v332_v31 = vld [vmem:[#allocation2 + $0x30] sm:$0xff] }
  0x3e   : > { %v338_v20 = vld [vmem:[#allocation2 + $0x60] sm:$0xff]  ;;  %v340_v32 = vld [vmem:[#allocation2 + $0x70] sm:$0xff] }
  0x3f   : > { %827 = vmatpush3.bf16.msra.mxu0 %v824_v30  ;;  %855 = vmatpush3.bf16.msra.mxu1 %v824_v30  ;;  %v341_v30 = vld [vmem:[#allocation2 + $0x78] sm:$0xff] }
  0x40   : > { %829 = vmatprep.subr.bf16.mxu0 %v828_v33  ;;  %848 = vmatprep.subr.bf16.mxu1 %v828_v33 }
  0x43   : > { %831 = vmatpush3.bf16.msra.mxu0 %v828_v33  ;;  %856 = vmatpush3.bf16.msra.mxu1 %v828_v33 }
  0x44   : > { %833 = vmatprep.subr.bf16.mxu0 %v832_v36  ;;  %849 = vmatprep.subr.bf16.mxu1 %v832_v36 }
  0x47   : > { %835 = vmatpush3.bf16.msra.mxu0 %v832_v36  ;;  %857 = vmatpush3.bf16.msra.mxu1 %v832_v36 }
  0x48   : > { %837 = vmatprep.subr.bf16.mxu0 %v836_v39  ;;  %850 = vmatprep.subr.bf16.mxu1 %v836_v39 }
  0x4b   : > { %839 = vmatpush3.bf16.msra.mxu0 %v836_v39  ;;  %858 = vmatpush3.bf16.msra.mxu1 %v836_v39 }
  0x4c   : > { %841 = vmatprep.subr.bf16.mxu0 %v840_v42  ;;  %851 = vmatprep.subr.bf16.mxu1 %v840_v42 }
  0x4f   : > { %843 = vmatpush3.bf16.msra.mxu0 %v840_v42  ;;  %859 = vmatpush3.bf16.msra.mxu1 %v840_v42  ;;  %v719_v42 = vld [vmem:[%s1136_s2] ss:$0 sm:$0xff] (!%p718_p11) }
  0x52   : > { %789 = vmatmul.mubr.f32.vlgmr.msra.gmra.mrb[0].mxu0 %v343_v43  ;;  %801 = vmatmul.mubr.f32.vlgmr.msra.gmra.mrb[0].mxu1 %v351_v44 }
  0x53   : > { %791 = vmatprep.mubr.f32.mxu0 %v344_v45  ;;  %803 = vmatprep.mubr.f32.mxu1 %v352_v46 }
  0x56   : > { %792 = vmatmul.mubr.f32.gmra.mrb[2].mxu0 %v345_v47  ;;  %804 = vmatmul.mubr.f32.gmra.mrb[2].mxu1 %v353_v48 }
  0x57   : > { %794 = vmatprep.mubr.f32.mxu0 %v346_v49  ;;  %806 = vmatprep.mubr.f32.mxu1 %v354_v50 }
  0x5a   : > { %795 = vmatmul.mubr.f32.gmra.mrb[4].mxu0 %v347_v51  ;;  %807 = vmatmul.mubr.f32.gmra.mrb[4].mxu1 %v355_v52 }
  0x5b   : > { %797 = vmatprep.mubr.f32.mxu0 %v348_v53  ;;  %809 = vmatprep.mubr.f32.mxu1 %v356_v54 }
  0x5e   : > { %798 = vmatmul.mubr.f32.gmra.mrb[6].mxu0 %v349_v55  ;;  %810 = vmatmul.mubr.f32.gmra.mrb[6].mxu1 %v357_v56 }
 0x125   : > { %v790_v61 = vpop.f32.mrb[0].mxu0  ;;  %v802_v62 = vpop.f32.mrb[0].mxu1 }
 0x126   : > { %v520_v63 = vadd.f32 %v790_v61, %v327_v57  ;;  %v528_v0 = vadd.f32 %v802_v62, %v335_v58  ;;  %v440_v1 = vpop.f32.mrb[1].mxu0  ;;  %v480_v2 = vpop.f32.mrb[1].mxu1 }
 0x127   : > { %v519_v3 = vadd.f32 %v440_v1, %v326_v59  ;;  %v527_v4 = vadd.f32 %v480_v2, %v334_v60 }
 0x128   : > { %536 = vst [vmem:[#allocation2 + $0x8] sm:$0xff] %v520_v63  ;;  %544 = vst [vmem:[#allocation2 + $0x48] sm:$0xff] %v528_v0 }
 0x129   : > { %535 = vst [vmem:[#allocation2] sm:$0xff] %v519_v3  ;;  %543 = vst [vmem:[#allocation2 + $0x40] sm:$0xff] %v527_v4  ;;  %v793_v9 = vpop.f32.mrb[2].mxu0  ;;  %v805_v10 = vpop.f32.mrb[2].mxu1 }
 0x12a   : > { %v522_v11 = vadd.f32 %v793_v9, %v329_v5  ;;  %v530_v12 = vadd.f32 %v805_v10, %v337_v6  ;;  %v450_v13 = vpop.f32.mrb[3].mxu0  ;;  %v490_v14 = vpop.f32.mrb[3].mxu1 }
 0x12b   : > { %v521_v15 = vadd.f32 %v450_v13, %v328_v7  ;;  %v529_v16 = vadd.f32 %v490_v14, %v336_v8 }
 0x12c   : > { %538 = vst [vmem:[#allocation2 + $0x18] sm:$0xff] %v522_v11  ;;  %546 = vst [vmem:[#allocation2 + $0x58] sm:$0xff] %v530_v12 }
 0x12d   : > { %537 = vst [vmem:[#allocation2 + $0x10] sm:$0xff] %v521_v15  ;;  %545 = vst [vmem:[#allocation2 + $0x50] sm:$0xff] %v529_v16  ;;  %v796_v21 = vpop.f32.mrb[4].mxu0  ;;  %v808_v22 = vpop.f32.mrb[4].mxu1 }
 0x12e   : > { %v524_v23 = vadd.f32 %v796_v21, %v331_v17  ;;  %v532_v24 = vadd.f32 %v808_v22, %v339_v18  ;;  %v460_v25 = vpop.f32.mrb[5].mxu0  ;;  %v500_v26 = vpop.f32.mrb[5].mxu1 }
 0x12f   : > { %v523_v27 = vadd.f32 %v460_v25, %v330_v19  ;;  %v531_v28 = vadd.f32 %v500_v26, %v338_v20  ;;  %554 = sbr.rel (%p718_p11) target bundleno = 323 (0x143), region = 78  ;;  %v556_v43 = vld [vmem:[#allocation2 + $0x8] sm:$0xff] (!%p718_p11) }
 0x130   : > { %540 = vst [vmem:[#allocation2 + $0x28] sm:$0xff] %v524_v23  ;;  %548 = vst [vmem:[#allocation2 + $0x68] sm:$0xff] %v532_v24  ;;  %v555_v41 = vld [vmem:[#allocation2] sm:$0xff] (!%p718_p11)  ;;  %v579_v45 = vadd.f32 (!%p718_p11), %v719_v42, %v556_v43  ;;  %v564_v60 = vld [vmem:[#allocation2 + $0x48] sm:$0xff] (!%p718_p11) }
 0x131   : > { %539 = vst [vmem:[#allocation2 + $0x20] sm:$0xff] %v523_v27  ;;  %547 = vst [vmem:[#allocation2 + $0x60] sm:$0xff] %v531_v28  ;;  %v799_v33 = vpop.f32.mrb[6].mxu0  ;;  %v811_v34 = vpop.f32.mrb[6].mxu1  ;;  %v578_v44 = vadd.f32 (!%p718_p11), %v719_v42, %v555_v41  ;;  %v563_v59 = vld [vmem:[#allocation2 + $0x40] sm:$0xff] (!%p718_p11)  ;;  %v587_v8 = vadd.f32 (!%p718_p11), %v719_v42, %v564_v60 }
 0x132   : > { %v526_v35 = vadd.f32 %v799_v33, %v333_v29  ;;  %v534_v36 = vadd.f32 %v811_v34, %v341_v30  ;;  %v470_v37 = vpop.f32.mrb[7].mxu0  ;;  %v510_v38 = vpop.f32.mrb[7].mxu1  ;;  %v595_v56 = vmax.f32 (!%p718_p11), %v579_v45, 0.0  ;;  %v586_v7 = vadd.f32 (!%p718_p11), %v719_v42, %v563_v59 }
 0x133   : > { %v525_v39 = vadd.f32 %v470_v37, %v332_v31  ;;  %v533_v40 = vadd.f32 %v510_v38, %v340_v32  ;;  %v558_v47 = vld [vmem:[#allocation2 + $0x18] sm:$0xff] (!%p718_p11)  ;;  %v594_v55 = vmax.f32 (!%p718_p11), %v578_v44, 0.0  ;;  %v603_v16 = vmax.f32 (!%p718_p11), %v587_v8, 0.0 }
 0x134   : > { %542 = vst [vmem:[#allocation2 + $0x38] sm:$0xff] %v526_v35  ;;  %550 = vst [vmem:[#allocation2 + $0x78] sm:$0xff] %v534_v36  ;;  %v557_v46 = vld [vmem:[#allocation2 + $0x10] sm:$0xff] (!%p718_p11)  ;;  %v581_v50 = vadd.f32 (!%p718_p11), %v719_v42, %v558_v47  ;;  %v566_v2 = vld [vmem:[#allocation2 + $0x58] sm:$0xff] (!%p718_p11)  ;;  %v602_v15 = vmax.f32 (!%p718_p11), %v586_v7, 0.0 }
 0x135   : > { %541 = vst [vmem:[#allocation2 + $0x30] sm:$0xff] %v525_v39  ;;  %549 = vst [vmem:[#allocation2 + $0x70] sm:$0xff] %v533_v40  ;;  %v580_v49 = vadd.f32 (!%p718_p11), %v719_v42, %v557_v46  ;;  %v565_v61 = vld [vmem:[#allocation2 + $0x50] sm:$0xff] (!%p718_p11)  ;;  %v589_v13 = vadd.f32 (!%p718_p11), %v719_v42, %v566_v2 }
 0x136   : > { %v597_v63 = vmax.f32 %v581_v50, 0.0  ;;  %610 = vst [vmem:[%s1137_s3] sm:$0xff] %v594_v55  ;;  %611 = vst [vmem:[%s1137_s3 + $0x8] sm:$0xff] %v595_v56  ;;  %v588_v12 = vadd.f32 %v719_v42, %v565_v61 }
 0x137   : > { %v560_v52 = vld [vmem:[#allocation2 + $0x28] sm:$0xff]  ;;  %v596_v62 = vmax.f32 %v580_v49, 0.0  ;;  %v605_v20 = vmax.f32 %v589_v13, 0.0  ;;  %618 = vst [vmem:[%s1137_s3 + $0x40] sm:$0xff] %v602_v15  ;;  %619 = vst [vmem:[%s1137_s3 + $0x48] sm:$0xff] %v603_v16 }
 0x138   : > { %v559_v48 = vld [vmem:[#allocation2 + $0x20] sm:$0xff]  ;;  %v583_v57 = vadd.f32 %v719_v42, %v560_v52  ;;  %v568_v4 = vld [vmem:[#allocation2 + $0x68] sm:$0xff]  ;;  %613 = vst [vmem:[%s1137_s3 + $0x18] sm:$0xff] %v597_v63  ;;  %v604_v19 = vmax.f32 %v588_v12, 0.0 }
 0x139   : > { %v582_v51 = vadd.f32 %v719_v42, %v559_v48  ;;  %v567_v3 = vld [vmem:[#allocation2 + $0x60] sm:$0xff]  ;;  %612 = vst [vmem:[%s1137_s3 + $0x10] sm:$0xff] %v596_v62  ;;  %v591_v17 = vadd.f32 %v719_v42, %v568_v4  ;;  %621 = vst [vmem:[%s1137_s3 + $0x58] sm:$0xff] %v605_v20 }
 0x13a   : > { %v599_v5 = vmax.f32 %v583_v57, 0.0  ;;  %v590_v14 = vadd.f32 %v719_v42, %v567_v3  ;;  %620 = vst [vmem:[%s1137_s3 + $0x50] sm:$0xff] %v604_v19 }
 0x13b   : > { %v562_v54 = vld [vmem:[#allocation2 + $0x38] sm:$0xff]  ;;  %v598_v0 = vmax.f32 %v582_v51, 0.0  ;;  %v607_v23 = vmax.f32 %v591_v17, 0.0 }
 0x13c   : > { %v561_v53 = vld [vmem:[#allocation2 + $0x30] sm:$0xff]  ;;  %v585_v1 = vadd.f32 %v719_v42, %v562_v54  ;;  %v570_v10 = vld [vmem:[#allocation2 + $0x78] sm:$0xff]  ;;  %615 = vst [vmem:[%s1137_s3 + $0x28] sm:$0xff] %v599_v5  ;;  %v606_v21 = vmax.f32 %v590_v14, 0.0 }
 0x13d   : > { %v584_v58 = vadd.f32 %v719_v42, %v561_v53  ;;  %v569_v9 = vld [vmem:[#allocation2 + $0x70] sm:$0xff]  ;;  %614 = vst [vmem:[%s1137_s3 + $0x20] sm:$0xff] %v598_v0  ;;  %v593_v22 = vadd.f32 %v719_v42, %v570_v10  ;;  %623 = vst [vmem:[%s1137_s3 + $0x68] sm:$0xff] %v607_v23 }
 0x13e   : > { %v601_v11 = vmax.f32 %v585_v1, 0.0  ;;  %v592_v18 = vadd.f32 %v719_v42, %v569_v9  ;;  %622 = vst [vmem:[%s1137_s3 + $0x60] sm:$0xff] %v606_v21 }
 0x13f   : > { %v600_v6 = vmax.f32 %v584_v58, 0.0  ;;  %v609_v25 = vmax.f32 %v593_v22, 0.0 }
 0x140   : > { %617 = vst [vmem:[%s1137_s3 + $0x38] sm:$0xff] %v601_v11  ;;  %v608_v24 = vmax.f32 %v592_v18, 0.0 }
 0x141   : > { %616 = vst [vmem:[%s1137_s3 + $0x30] sm:$0xff] %v600_v6  ;;  %625 = vst [vmem:[%s1137_s3 + $0x78] sm:$0xff] %v609_v25 }
 0x142   : > { %624 = vst [vmem:[%s1137_s3 + $0x70] sm:$0xff] %v608_v24 }
 0x143 PF: > { %s13_s16 = sadd.s32 1, %s939_s16   ;;  %s1138_s12 = smov %s927_s13 }
 0x144   : > { %p10_p12 = scmp.ge.s32.totalorder %s13_s16, 11   ;;  %s1139_s13 = smov %s997_s20 }
 0x145   : > { %s1140_s14 = smov %s935_s15  ;;  %s1141_s15 = smov %s1143_s17 }
 0x146   :  { %12 = sbr.rel (!%p10_p12) target bundleno = 3 (0x3), region = 116 }

// kernel: resnet18_forward.26
= control target key start
LH: loop header
LB: loop body
LE: loop exit
PB: predicated region body
PF: predicated region fallthrough
CT: control target
= control target key end

     0   :  { %s625_s1 = inlined_call_operand.vmem [shape: f32[128,128], index: 1, kind: input, shape index: {}]   ;;  %s626_s0 = inlined_call_operand.vmem [shape: f32[128,128], index: 0, kind: input, shape index: {}]   ;;  %s627_s2 = inlined_call_operand.vmem [shape: f32[1,128], index: 2, kind: input, shape index: {}]   ;;  %s628_s3 = inlined_call_operand.vmem [shape: f32[128,128], index: 3, kind: output, shape index: {}]  }
   0x1   :  { %v66_v0 = vld [vmem:[%s625_s1] sm:$0xff]  ;;  %v67_v1 = vld [vmem:[%s625_s1 + $0x8] sm:$0xff]  ;;  %v68_v2 = vld [vmem:[%s625_s1 + $0x10] sm:$0xff] }
   0x2   :  { %v410_v3 = vpack.c.bf16 %v67_v1, %v66_v0  ;;  %v69_v4 = vld [vmem:[%s625_s1 + $0x18] sm:$0xff]  ;;  %v70_v6 = vld [vmem:[%s625_s1 + $0x20] sm:$0xff]  ;;  %v71_v7 = vld [vmem:[%s625_s1 + $0x28] sm:$0xff] }
   0x3   :  { %v414_v5 = vpack.c.bf16 %v69_v4, %v68_v2  ;;  %v418_v8 = vpack.c.bf16 %v71_v7, %v70_v6  ;;  %v50_v9 = vld [vmem:[%s626_s0] sm:$0xff]  ;;  %v72_v11 = vld [vmem:[%s625_s1 + $0x30] sm:$0xff]  ;;  %v73_v12 = vld [vmem:[%s625_s1 + $0x38] sm:$0xff] }
   0x4   :  { %411 = vmatprep.subr.bf16.mxu0 %v410_v3  ;;  %442 = vmatprep.subr.bf16.mxu1 %v410_v3  ;;  %v58_v10 = vld [vmem:[%s626_s0 + $0x40] sm:$0xff]  ;;  %v422_v13 = vpack.c.bf16 %v73_v12, %v72_v11  ;;  %v75_v15 = vld [vmem:[%s625_s1 + $0x48] sm:$0xff]  ;;  %v76_v17 = vld [vmem:[%s625_s1 + $0x50] sm:$0xff] }
   0x5   :  { %413 = vmatpush3.bf16.msra.mxu0 %v410_v3  ;;  %450 = vmatpush3.bf16.msra.mxu1 %v410_v3  ;;  %v74_v14 = vld [vmem:[%s625_s1 + $0x40] sm:$0xff]  ;;  %v77_v18 = vld [vmem:[%s625_s1 + $0x58] sm:$0xff]  ;;  %v79_v21 = vld [vmem:[%s625_s1 + $0x68] sm:$0xff] }
   0x6   :  { %415 = vmatprep.subr.bf16.mxu0 %v414_v5  ;;  %443 = vmatprep.subr.bf16.mxu1 %v414_v5  ;;  %v426_v16 = vpack.c.bf16 %v75_v15, %v74_v14  ;;  %v430_v19 = vpack.c.bf16 %v77_v18, %v76_v17  ;;  %v78_v20 = vld [vmem:[%s625_s1 + $0x60] sm:$0xff]  ;;  %v80_v23 = vld [vmem:[%s625_s1 + $0x70] sm:$0xff]  ;;  %v81_v24 = vld [vmem:[%s625_s1 + $0x78] sm:$0xff] }
   0x7   :  { %386 = vmatprep.mubr.f32.mxu0 %v50_v9  ;;  %398 = vmatprep.mubr.f32.mxu1 %v58_v10  ;;  %v434_v22 = vpack.c.bf16 %v79_v21, %v78_v20  ;;  %v438_v25 = vpack.c.bf16 %v81_v24, %v80_v23  ;;  %v51_v26 = vld [vmem:[%s626_s0 + $0x8] sm:$0xff]  ;;  %v52_v28 = vld [vmem:[%s626_s0 + $0x10] sm:$0xff]  ;;  %v53_v30 = vld [vmem:[%s626_s0 + $0x18] sm:$0xff] }
   0x8   :  { %v59_v27 = vld [vmem:[%s626_s0 + $0x48] sm:$0xff]  ;;  %v60_v29 = vld [vmem:[%s626_s0 + $0x50] sm:$0xff]  ;;  %v61_v31 = vld [vmem:[%s626_s0 + $0x58] sm:$0xff] }
   0x9   :  { %417 = vmatpush3.bf16.msra.mxu0 %v414_v5  ;;  %451 = vmatpush3.bf16.msra.mxu1 %v414_v5  ;;  %v54_v32 = vld [vmem:[%s626_s0 + $0x20] sm:$0xff]  ;;  %v55_v34 = vld [vmem:[%s626_s0 + $0x28] sm:$0xff]  ;;  %v56_v36 = vld [vmem:[%s626_s0 + $0x30] sm:$0xff] }
   0xa   :  { %419 = vmatprep.subr.bf16.mxu0 %v418_v8  ;;  %444 = vmatprep.subr.bf16.mxu1 %v418_v8  ;;  %v62_v33 = vld [vmem:[%s626_s0 + $0x60] sm:$0xff]  ;;  %v63_v35 = vld [vmem:[%s626_s0 + $0x68] sm:$0xff]  ;;  %v64_v37 = vld [vmem:[%s626_s0 + $0x70] sm:$0xff] }
   0xb   :  { %v57_v38 = vld [vmem:[%s626_s0 + $0x38] sm:$0xff]  ;;  %v321_v40 = vld [vmem:[%s627_s2] ss:$0 sm:$0xff] }
   0xc   :  { %v65_v39 = vld [vmem:[%s626_s0 + $0x78] sm:$0xff] }
   0xd   :  { %421 = vmatpush3.bf16.msra.mxu0 %v418_v8  ;;  %452 = vmatpush3.bf16.msra.mxu1 %v418_v8 }
   0xe   :  { %423 = vmatprep.subr.bf16.mxu0 %v422_v13  ;;  %445 = vmatprep.subr.bf16.mxu1 %v422_v13 }
  0x11   :  { %425 = vmatpush3.bf16.msra.mxu0 %v422_v13  ;;  %453 = vmatpush3.bf16.msra.mxu1 %v422_v13 }
  0x12   :  { %427 = vmatprep.subr.bf16.mxu0 %v426_v16  ;;  %446 = vmatprep.subr.bf16.mxu1 %v426_v16 }
  0x15   :  { %429 = vmatpush3.bf16.msra.mxu0 %v426_v16  ;;  %454 = vmatpush3.bf16.msra.mxu1 %v426_v16 }
  0x16   :  { %431 = vmatprep.subr.bf16.mxu0 %v430_v19  ;;  %447 = vmatprep.subr.bf16.mxu1 %v430_v19 }
  0x19   :  { %433 = vmatpush3.bf16.msra.mxu0 %v430_v19  ;;  %455 = vmatpush3.bf16.msra.mxu1 %v430_v19 }
  0x1a   :  { %435 = vmatprep.subr.bf16.mxu0 %v434_v22  ;;  %448 = vmatprep.subr.bf16.mxu1 %v434_v22 }
  0x1d   :  { %437 = vmatpush3.bf16.msra.mxu0 %v434_v22  ;;  %456 = vmatpush3.bf16.msra.mxu1 %v434_v22 }
  0x1e   :  { %439 = vmatprep.subr.bf16.mxu0 %v438_v25  ;;  %449 = vmatprep.subr.bf16.mxu1 %v438_v25 }
  0x21   :  { %441 = vmatpush3.bf16.msra.mxu0 %v438_v25  ;;  %457 = vmatpush3.bf16.msra.mxu1 %v438_v25 }
  0x24   :  { %387 = vmatmul.mubr.f32.vlgmr.msra.gmra.mrb[0].mxu0 %v51_v26  ;;  %399 = vmatmul.mubr.f32.vlgmr.msra.gmra.mrb[0].mxu1 %v59_v27 }
  0x25   :  { %389 = vmatprep.mubr.f32.mxu0 %v52_v28  ;;  %401 = vmatprep.mubr.f32.mxu1 %v60_v29 }
  0x28   :  { %390 = vmatmul.mubr.f32.gmra.mrb[2].mxu0 %v53_v30  ;;  %402 = vmatmul.mubr.f32.gmra.mrb[2].mxu1 %v61_v31 }
  0x29   :  { %392 = vmatprep.mubr.f32.mxu0 %v54_v32  ;;  %404 = vmatprep.mubr.f32.mxu1 %v62_v33 }
  0x2c   :  { %393 = vmatmul.mubr.f32.gmra.mrb[4].mxu0 %v55_v34  ;;  %405 = vmatmul.mubr.f32.gmra.mrb[4].mxu1 %v63_v35 }
  0x2d   :  { %395 = vmatprep.mubr.f32.mxu0 %v56_v36  ;;  %407 = vmatprep.mubr.f32.mxu1 %v64_v37 }
  0x30   :  { %396 = vmatmul.mubr.f32.gmra.mrb[6].mxu0 %v57_v38  ;;  %408 = vmatmul.mubr.f32.gmra.mrb[6].mxu1 %v65_v39 }
  0xf7   :  { %v388_v41 = vpop.f32.mrb[0].mxu0  ;;  %v400_v42 = vpop.f32.mrb[0].mxu1 }
  0xf8   :  { %v286_v43 = vadd.f32 %v388_v41, %v321_v40  ;;  %v294_v44 = vadd.f32 %v400_v42, %v321_v40  ;;  %v148_v45 = vpop.f32.mrb[1].mxu0  ;;  %v188_v46 = vpop.f32.mrb[1].mxu1 }
  0xf9   :  { %v285_v47 = vadd.f32 %v321_v40, %v148_v45  ;;  %v293_v48 = vadd.f32 %v321_v40, %v188_v46 }
  0xfa   :  { %302 = vst [vmem:[%s628_s3 + $0x8] sm:$0xff] %v286_v43  ;;  %310 = vst [vmem:[%s628_s3 + $0x48] sm:$0xff] %v294_v44 }
  0xfb   :  { %301 = vst [vmem:[%s628_s3] sm:$0xff] %v285_v47  ;;  %309 = vst [vmem:[%s628_s3 + $0x40] sm:$0xff] %v293_v48  ;;  %v391_v49 = vpop.f32.mrb[2].mxu0  ;;  %v403_v50 = vpop.f32.mrb[2].mxu1 }
  0xfc   :  { %v288_v51 = vadd.f32 %v391_v49, %v321_v40  ;;  %v296_v52 = vadd.f32 %v403_v50, %v321_v40  ;;  %v158_v53 = vpop.f32.mrb[3].mxu0  ;;  %v198_v54 = vpop.f32.mrb[3].mxu1 }
  0xfd   :  { %v287_v55 = vadd.f32 %v321_v40, %v158_v53  ;;  %v295_v56 = vadd.f32 %v321_v40, %v198_v54 }
  0xfe   :  { %304 = vst [vmem:[%s628_s3 + $0x18] sm:$0xff] %v288_v51  ;;  %312 = vst [vmem:[%s628_s3 + $0x58] sm:$0xff] %v296_v52 }
  0xff   :  { %303 = vst [vmem:[%s628_s3 + $0x10] sm:$0xff] %v287_v55  ;;  %311 = vst [vmem:[%s628_s3 + $0x50] sm:$0xff] %v295_v56  ;;  %v394_v57 = vpop.f32.mrb[4].mxu0  ;;  %v406_v58 = vpop.f32.mrb[4].mxu1 }
 0x100   :  { %v290_v59 = vadd.f32 %v394_v57, %v321_v40  ;;  %v298_v60 = vadd.f32 %v406_v58, %v321_v40  ;;  %v168_v61 = vpop.f32.mrb[5].mxu0  ;;  %v208_v62 = vpop.f32.mrb[5].mxu1 }
 0x101   :  { %v289_v63 = vadd.f32 %v321_v40, %v168_v61  ;;  %v297_v0 = vadd.f32 %v321_v40, %v208_v62 }
 0x102   :  { %306 = vst [vmem:[%s628_s3 + $0x28] sm:$0xff] %v290_v59  ;;  %314 = vst [vmem:[%s628_s3 + $0x68] sm:$0xff] %v298_v60 }
 0x103   :  { %305 = vst [vmem:[%s628_s3 + $0x20] sm:$0xff] %v289_v63  ;;  %313 = vst [vmem:[%s628_s3 + $0x60] sm:$0xff] %v297_v0  ;;  %v397_v1 = vpop.f32.mrb[6].mxu0  ;;  %v409_v2 = vpop.f32.mrb[6].mxu1 }
 0x104   :  { %v292_v3 = vadd.f32 %v397_v1, %v321_v40  ;;  %v300_v4 = vadd.f32 %v409_v2, %v321_v40  ;;  %v178_v5 = vpop.f32.mrb[7].mxu0  ;;  %v218_v6 = vpop.f32.mrb[7].mxu1 }
 0x105   :  { %v291_v7 = vadd.f32 %v321_v40, %v178_v5  ;;  %v299_v8 = vadd.f32 %v321_v40, %v218_v6 }
 0x106   :  { %308 = vst [vmem:[%s628_s3 + $0x38] sm:$0xff] %v292_v3  ;;  %316 = vst [vmem:[%s628_s3 + $0x78] sm:$0xff] %v300_v4 }
 0x107   :  { %307 = vst [vmem:[%s628_s3 + $0x30] sm:$0xff] %v291_v7  ;;  %315 = vst [vmem:[%s628_s3 + $0x70] sm:$0xff] %v299_v8 }

// kernel: resnet18_forward.32
= control target key start
LH: loop header
LB: loop body
LE: loop exit
PB: predicated region body
PF: predicated region fallthrough
CT: control target
= control target key end

     0   :  { %s725_s12 = smov 0   ;;  %s727_s13 = smov 0   ;;  %s863_s0 = inlined_call_operand.vmem [shape: f32[32,1152], index: 0, kind: input, shape index: {}]   ;;  %s864_s1 = inlined_call_operand.vmem [shape: f32[1152,256], index: 1, kind: input, shape index: {}]   ;;  %s865_s2 = inlined_call_operand.vmem [shape: f32[1,256], index: 2, kind: input, shape index: {}]   ;;  %s866_s3 = inlined_call_operand.vmem [shape: f32[32,256], index: 3, kind: output, shape index: {}]  }
   0x1   :  { %s729_s14 = smov 0   ;;  %s731_s15 = smov 0  }
   0x2   :  { %s733_s16 = smov 0  }
   0x3 LB: > { %s22_s17 = sadd.s32 1, %s697_s15  ;;  %p41_p1 = scmp.ne.s32.totalorder %s689_s13, %s685_s12  ;;  %s701_s16 = sphi %s733_s16, %s13_s16   ;;  %s697_s15 = sphi %s731_s15, %s870_s15   ;;  %s693_s14 = sphi %s729_s14, %s869_s14   ;;  %s689_s13 = sphi %s727_s13, %s868_s13   ;;  %s685_s12 = sphi %s725_s12, %s867_s12  }
   0x4   : > { %p23_p0 = scmp.ge.s32.totalorder %s22_s17, 9  ;;  %p42_p2 = scmp.eq.s32.totalorder %s701_s16, 0 }
   0x5   : > { %s34_s19 = sadd.s32 1, %s689_s13  ;;  %p558_p5 = scmp.ge.s32.totalorder %s701_s16, 9 }
   0x6   : > { %s872_s17 = smov (%p23_p0, %s22_s17), 0  ;;  %p43_p3 = por %p42_p2, %p41_p1 }
   0x7   : > { %s30_s18 = ssub.s32 %s697_s15, %s872_s17  ;;  %143 = sbr.rel (%p558_p5) target bundleno = 21 (0x15), region = 20 }
   0x8   : > { %p32_p4 = scmp.eq.s32.totalorder %s30_s18, 0 }
   0xa   : > { %s760_s20 = scalar_select %p32_p4, %s689_s13, %s34_s19  }
   0xe   : > { %146 = sbr.rel (!%p43_p3) target bundleno = 21 (0x15), region = 24  ;;  %s148_s21 = sand.u32 (%p43_p3), 1, %s689_s13  }
   0xf   : > { %s560_s22 = sshll.u32 (%p43_p3), %s697_s15, 3  ;;  %s559_s23 = sshll.u32 (%p43_p3), %s148_s21, 5 }
  0x10   : > { %s155_s26 = scalar_lea.vmem (%p43_p3), %s863_s0, %s560_s22  ;;  %s150_s27 = scalar_lea.vmem (%p43_p3), [#allocation3], %s559_s23 }
  0x11   : > { %v189_v0 = vld [vmem:[%s155_s26] sm:$0xff] (%p43_p3)  ;;  %v191_v1 = vld [vmem:[%s155_s26 + $0x48] sm:$0xff] (%p43_p3)  ;;  %v193_v2 = vld [vmem:[%s155_s26 + $0x90] sm:$0xff] (%p43_p3) }
  0x12   : > { %190 = vst [vmem:[%s150_s27] sm:$0xff] (%p43_p3), %v189_v0  ;;  %192 = vst [vmem:[%s150_s27 + $0x8] sm:$0xff] (%p43_p3), %v191_v1  ;;  %v195_v3 = vld [vmem:[%s155_s26 + $0xd8] sm:$0xff] (%p43_p3) }
  0x13   : > { %194 = vst [vmem:[%s150_s27 + $0x10] sm:$0xff] (%p43_p3), %v193_v2  ;;  %196 = vst [vmem:[%s150_s27 + $0x18] sm:$0xff] (%p43_p3), %v195_v3 }
  0x15 PF: > { %p561_p6 = scmp.ge.s32.totalorder %s701_s16, 1  ;;  %p211_p7 = scmp.lt.s32.totalorder %s701_s16, 10 }
  0x17   : > { %p212_p8 = pnand %p561_p6, %p211_p7 }
  0x18   : > { %s218_s28 = sand.u32 (!%p212_p8), 1, %s685_s12   ;;  %s563_s29 = sshll.u32 (!%p212_p8), %s693_s14, 4 }
  0x19   : > { %215 = sbr.rel (%p212_p8) target bundleno = 307 (0x133), region = 66  ;;  %s562_s30 = sshll.u32 (!%p212_p8), %s218_s28, 5 }
  0x1a   : > { %p250_p9 = scmp.lt.s32.totalorder (!%p212_p8), %s563_s29, 143  ;;  %s777_s8 = scalar_lea.vmem (!%p212_p8), [#allocation3], %s562_s30 }
  0x1b   : > { %p566_p10 = scmp.ne.s32.totalorder (!%p212_p8), %s693_s14, 0 }
  0x20   : > { %s874_s29 = smov (!%p250_p9, %s563_s29), 143  ;;  %266 = sbr.rel (%p566_p10) target bundleno = 39 (0x27), region = 74 }
  0x21   : > { %s572_s4 = sshll.u32 %s874_s29, 4  ;;  %v703_v4 = vmov (!%p566_p10), 0.0  }
  0x22   : > { %s775_s7 = scalar_lea.vmem %s864_s1, %s572_s4  ;;  %267 = vst [vmem:[#allocation2] sm:$0xff] (!%p566_p10), %v703_v4  ;;  %268 = vst [vmem:[#allocation2 + $0x8] sm:$0xff] (!%p566_p10), %v703_v4 }
  0x23   : > { %269 = vst [vmem:[#allocation2 + $0x10] sm:$0xff] (!%p566_p10), %v703_v4  ;;  %270 = vst [vmem:[#allocation2 + $0x18] sm:$0xff] (!%p566_p10), %v703_v4 }
  0x24   : > { %271 = vst [vmem:[#allocation2 + $0x20] sm:$0xff] (!%p566_p10), %v703_v4  ;;  %272 = vst [vmem:[#allocation2 + $0x28] sm:$0xff] (!%p566_p10), %v703_v4 }
  0x25   : > { %273 = vst [vmem:[#allocation2 + $0x30] sm:$0xff] (!%p566_p10), %v703_v4  ;;  %274 = vst [vmem:[#allocation2 + $0x38] sm:$0xff] (!%p566_p10), %v703_v4 }
  0x27 PF: > { %v288_v5 = vld [vmem:[%s775_s7 + $0x8] sm:$0xff]  ;;  %v290_v6 = vld [vmem:[%s775_s7 + $0x18] sm:$0xff]  ;;  %v287_v7 = vld [vmem:[%s775_s7] sm:$0xff]  ;;  %v704_v12 = vmov 0.0   ;;  %p567_p11 = scmp.ne.s32.totalorder %s693_s14, 8 }
  0x28   : > { %v573_v8 = vpack.c.bf16 %v290_v6, %v288_v5  ;;  %v289_v9 = vld [vmem:[%s775_s7 + $0x10] sm:$0xff]  ;;  %v292_v10 = vld [vmem:[%s775_s7 + $0x28] sm:$0xff]  ;;  %v294_v11 = vld [vmem:[%s775_s7 + $0x38] sm:$0xff]  ;;  %383 = vmatprep.mubr.f32.mxu0 %v704_v12  ;;  %395 = vmatprep.mubr.f32.mxu1 %v704_v12 }
  0x29   : > { %v575_v13 = vpack.c.bf16 %v289_v9, %v287_v7  ;;  %v577_v14 = vpack.c.bf16 %v294_v11, %v292_v10  ;;  %v291_v15 = vld [vmem:[%s775_s7 + $0x20] sm:$0xff]  ;;  %v293_v16 = vld [vmem:[%s775_s7 + $0x30] sm:$0xff]  ;;  %v296_v17 = vld [vmem:[%s775_s7 + $0x48] sm:$0xff] }
  0x2a   : > { %574 = vmatprep.subr.bf16.mxu0 %v573_v8  ;;  %605 = vmatprep.subr.bf16.mxu1 %v573_v8  ;;  %v298_v18 = vld [vmem:[%s775_s7 + $0x58] sm:$0xff]  ;;  %v579_v19 = vpack.c.bf16 %v293_v16, %v291_v15  ;;  %v295_v21 = vld [vmem:[%s775_s7 + $0x40] sm:$0xff]  ;;  %v297_v22 = vld [vmem:[%s775_s7 + $0x50] sm:$0xff] }
  0x2b   : > { %576 = vmatpush1.bf16.msra.mxu0 %v575_v13  ;;  %613 = vmatpush1.bf16.msra.mxu1 %v575_v13  ;;  %v581_v20 = vpack.c.bf16 %v298_v18, %v296_v17  ;;  %v300_v23 = vld [vmem:[%s775_s7 + $0x68] sm:$0xff]  ;;  %v302_v24 = vld [vmem:[%s775_s7 + $0x78] sm:$0xff]  ;;  %v583_v25 = vpack.c.bf16 %v297_v22, %v295_v21  ;;  %v299_v27 = vld [vmem:[%s775_s7 + $0x60] sm:$0xff]  ;;  %v438_v18 = vlaneseq (!%p567_p11) }
  0x2c   : > { %578 = vmatprep.subr.bf16.mxu0 %v577_v14  ;;  %606 = vmatprep.subr.bf16.mxu1 %v577_v14  ;;  %v585_v26 = vpack.c.bf16 %v302_v24, %v300_v23  ;;  %v301_v28 = vld [vmem:[%s775_s7 + $0x70] sm:$0xff]  ;;  %v304_v29 = vld [vmem:[%s775_s7 + $0x88] sm:$0xff]  ;;  %v306_v30 = vld [vmem:[%s775_s7 + $0x98] sm:$0xff] }
  0x2d   : > { %v587_v31 = vpack.c.bf16 %v301_v28, %v299_v27  ;;  %v589_v32 = vpack.c.bf16 %v306_v30, %v304_v29  ;;  %v303_v33 = vld [vmem:[%s775_s7 + $0x80] sm:$0xff]  ;;  %v305_v34 = vld [vmem:[%s775_s7 + $0x90] sm:$0xff]  ;;  %v308_v35 = vld [vmem:[%s775_s7 + $0xa8] sm:$0xff] }
  0x2e   : > { %v310_v36 = vld [vmem:[%s775_s7 + $0xb8] sm:$0xff]  ;;  %v591_v37 = vpack.c.bf16 %v305_v34, %v303_v33  ;;  %v307_v39 = vld [vmem:[%s775_s7 + $0xa0] sm:$0xff]  ;;  %v309_v40 = vld [vmem:[%s775_s7 + $0xb0] sm:$0xff] }
  0x2f   : > { %580 = vmatpush1.bf16.msra.mxu0 %v579_v19  ;;  %614 = vmatpush1.bf16.msra.mxu1 %v579_v19  ;;  %v593_v38 = vpack.c.bf16 %v310_v36, %v308_v35  ;;  %v312_v41 = vld [vmem:[%s775_s7 + $0xc8] sm:$0xff]  ;;  %v314_v42 = vld [vmem:[%s775_s7 + $0xd8] sm:$0xff]  ;;  %v595_v43 = vpack.c.bf16 %v309_v40, %v307_v39  ;;  %v311_v45 = vld [vmem:[%s775_s7 + $0xc0] sm:$0xff]  ;;  %v439_v19 = vshrl.u32 (!%p567_p11), %v438_v18, 7 }
  0x30   : > { %582 = vmatprep.subr.bf16.mxu0 %v581_v20  ;;  %607 = vmatprep.subr.bf16.mxu1 %v581_v20  ;;  %v597_v44 = vpack.c.bf16 %v314_v42, %v312_v41  ;;  %v313_v46 = vld [vmem:[%s775_s7 + $0xd0] sm:$0xff]  ;;  %v316_v47 = vld [vmem:[%s775_s7 + $0xe8] sm:$0xff]  ;;  %v318_v48 = vld [vmem:[%s775_s7 + $0xf8] sm:$0xff] }
  0x31   : > { %v599_v49 = vpack.c.bf16 %v313_v46, %v311_v45  ;;  %v601_v50 = vpack.c.bf16 %v318_v48, %v316_v47  ;;  %v315_v51 = vld [vmem:[%s775_s7 + $0xe0] sm:$0xff]  ;;  %v317_v52 = vld [vmem:[%s775_s7 + $0xf0] sm:$0xff]  ;;  %v284_v56 = vld [vmem:[%s777_s8 + $0x8] sm:$0xff]  ;;  %v440_v22 = vsub.s32 (!%p567_p11), 0, %v439_v19  ;;  %v444_v24 = vsub.s32 (!%p567_p11), 1, %v439_v19 }
  0x32   : > { %v603_v53 = vpack.c.bf16 %v317_v52, %v315_v51  ;;  %v283_v54 = vld [vmem:[%s777_s8] sm:$0xff]  ;;  %v285_v55 = vld [vmem:[%s777_s8 + $0x10] sm:$0xff]  ;;  %v286_v57 = vld [vmem:[%s777_s8 + $0x18] sm:$0xff] }
  0x33   : > { %584 = vmatpush1.bf16.msra.mxu0 %v583_v25  ;;  %615 = vmatpush1.bf16.msra.mxu1 %v583_v25  ;;  %v275_v58 = vld [vmem:[#allocation2] sm:$0xff]  ;;  %v276_v60 = vld [vmem:[#allocation2 + $0x8] sm:$0xff]  ;;  %v277_v6 = vld [vmem:[#allocation2 + $0x10] sm:$0xff] }
  0x34   : > { %586 = vmatprep.subr.bf16.mxu0 %v585_v26  ;;  %608 = vmatprep.subr.bf16.mxu1 %v585_v26  ;;  %v279_v59 = vld [vmem:[#allocation2 + $0x20] sm:$0xff]  ;;  %v280_v61 = vld [vmem:[#allocation2 + $0x28] sm:$0xff]  ;;  %v281_v7 = vld [vmem:[#allocation2 + $0x30] sm:$0xff] }
  0x35   : > { %v278_v8 = vld [vmem:[#allocation2 + $0x18] sm:$0xff]  ;;  %v436_v20 = vld [vmem:[%s865_s2] sm:$0x3] (!%p567_p11) }
  0x36   : > { %v282_v9 = vld [vmem:[#allocation2 + $0x38] sm:$0xff]  ;;  %v441_v28 = vrot.slane (!%p567_p11), %v436_v20, %v440_v22  ;;  %v445_v29 = vrot.slane (!%p567_p11), %v436_v20, %v444_v24 }
  0x37   : > { %588 = vmatpush1.bf16.msra.mxu0 %v587_v31  ;;  %616 = vmatpush1.bf16.msra.mxu1 %v587_v31 }
  0x38   : > { %590 = vmatprep.subr.bf16.mxu0 %v589_v32  ;;  %609 = vmatprep.subr.bf16.mxu1 %v589_v32 }
  0x3b   : > { %592 = vmatpush1.bf16.msra.mxu0 %v591_v37  ;;  %617 = vmatpush1.bf16.msra.mxu1 %v591_v37 }
  0x3c   : > { %594 = vmatprep.subr.bf16.mxu0 %v593_v38  ;;  %610 = vmatprep.subr.bf16.mxu1 %v593_v38 }
  0x3f   : > { %596 = vmatpush1.bf16.msra.mxu0 %v595_v43  ;;  %618 = vmatpush1.bf16.msra.mxu1 %v595_v43 }
  0x40   : > { %598 = vmatprep.subr.bf16.mxu0 %v597_v44  ;;  %611 = vmatprep.subr.bf16.mxu1 %v597_v44 }
  0x43   : > { %600 = vmatpush1.bf16.msra.mxu0 %v599_v49  ;;  %619 = vmatpush1.bf16.msra.mxu1 %v599_v49 }
  0x44   : > { %602 = vmatprep.subr.bf16.mxu0 %v601_v50  ;;  %612 = vmatprep.subr.bf16.mxu1 %v601_v50 }
  0x47   : > { %604 = vmatpush1.bf16.msra.mxu0 %v603_v53  ;;  %620 = vmatpush1.bf16.msra.mxu1 %v603_v53 }
  0x4a   : > { %384 = vmatmul.mubr.f32.vlgmr.msra.gmra.mrb[0].mxu0 %v283_v54  ;;  %396 = vmatmul.mubr.f32.vlgmr.msra.gmra.mrb[0].mxu1 %v285_v55 }
  0x4b   : > { %389 = vmatprep.mubr.f32.mxu0 %v704_v12  ;;  %401 = vmatprep.mubr.f32.mxu1 %v704_v12 }
  0x4e   : > { %390 = vmatmul.mubr.f32.gmra.mrb[2].mxu0 %v284_v56  ;;  %402 = vmatmul.mubr.f32.gmra.mrb[2].mxu1 %v286_v57 }
 0x11d   : > { %v385_v62 = vpop.f32.mrb[0].mxu0  ;;  %v397_v63 = vpop.f32.mrb[0].mxu1 }
 0x11e   : > { %v408_v0 = vadd.f32 %v385_v62, %v275_v58  ;;  %v412_v1 = vadd.f32 %v397_v63, %v279_v59  ;;  %v387_v2 = vpop.f32.mrb[1].mxu0  ;;  %v399_v3 = vpop.f32.mrb[1].mxu1 }
 0x11f   : > { %v409_v4 = vadd.f32 %v387_v2, %v276_v60  ;;  %v413_v5 = vadd.f32 %v399_v3, %v280_v61  ;;  %427 = sbr.rel (%p567_p11) target bundleno = 307 (0x133), region = 78 }
 0x120   : > { %416 = vst [vmem:[#allocation2] sm:$0xff] %v408_v0  ;;  %420 = vst [vmem:[#allocation2 + $0x20] sm:$0xff] %v412_v1 }
 0x121   : > { %417 = vst [vmem:[#allocation2 + $0x8] sm:$0xff] %v409_v4  ;;  %421 = vst [vmem:[#allocation2 + $0x28] sm:$0xff] %v413_v5  ;;  %v391_v10 = vpop.f32.mrb[2].mxu0  ;;  %v403_v11 = vpop.f32.mrb[2].mxu1 }
 0x122   : > { %v410_v12 = vadd.f32 %v391_v10, %v277_v6  ;;  %v414_v13 = vadd.f32 %v403_v11, %v281_v7  ;;  %v393_v14 = vpop.f32.mrb[3].mxu0  ;;  %v405_v15 = vpop.f32.mrb[3].mxu1 }
 0x123   : > { %v411_v16 = vadd.f32 %v393_v14, %v278_v8  ;;  %v415_v17 = vadd.f32 %v405_v15, %v282_v9 }
 0x124   : > { %418 = vst [vmem:[#allocation2 + $0x10] sm:$0xff] %v410_v12  ;;  %422 = vst [vmem:[#allocation2 + $0x30] sm:$0xff] %v414_v13 }
 0x125   : > { %419 = vst [vmem:[#allocation2 + $0x18] sm:$0xff] %v411_v16  ;;  %423 = vst [vmem:[#allocation2 + $0x38] sm:$0xff] %v415_v17 }
 0x127   : > { %v428_v21 = vld [vmem:[#allocation2] sm:$0xff] }
 0x128   : > { %v429_v23 = vld [vmem:[#allocation2 + $0x8] sm:$0xff]  ;;  %v432_v27 = vld [vmem:[#allocation2 + $0x20] sm:$0xff]  ;;  %v448_v33 = vadd.f32 %v441_v28, %v428_v21 }
 0x129   : > { %v433_v30 = vld [vmem:[#allocation2 + $0x28] sm:$0xff]  ;;  %v449_v34 = vadd.f32 %v445_v29, %v429_v23  ;;  %v452_v37 = vadd.f32 %v441_v28, %v432_v27 }
 0x12a   : > { %v453_v38 = vadd.f32 %v445_v29, %v433_v30  ;;  %v456_v41 = vmax.f32 %v448_v33, 0.0 }
 0x12b   : > { %v430_v25 = vld [vmem:[#allocation2 + $0x10] sm:$0xff]  ;;  %v457_v42 = vmax.f32 %v449_v34, 0.0  ;;  %v460_v45 = vmax.f32 %v452_v37, 0.0 }
 0x12c   : > { %v431_v26 = vld [vmem:[#allocation2 + $0x18] sm:$0xff]  ;;  %v434_v31 = vld [vmem:[#allocation2 + $0x30] sm:$0xff]  ;;  %v450_v35 = vadd.f32 %v441_v28, %v430_v25  ;;  %v461_v46 = vmax.f32 %v453_v38, 0.0  ;;  %464 = vst [vmem:[%s866_s3] sm:$0xff] %v456_v41 }
 0x12d   : > { %v435_v32 = vld [vmem:[#allocation2 + $0x38] sm:$0xff]  ;;  %v451_v36 = vadd.f32 %v445_v29, %v431_v26  ;;  %v454_v39 = vadd.f32 %v441_v28, %v434_v31  ;;  %465 = vst [vmem:[%s866_s3 + $0x8] sm:$0xff] %v457_v42  ;;  %468 = vst [vmem:[%s866_s3 + $0x20] sm:$0xff] %v460_v45 }
 0x12e   : > { %v455_v40 = vadd.f32 %v445_v29, %v435_v32  ;;  %v458_v43 = vmax.f32 %v450_v35, 0.0  ;;  %469 = vst [vmem:[%s866_s3 + $0x28] sm:$0xff] %v461_v46 }
 0x12f   : > { %v459_v44 = vmax.f32 %v451_v36, 0.0  ;;  %v462_v47 = vmax.f32 %v454_v39, 0.0 }
 0x130   : > { %v463_v48 = vmax.f32 %v455_v40, 0.0  ;;  %466 = vst [vmem:[%s866_s3 + $0x10] sm:$0xff] %v458_v43 }
 0x131   : > { %467 = vst [vmem:[%s866_s3 + $0x18] sm:$0xff] %v459_v44  ;;  %470 = vst [vmem:[%s866_s3 + $0x30] sm:$0xff] %v462_v47 }
 0x132   : > { %471 = vst [vmem:[%s866_s3 + $0x38] sm:$0xff] %v463_v48 }
 0x133 PF: > { %s13_s16 = sadd.s32 1, %s701_s16   ;;  %s867_s12 = smov %s689_s13 }
 0x134   : > { %p10_p12 = scmp.ge.s32.totalorder %s13_s16, 11   ;;  %s868_s13 = smov %s760_s20 }
 0x135   : > { %s869_s14 = smov %s697_s15  ;;  %s870_s15 = smov %s872_s17 }
 0x136   :  { %12 = sbr.rel (!%p10_p12) target bundleno = 3 (0x3), region = 116 }

// kernel: resnet18_forward.31
= control target key start
LH: loop header
LB: loop body
LE: loop exit
PB: predicated region body
PF: predicated region fallthrough
CT: control target
= control target key end

     0   :  { %v267_v3 = vmov 0.0   ;;  %v188_v53 = vlaneseq  ;;  %s427_s1 = inlined_call_operand.vmem [shape: f32[128,256], index: 1, kind: input, shape index: {}]   ;;  %s428_s0 = inlined_call_operand.vmem [shape: f32[32,128], index: 0, kind: input, shape index: {}]   ;;  %s429_s2 = inlined_call_operand.vmem [shape: f32[1,256], index: 2, kind: input, shape index: {}]   ;;  %s430_s3 = inlined_call_operand.vmem [shape: f32[32,256], index: 3, kind: output, shape index: {}]  }
   0x1   :  { %v39_v0 = vld [vmem:[%s427_s1 + $0x8] sm:$0xff]  ;;  %v41_v1 = vld [vmem:[%s427_s1 + $0x18] sm:$0xff]  ;;  %v38_v2 = vld [vmem:[%s427_s1] sm:$0xff]  ;;  %134 = vmatprep.mubr.f32.mxu0 %v267_v3  ;;  %146 = vmatprep.mubr.f32.mxu1 %v267_v3 }
   0x2   :  { %v218_v4 = vpack.c.bf16 %v41_v1, %v39_v0  ;;  %v40_v5 = vld [vmem:[%s427_s1 + $0x10] sm:$0xff]  ;;  %v43_v6 = vld [vmem:[%s427_s1 + $0x28] sm:$0xff]  ;;  %v45_v7 = vld [vmem:[%s427_s1 + $0x38] sm:$0xff]  ;;  %v189_v54 = vshrl.u32 %v188_v53, 7 }
   0x3   :  { %v220_v8 = vpack.c.bf16 %v40_v5, %v38_v2  ;;  %v222_v9 = vpack.c.bf16 %v45_v7, %v43_v6  ;;  %v42_v10 = vld [vmem:[%s427_s1 + $0x20] sm:$0xff]  ;;  %v44_v11 = vld [vmem:[%s427_s1 + $0x30] sm:$0xff]  ;;  %v47_v12 = vld [vmem:[%s427_s1 + $0x48] sm:$0xff] }
   0x4   :  { %219 = vmatprep.subr.bf16.mxu0 %v218_v4  ;;  %250 = vmatprep.subr.bf16.mxu1 %v218_v4  ;;  %v49_v13 = vld [vmem:[%s427_s1 + $0x58] sm:$0xff]  ;;  %v224_v14 = vpack.c.bf16 %v44_v11, %v42_v10  ;;  %v46_v16 = vld [vmem:[%s427_s1 + $0x40] sm:$0xff]  ;;  %v48_v17 = vld [vmem:[%s427_s1 + $0x50] sm:$0xff]  ;;  %v190_v55 = vsub.s32 0, %v189_v54  ;;  %v194_v57 = vsub.s32 1, %v189_v54 }
   0x5   :  { %221 = vmatpush1.bf16.msra.mxu0 %v220_v8  ;;  %258 = vmatpush1.bf16.msra.mxu1 %v220_v8  ;;  %v226_v15 = vpack.c.bf16 %v49_v13, %v47_v12  ;;  %v51_v18 = vld [vmem:[%s427_s1 + $0x68] sm:$0xff]  ;;  %v53_v19 = vld [vmem:[%s427_s1 + $0x78] sm:$0xff]  ;;  %v228_v20 = vpack.c.bf16 %v48_v17, %v46_v16  ;;  %v50_v22 = vld [vmem:[%s427_s1 + $0x60] sm:$0xff] }
   0x6   :  { %223 = vmatprep.subr.bf16.mxu0 %v222_v9  ;;  %251 = vmatprep.subr.bf16.mxu1 %v222_v9  ;;  %v230_v21 = vpack.c.bf16 %v53_v19, %v51_v18  ;;  %v52_v23 = vld [vmem:[%s427_s1 + $0x70] sm:$0xff]  ;;  %v55_v24 = vld [vmem:[%s427_s1 + $0x88] sm:$0xff]  ;;  %v57_v25 = vld [vmem:[%s427_s1 + $0x98] sm:$0xff] }
   0x7   :  { %v232_v26 = vpack.c.bf16 %v52_v23, %v50_v22  ;;  %v234_v27 = vpack.c.bf16 %v57_v25, %v55_v24  ;;  %v54_v28 = vld [vmem:[%s427_s1 + $0x80] sm:$0xff]  ;;  %v56_v29 = vld [vmem:[%s427_s1 + $0x90] sm:$0xff]  ;;  %v59_v30 = vld [vmem:[%s427_s1 + $0xa8] sm:$0xff] }
   0x8   :  { %v61_v31 = vld [vmem:[%s427_s1 + $0xb8] sm:$0xff]  ;;  %v236_v32 = vpack.c.bf16 %v56_v29, %v54_v28  ;;  %v58_v34 = vld [vmem:[%s427_s1 + $0xa0] sm:$0xff]  ;;  %v60_v35 = vld [vmem:[%s427_s1 + $0xb0] sm:$0xff] }
   0x9   :  { %225 = vmatpush1.bf16.msra.mxu0 %v224_v14  ;;  %259 = vmatpush1.bf16.msra.mxu1 %v224_v14  ;;  %v238_v33 = vpack.c.bf16 %v61_v31, %v59_v30  ;;  %v63_v36 = vld [vmem:[%s427_s1 + $0xc8] sm:$0xff]  ;;  %v65_v37 = vld [vmem:[%s427_s1 + $0xd8] sm:$0xff]  ;;  %v240_v38 = vpack.c.bf16 %v60_v35, %v58_v34  ;;  %v62_v40 = vld [vmem:[%s427_s1 + $0xc0] sm:$0xff] }
   0xa   :  { %227 = vmatprep.subr.bf16.mxu0 %v226_v15  ;;  %252 = vmatprep.subr.bf16.mxu1 %v226_v15  ;;  %v242_v39 = vpack.c.bf16 %v65_v37, %v63_v36  ;;  %v64_v41 = vld [vmem:[%s427_s1 + $0xd0] sm:$0xff]  ;;  %v67_v42 = vld [vmem:[%s427_s1 + $0xe8] sm:$0xff]  ;;  %v69_v43 = vld [vmem:[%s427_s1 + $0xf8] sm:$0xff] }
   0xb   :  { %v244_v44 = vpack.c.bf16 %v64_v41, %v62_v40  ;;  %v246_v45 = vpack.c.bf16 %v69_v43, %v67_v42  ;;  %v66_v46 = vld [vmem:[%s427_s1 + $0xe0] sm:$0xff]  ;;  %v68_v47 = vld [vmem:[%s427_s1 + $0xf0] sm:$0xff]  ;;  %v35_v51 = vld [vmem:[%s428_s0 + $0x8] sm:$0xff] }
   0xc   :  { %v248_v48 = vpack.c.bf16 %v68_v47, %v66_v46  ;;  %v34_v49 = vld [vmem:[%s428_s0] sm:$0xff]  ;;  %v36_v50 = vld [vmem:[%s428_s0 + $0x10] sm:$0xff]  ;;  %v37_v52 = vld [vmem:[%s428_s0 + $0x18] sm:$0xff] }
   0xd   :  { %229 = vmatpush1.bf16.msra.mxu0 %v228_v20  ;;  %260 = vmatpush1.bf16.msra.mxu1 %v228_v20  ;;  %v186_v56 = vld [vmem:[%s429_s2] sm:$0x3] }
   0xe   :  { %231 = vmatprep.subr.bf16.mxu0 %v230_v21  ;;  %253 = vmatprep.subr.bf16.mxu1 %v230_v21  ;;  %v191_v58 = vrot.slane %v186_v56, %v190_v55  ;;  %v195_v59 = vrot.slane %v186_v56, %v194_v57 }
  0x11   :  { %233 = vmatpush1.bf16.msra.mxu0 %v232_v26  ;;  %261 = vmatpush1.bf16.msra.mxu1 %v232_v26 }
  0x12   :  { %235 = vmatprep.subr.bf16.mxu0 %v234_v27  ;;  %254 = vmatprep.subr.bf16.mxu1 %v234_v27 }
  0x15   :  { %237 = vmatpush1.bf16.msra.mxu0 %v236_v32  ;;  %262 = vmatpush1.bf16.msra.mxu1 %v236_v32 }
  0x16   :  { %239 = vmatprep.subr.bf16.mxu0 %v238_v33  ;;  %255 = vmatprep.subr.bf16.mxu1 %v238_v33 }
  0x19   :  { %241 = vmatpush1.bf16.msra.mxu0 %v240_v38  ;;  %263 = vmatpush1.bf16.msra.mxu1 %v240_v38 }
  0x1a   :  { %243 = vmatprep.subr.bf16.mxu0 %v242_v39  ;;  %256 = vmatprep.subr.bf16.mxu1 %v242_v39 }
  0x1d   :  { %245 = vmatpush1.bf16.msra.mxu0 %v244_v44  ;;  %264 = vmatpush1.bf16.msra.mxu1 %v244_v44 }
  0x1e   :  { %247 = vmatprep.subr.bf16.mxu0 %v246_v45  ;;  %257 = vmatprep.subr.bf16.mxu1 %v246_v45 }
  0x21   :  { %249 = vmatpush1.bf16.msra.mxu0 %v248_v48  ;;  %265 = vmatpush1.bf16.msra.mxu1 %v248_v48 }
  0x24   :  { %135 = vmatmul.mubr.f32.vlgmr.msra.gmra.mrb[0].mxu0 %v34_v49  ;;  %147 = vmatmul.mubr.f32.vlgmr.msra.gmra.mrb[0].mxu1 %v36_v50 }
  0x25   :  { %140 = vmatprep.mubr.f32.mxu0 %v267_v3  ;;  %152 = vmatprep.mubr.f32.mxu1 %v267_v3 }
  0x28   :  { %141 = vmatmul.mubr.f32.gmra.mrb[2].mxu0 %v35_v51  ;;  %153 = vmatmul.mubr.f32.gmra.mrb[2].mxu1 %v37_v52 }
  0xf7   :  { %v136_v60 = vpop.f32.mrb[0].mxu0  ;;  %v148_v61 = vpop.f32.mrb[0].mxu1 }
  0xf8   :  { %v198_v62 = vadd.f32 %v191_v58, %v136_v60  ;;  %v202_v63 = vadd.f32 %v191_v58, %v148_v61  ;;  %v138_v0 = vpop.f32.mrb[1].mxu0  ;;  %v150_v1 = vpop.f32.mrb[1].mxu1 }
  0xf9   :  { %v199_v2 = vadd.f32 %v195_v59, %v138_v0  ;;  %v203_v3 = vadd.f32 %v195_v59, %v150_v1 }
  0xfa   :  { %206 = vst [vmem:[%s430_s3] sm:$0xff] %v198_v62  ;;  %210 = vst [vmem:[%s430_s3 + $0x20] sm:$0xff] %v202_v63 }
  0xfb   :  { %207 = vst [vmem:[%s430_s3 + $0x8] sm:$0xff] %v199_v2  ;;  %211 = vst [vmem:[%s430_s3 + $0x28] sm:$0xff] %v203_v3  ;;  %v142_v4 = vpop.f32.mrb[2].mxu0  ;;  %v154_v5 = vpop.f32.mrb[2].mxu1 }
  0xfc   :  { %v200_v6 = vadd.f32 %v191_v58, %v142_v4  ;;  %v204_v7 = vadd.f32 %v191_v58, %v154_v5  ;;  %v144_v8 = vpop.f32.mrb[3].mxu0  ;;  %v156_v9 = vpop.f32.mrb[3].mxu1 }
  0xfd   :  { %v201_v10 = vadd.f32 %v195_v59, %v144_v8  ;;  %v205_v11 = vadd.f32 %v195_v59, %v156_v9 }
  0xfe   :  { %208 = vst [vmem:[%s430_s3 + $0x10] sm:$0xff] %v200_v6  ;;  %212 = vst [vmem:[%s430_s3 + $0x30] sm:$0xff] %v204_v7 }
  0xff   :  { %209 = vst [vmem:[%s430_s3 + $0x18] sm:$0xff] %v201_v10  ;;  %213 = vst [vmem:[%s430_s3 + $0x38] sm:$0xff] %v205_v11 }

// kernel: resnet18_forward.33
= control target key start
LH: loop header
LB: loop body
LE: loop exit
PB: predicated region body
PF: predicated region fallthrough
CT: control target
= control target key end

     0   :  { %s814_s15 = smov 0   ;;  %s816_s16 = smov 0   ;;  %s976_s0 = inlined_call_operand.vmem [shape: f32[32,2304], index: 0, kind: input, shape index: {}]   ;;  %s977_s1 = inlined_call_operand.vmem [shape: f32[2304,256], index: 1, kind: input, shape index: {}]   ;;  %s978_s2 = inlined_call_operand.vmem [shape: f32[1,256], index: 2, kind: input, shape index: {}]   ;;  %s979_s3 = inlined_call_operand.vmem [shape: f32[32,256], index: 3, kind: input, shape index: {}]   ;;  %s980_s4 = inlined_call_operand.vmem [shape: f32[32,256], index: 4, kind: output, shape index: {}]  }
   0x1   :  { %s818_s17 = smov 0   ;;  %s820_s18 = smov 0  }
   0x2   :  { %s822_s19 = smov 0  }
   0x3 LB: > { %s23_s20 = sadd.s32 1, %s781_s18  ;;  %p42_p1 = scmp.ne.s32.totalorder %s773_s16, %s769_s15  ;;  %s785_s19 = sphi %s822_s19, %s14_s19   ;;  %s781_s18 = sphi %s820_s18, %s984_s18   ;;  %s777_s17 = sphi %s818_s17, %s983_s17   ;;  %s773_s16 = sphi %s816_s16, %s982_s16   ;;  %s769_s15 = sphi %s814_s15, %s981_s15  }
   0x4   : > { %p24_p0 = scmp.ge.s32.totalorder %s23_s20, 18  ;;  %p43_p2 = scmp.eq.s32.totalorder %s785_s19, 0 }
   0x5   : > { %s35_s22 = sadd.s32 1, %s773_s16  ;;  %p642_p5 = scmp.ge.s32.totalorder %s785_s19, 18 }
   0x6   : > { %s986_s20 = smov (%p24_p0, %s23_s20), 0  ;;  %p44_p3 = por %p43_p2, %p42_p1 }
   0x7   : > { %s31_s21 = ssub.s32 %s781_s18, %s986_s20  ;;  %180 = sbr.rel (%p642_p5) target bundleno = 21 (0x15), region = 24 }
   0x8   : > { %p33_p4 = scmp.eq.s32.totalorder %s31_s21, 0 }
   0xa   : > { %s849_s23 = scalar_select %p33_p4, %s773_s16, %s35_s22  }
   0xe   : > { %183 = sbr.rel (!%p44_p3) target bundleno = 21 (0x15), region = 28  ;;  %s185_s24 = sand.u32 (%p44_p3), 1, %s773_s16  }
   0xf   : > { %s644_s25 = sshll.u32 (%p44_p3), %s781_s18, 3  ;;  %s643_s26 = sshll.u32 (%p44_p3), %s185_s24, 5 }
  0x10   : > { %s192_s29 = scalar_lea.vmem (%p44_p3), %s976_s0, %s644_s25  ;;  %s187_s30 = scalar_lea.vmem (%p44_p3), [#allocation3], %s643_s26 }
  0x11   : > { %v226_v0 = vld [vmem:[%s192_s29] sm:$0xff] (%p44_p3)  ;;  %v228_v1 = vld [vmem:[%s192_s29 + $0x90] sm:$0xff] (%p44_p3) }
  0x12   : > { %v230_v2 = vld [vmem:[%s192_s29 + $0x120] sm:$0xff] (%p44_p3)  ;;  %227 = vst [vmem:[%s187_s30] sm:$0xff] (%p44_p3), %v226_v0  ;;  %229 = vst [vmem:[%s187_s30 + $0x8] sm:$0xff] (%p44_p3), %v228_v1  ;;  %v232_v3 = vld [vmem:[%s192_s29 + $0x1b0] sm:$0xff] (%p44_p3) }
  0x13   : > { %231 = vst [vmem:[%s187_s30 + $0x10] sm:$0xff] (%p44_p3), %v230_v2  ;;  %233 = vst [vmem:[%s187_s30 + $0x18] sm:$0xff] (%p44_p3), %v232_v3 }
  0x15 PF: > { %p645_p6 = scmp.ge.s32.totalorder %s785_s19, 1  ;;  %p248_p7 = scmp.lt.s32.totalorder %s785_s19, 19 }
  0x17   : > { %p249_p8 = pnand %p645_p6, %p248_p7 }
  0x18   : > { %s255_s5 = sand.u32 (!%p249_p8), 1, %s769_s15   ;;  %s647_s6 = sshll.u32 (!%p249_p8), %s777_s17, 4 }
  0x19   : > { %252 = sbr.rel (%p249_p8) target bundleno = 309 (0x135), region = 70  ;;  %s646_s7 = sshll.u32 (!%p249_p8), %s255_s5, 5 }
  0x1a   : > { %p295_p9 = scmp.lt.s32.totalorder (!%p249_p8), %s647_s6, 287  ;;  %s866_s12 = scalar_lea.vmem (!%p249_p8), [#allocation3], %s646_s7 }
  0x1b   : > { %p650_p10 = scmp.ne.s32.totalorder (!%p249_p8), %s777_s17, 0 }
  0x20   : > { %s988_s6 = smov (!%p295_p9, %s647_s6), 287  ;;  %318 = sbr.rel (%p650_p10) target bundleno = 39 (0x27), region = 78 }
  0x21   : > { %s656_s8 = sshll.u32 %s988_s6, 4  ;;  %v787_v4 = vmov (!%p650_p10), 0.0  }
  0x22   : > { %s864_s11 = scalar_lea.vmem %s977_s1, %s656_s8  ;;  %319 = vst [vmem:[#allocation2] sm:$0xff] (!%p650_p10), %v787_v4  ;;  %320 = vst [vmem:[#allocation2 + $0x8] sm:$0xff] (!%p650_p10), %v787_v4 }
  0x23   : > { %321 = vst [vmem:[#allocation2 + $0x10] sm:$0xff] (!%p650_p10), %v787_v4  ;;  %322 = vst [vmem:[#allocation2 + $0x18] sm:$0xff] (!%p650_p10), %v787_v4 }
  0x24   : > { %323 = vst [vmem:[#allocation2 + $0x20] sm:$0xff] (!%p650_p10), %v787_v4  ;;  %324 = vst [vmem:[#allocation2 + $0x28] sm:$0xff] (!%p650_p10), %v787_v4 }
  0x25   : > { %325 = vst [vmem:[#allocation2 + $0x30] sm:$0xff] (!%p650_p10), %v787_v4  ;;  %326 = vst [vmem:[#allocation2 + $0x38] sm:$0xff] (!%p650_p10), %v787_v4 }
  0x27 PF: > { %v340_v5 = vld [vmem:[%s864_s11 + $0x8] sm:$0xff]  ;;  %v342_v6 = vld [vmem:[%s864_s11 + $0x18] sm:$0xff]  ;;  %v339_v7 = vld [vmem:[%s864_s11] sm:$0xff]  ;;  %v788_v12 = vmov 0.0   ;;  %p651_p11 = scmp.ne.s32.totalorder %s777_s17, 17 }
  0x28   : > { %v657_v8 = vpack.c.bf16 %v342_v6, %v340_v5  ;;  %v341_v9 = vld [vmem:[%s864_s11 + $0x10] sm:$0xff]  ;;  %v344_v10 = vld [vmem:[%s864_s11 + $0x28] sm:$0xff]  ;;  %v346_v11 = vld [vmem:[%s864_s11 + $0x38] sm:$0xff]  ;;  %435 = vmatprep.mubr.f32.mxu0 %v788_v12  ;;  %447 = vmatprep.mubr.f32.mxu1 %v788_v12 }
  0x29   : > { %v659_v13 = vpack.c.bf16 %v341_v9, %v339_v7  ;;  %v661_v14 = vpack.c.bf16 %v346_v11, %v344_v10  ;;  %v343_v15 = vld [vmem:[%s864_s11 + $0x20] sm:$0xff]  ;;  %v345_v16 = vld [vmem:[%s864_s11 + $0x30] sm:$0xff]  ;;  %v348_v17 = vld [vmem:[%s864_s11 + $0x48] sm:$0xff] }
  0x2a   : > { %658 = vmatprep.subr.bf16.mxu0 %v657_v8  ;;  %689 = vmatprep.subr.bf16.mxu1 %v657_v8  ;;  %v350_v18 = vld [vmem:[%s864_s11 + $0x58] sm:$0xff]  ;;  %v663_v19 = vpack.c.bf16 %v345_v16, %v343_v15  ;;  %v347_v21 = vld [vmem:[%s864_s11 + $0x40] sm:$0xff]  ;;  %v349_v22 = vld [vmem:[%s864_s11 + $0x50] sm:$0xff] }
  0x2b   : > { %660 = vmatpush1.bf16.msra.mxu0 %v659_v13  ;;  %697 = vmatpush1.bf16.msra.mxu1 %v659_v13  ;;  %v665_v20 = vpack.c.bf16 %v350_v18, %v348_v17  ;;  %v352_v23 = vld [vmem:[%s864_s11 + $0x68] sm:$0xff]  ;;  %v354_v24 = vld [vmem:[%s864_s11 + $0x78] sm:$0xff]  ;;  %v667_v25 = vpack.c.bf16 %v349_v22, %v347_v21  ;;  %v351_v27 = vld [vmem:[%s864_s11 + $0x60] sm:$0xff]  ;;  %v490_v18 = vlaneseq (!%p651_p11) }
  0x2c   : > { %662 = vmatprep.subr.bf16.mxu0 %v661_v14  ;;  %690 = vmatprep.subr.bf16.mxu1 %v661_v14  ;;  %v669_v26 = vpack.c.bf16 %v354_v24, %v352_v23  ;;  %v353_v28 = vld [vmem:[%s864_s11 + $0x70] sm:$0xff]  ;;  %v356_v29 = vld [vmem:[%s864_s11 + $0x88] sm:$0xff]  ;;  %v358_v30 = vld [vmem:[%s864_s11 + $0x98] sm:$0xff] }
  0x2d   : > { %v671_v31 = vpack.c.bf16 %v353_v28, %v351_v27  ;;  %v673_v32 = vpack.c.bf16 %v358_v30, %v356_v29  ;;  %v355_v33 = vld [vmem:[%s864_s11 + $0x80] sm:$0xff]  ;;  %v357_v34 = vld [vmem:[%s864_s11 + $0x90] sm:$0xff]  ;;  %v360_v35 = vld [vmem:[%s864_s11 + $0xa8] sm:$0xff] }
  0x2e   : > { %v362_v36 = vld [vmem:[%s864_s11 + $0xb8] sm:$0xff]  ;;  %v675_v37 = vpack.c.bf16 %v357_v34, %v355_v33  ;;  %v359_v39 = vld [vmem:[%s864_s11 + $0xa0] sm:$0xff]  ;;  %v361_v40 = vld [vmem:[%s864_s11 + $0xb0] sm:$0xff] }
  0x2f   : > { %664 = vmatpush1.bf16.msra.mxu0 %v663_v19  ;;  %698 = vmatpush1.bf16.msra.mxu1 %v663_v19  ;;  %v677_v38 = vpack.c.bf16 %v362_v36, %v360_v35  ;;  %v364_v41 = vld [vmem:[%s864_s11 + $0xc8] sm:$0xff]  ;;  %v366_v42 = vld [vmem:[%s864_s11 + $0xd8] sm:$0xff]  ;;  %v679_v43 = vpack.c.bf16 %v361_v40, %v359_v39  ;;  %v363_v45 = vld [vmem:[%s864_s11 + $0xc0] sm:$0xff]  ;;  %v491_v19 = vshrl.u32 (!%p651_p11), %v490_v18, 7 }
  0x30   : > { %666 = vmatprep.subr.bf16.mxu0 %v665_v20  ;;  %691 = vmatprep.subr.bf16.mxu1 %v665_v20  ;;  %v681_v44 = vpack.c.bf16 %v366_v42, %v364_v41  ;;  %v365_v46 = vld [vmem:[%s864_s11 + $0xd0] sm:$0xff]  ;;  %v368_v47 = vld [vmem:[%s864_s11 + $0xe8] sm:$0xff]  ;;  %v370_v48 = vld [vmem:[%s864_s11 + $0xf8] sm:$0xff] }
  0x31   : > { %v683_v49 = vpack.c.bf16 %v365_v46, %v363_v45  ;;  %v685_v50 = vpack.c.bf16 %v370_v48, %v368_v47  ;;  %v367_v51 = vld [vmem:[%s864_s11 + $0xe0] sm:$0xff]  ;;  %v369_v52 = vld [vmem:[%s864_s11 + $0xf0] sm:$0xff]  ;;  %v336_v56 = vld [vmem:[%s866_s12 + $0x8] sm:$0xff]  ;;  %v492_v22 = vsub.s32 (!%p651_p11), 0, %v491_v19  ;;  %v496_v24 = vsub.s32 (!%p651_p11), 1, %v491_v19 }
  0x32   : > { %v687_v53 = vpack.c.bf16 %v369_v52, %v367_v51  ;;  %v335_v54 = vld [vmem:[%s866_s12] sm:$0xff]  ;;  %v337_v55 = vld [vmem:[%s866_s12 + $0x10] sm:$0xff]  ;;  %v338_v57 = vld [vmem:[%s866_s12 + $0x18] sm:$0xff] }
  0x33   : > { %668 = vmatpush1.bf16.msra.mxu0 %v667_v25  ;;  %699 = vmatpush1.bf16.msra.mxu1 %v667_v25  ;;  %v327_v58 = vld [vmem:[#allocation2] sm:$0xff]  ;;  %v328_v60 = vld [vmem:[#allocation2 + $0x8] sm:$0xff]  ;;  %v329_v6 = vld [vmem:[#allocation2 + $0x10] sm:$0xff] }
  0x34   : > { %670 = vmatprep.subr.bf16.mxu0 %v669_v26  ;;  %692 = vmatprep.subr.bf16.mxu1 %v669_v26  ;;  %v331_v59 = vld [vmem:[#allocation2 + $0x20] sm:$0xff]  ;;  %v332_v61 = vld [vmem:[#allocation2 + $0x28] sm:$0xff]  ;;  %v333_v7 = vld [vmem:[#allocation2 + $0x30] sm:$0xff] }
  0x35   : > { %v330_v8 = vld [vmem:[#allocation2 + $0x18] sm:$0xff]  ;;  %v488_v20 = vld [vmem:[%s978_s2] sm:$0x3] (!%p651_p11)  ;;  %v509_v26 = vld [vmem:[%s979_s3 + $0x8] sm:$0xff] (!%p651_p11) }
  0x36   : > { %v334_v9 = vld [vmem:[#allocation2 + $0x38] sm:$0xff]  ;;  %v508_v25 = vld [vmem:[%s979_s3] sm:$0xff] (!%p651_p11)  ;;  %v493_v30 = vrot.slane (!%p651_p11), %v488_v20, %v492_v22  ;;  %v510_v35 = vld [vmem:[%s979_s3 + $0x10] sm:$0xff] (!%p651_p11) }
  0x37   : > { %672 = vmatpush1.bf16.msra.mxu0 %v671_v31  ;;  %700 = vmatpush1.bf16.msra.mxu1 %v671_v31  ;;  %v497_v31 = vrot.slane (!%p651_p11), %v488_v20, %v496_v24  ;;  %v511_v36 = vld [vmem:[%s979_s3 + $0x18] sm:$0xff] (!%p651_p11)  ;;  %v513_v42 = vld [vmem:[%s979_s3 + $0x28] sm:$0xff] (!%p651_p11) }
  0x38   : > { %674 = vmatprep.subr.bf16.mxu0 %v673_v32  ;;  %693 = vmatprep.subr.bf16.mxu1 %v673_v32 }
  0x3b   : > { %676 = vmatpush1.bf16.msra.mxu0 %v675_v37  ;;  %701 = vmatpush1.bf16.msra.mxu1 %v675_v37  ;;  %v512_v37 = vld [vmem:[%s979_s3 + $0x20] sm:$0xff] (!%p651_p11) }
  0x3c   : > { %678 = vmatprep.subr.bf16.mxu0 %v677_v38  ;;  %694 = vmatprep.subr.bf16.mxu1 %v677_v38 }
  0x3f   : > { %680 = vmatpush1.bf16.msra.mxu0 %v679_v43  ;;  %702 = vmatpush1.bf16.msra.mxu1 %v679_v43  ;;  %v514_v43 = vld [vmem:[%s979_s3 + $0x30] sm:$0xff] (!%p651_p11) }
  0x40   : > { %682 = vmatprep.subr.bf16.mxu0 %v681_v44  ;;  %695 = vmatprep.subr.bf16.mxu1 %v681_v44  ;;  %v515_v44 = vld [vmem:[%s979_s3 + $0x38] sm:$0xff] (!%p651_p11) }
  0x43   : > { %684 = vmatpush1.bf16.msra.mxu0 %v683_v49  ;;  %703 = vmatpush1.bf16.msra.mxu1 %v683_v49 }
  0x44   : > { %686 = vmatprep.subr.bf16.mxu0 %v685_v50  ;;  %696 = vmatprep.subr.bf16.mxu1 %v685_v50 }
  0x47   : > { %688 = vmatpush1.bf16.msra.mxu0 %v687_v53  ;;  %704 = vmatpush1.bf16.msra.mxu1 %v687_v53 }
  0x4a   : > { %436 = vmatmul.mubr.f32.vlgmr.msra.gmra.mrb[0].mxu0 %v335_v54  ;;  %448 = vmatmul.mubr.f32.vlgmr.msra.gmra.mrb[0].mxu1 %v337_v55 }
  0x4b   : > { %441 = vmatprep.mubr.f32.mxu0 %v788_v12  ;;  %453 = vmatprep.mubr.f32.mxu1 %v788_v12 }
  0x4e   : > { %442 = vmatmul.mubr.f32.gmra.mrb[2].mxu0 %v336_v56  ;;  %454 = vmatmul.mubr.f32.gmra.mrb[2].mxu1 %v338_v57 }
 0x11d   : > { %v437_v62 = vpop.f32.mrb[0].mxu0  ;;  %v449_v63 = vpop.f32.mrb[0].mxu1 }
 0x11e   : > { %v460_v0 = vadd.f32 %v437_v62, %v327_v58  ;;  %v464_v1 = vadd.f32 %v449_v63, %v331_v59  ;;  %v439_v2 = vpop.f32.mrb[1].mxu0  ;;  %v451_v3 = vpop.f32.mrb[1].mxu1 }
 0x11f   : > { %v461_v4 = vadd.f32 %v439_v2, %v328_v60  ;;  %v465_v5 = vadd.f32 %v451_v3, %v332_v61  ;;  %479 = sbr.rel (%p651_p11) target bundleno = 309 (0x135), region = 82 }
 0x120   : > { %468 = vst [vmem:[#allocation2] sm:$0xff] %v460_v0  ;;  %472 = vst [vmem:[#allocation2 + $0x20] sm:$0xff] %v464_v1 }
 0x121   : > { %469 = vst [vmem:[#allocation2 + $0x8] sm:$0xff] %v461_v4  ;;  %473 = vst [vmem:[#allocation2 + $0x28] sm:$0xff] %v465_v5  ;;  %v443_v10 = vpop.f32.mrb[2].mxu0  ;;  %v455_v11 = vpop.f32.mrb[2].mxu1 }
 0x122   : > { %v462_v12 = vadd.f32 %v443_v10, %v329_v6  ;;  %v466_v13 = vadd.f32 %v455_v11, %v333_v7  ;;  %v445_v14 = vpop.f32.mrb[3].mxu0  ;;  %v457_v15 = vpop.f32.mrb[3].mxu1 }
 0x123   : > { %v463_v16 = vadd.f32 %v445_v14, %v330_v8  ;;  %v467_v17 = vadd.f32 %v457_v15, %v334_v9 }
 0x124   : > { %470 = vst [vmem:[#allocation2 + $0x10] sm:$0xff] %v462_v12  ;;  %474 = vst [vmem:[#allocation2 + $0x30] sm:$0xff] %v466_v13 }
 0x125   : > { %471 = vst [vmem:[#allocation2 + $0x18] sm:$0xff] %v463_v16  ;;  %475 = vst [vmem:[#allocation2 + $0x38] sm:$0xff] %v467_v17 }
 0x127   : > { %v480_v21 = vld [vmem:[#allocation2] sm:$0xff] }
 0x128   : > { %v481_v23 = vld [vmem:[#allocation2 + $0x8] sm:$0xff]  ;;  %v484_v29 = vld [vmem:[#allocation2 + $0x20] sm:$0xff]  ;;  %v500_v38 = vadd.f32 %v493_v30, %v480_v21 }
 0x129   : > { %v485_v32 = vld [vmem:[#allocation2 + $0x28] sm:$0xff]  ;;  %v501_v39 = vadd.f32 %v497_v31, %v481_v23  ;;  %v504_v45 = vadd.f32 %v493_v30, %v484_v29 }
 0x12a   : > { %v505_v46 = vadd.f32 %v497_v31, %v485_v32  ;;  %v516_v49 = vadd.f32 %v508_v25, %v500_v38 }
 0x12b   : > { %v482_v27 = vld [vmem:[#allocation2 + $0x10] sm:$0xff]  ;;  %v517_v50 = vadd.f32 %v509_v26, %v501_v39  ;;  %v520_v53 = vadd.f32 %v512_v37, %v504_v45 }
 0x12c   : > { %v483_v28 = vld [vmem:[#allocation2 + $0x18] sm:$0xff]  ;;  %v486_v33 = vld [vmem:[#allocation2 + $0x30] sm:$0xff]  ;;  %v502_v40 = vadd.f32 %v493_v30, %v482_v27  ;;  %v521_v54 = vadd.f32 %v513_v42, %v505_v46  ;;  %v524_v57 = vmax.f32 %v516_v49, 0.0 }
 0x12d   : > { %v487_v34 = vld [vmem:[#allocation2 + $0x38] sm:$0xff]  ;;  %v503_v41 = vadd.f32 %v497_v31, %v483_v28  ;;  %v506_v47 = vadd.f32 %v493_v30, %v486_v33  ;;  %v525_v58 = vmax.f32 %v517_v50, 0.0  ;;  %v528_v61 = vmax.f32 %v520_v53, 0.0 }
 0x12e   : > { %v507_v48 = vadd.f32 %v497_v31, %v487_v34  ;;  %v518_v51 = vadd.f32 %v510_v35, %v502_v40  ;;  %v529_v62 = vmax.f32 %v521_v54, 0.0  ;;  %532 = vst [vmem:[%s980_s4] sm:$0xff] %v524_v57 }
 0x12f   : > { %v519_v52 = vadd.f32 %v511_v36, %v503_v41  ;;  %v522_v55 = vadd.f32 %v514_v43, %v506_v47  ;;  %533 = vst [vmem:[%s980_s4 + $0x8] sm:$0xff] %v525_v58  ;;  %536 = vst [vmem:[%s980_s4 + $0x20] sm:$0xff] %v528_v61 }
 0x130   : > { %v523_v56 = vadd.f32 %v515_v44, %v507_v48  ;;  %v526_v59 = vmax.f32 %v518_v51, 0.0  ;;  %537 = vst [vmem:[%s980_s4 + $0x28] sm:$0xff] %v529_v62 }
 0x131   : > { %v527_v60 = vmax.f32 %v519_v52, 0.0  ;;  %v530_v63 = vmax.f32 %v522_v55, 0.0 }
 0x132   : > { %v531_v0 = vmax.f32 %v523_v56, 0.0  ;;  %534 = vst [vmem:[%s980_s4 + $0x10] sm:$0xff] %v526_v59 }
 0x133   : > { %535 = vst [vmem:[%s980_s4 + $0x18] sm:$0xff] %v527_v60  ;;  %538 = vst [vmem:[%s980_s4 + $0x30] sm:$0xff] %v530_v63 }
 0x134   : > { %539 = vst [vmem:[%s980_s4 + $0x38] sm:$0xff] %v531_v0 }
 0x135 PF: > { %s14_s19 = sadd.s32 1, %s785_s19   ;;  %s981_s15 = smov %s773_s16 }
 0x136   : > { %p11_p12 = scmp.ge.s32.totalorder %s14_s19, 20   ;;  %s982_s16 = smov %s849_s23 }
 0x137   : > { %s983_s17 = smov %s781_s18  ;;  %s984_s18 = smov %s986_s20 }
 0x138   :  { %13 = sbr.rel (!%p11_p12) target bundleno = 3 (0x3), region = 123 }

// kernel: resnet18_forward.34
= control target key start
LH: loop header
LB: loop body
LE: loop exit
PB: predicated region body
PF: predicated region fallthrough
CT: control target
= control target key end

     0   :  { %s725_s12 = smov 0   ;;  %s727_s13 = smov 0   ;;  %s863_s0 = inlined_call_operand.vmem [shape: f32[32,2304], index: 0, kind: input, shape index: {}]   ;;  %s864_s1 = inlined_call_operand.vmem [shape: f32[2304,256], index: 1, kind: input, shape index: {}]   ;;  %s865_s2 = inlined_call_operand.vmem [shape: f32[1,256], index: 2, kind: input, shape index: {}]   ;;  %s866_s3 = inlined_call_operand.vmem [shape: f32[32,256], index: 3, kind: output, shape index: {}]  }
   0x1   :  { %s729_s14 = smov 0   ;;  %s731_s15 = smov 0  }
   0x2   :  { %s733_s16 = smov 0  }
   0x3 LB: > { %s22_s17 = sadd.s32 1, %s697_s15  ;;  %p41_p1 = scmp.ne.s32.totalorder %s689_s13, %s685_s12  ;;  %s701_s16 = sphi %s733_s16, %s13_s16   ;;  %s697_s15 = sphi %s731_s15, %s870_s15   ;;  %s693_s14 = sphi %s729_s14, %s869_s14   ;;  %s689_s13 = sphi %s727_s13, %s868_s13   ;;  %s685_s12 = sphi %s725_s12, %s867_s12  }
   0x4   : > { %p23_p0 = scmp.ge.s32.totalorder %s22_s17, 18  ;;  %p42_p2 = scmp.eq.s32.totalorder %s701_s16, 0 }
   0x5   : > { %s34_s19 = sadd.s32 1, %s689_s13  ;;  %p558_p5 = scmp.ge.s32.totalorder %s701_s16, 18 }
   0x6   : > { %s872_s17 = smov (%p23_p0, %s22_s17), 0  ;;  %p43_p3 = por %p42_p2, %p41_p1 }
   0x7   : > { %s30_s18 = ssub.s32 %s697_s15, %s872_s17  ;;  %143 = sbr.rel (%p558_p5) target bundleno = 21 (0x15), region = 20 }
   0x8   : > { %p32_p4 = scmp.eq.s32.totalorder %s30_s18, 0 }
   0xa   : > { %s760_s20 = scalar_select %p32_p4, %s689_s13, %s34_s19  }
   0xe   : > { %146 = sbr.rel (!%p43_p3) target bundleno = 21 (0x15), region = 24  ;;  %s148_s21 = sand.u32 (%p43_p3), 1, %s689_s13  }
   0xf   : > { %s560_s22 = sshll.u32 (%p43_p3), %s697_s15, 3  ;;  %s559_s23 = sshll.u32 (%p43_p3), %s148_s21, 5 }
  0x10   : > { %s155_s26 = scalar_lea.vmem (%p43_p3), %s863_s0, %s560_s22  ;;  %s150_s27 = scalar_lea.vmem (%p43_p3), [#allocation3], %s559_s23 }
  0x11   : > { %v189_v0 = vld [vmem:[%s155_s26] sm:$0xff] (%p43_p3)  ;;  %v191_v1 = vld [vmem:[%s155_s26 + $0x90] sm:$0xff] (%p43_p3) }
  0x12   : > { %v193_v2 = vld [vmem:[%s155_s26 + $0x120] sm:$0xff] (%p43_p3)  ;;  %190 = vst [vmem:[%s150_s27] sm:$0xff] (%p43_p3), %v189_v0  ;;  %192 = vst [vmem:[%s150_s27 + $0x8] sm:$0xff] (%p43_p3), %v191_v1  ;;  %v195_v3 = vld [vmem:[%s155_s26 + $0x1b0] sm:$0xff] (%p43_p3) }
  0x13   : > { %194 = vst [vmem:[%s150_s27 + $0x10] sm:$0xff] (%p43_p3), %v193_v2  ;;  %196 = vst [vmem:[%s150_s27 + $0x18] sm:$0xff] (%p43_p3), %v195_v3 }
  0x15 PF: > { %p561_p6 = scmp.ge.s32.totalorder %s701_s16, 1  ;;  %p211_p7 = scmp.lt.s32.totalorder %s701_s16, 19 }
  0x17   : > { %p212_p8 = pnand %p561_p6, %p211_p7 }
  0x18   : > { %s218_s28 = sand.u32 (!%p212_p8), 1, %s685_s12   ;;  %s563_s29 = sshll.u32 (!%p212_p8), %s693_s14, 4 }
  0x19   : > { %215 = sbr.rel (%p212_p8) target bundleno = 307 (0x133), region = 66  ;;  %s562_s30 = sshll.u32 (!%p212_p8), %s218_s28, 5 }
  0x1a   : > { %p250_p9 = scmp.lt.s32.totalorder (!%p212_p8), %s563_s29, 287  ;;  %s777_s8 = scalar_lea.vmem (!%p212_p8), [#allocation3], %s562_s30 }
  0x1b   : > { %p566_p10 = scmp.ne.s32.totalorder (!%p212_p8), %s693_s14, 0 }
  0x20   : > { %s874_s29 = smov (!%p250_p9, %s563_s29), 287  ;;  %266 = sbr.rel (%p566_p10) target bundleno = 39 (0x27), region = 74 }
  0x21   : > { %s572_s4 = sshll.u32 %s874_s29, 4  ;;  %v703_v4 = vmov (!%p566_p10), 0.0  }
  0x22   : > { %s775_s7 = scalar_lea.vmem %s864_s1, %s572_s4  ;;  %267 = vst [vmem:[#allocation2] sm:$0xff] (!%p566_p10), %v703_v4  ;;  %268 = vst [vmem:[#allocation2 + $0x8] sm:$0xff] (!%p566_p10), %v703_v4 }
  0x23   : > { %269 = vst [vmem:[#allocation2 + $0x10] sm:$0xff] (!%p566_p10), %v703_v4  ;;  %270 = vst [vmem:[#allocation2 + $0x18] sm:$0xff] (!%p566_p10), %v703_v4 }
  0x24   : > { %271 = vst [vmem:[#allocation2 + $0x20] sm:$0xff] (!%p566_p10), %v703_v4  ;;  %272 = vst [vmem:[#allocation2 + $0x28] sm:$0xff] (!%p566_p10), %v703_v4 }
  0x25   : > { %273 = vst [vmem:[#allocation2 + $0x30] sm:$0xff] (!%p566_p10), %v703_v4  ;;  %274 = vst [vmem:[#allocation2 + $0x38] sm:$0xff] (!%p566_p10), %v703_v4 }
  0x27 PF: > { %v288_v5 = vld [vmem:[%s775_s7 + $0x8] sm:$0xff]  ;;  %v290_v6 = vld [vmem:[%s775_s7 + $0x18] sm:$0xff]  ;;  %v287_v7 = vld [vmem:[%s775_s7] sm:$0xff]  ;;  %v704_v12 = vmov 0.0   ;;  %p567_p11 = scmp.ne.s32.totalorder %s693_s14, 17 }
  0x28   : > { %v573_v8 = vpack.c.bf16 %v290_v6, %v288_v5  ;;  %v289_v9 = vld [vmem:[%s775_s7 + $0x10] sm:$0xff]  ;;  %v292_v10 = vld [vmem:[%s775_s7 + $0x28] sm:$0xff]  ;;  %v294_v11 = vld [vmem:[%s775_s7 + $0x38] sm:$0xff]  ;;  %383 = vmatprep.mubr.f32.mxu0 %v704_v12  ;;  %395 = vmatprep.mubr.f32.mxu1 %v704_v12 }
  0x29   : > { %v575_v13 = vpack.c.bf16 %v289_v9, %v287_v7  ;;  %v577_v14 = vpack.c.bf16 %v294_v11, %v292_v10  ;;  %v291_v15 = vld [vmem:[%s775_s7 + $0x20] sm:$0xff]  ;;  %v293_v16 = vld [vmem:[%s775_s7 + $0x30] sm:$0xff]  ;;  %v296_v17 = vld [vmem:[%s775_s7 + $0x48] sm:$0xff] }
  0x2a   : > { %574 = vmatprep.subr.bf16.mxu0 %v573_v8  ;;  %605 = vmatprep.subr.bf16.mxu1 %v573_v8  ;;  %v298_v18 = vld [vmem:[%s775_s7 + $0x58] sm:$0xff]  ;;  %v579_v19 = vpack.c.bf16 %v293_v16, %v291_v15  ;;  %v295_v21 = vld [vmem:[%s775_s7 + $0x40] sm:$0xff]  ;;  %v297_v22 = vld [vmem:[%s775_s7 + $0x50] sm:$0xff] }
  0x2b   : > { %576 = vmatpush1.bf16.msra.mxu0 %v575_v13  ;;  %613 = vmatpush1.bf16.msra.mxu1 %v575_v13  ;;  %v581_v20 = vpack.c.bf16 %v298_v18, %v296_v17  ;;  %v300_v23 = vld [vmem:[%s775_s7 + $0x68] sm:$0xff]  ;;  %v302_v24 = vld [vmem:[%s775_s7 + $0x78] sm:$0xff]  ;;  %v583_v25 = vpack.c.bf16 %v297_v22, %v295_v21  ;;  %v299_v27 = vld [vmem:[%s775_s7 + $0x60] sm:$0xff]  ;;  %v438_v18 = vlaneseq (!%p567_p11) }
  0x2c   : > { %578 = vmatprep.subr.bf16.mxu0 %v577_v14  ;;  %606 = vmatprep.subr.bf16.mxu1 %v577_v14  ;;  %v585_v26 = vpack.c.bf16 %v302_v24, %v300_v23  ;;  %v301_v28 = vld [vmem:[%s775_s7 + $0x70] sm:$0xff]  ;;  %v304_v29 = vld [vmem:[%s775_s7 + $0x88] sm:$0xff]  ;;  %v306_v30 = vld [vmem:[%s775_s7 + $0x98] sm:$0xff] }
  0x2d   : > { %v587_v31 = vpack.c.bf16 %v301_v28, %v299_v27  ;;  %v589_v32 = vpack.c.bf16 %v306_v30, %v304_v29  ;;  %v303_v33 = vld [vmem:[%s775_s7 + $0x80] sm:$0xff]  ;;  %v305_v34 = vld [vmem:[%s775_s7 + $0x90] sm:$0xff]  ;;  %v308_v35 = vld [vmem:[%s775_s7 + $0xa8] sm:$0xff] }
  0x2e   : > { %v310_v36 = vld [vmem:[%s775_s7 + $0xb8] sm:$0xff]  ;;  %v591_v37 = vpack.c.bf16 %v305_v34, %v303_v33  ;;  %v307_v39 = vld [vmem:[%s775_s7 + $0xa0] sm:$0xff]  ;;  %v309_v40 = vld [vmem:[%s775_s7 + $0xb0] sm:$0xff] }
  0x2f   : > { %580 = vmatpush1.bf16.msra.mxu0 %v579_v19  ;;  %614 = vmatpush1.bf16.msra.mxu1 %v579_v19  ;;  %v593_v38 = vpack.c.bf16 %v310_v36, %v308_v35  ;;  %v312_v41 = vld [vmem:[%s775_s7 + $0xc8] sm:$0xff]  ;;  %v314_v42 = vld [vmem:[%s775_s7 + $0xd8] sm:$0xff]  ;;  %v595_v43 = vpack.c.bf16 %v309_v40, %v307_v39  ;;  %v311_v45 = vld [vmem:[%s775_s7 + $0xc0] sm:$0xff]  ;;  %v439_v19 = vshrl.u32 (!%p567_p11), %v438_v18, 7 }
  0x30   : > { %582 = vmatprep.subr.bf16.mxu0 %v581_v20  ;;  %607 = vmatprep.subr.bf16.mxu1 %v581_v20  ;;  %v597_v44 = vpack.c.bf16 %v314_v42, %v312_v41  ;;  %v313_v46 = vld [vmem:[%s775_s7 + $0xd0] sm:$0xff]  ;;  %v316_v47 = vld [vmem:[%s775_s7 + $0xe8] sm:$0xff]  ;;  %v318_v48 = vld [vmem:[%s775_s7 + $0xf8] sm:$0xff] }
  0x31   : > { %v599_v49 = vpack.c.bf16 %v313_v46, %v311_v45  ;;  %v601_v50 = vpack.c.bf16 %v318_v48, %v316_v47  ;;  %v315_v51 = vld [vmem:[%s775_s7 + $0xe0] sm:$0xff]  ;;  %v317_v52 = vld [vmem:[%s775_s7 + $0xf0] sm:$0xff]  ;;  %v284_v56 = vld [vmem:[%s777_s8 + $0x8] sm:$0xff]  ;;  %v440_v22 = vsub.s32 (!%p567_p11), 0, %v439_v19  ;;  %v444_v24 = vsub.s32 (!%p567_p11), 1, %v439_v19 }
  0x32   : > { %v603_v53 = vpack.c.bf16 %v317_v52, %v315_v51  ;;  %v283_v54 = vld [vmem:[%s777_s8] sm:$0xff]  ;;  %v285_v55 = vld [vmem:[%s777_s8 + $0x10] sm:$0xff]  ;;  %v286_v57 = vld [vmem:[%s777_s8 + $0x18] sm:$0xff] }
  0x33   : > { %584 = vmatpush1.bf16.msra.mxu0 %v583_v25  ;;  %615 = vmatpush1.bf16.msra.mxu1 %v583_v25  ;;  %v275_v58 = vld [vmem:[#allocation2] sm:$0xff]  ;;  %v276_v60 = vld [vmem:[#allocation2 + $0x8] sm:$0xff]  ;;  %v277_v6 = vld [vmem:[#allocation2 + $0x10] sm:$0xff] }
  0x34   : > { %586 = vmatprep.subr.bf16.mxu0 %v585_v26  ;;  %608 = vmatprep.subr.bf16.mxu1 %v585_v26  ;;  %v279_v59 = vld [vmem:[#allocation2 + $0x20] sm:$0xff]  ;;  %v280_v61 = vld [vmem:[#allocation2 + $0x28] sm:$0xff]  ;;  %v281_v7 = vld [vmem:[#allocation2 + $0x30] sm:$0xff] }
  0x35   : > { %v278_v8 = vld [vmem:[#allocation2 + $0x18] sm:$0xff]  ;;  %v436_v20 = vld [vmem:[%s865_s2] sm:$0x3] (!%p567_p11) }
  0x36   : > { %v282_v9 = vld [vmem:[#allocation2 + $0x38] sm:$0xff]  ;;  %v441_v28 = vrot.slane (!%p567_p11), %v436_v20, %v440_v22  ;;  %v445_v29 = vrot.slane (!%p567_p11), %v436_v20, %v444_v24 }
  0x37   : > { %588 = vmatpush1.bf16.msra.mxu0 %v587_v31  ;;  %616 = vmatpush1.bf16.msra.mxu1 %v587_v31 }
  0x38   : > { %590 = vmatprep.subr.bf16.mxu0 %v589_v32  ;;  %609 = vmatprep.subr.bf16.mxu1 %v589_v32 }
  0x3b   : > { %592 = vmatpush1.bf16.msra.mxu0 %v591_v37  ;;  %617 = vmatpush1.bf16.msra.mxu1 %v591_v37 }
  0x3c   : > { %594 = vmatprep.subr.bf16.mxu0 %v593_v38  ;;  %610 = vmatprep.subr.bf16.mxu1 %v593_v38 }
  0x3f   : > { %596 = vmatpush1.bf16.msra.mxu0 %v595_v43  ;;  %618 = vmatpush1.bf16.msra.mxu1 %v595_v43 }
  0x40   : > { %598 = vmatprep.subr.bf16.mxu0 %v597_v44  ;;  %611 = vmatprep.subr.bf16.mxu1 %v597_v44 }
  0x43   : > { %600 = vmatpush1.bf16.msra.mxu0 %v599_v49  ;;  %619 = vmatpush1.bf16.msra.mxu1 %v599_v49 }
  0x44   : > { %602 = vmatprep.subr.bf16.mxu0 %v601_v50  ;;  %612 = vmatprep.subr.bf16.mxu1 %v601_v50 }
  0x47   : > { %604 = vmatpush1.bf16.msra.mxu0 %v603_v53  ;;  %620 = vmatpush1.bf16.msra.mxu1 %v603_v53 }
  0x4a   : > { %384 = vmatmul.mubr.f32.vlgmr.msra.gmra.mrb[0].mxu0 %v283_v54  ;;  %396 = vmatmul.mubr.f32.vlgmr.msra.gmra.mrb[0].mxu1 %v285_v55 }
  0x4b   : > { %389 = vmatprep.mubr.f32.mxu0 %v704_v12  ;;  %401 = vmatprep.mubr.f32.mxu1 %v704_v12 }
  0x4e   : > { %390 = vmatmul.mubr.f32.gmra.mrb[2].mxu0 %v284_v56  ;;  %402 = vmatmul.mubr.f32.gmra.mrb[2].mxu1 %v286_v57 }
 0x11d   : > { %v385_v62 = vpop.f32.mrb[0].mxu0  ;;  %v397_v63 = vpop.f32.mrb[0].mxu1 }
 0x11e   : > { %v408_v0 = vadd.f32 %v385_v62, %v275_v58  ;;  %v412_v1 = vadd.f32 %v397_v63, %v279_v59  ;;  %v387_v2 = vpop.f32.mrb[1].mxu0  ;;  %v399_v3 = vpop.f32.mrb[1].mxu1 }
 0x11f   : > { %v409_v4 = vadd.f32 %v387_v2, %v276_v60  ;;  %v413_v5 = vadd.f32 %v399_v3, %v280_v61  ;;  %427 = sbr.rel (%p567_p11) target bundleno = 307 (0x133), region = 78 }
 0x120   : > { %416 = vst [vmem:[#allocation2] sm:$0xff] %v408_v0  ;;  %420 = vst [vmem:[#allocation2 + $0x20] sm:$0xff] %v412_v1 }
 0x121   : > { %417 = vst [vmem:[#allocation2 + $0x8] sm:$0xff] %v409_v4  ;;  %421 = vst [vmem:[#allocation2 + $0x28] sm:$0xff] %v413_v5  ;;  %v391_v10 = vpop.f32.mrb[2].mxu0  ;;  %v403_v11 = vpop.f32.mrb[2].mxu1 }
 0x122   : > { %v410_v12 = vadd.f32 %v391_v10, %v277_v6  ;;  %v414_v13 = vadd.f32 %v403_v11, %v281_v7  ;;  %v393_v14 = vpop.f32.mrb[3].mxu0  ;;  %v405_v15 = vpop.f32.mrb[3].mxu1 }
 0x123   : > { %v411_v16 = vadd.f32 %v393_v14, %v278_v8  ;;  %v415_v17 = vadd.f32 %v405_v15, %v282_v9 }
 0x124   : > { %418 = vst [vmem:[#allocation2 + $0x10] sm:$0xff] %v410_v12  ;;  %422 = vst [vmem:[#allocation2 + $0x30] sm:$0xff] %v414_v13 }
 0x125   : > { %419 = vst [vmem:[#allocation2 + $0x18] sm:$0xff] %v411_v16  ;;  %423 = vst [vmem:[#allocation2 + $0x38] sm:$0xff] %v415_v17 }
 0x127   : > { %v428_v21 = vld [vmem:[#allocation2] sm:$0xff] }
 0x128   : > { %v429_v23 = vld [vmem:[#allocation2 + $0x8] sm:$0xff]  ;;  %v432_v27 = vld [vmem:[#allocation2 + $0x20] sm:$0xff]  ;;  %v448_v33 = vadd.f32 %v441_v28, %v428_v21 }
 0x129   : > { %v433_v30 = vld [vmem:[#allocation2 + $0x28] sm:$0xff]  ;;  %v449_v34 = vadd.f32 %v445_v29, %v429_v23  ;;  %v452_v37 = vadd.f32 %v441_v28, %v432_v27 }
 0x12a   : > { %v453_v38 = vadd.f32 %v445_v29, %v433_v30  ;;  %v456_v41 = vmax.f32 %v448_v33, 0.0 }
 0x12b   : > { %v430_v25 = vld [vmem:[#allocation2 + $0x10] sm:$0xff]  ;;  %v457_v42 = vmax.f32 %v449_v34, 0.0  ;;  %v460_v45 = vmax.f32 %v452_v37, 0.0 }
 0x12c   : > { %v431_v26 = vld [vmem:[#allocation2 + $0x18] sm:$0xff]  ;;  %v434_v31 = vld [vmem:[#allocation2 + $0x30] sm:$0xff]  ;;  %v450_v35 = vadd.f32 %v441_v28, %v430_v25  ;;  %v461_v46 = vmax.f32 %v453_v38, 0.0  ;;  %464 = vst [vmem:[%s866_s3] sm:$0xff] %v456_v41 }
 0x12d   : > { %v435_v32 = vld [vmem:[#allocation2 + $0x38] sm:$0xff]  ;;  %v451_v36 = vadd.f32 %v445_v29, %v431_v26  ;;  %v454_v39 = vadd.f32 %v441_v28, %v434_v31  ;;  %465 = vst [vmem:[%s866_s3 + $0x8] sm:$0xff] %v457_v42  ;;  %468 = vst [vmem:[%s866_s3 + $0x20] sm:$0xff] %v460_v45 }
 0x12e   : > { %v455_v40 = vadd.f32 %v445_v29, %v435_v32  ;;  %v458_v43 = vmax.f32 %v450_v35, 0.0  ;;  %469 = vst [vmem:[%s866_s3 + $0x28] sm:$0xff] %v461_v46 }
 0x12f   : > { %v459_v44 = vmax.f32 %v451_v36, 0.0  ;;  %v462_v47 = vmax.f32 %v454_v39, 0.0 }
 0x130   : > { %v463_v48 = vmax.f32 %v455_v40, 0.0  ;;  %466 = vst [vmem:[%s866_s3 + $0x10] sm:$0xff] %v458_v43 }
 0x131   : > { %467 = vst [vmem:[%s866_s3 + $0x18] sm:$0xff] %v459_v44  ;;  %470 = vst [vmem:[%s866_s3 + $0x30] sm:$0xff] %v462_v47 }
 0x132   : > { %471 = vst [vmem:[%s866_s3 + $0x38] sm:$0xff] %v463_v48 }
 0x133 PF: > { %s13_s16 = sadd.s32 1, %s701_s16   ;;  %s867_s12 = smov %s689_s13 }
 0x134   : > { %p10_p12 = scmp.ge.s32.totalorder %s13_s16, 20   ;;  %s868_s13 = smov %s760_s20 }
 0x135   : > { %s869_s14 = smov %s697_s15  ;;  %s870_s15 = smov %s872_s17 }
 0x136   :  { %12 = sbr.rel (!%p10_p12) target bundleno = 3 (0x3), region = 116 }

// kernel: resnet18_forward.37
= control target key start
LH: loop header
LB: loop body
LE: loop exit
PB: predicated region body
PF: predicated region fallthrough
CT: control target
= control target key end

     0   :  { %s717_s12 = smov 0   ;;  %s719_s13 = smov 0   ;;  %s841_s0 = inlined_call_operand.vmem [shape: f32[8,2304], index: 0, kind: input, shape index: {}]   ;;  %s842_s1 = inlined_call_operand.vmem [shape: f32[2304,512], index: 1, kind: input, shape index: {}]   ;;  %s843_s2 = inlined_call_operand.vmem [shape: f32[1,512], index: 2, kind: input, shape index: {}]   ;;  %s844_s3 = inlined_call_operand.vmem [shape: f32[8,512], index: 3, kind: output, shape index: {}]  }
   0x1   :  { %s721_s14 = smov 0  }
   0x2 LB: > { %s22_s15 = sadd.s32 1, %s689_s13  ;;  %p570_p0 = scmp.ge.s32.totalorder %s693_s14, 1  ;;  %s693_s14 = sphi %s721_s14, %s13_s14   ;;  %s689_s13 = sphi %s719_s13, %s846_s13   ;;  %s685_s12 = sphi %s717_s12, %s845_s12  }
   0x3   : > { %p23_p1 = scmp.ge.s32.totalorder %s22_s15, 18  ;;  %p166_p2 = scmp.lt.s32.totalorder %s693_s14, 19 }
   0x5   : > { %s848_s15 = smov (%p23_p1, %s22_s15), 0  ;;  %p167_p3 = pnand %p570_p0, %p166_p2 }
   0x6   : > { %p201_p4 = scmp.lt.s32.totalorder (!%p167_p3), %s685_s12, 17  ;;  %s572_s16 = sshll.u32 (!%p167_p3), %s685_s12, 4 }
   0x7   : > { %170 = sbr.rel (%p167_p3) target bundleno = 287 (0x11f), region = 32  ;;  %p208_p5 = scmp.lt.s32.totalorder (!%p167_p3), %s572_s16, 287 }
   0x8   : > { %p575_p6 = scmp.ne.s32.totalorder (!%p167_p3), %s685_s12, 0 }
   0xe   : > { %s202_s17 = scalar_select %p201_p4, %s685_s12, 17 }
   0xf   : > { %s850_s16 = smov (!%p208_p5, %s572_s16), 287  ;;  %222 = sbr.rel (%p575_p6) target bundleno = 22 (0x16), region = 36 }
  0x10   : > { %s571_s18 = sshll.u32 %s202_s17, 3  ;;  %s580_s22 = sshll.u32 %s850_s16, 5  ;;  %v695_v0 = vmov (!%p575_p6), 0.0  }
  0x11   : > { %s743_s21 = scalar_lea.vmem %s841_s0, %s571_s18  ;;  %s748_s25 = scalar_lea.vmem %s842_s1, %s580_s22  ;;  %223 = vst [vmem:[#allocation2] sm:$0xff] (!%p575_p6), %v695_v0  ;;  %224 = vst [vmem:[#allocation2 + $0x8] sm:$0xff] (!%p575_p6), %v695_v0 }
  0x12   : > { %225 = vst [vmem:[#allocation2 + $0x10] sm:$0xff] (!%p575_p6), %v695_v0  ;;  %226 = vst [vmem:[#allocation2 + $0x18] sm:$0xff] (!%p575_p6), %v695_v0 }
  0x16 PF: > { %v233_v1 = vld [vmem:[%s748_s25 + $0x8] sm:$0xff]  ;;  %v235_v3 = vld [vmem:[%s748_s25 + $0x18] sm:$0xff]  ;;  %v232_v6 = vld [vmem:[%s748_s25] sm:$0xff]  ;;  %v696_v8 = vmov 0.0   ;;  %p576_p7 = scmp.ne.s32.totalorder %s685_s12, 17 }
  0x17   : > { %v237_v2 = vld [vmem:[%s748_s25 + $0x28] sm:$0xff]  ;;  %v239_v5 = vld [vmem:[%s748_s25 + $0x38] sm:$0xff]  ;;  %v236_v7 = vld [vmem:[%s748_s25 + $0x20] sm:$0xff]  ;;  %360 = vmatprep.mubr.f32.mxu0 %v696_v8  ;;  %431 = vmatprep.mubr.f32.mxu1 %v696_v8 }
  0x18   : > { %v581_v4 = vpack.c.bf16 %v237_v2, %v233_v1  ;;  %v613_v9 = vpack.c.bf16 %v239_v5, %v235_v3  ;;  %v583_v10 = vpack.c.bf16 %v236_v7, %v232_v6  ;;  %v234_v11 = vld [vmem:[%s748_s25 + $0x10] sm:$0xff]  ;;  %v241_v13 = vld [vmem:[%s748_s25 + $0x48] sm:$0xff]  ;;  %v243_v16 = vld [vmem:[%s748_s25 + $0x58] sm:$0xff] }
  0x19   : > { %v238_v12 = vld [vmem:[%s748_s25 + $0x30] sm:$0xff]  ;;  %v245_v15 = vld [vmem:[%s748_s25 + $0x68] sm:$0xff]  ;;  %v247_v17 = vld [vmem:[%s748_s25 + $0x78] sm:$0xff] }
  0x1a   : > { %582 = vmatprep.subr.bf16.mxu0 %v581_v4  ;;  %v615_v14 = vpack.c.bf16 %v238_v12, %v234_v11  ;;  %614 = vmatprep.subr.bf16.mxu1 %v613_v9  ;;  %v585_v18 = vpack.c.bf16 %v245_v15, %v241_v13  ;;  %v617_v19 = vpack.c.bf16 %v247_v17, %v243_v16  ;;  %v240_v20 = vld [vmem:[%s748_s25 + $0x40] sm:$0xff]  ;;  %v242_v22 = vld [vmem:[%s748_s25 + $0x50] sm:$0xff]  ;;  %v249_v25 = vld [vmem:[%s748_s25 + $0x88] sm:$0xff] }
  0x1b   : > { %584 = vmatpush1.bf16.msra.mxu0 %v583_v10  ;;  %v244_v21 = vld [vmem:[%s748_s25 + $0x60] sm:$0xff]  ;;  %v246_v24 = vld [vmem:[%s748_s25 + $0x70] sm:$0xff]  ;;  %v253_v26 = vld [vmem:[%s748_s25 + $0xa8] sm:$0xff] }
  0x1c   : > { %616 = vmatpush1.bf16.msra.mxu1 %v615_v14  ;;  %v587_v23 = vpack.c.bf16 %v244_v21, %v240_v20  ;;  %586 = vmatprep.subr.bf16.mxu0 %v585_v18  ;;  %v619_v27 = vpack.c.bf16 %v246_v24, %v242_v22  ;;  %v589_v28 = vpack.c.bf16 %v253_v26, %v249_v25  ;;  %v251_v29 = vld [vmem:[%s748_s25 + $0x98] sm:$0xff]  ;;  %v248_v31 = vld [vmem:[%s748_s25 + $0x80] sm:$0xff]  ;;  %v250_v34 = vld [vmem:[%s748_s25 + $0x90] sm:$0xff] }
  0x1d   : > { %618 = vmatprep.subr.bf16.mxu1 %v617_v19  ;;  %v255_v30 = vld [vmem:[%s748_s25 + $0xb8] sm:$0xff]  ;;  %v252_v33 = vld [vmem:[%s748_s25 + $0xa0] sm:$0xff]  ;;  %v254_v35 = vld [vmem:[%s748_s25 + $0xb0] sm:$0xff] }
  0x1e   : > { %v621_v32 = vpack.c.bf16 %v255_v30, %v251_v29  ;;  %v591_v36 = vpack.c.bf16 %v252_v33, %v248_v31  ;;  %v257_v37 = vld [vmem:[%s748_s25 + $0xc8] sm:$0xff]  ;;  %v259_v39 = vld [vmem:[%s748_s25 + $0xd8] sm:$0xff]  ;;  %v623_v40 = vpack.c.bf16 %v254_v35, %v250_v34  ;;  %v256_v43 = vld [vmem:[%s748_s25 + $0xc0] sm:$0xff] }
  0x1f   : > { %588 = vmatpush1.bf16.msra.mxu0 %v587_v23  ;;  %v261_v38 = vld [vmem:[%s748_s25 + $0xe8] sm:$0xff]  ;;  %v263_v42 = vld [vmem:[%s748_s25 + $0xf8] sm:$0xff]  ;;  %v260_v44 = vld [vmem:[%s748_s25 + $0xe0] sm:$0xff] }
  0x20   : > { %620 = vmatpush1.bf16.msra.mxu1 %v619_v27  ;;  %590 = vmatprep.subr.bf16.mxu0 %v589_v28  ;;  %v593_v41 = vpack.c.bf16 %v261_v38, %v257_v37  ;;  %v625_v45 = vpack.c.bf16 %v263_v42, %v259_v39  ;;  %v258_v46 = vld [vmem:[%s748_s25 + $0xd0] sm:$0xff]  ;;  %v265_v48 = vld [vmem:[%s748_s25 + $0x108] sm:$0xff]  ;;  %v267_v50 = vld [vmem:[%s748_s25 + $0x118] sm:$0xff]  ;;  %v595_v52 = vpack.c.bf16 %v260_v44, %v256_v43 }
  0x21   : > { %622 = vmatprep.subr.bf16.mxu1 %v621_v32  ;;  %v262_v47 = vld [vmem:[%s748_s25 + $0xf0] sm:$0xff]  ;;  %v269_v49 = vld [vmem:[%s748_s25 + $0x128] sm:$0xff]  ;;  %v271_v51 = vld [vmem:[%s748_s25 + $0x138] sm:$0xff] }
  0x22   : > { %v627_v53 = vpack.c.bf16 %v262_v47, %v258_v46  ;;  %v597_v54 = vpack.c.bf16 %v269_v49, %v265_v48  ;;  %v264_v55 = vld [vmem:[%s748_s25 + $0x100] sm:$0xff]  ;;  %v266_v57 = vld [vmem:[%s748_s25 + $0x110] sm:$0xff]  ;;  %v629_v58 = vpack.c.bf16 %v271_v51, %v267_v50  ;;  %v273_v60 = vld [vmem:[%s748_s25 + $0x148] sm:$0xff]  ;;  %v456_v47 = vlaneseq (!%p576_p7) }
  0x23   : > { %592 = vmatpush1.bf16.msra.mxu0 %v591_v36  ;;  %v268_v56 = vld [vmem:[%s748_s25 + $0x120] sm:$0xff]  ;;  %v270_v59 = vld [vmem:[%s748_s25 + $0x130] sm:$0xff]  ;;  %v277_v61 = vld [vmem:[%s748_s25 + $0x168] sm:$0xff] }
  0x24   : > { %624 = vmatpush1.bf16.msra.mxu1 %v623_v40  ;;  %594 = vmatprep.subr.bf16.mxu0 %v593_v41  ;;  %v275_v62 = vld [vmem:[%s748_s25 + $0x158] sm:$0xff]  ;;  %v599_v0 = vpack.c.bf16 %v268_v56, %v264_v55  ;;  %v631_v1 = vpack.c.bf16 %v270_v59, %v266_v57  ;;  %v601_v2 = vpack.c.bf16 %v277_v61, %v273_v60  ;;  %v272_v3 = vld [vmem:[%s748_s25 + $0x140] sm:$0xff]  ;;  %v274_v5 = vld [vmem:[%s748_s25 + $0x150] sm:$0xff]  ;;  %v457_v48 = vshrl.u32 (!%p576_p7), %v456_v47, 7 }
  0x25   : > { %626 = vmatprep.subr.bf16.mxu1 %v625_v45  ;;  %v279_v63 = vld [vmem:[%s748_s25 + $0x178] sm:$0xff]  ;;  %v276_v4 = vld [vmem:[%s748_s25 + $0x160] sm:$0xff]  ;;  %v278_v7 = vld [vmem:[%s748_s25 + $0x170] sm:$0xff] }
  0x26   : > { %v633_v6 = vpack.c.bf16 %v279_v63, %v275_v62  ;;  %v281_v8 = vld [vmem:[%s748_s25 + $0x188] sm:$0xff]  ;;  %v283_v10 = vld [vmem:[%s748_s25 + $0x198] sm:$0xff]  ;;  %v603_v12 = vpack.c.bf16 %v276_v4, %v272_v3  ;;  %v635_v13 = vpack.c.bf16 %v278_v7, %v274_v5  ;;  %v280_v15 = vld [vmem:[%s748_s25 + $0x180] sm:$0xff]  ;;  %v458_v51 = vsub.s32 (!%p576_p7), 0, %v457_v48 }
  0x27   : > { %596 = vmatpush1.bf16.msra.mxu0 %v595_v52  ;;  %v285_v9 = vld [vmem:[%s748_s25 + $0x1a8] sm:$0xff]  ;;  %v287_v11 = vld [vmem:[%s748_s25 + $0x1b8] sm:$0xff]  ;;  %v284_v16 = vld [vmem:[%s748_s25 + $0x1a0] sm:$0xff]  ;;  %v462_v52 = vsub.s32 (!%p576_p7), 1, %v457_v48 }
  0x28   : > { %628 = vmatpush1.bf16.msra.mxu1 %v627_v53  ;;  %598 = vmatprep.subr.bf16.mxu0 %v597_v54  ;;  %v605_v14 = vpack.c.bf16 %v285_v9, %v281_v8  ;;  %v282_v17 = vld [vmem:[%s748_s25 + $0x190] sm:$0xff]  ;;  %v637_v18 = vpack.c.bf16 %v287_v11, %v283_v10  ;;  %v289_v20 = vld [vmem:[%s748_s25 + $0x1c8] sm:$0xff]  ;;  %v291_v22 = vld [vmem:[%s748_s25 + $0x1d8] sm:$0xff]  ;;  %v607_v24 = vpack.c.bf16 %v284_v16, %v280_v15  ;;  %v466_v53 = vsub.s32 (!%p576_p7), 2, %v457_v48 }
  0x29   : > { %630 = vmatprep.subr.bf16.mxu1 %v629_v58  ;;  %v286_v19 = vld [vmem:[%s748_s25 + $0x1b0] sm:$0xff]  ;;  %v293_v21 = vld [vmem:[%s748_s25 + $0x1e8] sm:$0xff]  ;;  %v295_v23 = vld [vmem:[%s748_s25 + $0x1f8] sm:$0xff]  ;;  %v470_v54 = vsub.s32 (!%p576_p7), 3, %v457_v48 }
  0x2a   : > { %v639_v25 = vpack.c.bf16 %v286_v19, %v282_v17  ;;  %v609_v26 = vpack.c.bf16 %v293_v21, %v289_v20  ;;  %v288_v27 = vld [vmem:[%s748_s25 + $0x1c0] sm:$0xff]  ;;  %v641_v29 = vpack.c.bf16 %v295_v23, %v291_v22  ;;  %v290_v30 = vld [vmem:[%s748_s25 + $0x1d0] sm:$0xff]  ;;  %v228_v37 = vld [vmem:[#allocation2 + $0x8] sm:$0xff] }
  0x2b   : > { %600 = vmatpush1.bf16.msra.mxu0 %v599_v0  ;;  %v292_v28 = vld [vmem:[%s748_s25 + $0x1e0] sm:$0xff]  ;;  %v294_v31 = vld [vmem:[%s748_s25 + $0x1f0] sm:$0xff]  ;;  %v230_v39 = vld [vmem:[#allocation2 + $0x18] sm:$0xff] }
  0x2c   : > { %632 = vmatpush1.bf16.msra.mxu1 %v631_v1  ;;  %602 = vmatprep.subr.bf16.mxu0 %v601_v2  ;;  %v611_v32 = vpack.c.bf16 %v292_v28, %v288_v27  ;;  %v643_v33 = vpack.c.bf16 %v294_v31, %v290_v30  ;;  %v231_v34 = vld [vmem:[%s743_s21] sm:$0xff]  ;;  %v229_v36 = vld [vmem:[#allocation2 + $0x10] sm:$0xff] }
  0x2d   : > { %634 = vmatprep.subr.bf16.mxu1 %v633_v6  ;;  %v227_v35 = vld [vmem:[#allocation2] sm:$0xff] }
  0x2e   : > { %v454_v49 = vld [vmem:[%s843_s2] sm:$0xf] (!%p576_p7) }
  0x2f   : > { %604 = vmatpush1.bf16.msra.mxu0 %v603_v12  ;;  %v459_v58 = vrot.slane (!%p576_p7), %v454_v49, %v458_v51  ;;  %v463_v59 = vrot.slane (!%p576_p7), %v454_v49, %v462_v52  ;;  %v467_v60 = vrot.slane (!%p576_p7), %v454_v49, %v466_v53  ;;  %v471_v61 = vrot.slane (!%p576_p7), %v454_v49, %v470_v54 }
  0x30   : > { %636 = vmatpush1.bf16.msra.mxu1 %v635_v13  ;;  %606 = vmatprep.subr.bf16.mxu0 %v605_v14 }
  0x31   : > { %638 = vmatprep.subr.bf16.mxu1 %v637_v18 }
  0x33   : > { %608 = vmatpush1.bf16.msra.mxu0 %v607_v24 }
  0x34   : > { %640 = vmatpush1.bf16.msra.mxu1 %v639_v25  ;;  %610 = vmatprep.subr.bf16.mxu0 %v609_v26 }
  0x35   : > { %642 = vmatprep.subr.bf16.mxu1 %v641_v29 }
  0x37   : > { %612 = vmatpush1.bf16.msra.mxu0 %v611_v32 }
  0x38   : > { %644 = vmatpush1.bf16.msra.mxu1 %v643_v33 }
  0x3a   : > { %361 = vmatmul.mubr.f32.vlgmr.msra.gmra.mrb[0].mxu0 %v231_v34 }
  0x3b   : > { %432 = vmatmul.mubr.f32.vlgmr.msra.gmra.mrb[0].mxu1 %v231_v34 }
 0x10c   : > { %449 = sbr.rel (%p576_p7) target bundleno = 287 (0x11f), region = 40 }
 0x10d   : > { %v362_v38 = vpop.f32.mrb[0].mxu0 }
 0x10e   : > { %v438_v40 = vadd.f32 %v362_v38, %v227_v35  ;;  %v433_v41 = vpop.f32.mrb[0].mxu1  ;;  %v364_v42 = vpop.f32.mrb[1].mxu0 }
 0x10f   : > { %v440_v43 = vadd.f32 %v433_v41, %v229_v36  ;;  %v439_v44 = vadd.f32 %v364_v42, %v228_v37  ;;  %v435_v45 = vpop.f32.mrb[1].mxu1 }
 0x110   : > { %442 = vst [vmem:[#allocation2] sm:$0xff] %v438_v40  ;;  %v441_v46 = vadd.f32 %v435_v45, %v230_v39 }
 0x111   : > { %444 = vst [vmem:[#allocation2 + $0x10] sm:$0xff] %v440_v43  ;;  %443 = vst [vmem:[#allocation2 + $0x8] sm:$0xff] %v439_v44 }
 0x112   : > { %445 = vst [vmem:[#allocation2 + $0x18] sm:$0xff] %v441_v46 }
 0x117   : > { %v450_v50 = vld [vmem:[#allocation2] sm:$0xff] }
 0x118   : > { %v451_v55 = vld [vmem:[#allocation2 + $0x8] sm:$0xff]  ;;  %v452_v56 = vld [vmem:[#allocation2 + $0x10] sm:$0xff]  ;;  %v476_v62 = vadd.f32 %v459_v58, %v450_v50 }
 0x119   : > { %v453_v57 = vld [vmem:[#allocation2 + $0x18] sm:$0xff]  ;;  %v477_v63 = vadd.f32 %v463_v59, %v451_v55  ;;  %v478_v0 = vadd.f32 %v467_v60, %v452_v56 }
 0x11a   : > { %v479_v1 = vadd.f32 %v471_v61, %v453_v57  ;;  %v480_v2 = vmax.f32 %v476_v62, 0.0 }
 0x11b   : > { %v481_v3 = vmax.f32 %v477_v63, 0.0  ;;  %v482_v4 = vmax.f32 %v478_v0, 0.0 }
 0x11c   : > { %v483_v5 = vmax.f32 %v479_v1, 0.0  ;;  %484 = vst [vmem:[%s844_s3] sm:$0xff] %v480_v2 }
 0x11d   : > { %485 = vst [vmem:[%s844_s3 + $0x8] sm:$0xff] %v481_v3  ;;  %486 = vst [vmem:[%s844_s3 + $0x10] sm:$0xff] %v482_v4 }
 0x11e   : > { %487 = vst [vmem:[%s844_s3 + $0x18] sm:$0xff] %v483_v5 }
 0x11f PF: > { %s13_s14 = sadd.s32 1, %s693_s14   ;;  %s845_s12 = smov %s689_s13 }
 0x120   : > { %p10_p8 = scmp.ge.s32.totalorder %s13_s14, 20   ;;  %s846_s13 = smov %s848_s15 }
 0x122   :  { %12 = sbr.rel (!%p10_p8) target bundleno = 2 (0x2), region = 73 }

// kernel: resnet18_forward.36
= control target key start
LH: loop header
LB: loop body
LE: loop exit
PB: predicated region body
PF: predicated region fallthrough
CT: control target
= control target key end

     0   :  { %s713_s12 = smov 0   ;;  %s715_s13 = smov 0   ;;  %s837_s0 = inlined_call_operand.vmem [shape: f32[8,256], index: 0, kind: input, shape index: {}]   ;;  %s838_s1 = inlined_call_operand.vmem [shape: f32[256,512], index: 1, kind: input, shape index: {}]   ;;  %s839_s2 = inlined_call_operand.vmem [shape: f32[1,512], index: 2, kind: input, shape index: {}]   ;;  %s840_s3 = inlined_call_operand.vmem [shape: f32[8,512], index: 3, kind: output, shape index: {}]  }
   0x1   :  { %s717_s14 = smov 0  }
   0x2 LB: > { %s22_s15 = sadd.s32 1, %s685_s13  ;;  %p566_p0 = scmp.ge.s32.totalorder %s689_s14, 1  ;;  %s689_s14 = sphi %s717_s14, %s13_s14   ;;  %s685_s13 = sphi %s715_s13, %s842_s13   ;;  %s681_s12 = sphi %s713_s12, %s841_s12  }
   0x3   : > { %p23_p1 = scmp.ge.s32.totalorder %s22_s15, 2  ;;  %p166_p2 = scmp.lt.s32.totalorder %s689_s14, 3 }
   0x5   : > { %s844_s15 = smov (%p23_p1, %s22_s15), 0  ;;  %p167_p3 = pnand %p566_p0, %p166_p2 }
   0x6   : > { %p201_p4 = scmp.lt.s32.totalorder (!%p167_p3), %s681_s12, 1  ;;  %s568_s16 = sshll.u32 (!%p167_p3), %s681_s12, 4 }
   0x7   : > { %170 = sbr.rel (%p167_p3) target bundleno = 285 (0x11d), region = 32  ;;  %p208_p5 = scmp.lt.s32.totalorder (!%p167_p3), %s568_s16, 31 }
   0x8   : > { %p571_p6 = scmp.ne.s32.totalorder (!%p167_p3), %s681_s12, 0 }
   0xe   : > { %s202_s17 = scalar_select %p201_p4, %s681_s12, 1 }
   0xf   : > { %s846_s16 = smov (!%p208_p5, %s568_s16), 31  ;;  %222 = sbr.rel (%p571_p6) target bundleno = 22 (0x16), region = 36 }
  0x10   : > { %s567_s18 = sshll.u32 %s202_s17, 3  ;;  %s576_s22 = sshll.u32 %s846_s16, 5  ;;  %v691_v0 = vmov (!%p571_p6), 0.0  }
  0x11   : > { %s739_s21 = scalar_lea.vmem %s837_s0, %s567_s18  ;;  %s744_s25 = scalar_lea.vmem %s838_s1, %s576_s22  ;;  %223 = vst [vmem:[#allocation2] sm:$0xff] (!%p571_p6), %v691_v0  ;;  %224 = vst [vmem:[#allocation2 + $0x8] sm:$0xff] (!%p571_p6), %v691_v0 }
  0x12   : > { %225 = vst [vmem:[#allocation2 + $0x10] sm:$0xff] (!%p571_p6), %v691_v0  ;;  %226 = vst [vmem:[#allocation2 + $0x18] sm:$0xff] (!%p571_p6), %v691_v0 }
  0x16 PF: > { %v233_v1 = vld [vmem:[%s744_s25 + $0x8] sm:$0xff]  ;;  %v235_v3 = vld [vmem:[%s744_s25 + $0x18] sm:$0xff]  ;;  %v232_v6 = vld [vmem:[%s744_s25] sm:$0xff]  ;;  %v692_v8 = vmov 0.0   ;;  %p572_p7 = scmp.ne.s32.totalorder %s681_s12, 1 }
  0x17   : > { %v237_v2 = vld [vmem:[%s744_s25 + $0x28] sm:$0xff]  ;;  %v239_v5 = vld [vmem:[%s744_s25 + $0x38] sm:$0xff]  ;;  %v236_v7 = vld [vmem:[%s744_s25 + $0x20] sm:$0xff]  ;;  %360 = vmatprep.mubr.f32.mxu0 %v692_v8  ;;  %431 = vmatprep.mubr.f32.mxu1 %v692_v8 }
  0x18   : > { %v577_v4 = vpack.c.bf16 %v237_v2, %v233_v1  ;;  %v609_v9 = vpack.c.bf16 %v239_v5, %v235_v3  ;;  %v579_v10 = vpack.c.bf16 %v236_v7, %v232_v6  ;;  %v234_v11 = vld [vmem:[%s744_s25 + $0x10] sm:$0xff]  ;;  %v241_v13 = vld [vmem:[%s744_s25 + $0x48] sm:$0xff]  ;;  %v243_v16 = vld [vmem:[%s744_s25 + $0x58] sm:$0xff] }
  0x19   : > { %v238_v12 = vld [vmem:[%s744_s25 + $0x30] sm:$0xff]  ;;  %v245_v15 = vld [vmem:[%s744_s25 + $0x68] sm:$0xff]  ;;  %v247_v17 = vld [vmem:[%s744_s25 + $0x78] sm:$0xff] }
  0x1a   : > { %578 = vmatprep.subr.bf16.mxu0 %v577_v4  ;;  %v611_v14 = vpack.c.bf16 %v238_v12, %v234_v11  ;;  %610 = vmatprep.subr.bf16.mxu1 %v609_v9  ;;  %v581_v18 = vpack.c.bf16 %v245_v15, %v241_v13  ;;  %v613_v19 = vpack.c.bf16 %v247_v17, %v243_v16  ;;  %v240_v20 = vld [vmem:[%s744_s25 + $0x40] sm:$0xff]  ;;  %v242_v22 = vld [vmem:[%s744_s25 + $0x50] sm:$0xff]  ;;  %v249_v25 = vld [vmem:[%s744_s25 + $0x88] sm:$0xff] }
  0x1b   : > { %580 = vmatpush1.bf16.msra.mxu0 %v579_v10  ;;  %v244_v21 = vld [vmem:[%s744_s25 + $0x60] sm:$0xff]  ;;  %v246_v24 = vld [vmem:[%s744_s25 + $0x70] sm:$0xff]  ;;  %v253_v26 = vld [vmem:[%s744_s25 + $0xa8] sm:$0xff] }
  0x1c   : > { %612 = vmatpush1.bf16.msra.mxu1 %v611_v14  ;;  %v583_v23 = vpack.c.bf16 %v244_v21, %v240_v20  ;;  %582 = vmatprep.subr.bf16.mxu0 %v581_v18  ;;  %v615_v27 = vpack.c.bf16 %v246_v24, %v242_v22  ;;  %v585_v28 = vpack.c.bf16 %v253_v26, %v249_v25  ;;  %v251_v29 = vld [vmem:[%s744_s25 + $0x98] sm:$0xff]  ;;  %v248_v31 = vld [vmem:[%s744_s25 + $0x80] sm:$0xff]  ;;  %v250_v34 = vld [vmem:[%s744_s25 + $0x90] sm:$0xff] }
  0x1d   : > { %614 = vmatprep.subr.bf16.mxu1 %v613_v19  ;;  %v255_v30 = vld [vmem:[%s744_s25 + $0xb8] sm:$0xff]  ;;  %v252_v33 = vld [vmem:[%s744_s25 + $0xa0] sm:$0xff]  ;;  %v254_v35 = vld [vmem:[%s744_s25 + $0xb0] sm:$0xff] }
  0x1e   : > { %v617_v32 = vpack.c.bf16 %v255_v30, %v251_v29  ;;  %v587_v36 = vpack.c.bf16 %v252_v33, %v248_v31  ;;  %v257_v37 = vld [vmem:[%s744_s25 + $0xc8] sm:$0xff]  ;;  %v259_v39 = vld [vmem:[%s744_s25 + $0xd8] sm:$0xff]  ;;  %v619_v40 = vpack.c.bf16 %v254_v35, %v250_v34  ;;  %v256_v43 = vld [vmem:[%s744_s25 + $0xc0] sm:$0xff] }
  0x1f   : > { %584 = vmatpush1.bf16.msra.mxu0 %v583_v23  ;;  %v261_v38 = vld [vmem:[%s744_s25 + $0xe8] sm:$0xff]  ;;  %v263_v42 = vld [vmem:[%s744_s25 + $0xf8] sm:$0xff]  ;;  %v260_v44 = vld [vmem:[%s744_s25 + $0xe0] sm:$0xff] }
  0x20   : > { %616 = vmatpush1.bf16.msra.mxu1 %v615_v27  ;;  %586 = vmatprep.subr.bf16.mxu0 %v585_v28  ;;  %v589_v41 = vpack.c.bf16 %v261_v38, %v257_v37  ;;  %v621_v45 = vpack.c.bf16 %v263_v42, %v259_v39  ;;  %v258_v46 = vld [vmem:[%s744_s25 + $0xd0] sm:$0xff]  ;;  %v265_v48 = vld [vmem:[%s744_s25 + $0x108] sm:$0xff]  ;;  %v267_v50 = vld [vmem:[%s744_s25 + $0x118] sm:$0xff]  ;;  %v591_v52 = vpack.c.bf16 %v260_v44, %v256_v43 }
  0x21   : > { %618 = vmatprep.subr.bf16.mxu1 %v617_v32  ;;  %v262_v47 = vld [vmem:[%s744_s25 + $0xf0] sm:$0xff]  ;;  %v269_v49 = vld [vmem:[%s744_s25 + $0x128] sm:$0xff]  ;;  %v271_v51 = vld [vmem:[%s744_s25 + $0x138] sm:$0xff] }
  0x22   : > { %v623_v53 = vpack.c.bf16 %v262_v47, %v258_v46  ;;  %v593_v54 = vpack.c.bf16 %v269_v49, %v265_v48  ;;  %v264_v55 = vld [vmem:[%s744_s25 + $0x100] sm:$0xff]  ;;  %v266_v57 = vld [vmem:[%s744_s25 + $0x110] sm:$0xff]  ;;  %v625_v58 = vpack.c.bf16 %v271_v51, %v267_v50  ;;  %v273_v60 = vld [vmem:[%s744_s25 + $0x148] sm:$0xff]  ;;  %v456_v47 = vlaneseq (!%p572_p7) }
  0x23   : > { %588 = vmatpush1.bf16.msra.mxu0 %v587_v36  ;;  %v268_v56 = vld [vmem:[%s744_s25 + $0x120] sm:$0xff]  ;;  %v270_v59 = vld [vmem:[%s744_s25 + $0x130] sm:$0xff]  ;;  %v277_v61 = vld [vmem:[%s744_s25 + $0x168] sm:$0xff] }
  0x24   : > { %620 = vmatpush1.bf16.msra.mxu1 %v619_v40  ;;  %590 = vmatprep.subr.bf16.mxu0 %v589_v41  ;;  %v275_v62 = vld [vmem:[%s744_s25 + $0x158] sm:$0xff]  ;;  %v595_v0 = vpack.c.bf16 %v268_v56, %v264_v55  ;;  %v627_v1 = vpack.c.bf16 %v270_v59, %v266_v57  ;;  %v597_v2 = vpack.c.bf16 %v277_v61, %v273_v60  ;;  %v272_v3 = vld [vmem:[%s744_s25 + $0x140] sm:$0xff]  ;;  %v274_v5 = vld [vmem:[%s744_s25 + $0x150] sm:$0xff]  ;;  %v457_v48 = vshrl.u32 (!%p572_p7), %v456_v47, 7 }
  0x25   : > { %622 = vmatprep.subr.bf16.mxu1 %v621_v45  ;;  %v279_v63 = vld [vmem:[%s744_s25 + $0x178] sm:$0xff]  ;;  %v276_v4 = vld [vmem:[%s744_s25 + $0x160] sm:$0xff]  ;;  %v278_v7 = vld [vmem:[%s744_s25 + $0x170] sm:$0xff] }
  0x26   : > { %v629_v6 = vpack.c.bf16 %v279_v63, %v275_v62  ;;  %v281_v8 = vld [vmem:[%s744_s25 + $0x188] sm:$0xff]  ;;  %v283_v10 = vld [vmem:[%s744_s25 + $0x198] sm:$0xff]  ;;  %v599_v12 = vpack.c.bf16 %v276_v4, %v272_v3  ;;  %v631_v13 = vpack.c.bf16 %v278_v7, %v274_v5  ;;  %v280_v15 = vld [vmem:[%s744_s25 + $0x180] sm:$0xff]  ;;  %v458_v51 = vsub.s32 (!%p572_p7), 0, %v457_v48 }
  0x27   : > { %592 = vmatpush1.bf16.msra.mxu0 %v591_v52  ;;  %v285_v9 = vld [vmem:[%s744_s25 + $0x1a8] sm:$0xff]  ;;  %v287_v11 = vld [vmem:[%s744_s25 + $0x1b8] sm:$0xff]  ;;  %v284_v16 = vld [vmem:[%s744_s25 + $0x1a0] sm:$0xff]  ;;  %v462_v52 = vsub.s32 (!%p572_p7), 1, %v457_v48 }
  0x28   : > { %624 = vmatpush1.bf16.msra.mxu1 %v623_v53  ;;  %594 = vmatprep.subr.bf16.mxu0 %v593_v54  ;;  %v601_v14 = vpack.c.bf16 %v285_v9, %v281_v8  ;;  %v282_v17 = vld [vmem:[%s744_s25 + $0x190] sm:$0xff]  ;;  %v633_v18 = vpack.c.bf16 %v287_v11, %v283_v10  ;;  %v289_v20 = vld [vmem:[%s744_s25 + $0x1c8] sm:$0xff]  ;;  %v291_v22 = vld [vmem:[%s744_s25 + $0x1d8] sm:$0xff]  ;;  %v603_v24 = vpack.c.bf16 %v284_v16, %v280_v15  ;;  %v466_v53 = vsub.s32 (!%p572_p7), 2, %v457_v48 }
  0x29   : > { %626 = vmatprep.subr.bf16.mxu1 %v625_v58  ;;  %v286_v19 = vld [vmem:[%s744_s25 + $0x1b0] sm:$0xff]  ;;  %v293_v21 = vld [vmem:[%s744_s25 + $0x1e8] sm:$0xff]  ;;  %v295_v23 = vld [vmem:[%s744_s25 + $0x1f8] sm:$0xff]  ;;  %v470_v54 = vsub.s32 (!%p572_p7), 3, %v457_v48 }
  0x2a   : > { %v635_v25 = vpack.c.bf16 %v286_v19, %v282_v17  ;;  %v605_v26 = vpack.c.bf16 %v293_v21, %v289_v20  ;;  %v288_v27 = vld [vmem:[%s744_s25 + $0x1c0] sm:$0xff]  ;;  %v637_v29 = vpack.c.bf16 %v295_v23, %v291_v22  ;;  %v290_v30 = vld [vmem:[%s744_s25 + $0x1d0] sm:$0xff]  ;;  %v228_v37 = vld [vmem:[#allocation2 + $0x8] sm:$0xff] }
  0x2b   : > { %596 = vmatpush1.bf16.msra.mxu0 %v595_v0  ;;  %v292_v28 = vld [vmem:[%s744_s25 + $0x1e0] sm:$0xff]  ;;  %v294_v31 = vld [vmem:[%s744_s25 + $0x1f0] sm:$0xff]  ;;  %v230_v39 = vld [vmem:[#allocation2 + $0x18] sm:$0xff] }
  0x2c   : > { %628 = vmatpush1.bf16.msra.mxu1 %v627_v1  ;;  %598 = vmatprep.subr.bf16.mxu0 %v597_v2  ;;  %v607_v32 = vpack.c.bf16 %v292_v28, %v288_v27  ;;  %v639_v33 = vpack.c.bf16 %v294_v31, %v290_v30  ;;  %v231_v34 = vld [vmem:[%s739_s21] sm:$0xff]  ;;  %v229_v36 = vld [vmem:[#allocation2 + $0x10] sm:$0xff] }
  0x2d   : > { %630 = vmatprep.subr.bf16.mxu1 %v629_v6  ;;  %v227_v35 = vld [vmem:[#allocation2] sm:$0xff] }
  0x2e   : > { %v454_v49 = vld [vmem:[%s839_s2] sm:$0xf] (!%p572_p7) }
  0x2f   : > { %600 = vmatpush1.bf16.msra.mxu0 %v599_v12  ;;  %v459_v58 = vrot.slane (!%p572_p7), %v454_v49, %v458_v51  ;;  %v463_v59 = vrot.slane (!%p572_p7), %v454_v49, %v462_v52  ;;  %v467_v60 = vrot.slane (!%p572_p7), %v454_v49, %v466_v53  ;;  %v471_v61 = vrot.slane (!%p572_p7), %v454_v49, %v470_v54 }
  0x30   : > { %632 = vmatpush1.bf16.msra.mxu1 %v631_v13  ;;  %602 = vmatprep.subr.bf16.mxu0 %v601_v14 }
  0x31   : > { %634 = vmatprep.subr.bf16.mxu1 %v633_v18 }
  0x33   : > { %604 = vmatpush1.bf16.msra.mxu0 %v603_v24 }
  0x34   : > { %636 = vmatpush1.bf16.msra.mxu1 %v635_v25  ;;  %606 = vmatprep.subr.bf16.mxu0 %v605_v26 }
  0x35   : > { %638 = vmatprep.subr.bf16.mxu1 %v637_v29 }
  0x37   : > { %608 = vmatpush1.bf16.msra.mxu0 %v607_v32 }
  0x38   : > { %640 = vmatpush1.bf16.msra.mxu1 %v639_v33 }
  0x3a   : > { %361 = vmatmul.mubr.f32.vlgmr.msra.gmra.mrb[0].mxu0 %v231_v34 }
  0x3b   : > { %432 = vmatmul.mubr.f32.vlgmr.msra.gmra.mrb[0].mxu1 %v231_v34 }
 0x10c   : > { %449 = sbr.rel (%p572_p7) target bundleno = 285 (0x11d), region = 40 }
 0x10d   : > { %v362_v38 = vpop.f32.mrb[0].mxu0 }
 0x10e   : > { %v438_v40 = vadd.f32 %v362_v38, %v227_v35  ;;  %v433_v41 = vpop.f32.mrb[0].mxu1  ;;  %v364_v42 = vpop.f32.mrb[1].mxu0 }
 0x10f   : > { %v440_v43 = vadd.f32 %v433_v41, %v229_v36  ;;  %v439_v44 = vadd.f32 %v364_v42, %v228_v37  ;;  %v435_v45 = vpop.f32.mrb[1].mxu1 }
 0x110   : > { %442 = vst [vmem:[#allocation2] sm:$0xff] %v438_v40  ;;  %v441_v46 = vadd.f32 %v435_v45, %v230_v39 }
 0x111   : > { %444 = vst [vmem:[#allocation2 + $0x10] sm:$0xff] %v440_v43  ;;  %443 = vst [vmem:[#allocation2 + $0x8] sm:$0xff] %v439_v44 }
 0x112   : > { %445 = vst [vmem:[#allocation2 + $0x18] sm:$0xff] %v441_v46 }
 0x117   : > { %v450_v50 = vld [vmem:[#allocation2] sm:$0xff] }
 0x118   : > { %v451_v55 = vld [vmem:[#allocation2 + $0x8] sm:$0xff]  ;;  %v452_v56 = vld [vmem:[#allocation2 + $0x10] sm:$0xff]  ;;  %v476_v62 = vadd.f32 %v459_v58, %v450_v50 }
 0x119   : > { %v453_v57 = vld [vmem:[#allocation2 + $0x18] sm:$0xff]  ;;  %v477_v63 = vadd.f32 %v463_v59, %v451_v55  ;;  %v478_v0 = vadd.f32 %v467_v60, %v452_v56 }
 0x11a   : > { %v479_v1 = vadd.f32 %v471_v61, %v453_v57  ;;  %480 = vst [vmem:[%s840_s3] sm:$0xff] %v476_v62 }
 0x11b   : > { %481 = vst [vmem:[%s840_s3 + $0x8] sm:$0xff] %v477_v63  ;;  %482 = vst [vmem:[%s840_s3 + $0x10] sm:$0xff] %v478_v0 }
 0x11c   : > { %483 = vst [vmem:[%s840_s3 + $0x18] sm:$0xff] %v479_v1 }
 0x11d PF: > { %s13_s14 = sadd.s32 1, %s689_s14   ;;  %s841_s12 = smov %s685_s13 }
 0x11e   : > { %p10_p8 = scmp.ge.s32.totalorder %s13_s14, 4   ;;  %s842_s13 = smov %s844_s15 }
 0x120   :  { %12 = sbr.rel (!%p10_p8) target bundleno = 2 (0x2), region = 73 }

// kernel: resnet18_forward.38
= control target key start
LH: loop header
LB: loop body
LE: loop exit
PB: predicated region body
PF: predicated region fallthrough
CT: control target
= control target key end

     0   :  { %s793_s15 = smov 0   ;;  %s795_s16 = smov 0   ;;  %s929_s0 = inlined_call_operand.vmem [shape: f32[8,4608], index: 0, kind: input, shape index: {}]   ;;  %s930_s1 = inlined_call_operand.vmem [shape: f32[4608,512], index: 1, kind: input, shape index: {}]   ;;  %s931_s2 = inlined_call_operand.vmem [shape: f32[1,512], index: 2, kind: input, shape index: {}]   ;;  %s932_s3 = inlined_call_operand.vmem [shape: f32[8,512], index: 3, kind: input, shape index: {}]   ;;  %s933_s4 = inlined_call_operand.vmem [shape: f32[8,512], index: 4, kind: output, shape index: {}]  }
   0x1   :  { %s797_s17 = smov 0  }
   0x2 LB: > { %s23_s18 = sadd.s32 1, %s760_s16  ;;  %p641_p0 = scmp.ge.s32.totalorder %s764_s17, 1  ;;  %s764_s17 = sphi %s797_s17, %s14_s17   ;;  %s760_s16 = sphi %s795_s16, %s935_s16   ;;  %s756_s15 = sphi %s793_s15, %s934_s15  }
   0x3   : > { %p24_p1 = scmp.ge.s32.totalorder %s23_s18, 36  ;;  %p201_p2 = scmp.lt.s32.totalorder %s764_s17, 37 }
   0x5   : > { %s937_s18 = smov (%p24_p1, %s23_s18), 0  ;;  %p202_p3 = pnand %p641_p0, %p201_p2 }
   0x6   : > { %p243_p4 = scmp.lt.s32.totalorder (!%p202_p3), %s756_s15, 35  ;;  %s643_s19 = sshll.u32 (!%p202_p3), %s756_s15, 4 }
   0x7   : > { %205 = sbr.rel (%p202_p3) target bundleno = 289 (0x121), region = 36  ;;  %p250_p5 = scmp.lt.s32.totalorder (!%p202_p3), %s643_s19, 575 }
   0x8   : > { %p646_p6 = scmp.ne.s32.totalorder (!%p202_p3), %s756_s15, 0 }
   0xe   : > { %s244_s20 = scalar_select %p243_p4, %s756_s15, 35 }
   0xf   : > { %s939_s19 = smov (!%p250_p5, %s643_s19), 575  ;;  %269 = sbr.rel (%p646_p6) target bundleno = 22 (0x16), region = 40 }
  0x10   : > { %s642_s21 = sshll.u32 %s244_s20, 3  ;;  %s651_s25 = sshll.u32 %s939_s19, 5  ;;  %v766_v0 = vmov (!%p646_p6), 0.0  }
  0x11   : > { %s819_s24 = scalar_lea.vmem %s929_s0, %s642_s21  ;;  %s824_s28 = scalar_lea.vmem %s930_s1, %s651_s25  ;;  %270 = vst [vmem:[#allocation2] sm:$0xff] (!%p646_p6), %v766_v0  ;;  %271 = vst [vmem:[#allocation2 + $0x8] sm:$0xff] (!%p646_p6), %v766_v0 }
  0x12   : > { %272 = vst [vmem:[#allocation2 + $0x10] sm:$0xff] (!%p646_p6), %v766_v0  ;;  %273 = vst [vmem:[#allocation2 + $0x18] sm:$0xff] (!%p646_p6), %v766_v0 }
  0x16 PF: > { %v280_v1 = vld [vmem:[%s824_s28 + $0x8] sm:$0xff]  ;;  %v282_v3 = vld [vmem:[%s824_s28 + $0x18] sm:$0xff]  ;;  %v279_v6 = vld [vmem:[%s824_s28] sm:$0xff]  ;;  %v767_v8 = vmov 0.0   ;;  %p647_p7 = scmp.ne.s32.totalorder %s756_s15, 35 }
  0x17   : > { %v284_v2 = vld [vmem:[%s824_s28 + $0x28] sm:$0xff]  ;;  %v286_v5 = vld [vmem:[%s824_s28 + $0x38] sm:$0xff]  ;;  %v283_v7 = vld [vmem:[%s824_s28 + $0x20] sm:$0xff]  ;;  %407 = vmatprep.mubr.f32.mxu0 %v767_v8  ;;  %478 = vmatprep.mubr.f32.mxu1 %v767_v8 }
  0x18   : > { %v652_v4 = vpack.c.bf16 %v284_v2, %v280_v1  ;;  %v684_v9 = vpack.c.bf16 %v286_v5, %v282_v3  ;;  %v654_v10 = vpack.c.bf16 %v283_v7, %v279_v6  ;;  %v281_v11 = vld [vmem:[%s824_s28 + $0x10] sm:$0xff]  ;;  %v288_v13 = vld [vmem:[%s824_s28 + $0x48] sm:$0xff]  ;;  %v290_v16 = vld [vmem:[%s824_s28 + $0x58] sm:$0xff] }
  0x19   : > { %v285_v12 = vld [vmem:[%s824_s28 + $0x30] sm:$0xff]  ;;  %v292_v15 = vld [vmem:[%s824_s28 + $0x68] sm:$0xff]  ;;  %v294_v17 = vld [vmem:[%s824_s28 + $0x78] sm:$0xff] }
  0x1a   : > { %653 = vmatprep.subr.bf16.mxu0 %v652_v4  ;;  %v686_v14 = vpack.c.bf16 %v285_v12, %v281_v11  ;;  %685 = vmatprep.subr.bf16.mxu1 %v684_v9  ;;  %v656_v18 = vpack.c.bf16 %v292_v15, %v288_v13  ;;  %v688_v19 = vpack.c.bf16 %v294_v17, %v290_v16  ;;  %v287_v20 = vld [vmem:[%s824_s28 + $0x40] sm:$0xff]  ;;  %v289_v22 = vld [vmem:[%s824_s28 + $0x50] sm:$0xff]  ;;  %v296_v25 = vld [vmem:[%s824_s28 + $0x88] sm:$0xff] }
  0x1b   : > { %655 = vmatpush1.bf16.msra.mxu0 %v654_v10  ;;  %v291_v21 = vld [vmem:[%s824_s28 + $0x60] sm:$0xff]  ;;  %v293_v24 = vld [vmem:[%s824_s28 + $0x70] sm:$0xff]  ;;  %v300_v26 = vld [vmem:[%s824_s28 + $0xa8] sm:$0xff] }
  0x1c   : > { %687 = vmatpush1.bf16.msra.mxu1 %v686_v14  ;;  %v658_v23 = vpack.c.bf16 %v291_v21, %v287_v20  ;;  %657 = vmatprep.subr.bf16.mxu0 %v656_v18  ;;  %v690_v27 = vpack.c.bf16 %v293_v24, %v289_v22  ;;  %v660_v28 = vpack.c.bf16 %v300_v26, %v296_v25  ;;  %v298_v29 = vld [vmem:[%s824_s28 + $0x98] sm:$0xff]  ;;  %v295_v31 = vld [vmem:[%s824_s28 + $0x80] sm:$0xff]  ;;  %v297_v34 = vld [vmem:[%s824_s28 + $0x90] sm:$0xff] }
  0x1d   : > { %689 = vmatprep.subr.bf16.mxu1 %v688_v19  ;;  %v302_v30 = vld [vmem:[%s824_s28 + $0xb8] sm:$0xff]  ;;  %v299_v33 = vld [vmem:[%s824_s28 + $0xa0] sm:$0xff]  ;;  %v301_v35 = vld [vmem:[%s824_s28 + $0xb0] sm:$0xff] }
  0x1e   : > { %v692_v32 = vpack.c.bf16 %v302_v30, %v298_v29  ;;  %v662_v36 = vpack.c.bf16 %v299_v33, %v295_v31  ;;  %v304_v37 = vld [vmem:[%s824_s28 + $0xc8] sm:$0xff]  ;;  %v306_v39 = vld [vmem:[%s824_s28 + $0xd8] sm:$0xff]  ;;  %v694_v40 = vpack.c.bf16 %v301_v35, %v297_v34  ;;  %v303_v43 = vld [vmem:[%s824_s28 + $0xc0] sm:$0xff] }
  0x1f   : > { %659 = vmatpush1.bf16.msra.mxu0 %v658_v23  ;;  %v308_v38 = vld [vmem:[%s824_s28 + $0xe8] sm:$0xff]  ;;  %v310_v42 = vld [vmem:[%s824_s28 + $0xf8] sm:$0xff]  ;;  %v307_v44 = vld [vmem:[%s824_s28 + $0xe0] sm:$0xff] }
  0x20   : > { %691 = vmatpush1.bf16.msra.mxu1 %v690_v27  ;;  %661 = vmatprep.subr.bf16.mxu0 %v660_v28  ;;  %v664_v41 = vpack.c.bf16 %v308_v38, %v304_v37  ;;  %v696_v45 = vpack.c.bf16 %v310_v42, %v306_v39  ;;  %v305_v46 = vld [vmem:[%s824_s28 + $0xd0] sm:$0xff]  ;;  %v312_v48 = vld [vmem:[%s824_s28 + $0x108] sm:$0xff]  ;;  %v314_v50 = vld [vmem:[%s824_s28 + $0x118] sm:$0xff]  ;;  %v666_v52 = vpack.c.bf16 %v307_v44, %v303_v43 }
  0x21   : > { %693 = vmatprep.subr.bf16.mxu1 %v692_v32  ;;  %v309_v47 = vld [vmem:[%s824_s28 + $0xf0] sm:$0xff]  ;;  %v316_v49 = vld [vmem:[%s824_s28 + $0x128] sm:$0xff]  ;;  %v318_v51 = vld [vmem:[%s824_s28 + $0x138] sm:$0xff] }
  0x22   : > { %v698_v53 = vpack.c.bf16 %v309_v47, %v305_v46  ;;  %v668_v54 = vpack.c.bf16 %v316_v49, %v312_v48  ;;  %v311_v55 = vld [vmem:[%s824_s28 + $0x100] sm:$0xff]  ;;  %v313_v57 = vld [vmem:[%s824_s28 + $0x110] sm:$0xff]  ;;  %v700_v58 = vpack.c.bf16 %v318_v51, %v314_v50  ;;  %v320_v60 = vld [vmem:[%s824_s28 + $0x148] sm:$0xff]  ;;  %v503_v47 = vlaneseq (!%p647_p7) }
  0x23   : > { %663 = vmatpush1.bf16.msra.mxu0 %v662_v36  ;;  %v315_v56 = vld [vmem:[%s824_s28 + $0x120] sm:$0xff]  ;;  %v317_v59 = vld [vmem:[%s824_s28 + $0x130] sm:$0xff]  ;;  %v324_v61 = vld [vmem:[%s824_s28 + $0x168] sm:$0xff] }
  0x24   : > { %695 = vmatpush1.bf16.msra.mxu1 %v694_v40  ;;  %665 = vmatprep.subr.bf16.mxu0 %v664_v41  ;;  %v322_v62 = vld [vmem:[%s824_s28 + $0x158] sm:$0xff]  ;;  %v670_v0 = vpack.c.bf16 %v315_v56, %v311_v55  ;;  %v702_v1 = vpack.c.bf16 %v317_v59, %v313_v57  ;;  %v672_v2 = vpack.c.bf16 %v324_v61, %v320_v60  ;;  %v319_v3 = vld [vmem:[%s824_s28 + $0x140] sm:$0xff]  ;;  %v321_v5 = vld [vmem:[%s824_s28 + $0x150] sm:$0xff]  ;;  %v504_v48 = vshrl.u32 (!%p647_p7), %v503_v47, 7 }
  0x25   : > { %697 = vmatprep.subr.bf16.mxu1 %v696_v45  ;;  %v326_v63 = vld [vmem:[%s824_s28 + $0x178] sm:$0xff]  ;;  %v323_v4 = vld [vmem:[%s824_s28 + $0x160] sm:$0xff]  ;;  %v325_v7 = vld [vmem:[%s824_s28 + $0x170] sm:$0xff] }
  0x26   : > { %v704_v6 = vpack.c.bf16 %v326_v63, %v322_v62  ;;  %v328_v8 = vld [vmem:[%s824_s28 + $0x188] sm:$0xff]  ;;  %v330_v10 = vld [vmem:[%s824_s28 + $0x198] sm:$0xff]  ;;  %v674_v12 = vpack.c.bf16 %v323_v4, %v319_v3  ;;  %v706_v13 = vpack.c.bf16 %v325_v7, %v321_v5  ;;  %v327_v15 = vld [vmem:[%s824_s28 + $0x180] sm:$0xff]  ;;  %v505_v51 = vsub.s32 (!%p647_p7), 0, %v504_v48 }
  0x27   : > { %667 = vmatpush1.bf16.msra.mxu0 %v666_v52  ;;  %v332_v9 = vld [vmem:[%s824_s28 + $0x1a8] sm:$0xff]  ;;  %v334_v11 = vld [vmem:[%s824_s28 + $0x1b8] sm:$0xff]  ;;  %v331_v16 = vld [vmem:[%s824_s28 + $0x1a0] sm:$0xff]  ;;  %v509_v52 = vsub.s32 (!%p647_p7), 1, %v504_v48 }
  0x28   : > { %699 = vmatpush1.bf16.msra.mxu1 %v698_v53  ;;  %669 = vmatprep.subr.bf16.mxu0 %v668_v54  ;;  %v676_v14 = vpack.c.bf16 %v332_v9, %v328_v8  ;;  %v329_v17 = vld [vmem:[%s824_s28 + $0x190] sm:$0xff]  ;;  %v708_v18 = vpack.c.bf16 %v334_v11, %v330_v10  ;;  %v336_v20 = vld [vmem:[%s824_s28 + $0x1c8] sm:$0xff]  ;;  %v338_v22 = vld [vmem:[%s824_s28 + $0x1d8] sm:$0xff]  ;;  %v678_v24 = vpack.c.bf16 %v331_v16, %v327_v15  ;;  %v513_v53 = vsub.s32 (!%p647_p7), 2, %v504_v48 }
  0x29   : > { %701 = vmatprep.subr.bf16.mxu1 %v700_v58  ;;  %v333_v19 = vld [vmem:[%s824_s28 + $0x1b0] sm:$0xff]  ;;  %v340_v21 = vld [vmem:[%s824_s28 + $0x1e8] sm:$0xff]  ;;  %v342_v23 = vld [vmem:[%s824_s28 + $0x1f8] sm:$0xff]  ;;  %v517_v54 = vsub.s32 (!%p647_p7), 3, %v504_v48 }
  0x2a   : > { %v710_v25 = vpack.c.bf16 %v333_v19, %v329_v17  ;;  %v680_v26 = vpack.c.bf16 %v340_v21, %v336_v20  ;;  %v335_v27 = vld [vmem:[%s824_s28 + $0x1c0] sm:$0xff]  ;;  %v712_v29 = vpack.c.bf16 %v342_v23, %v338_v22  ;;  %v337_v30 = vld [vmem:[%s824_s28 + $0x1d0] sm:$0xff]  ;;  %v275_v37 = vld [vmem:[#allocation2 + $0x8] sm:$0xff] }
  0x2b   : > { %671 = vmatpush1.bf16.msra.mxu0 %v670_v0  ;;  %v339_v28 = vld [vmem:[%s824_s28 + $0x1e0] sm:$0xff]  ;;  %v341_v31 = vld [vmem:[%s824_s28 + $0x1f0] sm:$0xff]  ;;  %v277_v39 = vld [vmem:[#allocation2 + $0x18] sm:$0xff] }
  0x2c   : > { %703 = vmatpush1.bf16.msra.mxu1 %v702_v1  ;;  %673 = vmatprep.subr.bf16.mxu0 %v672_v2  ;;  %v682_v32 = vpack.c.bf16 %v339_v28, %v335_v27  ;;  %v714_v33 = vpack.c.bf16 %v341_v31, %v337_v30  ;;  %v278_v34 = vld [vmem:[%s819_s24] sm:$0xff]  ;;  %v276_v36 = vld [vmem:[#allocation2 + $0x10] sm:$0xff]  ;;  %v528_v63 = vld [vmem:[%s932_s3 + $0x8] sm:$0xff] (!%p647_p7) }
  0x2d   : > { %705 = vmatprep.subr.bf16.mxu1 %v704_v6  ;;  %v274_v35 = vld [vmem:[#allocation2] sm:$0xff]  ;;  %v529_v0 = vld [vmem:[%s932_s3 + $0x10] sm:$0xff] (!%p647_p7)  ;;  %v530_v1 = vld [vmem:[%s932_s3 + $0x18] sm:$0xff] (!%p647_p7) }
  0x2e   : > { %v501_v49 = vld [vmem:[%s931_s2] sm:$0xf] (!%p647_p7) }
  0x2f   : > { %675 = vmatpush1.bf16.msra.mxu0 %v674_v12  ;;  %v506_v58 = vrot.slane (!%p647_p7), %v501_v49, %v505_v51  ;;  %v527_v59 = vld [vmem:[%s932_s3] sm:$0xff] (!%p647_p7)  ;;  %v510_v60 = vrot.slane (!%p647_p7), %v501_v49, %v509_v52  ;;  %v514_v61 = vrot.slane (!%p647_p7), %v501_v49, %v513_v53  ;;  %v518_v62 = vrot.slane (!%p647_p7), %v501_v49, %v517_v54 }
  0x30   : > { %707 = vmatpush1.bf16.msra.mxu1 %v706_v13  ;;  %677 = vmatprep.subr.bf16.mxu0 %v676_v14 }
  0x31   : > { %709 = vmatprep.subr.bf16.mxu1 %v708_v18 }
  0x33   : > { %679 = vmatpush1.bf16.msra.mxu0 %v678_v24 }
  0x34   : > { %711 = vmatpush1.bf16.msra.mxu1 %v710_v25  ;;  %681 = vmatprep.subr.bf16.mxu0 %v680_v26 }
  0x35   : > { %713 = vmatprep.subr.bf16.mxu1 %v712_v29 }
  0x37   : > { %683 = vmatpush1.bf16.msra.mxu0 %v682_v32 }
  0x38   : > { %715 = vmatpush1.bf16.msra.mxu1 %v714_v33 }
  0x3a   : > { %408 = vmatmul.mubr.f32.vlgmr.msra.gmra.mrb[0].mxu0 %v278_v34 }
  0x3b   : > { %479 = vmatmul.mubr.f32.vlgmr.msra.gmra.mrb[0].mxu1 %v278_v34 }
 0x10c   : > { %496 = sbr.rel (%p647_p7) target bundleno = 289 (0x121), region = 44 }
 0x10d   : > { %v409_v38 = vpop.f32.mrb[0].mxu0 }
 0x10e   : > { %v485_v40 = vadd.f32 %v409_v38, %v274_v35  ;;  %v480_v41 = vpop.f32.mrb[0].mxu1  ;;  %v411_v42 = vpop.f32.mrb[1].mxu0 }
 0x10f   : > { %v487_v43 = vadd.f32 %v480_v41, %v276_v36  ;;  %v486_v44 = vadd.f32 %v411_v42, %v275_v37  ;;  %v482_v45 = vpop.f32.mrb[1].mxu1 }
 0x110   : > { %489 = vst [vmem:[#allocation2] sm:$0xff] %v485_v40  ;;  %v488_v46 = vadd.f32 %v482_v45, %v277_v39 }
 0x111   : > { %491 = vst [vmem:[#allocation2 + $0x10] sm:$0xff] %v487_v43  ;;  %490 = vst [vmem:[#allocation2 + $0x8] sm:$0xff] %v486_v44 }
 0x112   : > { %492 = vst [vmem:[#allocation2 + $0x18] sm:$0xff] %v488_v46 }
 0x117   : > { %v497_v50 = vld [vmem:[#allocation2] sm:$0xff] }
 0x118   : > { %v498_v55 = vld [vmem:[#allocation2 + $0x8] sm:$0xff]  ;;  %v499_v56 = vld [vmem:[#allocation2 + $0x10] sm:$0xff]  ;;  %v523_v2 = vadd.f32 %v506_v58, %v497_v50 }
 0x119   : > { %v500_v57 = vld [vmem:[#allocation2 + $0x18] sm:$0xff]  ;;  %v524_v3 = vadd.f32 %v510_v60, %v498_v55  ;;  %v525_v4 = vadd.f32 %v514_v61, %v499_v56 }
 0x11a   : > { %v526_v5 = vadd.f32 %v518_v62, %v500_v57  ;;  %v531_v6 = vadd.f32 %v527_v59, %v523_v2 }
 0x11b   : > { %v532_v7 = vadd.f32 %v528_v63, %v524_v3  ;;  %v533_v8 = vadd.f32 %v529_v0, %v525_v4 }
 0x11c   : > { %v534_v9 = vadd.f32 %v530_v1, %v526_v5  ;;  %v535_v10 = vmax.f32 %v531_v6, 0.0 }
 0x11d   : > { %v536_v11 = vmax.f32 %v532_v7, 0.0  ;;  %v537_v12 = vmax.f32 %v533_v8, 0.0 }
 0x11e   : > { %v538_v13 = vmax.f32 %v534_v9, 0.0  ;;  %539 = vst [vmem:[%s933_s4] sm:$0xff] %v535_v10 }
 0x11f   : > { %540 = vst [vmem:[%s933_s4 + $0x8] sm:$0xff] %v536_v11  ;;  %541 = vst [vmem:[%s933_s4 + $0x10] sm:$0xff] %v537_v12 }
 0x120   : > { %542 = vst [vmem:[%s933_s4 + $0x18] sm:$0xff] %v538_v13 }
 0x121 PF: > { %s14_s17 = sadd.s32 1, %s764_s17   ;;  %s934_s15 = smov %s760_s16 }
 0x122   : > { %p11_p8 = scmp.ge.s32.totalorder %s14_s17, 38   ;;  %s935_s16 = smov %s937_s18 }
 0x124   :  { %13 = sbr.rel (!%p11_p8) target bundleno = 2 (0x2), region = 80 }

// kernel: resnet18_forward.39
= control target key start
LH: loop header
LB: loop body
LE: loop exit
PB: predicated region body
PF: predicated region fallthrough
CT: control target
= control target key end

     0   :  { %s717_s12 = smov 0   ;;  %s719_s13 = smov 0   ;;  %s841_s0 = inlined_call_operand.vmem [shape: f32[8,4608], index: 0, kind: input, shape index: {}]   ;;  %s842_s1 = inlined_call_operand.vmem [shape: f32[4608,512], index: 1, kind: input, shape index: {}]   ;;  %s843_s2 = inlined_call_operand.vmem [shape: f32[1,512], index: 2, kind: input, shape index: {}]   ;;  %s844_s3 = inlined_call_operand.vmem [shape: f32[8,512], index: 3, kind: output, shape index: {}]  }
   0x1   :  { %s721_s14 = smov 0  }
   0x2 LB: > { %s22_s15 = sadd.s32 1, %s689_s13  ;;  %p570_p0 = scmp.ge.s32.totalorder %s693_s14, 1  ;;  %s693_s14 = sphi %s721_s14, %s13_s14   ;;  %s689_s13 = sphi %s719_s13, %s846_s13   ;;  %s685_s12 = sphi %s717_s12, %s845_s12  }
   0x3   : > { %p23_p1 = scmp.ge.s32.totalorder %s22_s15, 36  ;;  %p166_p2 = scmp.lt.s32.totalorder %s693_s14, 37 }
   0x5   : > { %s848_s15 = smov (%p23_p1, %s22_s15), 0  ;;  %p167_p3 = pnand %p570_p0, %p166_p2 }
   0x6   : > { %p201_p4 = scmp.lt.s32.totalorder (!%p167_p3), %s685_s12, 35  ;;  %s572_s16 = sshll.u32 (!%p167_p3), %s685_s12, 4 }
   0x7   : > { %170 = sbr.rel (%p167_p3) target bundleno = 287 (0x11f), region = 32  ;;  %p208_p5 = scmp.lt.s32.totalorder (!%p167_p3), %s572_s16, 575 }
   0x8   : > { %p575_p6 = scmp.ne.s32.totalorder (!%p167_p3), %s685_s12, 0 }
   0xe   : > { %s202_s17 = scalar_select %p201_p4, %s685_s12, 35 }
   0xf   : > { %s850_s16 = smov (!%p208_p5, %s572_s16), 575  ;;  %222 = sbr.rel (%p575_p6) target bundleno = 22 (0x16), region = 36 }
  0x10   : > { %s571_s18 = sshll.u32 %s202_s17, 3  ;;  %s580_s22 = sshll.u32 %s850_s16, 5  ;;  %v695_v0 = vmov (!%p575_p6), 0.0  }
  0x11   : > { %s743_s21 = scalar_lea.vmem %s841_s0, %s571_s18  ;;  %s748_s25 = scalar_lea.vmem %s842_s1, %s580_s22  ;;  %223 = vst [vmem:[#allocation2] sm:$0xff] (!%p575_p6), %v695_v0  ;;  %224 = vst [vmem:[#allocation2 + $0x8] sm:$0xff] (!%p575_p6), %v695_v0 }
  0x12   : > { %225 = vst [vmem:[#allocation2 + $0x10] sm:$0xff] (!%p575_p6), %v695_v0  ;;  %226 = vst [vmem:[#allocation2 + $0x18] sm:$0xff] (!%p575_p6), %v695_v0 }
  0x16 PF: > { %v233_v1 = vld [vmem:[%s748_s25 + $0x8] sm:$0xff]  ;;  %v235_v3 = vld [vmem:[%s748_s25 + $0x18] sm:$0xff]  ;;  %v232_v6 = vld [vmem:[%s748_s25] sm:$0xff]  ;;  %v696_v8 = vmov 0.0   ;;  %p576_p7 = scmp.ne.s32.totalorder %s685_s12, 35 }
  0x17   : > { %v237_v2 = vld [vmem:[%s748_s25 + $0x28] sm:$0xff]  ;;  %v239_v5 = vld [vmem:[%s748_s25 + $0x38] sm:$0xff]  ;;  %v236_v7 = vld [vmem:[%s748_s25 + $0x20] sm:$0xff]  ;;  %360 = vmatprep.mubr.f32.mxu0 %v696_v8  ;;  %431 = vmatprep.mubr.f32.mxu1 %v696_v8 }
  0x18   : > { %v581_v4 = vpack.c.bf16 %v237_v2, %v233_v1  ;;  %v613_v9 = vpack.c.bf16 %v239_v5, %v235_v3  ;;  %v583_v10 = vpack.c.bf16 %v236_v7, %v232_v6  ;;  %v234_v11 = vld [vmem:[%s748_s25 + $0x10] sm:$0xff]  ;;  %v241_v13 = vld [vmem:[%s748_s25 + $0x48] sm:$0xff]  ;;  %v243_v16 = vld [vmem:[%s748_s25 + $0x58] sm:$0xff] }
  0x19   : > { %v238_v12 = vld [vmem:[%s748_s25 + $0x30] sm:$0xff]  ;;  %v245_v15 = vld [vmem:[%s748_s25 + $0x68] sm:$0xff]  ;;  %v247_v17 = vld [vmem:[%s748_s25 + $0x78] sm:$0xff] }
  0x1a   : > { %582 = vmatprep.subr.bf16.mxu0 %v581_v4  ;;  %v615_v14 = vpack.c.bf16 %v238_v12, %v234_v11  ;;  %614 = vmatprep.subr.bf16.mxu1 %v613_v9  ;;  %v585_v18 = vpack.c.bf16 %v245_v15, %v241_v13  ;;  %v617_v19 = vpack.c.bf16 %v247_v17, %v243_v16  ;;  %v240_v20 = vld [vmem:[%s748_s25 + $0x40] sm:$0xff]  ;;  %v242_v22 = vld [vmem:[%s748_s25 + $0x50] sm:$0xff]  ;;  %v249_v25 = vld [vmem:[%s748_s25 + $0x88] sm:$0xff] }
  0x1b   : > { %584 = vmatpush1.bf16.msra.mxu0 %v583_v10  ;;  %v244_v21 = vld [vmem:[%s748_s25 + $0x60] sm:$0xff]  ;;  %v246_v24 = vld [vmem:[%s748_s25 + $0x70] sm:$0xff]  ;;  %v253_v26 = vld [vmem:[%s748_s25 + $0xa8] sm:$0xff] }
  0x1c   : > { %616 = vmatpush1.bf16.msra.mxu1 %v615_v14  ;;  %v587_v23 = vpack.c.bf16 %v244_v21, %v240_v20  ;;  %586 = vmatprep.subr.bf16.mxu0 %v585_v18  ;;  %v619_v27 = vpack.c.bf16 %v246_v24, %v242_v22  ;;  %v589_v28 = vpack.c.bf16 %v253_v26, %v249_v25  ;;  %v251_v29 = vld [vmem:[%s748_s25 + $0x98] sm:$0xff]  ;;  %v248_v31 = vld [vmem:[%s748_s25 + $0x80] sm:$0xff]  ;;  %v250_v34 = vld [vmem:[%s748_s25 + $0x90] sm:$0xff] }
  0x1d   : > { %618 = vmatprep.subr.bf16.mxu1 %v617_v19  ;;  %v255_v30 = vld [vmem:[%s748_s25 + $0xb8] sm:$0xff]  ;;  %v252_v33 = vld [vmem:[%s748_s25 + $0xa0] sm:$0xff]  ;;  %v254_v35 = vld [vmem:[%s748_s25 + $0xb0] sm:$0xff] }
  0x1e   : > { %v621_v32 = vpack.c.bf16 %v255_v30, %v251_v29  ;;  %v591_v36 = vpack.c.bf16 %v252_v33, %v248_v31  ;;  %v257_v37 = vld [vmem:[%s748_s25 + $0xc8] sm:$0xff]  ;;  %v259_v39 = vld [vmem:[%s748_s25 + $0xd8] sm:$0xff]  ;;  %v623_v40 = vpack.c.bf16 %v254_v35, %v250_v34  ;;  %v256_v43 = vld [vmem:[%s748_s25 + $0xc0] sm:$0xff] }
  0x1f   : > { %588 = vmatpush1.bf16.msra.mxu0 %v587_v23  ;;  %v261_v38 = vld [vmem:[%s748_s25 + $0xe8] sm:$0xff]  ;;  %v263_v42 = vld [vmem:[%s748_s25 + $0xf8] sm:$0xff]  ;;  %v260_v44 = vld [vmem:[%s748_s25 + $0xe0] sm:$0xff] }
  0x20   : > { %620 = vmatpush1.bf16.msra.mxu1 %v619_v27  ;;  %590 = vmatprep.subr.bf16.mxu0 %v589_v28  ;;  %v593_v41 = vpack.c.bf16 %v261_v38, %v257_v37  ;;  %v625_v45 = vpack.c.bf16 %v263_v42, %v259_v39  ;;  %v258_v46 = vld [vmem:[%s748_s25 + $0xd0] sm:$0xff]  ;;  %v265_v48 = vld [vmem:[%s748_s25 + $0x108] sm:$0xff]  ;;  %v267_v50 = vld [vmem:[%s748_s25 + $0x118] sm:$0xff]  ;;  %v595_v52 = vpack.c.bf16 %v260_v44, %v256_v43 }
  0x21   : > { %622 = vmatprep.subr.bf16.mxu1 %v621_v32  ;;  %v262_v47 = vld [vmem:[%s748_s25 + $0xf0] sm:$0xff]  ;;  %v269_v49 = vld [vmem:[%s748_s25 + $0x128] sm:$0xff]  ;;  %v271_v51 = vld [vmem:[%s748_s25 + $0x138] sm:$0xff] }
  0x22   : > { %v627_v53 = vpack.c.bf16 %v262_v47, %v258_v46  ;;  %v597_v54 = vpack.c.bf16 %v269_v49, %v265_v48  ;;  %v264_v55 = vld [vmem:[%s748_s25 + $0x100] sm:$0xff]  ;;  %v266_v57 = vld [vmem:[%s748_s25 + $0x110] sm:$0xff]  ;;  %v629_v58 = vpack.c.bf16 %v271_v51, %v267_v50  ;;  %v273_v60 = vld [vmem:[%s748_s25 + $0x148] sm:$0xff]  ;;  %v456_v47 = vlaneseq (!%p576_p7) }
  0x23   : > { %592 = vmatpush1.bf16.msra.mxu0 %v591_v36  ;;  %v268_v56 = vld [vmem:[%s748_s25 + $0x120] sm:$0xff]  ;;  %v270_v59 = vld [vmem:[%s748_s25 + $0x130] sm:$0xff]  ;;  %v277_v61 = vld [vmem:[%s748_s25 + $0x168] sm:$0xff] }
  0x24   : > { %624 = vmatpush1.bf16.msra.mxu1 %v623_v40  ;;  %594 = vmatprep.subr.bf16.mxu0 %v593_v41  ;;  %v275_v62 = vld [vmem:[%s748_s25 + $0x158] sm:$0xff]  ;;  %v599_v0 = vpack.c.bf16 %v268_v56, %v264_v55  ;;  %v631_v1 = vpack.c.bf16 %v270_v59, %v266_v57  ;;  %v601_v2 = vpack.c.bf16 %v277_v61, %v273_v60  ;;  %v272_v3 = vld [vmem:[%s748_s25 + $0x140] sm:$0xff]  ;;  %v274_v5 = vld [vmem:[%s748_s25 + $0x150] sm:$0xff]  ;;  %v457_v48 = vshrl.u32 (!%p576_p7), %v456_v47, 7 }
  0x25   : > { %626 = vmatprep.subr.bf16.mxu1 %v625_v45  ;;  %v279_v63 = vld [vmem:[%s748_s25 + $0x178] sm:$0xff]  ;;  %v276_v4 = vld [vmem:[%s748_s25 + $0x160] sm:$0xff]  ;;  %v278_v7 = vld [vmem:[%s748_s25 + $0x170] sm:$0xff] }
  0x26   : > { %v633_v6 = vpack.c.bf16 %v279_v63, %v275_v62  ;;  %v281_v8 = vld [vmem:[%s748_s25 + $0x188] sm:$0xff]  ;;  %v283_v10 = vld [vmem:[%s748_s25 + $0x198] sm:$0xff]  ;;  %v603_v12 = vpack.c.bf16 %v276_v4, %v272_v3  ;;  %v635_v13 = vpack.c.bf16 %v278_v7, %v274_v5  ;;  %v280_v15 = vld [vmem:[%s748_s25 + $0x180] sm:$0xff]  ;;  %v458_v51 = vsub.s32 (!%p576_p7), 0, %v457_v48 }
  0x27   : > { %596 = vmatpush1.bf16.msra.mxu0 %v595_v52  ;;  %v285_v9 = vld [vmem:[%s748_s25 + $0x1a8] sm:$0xff]  ;;  %v287_v11 = vld [vmem:[%s748_s25 + $0x1b8] sm:$0xff]  ;;  %v284_v16 = vld [vmem:[%s748_s25 + $0x1a0] sm:$0xff]  ;;  %v462_v52 = vsub.s32 (!%p576_p7), 1, %v457_v48 }
  0x28   : > { %628 = vmatpush1.bf16.msra.mxu1 %v627_v53  ;;  %598 = vmatprep.subr.bf16.mxu0 %v597_v54  ;;  %v605_v14 = vpack.c.bf16 %v285_v9, %v281_v8  ;;  %v282_v17 = vld [vmem:[%s748_s25 + $0x190] sm:$0xff]  ;;  %v637_v18 = vpack.c.bf16 %v287_v11, %v283_v10  ;;  %v289_v20 = vld [vmem:[%s748_s25 + $0x1c8] sm:$0xff]  ;;  %v291_v22 = vld [vmem:[%s748_s25 + $0x1d8] sm:$0xff]  ;;  %v607_v24 = vpack.c.bf16 %v284_v16, %v280_v15  ;;  %v466_v53 = vsub.s32 (!%p576_p7), 2, %v457_v48 }
  0x29   : > { %630 = vmatprep.subr.bf16.mxu1 %v629_v58  ;;  %v286_v19 = vld [vmem:[%s748_s25 + $0x1b0] sm:$0xff]  ;;  %v293_v21 = vld [vmem:[%s748_s25 + $0x1e8] sm:$0xff]  ;;  %v295_v23 = vld [vmem:[%s748_s25 + $0x1f8] sm:$0xff]  ;;  %v470_v54 = vsub.s32 (!%p576_p7), 3, %v457_v48 }
  0x2a   : > { %v639_v25 = vpack.c.bf16 %v286_v19, %v282_v17  ;;  %v609_v26 = vpack.c.bf16 %v293_v21, %v289_v20  ;;  %v288_v27 = vld [vmem:[%s748_s25 + $0x1c0] sm:$0xff]  ;;  %v641_v29 = vpack.c.bf16 %v295_v23, %v291_v22  ;;  %v290_v30 = vld [vmem:[%s748_s25 + $0x1d0] sm:$0xff]  ;;  %v228_v37 = vld [vmem:[#allocation2 + $0x8] sm:$0xff] }
  0x2b   : > { %600 = vmatpush1.bf16.msra.mxu0 %v599_v0  ;;  %v292_v28 = vld [vmem:[%s748_s25 + $0x1e0] sm:$0xff]  ;;  %v294_v31 = vld [vmem:[%s748_s25 + $0x1f0] sm:$0xff]  ;;  %v230_v39 = vld [vmem:[#allocation2 + $0x18] sm:$0xff] }
  0x2c   : > { %632 = vmatpush1.bf16.msra.mxu1 %v631_v1  ;;  %602 = vmatprep.subr.bf16.mxu0 %v601_v2  ;;  %v611_v32 = vpack.c.bf16 %v292_v28, %v288_v27  ;;  %v643_v33 = vpack.c.bf16 %v294_v31, %v290_v30  ;;  %v231_v34 = vld [vmem:[%s743_s21] sm:$0xff]  ;;  %v229_v36 = vld [vmem:[#allocation2 + $0x10] sm:$0xff] }
  0x2d   : > { %634 = vmatprep.subr.bf16.mxu1 %v633_v6  ;;  %v227_v35 = vld [vmem:[#allocation2] sm:$0xff] }
  0x2e   : > { %v454_v49 = vld [vmem:[%s843_s2] sm:$0xf] (!%p576_p7) }
  0x2f   : > { %604 = vmatpush1.bf16.msra.mxu0 %v603_v12  ;;  %v459_v58 = vrot.slane (!%p576_p7), %v454_v49, %v458_v51  ;;  %v463_v59 = vrot.slane (!%p576_p7), %v454_v49, %v462_v52  ;;  %v467_v60 = vrot.slane (!%p576_p7), %v454_v49, %v466_v53  ;;  %v471_v61 = vrot.slane (!%p576_p7), %v454_v49, %v470_v54 }
  0x30   : > { %636 = vmatpush1.bf16.msra.mxu1 %v635_v13  ;;  %606 = vmatprep.subr.bf16.mxu0 %v605_v14 }
  0x31   : > { %638 = vmatprep.subr.bf16.mxu1 %v637_v18 }
  0x33   : > { %608 = vmatpush1.bf16.msra.mxu0 %v607_v24 }
  0x34   : > { %640 = vmatpush1.bf16.msra.mxu1 %v639_v25  ;;  %610 = vmatprep.subr.bf16.mxu0 %v609_v26 }
  0x35   : > { %642 = vmatprep.subr.bf16.mxu1 %v641_v29 }
  0x37   : > { %612 = vmatpush1.bf16.msra.mxu0 %v611_v32 }
  0x38   : > { %644 = vmatpush1.bf16.msra.mxu1 %v643_v33 }
  0x3a   : > { %361 = vmatmul.mubr.f32.vlgmr.msra.gmra.mrb[0].mxu0 %v231_v34 }
  0x3b   : > { %432 = vmatmul.mubr.f32.vlgmr.msra.gmra.mrb[0].mxu1 %v231_v34 }
 0x10c   : > { %449 = sbr.rel (%p576_p7) target bundleno = 287 (0x11f), region = 40 }
 0x10d   : > { %v362_v38 = vpop.f32.mrb[0].mxu0 }
 0x10e   : > { %v438_v40 = vadd.f32 %v362_v38, %v227_v35  ;;  %v433_v41 = vpop.f32.mrb[0].mxu1  ;;  %v364_v42 = vpop.f32.mrb[1].mxu0 }
 0x10f   : > { %v440_v43 = vadd.f32 %v433_v41, %v229_v36  ;;  %v439_v44 = vadd.f32 %v364_v42, %v228_v37  ;;  %v435_v45 = vpop.f32.mrb[1].mxu1 }
 0x110   : > { %442 = vst [vmem:[#allocation2] sm:$0xff] %v438_v40  ;;  %v441_v46 = vadd.f32 %v435_v45, %v230_v39 }
 0x111   : > { %444 = vst [vmem:[#allocation2 + $0x10] sm:$0xff] %v440_v43  ;;  %443 = vst [vmem:[#allocation2 + $0x8] sm:$0xff] %v439_v44 }
 0x112   : > { %445 = vst [vmem:[#allocation2 + $0x18] sm:$0xff] %v441_v46 }
 0x117   : > { %v450_v50 = vld [vmem:[#allocation2] sm:$0xff] }
 0x118   : > { %v451_v55 = vld [vmem:[#allocation2 + $0x8] sm:$0xff]  ;;  %v452_v56 = vld [vmem:[#allocation2 + $0x10] sm:$0xff]  ;;  %v476_v62 = vadd.f32 %v459_v58, %v450_v50 }
 0x119   : > { %v453_v57 = vld [vmem:[#allocation2 + $0x18] sm:$0xff]  ;;  %v477_v63 = vadd.f32 %v463_v59, %v451_v55  ;;  %v478_v0 = vadd.f32 %v467_v60, %v452_v56 }
 0x11a   : > { %v479_v1 = vadd.f32 %v471_v61, %v453_v57  ;;  %v480_v2 = vmax.f32 %v476_v62, 0.0 }
 0x11b   : > { %v481_v3 = vmax.f32 %v477_v63, 0.0  ;;  %v482_v4 = vmax.f32 %v478_v0, 0.0 }
 0x11c   : > { %v483_v5 = vmax.f32 %v479_v1, 0.0  ;;  %484 = vst [vmem:[%s844_s3] sm:$0xff] %v480_v2 }
 0x11d   : > { %485 = vst [vmem:[%s844_s3 + $0x8] sm:$0xff] %v481_v3  ;;  %486 = vst [vmem:[%s844_s3 + $0x10] sm:$0xff] %v482_v4 }
 0x11e   : > { %487 = vst [vmem:[%s844_s3 + $0x18] sm:$0xff] %v483_v5 }
 0x11f PF: > { %s13_s14 = sadd.s32 1, %s693_s14   ;;  %s845_s12 = smov %s689_s13 }
 0x120   : > { %p10_p8 = scmp.ge.s32.totalorder %s13_s14, 38   ;;  %s846_s13 = smov %s848_s15 }
 0x122   :  { %12 = sbr.rel (!%p10_p8) target bundleno = 2 (0x2), region = 73 }

// kernel: resnet18_forward.41
= control target key start
LH: loop header
LB: loop body
LE: loop exit
PB: predicated region body
PF: predicated region fallthrough
CT: control target
= control target key end

     0   :  { %vm31_vm0 = vcmask 1043456   ;;  %s790_s0 = inlined_call_operand.vmem [shape: f32[2,4,512], index: 0, kind: input, shape index: {}]   ;;  %s791_s1 = inlined_call_operand.vmem [shape: f32[512,128], index: 1, kind: input, shape index: {}]   ;;  %s792_s2 = inlined_call_operand.vmem [shape: f32[1,128], index: 2, kind: input, shape index: {}]   ;;  %s793_s3 = inlined_call_operand.hbm [shape: f32[2,128], index: 3, kind: output, shape index: {}]  }
   0x1   :  { %v112_v0 = vld [vmem:[%s791_s1 + $0x80] sm:$0xff]  ;;  %v113_v1 = vld [vmem:[%s791_s1 + $0x88] sm:$0xff]  ;;  %v114_v11 = vld [vmem:[%s791_s1 + $0x90] sm:$0xff] }
   0x2   :  { %v96_v2 = vld [vmem:[%s791_s1] sm:$0xff]  ;;  %v423_v3 = vpack.c.bf16 %v113_v1, %v112_v0  ;;  %v97_v4 = vld [vmem:[%s791_s1 + $0x8] sm:$0xff]  ;;  %v115_v13 = vld [vmem:[%s791_s1 + $0x98] sm:$0xff] }
   0x3   :  { %v144_v5 = vld [vmem:[%s791_s1 + $0x180] sm:$0xff]  ;;  %v145_v6 = vld [vmem:[%s791_s1 + $0x188] sm:$0xff]  ;;  %v425_v7 = vpack.c.bf16 %v97_v4, %v96_v2  ;;  %v98_v14 = vld [vmem:[%s791_s1 + $0x10] sm:$0xff]  ;;  %v427_v16 = vpack.c.bf16 %v115_v13, %v114_v11 }
   0x4   :  { %v455_v8 = vpack.c.bf16 %v145_v6, %v144_v5  ;;  %v128_v9 = vld [vmem:[%s791_s1 + $0x100] sm:$0xff]  ;;  %v129_v10 = vld [vmem:[%s791_s1 + $0x108] sm:$0xff]  ;;  %424 = vmatprep.subr.bf16.mxu0 %v423_v3  ;;  %v99_v15 = vld [vmem:[%s791_s1 + $0x18] sm:$0xff] }
   0x5   :  { %v457_v12 = vpack.c.bf16 %v129_v10, %v128_v9  ;;  %426 = vmatpush3.bf16.msra.mxu0 %v425_v7  ;;  %v429_v17 = vpack.c.bf16 %v99_v15, %v98_v14  ;;  %v146_v18 = vld [vmem:[%s791_s1 + $0x190] sm:$0xff]  ;;  %v147_v19 = vld [vmem:[%s791_s1 + $0x198] sm:$0xff]  ;;  %v116_v23 = vld [vmem:[%s791_s1 + $0xa0] sm:$0xff] }
   0x6   :  { %456 = vmatprep.subr.bf16.mxu1 %v455_v8  ;;  %v130_v20 = vld [vmem:[%s791_s1 + $0x110] sm:$0xff]  ;;  %v459_v21 = vpack.c.bf16 %v147_v19, %v146_v18  ;;  %v131_v22 = vld [vmem:[%s791_s1 + $0x118] sm:$0xff]  ;;  %v117_v24 = vld [vmem:[%s791_s1 + $0xa8] sm:$0xff]  ;;  %428 = vmatprep.subr.bf16.mxu0 %v427_v16 }
   0x7   :  { %458 = vmatpush3.bf16.msra.mxu1 %v457_v12  ;;  %v461_v25 = vpack.c.bf16 %v131_v22, %v130_v20  ;;  %v431_v26 = vpack.c.bf16 %v117_v24, %v116_v23  ;;  %v100_v27 = vld [vmem:[%s791_s1 + $0x20] sm:$0xff]  ;;  %v101_v28 = vld [vmem:[%s791_s1 + $0x28] sm:$0xff]  ;;  %v118_v35 = vld [vmem:[%s791_s1 + $0xb0] sm:$0xff] }
   0x8   :  { %v148_v29 = vld [vmem:[%s791_s1 + $0x1a0] sm:$0xff]  ;;  %460 = vmatprep.subr.bf16.mxu1 %v459_v21  ;;  %v149_v30 = vld [vmem:[%s791_s1 + $0x1a8] sm:$0xff]  ;;  %v433_v33 = vpack.c.bf16 %v101_v28, %v100_v27  ;;  %v119_v36 = vld [vmem:[%s791_s1 + $0xb8] sm:$0xff] }
   0x9   :  { %v132_v31 = vld [vmem:[%s791_s1 + $0x120] sm:$0xff]  ;;  %v133_v32 = vld [vmem:[%s791_s1 + $0x128] sm:$0xff]  ;;  %430 = vmatpush3.bf16.msra.mxu0 %v429_v17  ;;  %v463_v34 = vpack.c.bf16 %v149_v30, %v148_v29  ;;  %v102_v37 = vld [vmem:[%s791_s1 + $0x30] sm:$0xff]  ;;  %v435_v39 = vpack.c.bf16 %v119_v36, %v118_v35 }
   0xa   :  { %432 = vmatprep.subr.bf16.mxu0 %v431_v26  ;;  %v465_v38 = vpack.c.bf16 %v133_v32, %v132_v31  ;;  %v103_v40 = vld [vmem:[%s791_s1 + $0x38] sm:$0xff]  ;;  %v150_v41 = vld [vmem:[%s791_s1 + $0x1b0] sm:$0xff]  ;;  %v120_v46 = vld [vmem:[%s791_s1 + $0xc0] sm:$0xff] }
   0xb   :  { %462 = vmatpush3.bf16.msra.mxu1 %v461_v25  ;;  %v151_v42 = vld [vmem:[%s791_s1 + $0x1b8] sm:$0xff]  ;;  %v134_v44 = vld [vmem:[%s791_s1 + $0x130] sm:$0xff]  ;;  %v121_v47 = vld [vmem:[%s791_s1 + $0xc8] sm:$0xff]  ;;  %v437_v50 = vpack.c.bf16 %v103_v40, %v102_v37 }
   0xc   :  { %464 = vmatprep.subr.bf16.mxu1 %v463_v34  ;;  %v467_v43 = vpack.c.bf16 %v151_v42, %v150_v41  ;;  %v135_v45 = vld [vmem:[%s791_s1 + $0x138] sm:$0xff]  ;;  %v104_v48 = vld [vmem:[%s791_s1 + $0x40] sm:$0xff]  ;;  %v105_v49 = vld [vmem:[%s791_s1 + $0x48] sm:$0xff]  ;;  %v439_v55 = vpack.c.bf16 %v121_v47, %v120_v46 }
   0xd   :  { %434 = vmatpush3.bf16.msra.mxu0 %v433_v33  ;;  %v152_v51 = vld [vmem:[%s791_s1 + $0x1c0] sm:$0xff]  ;;  %v153_v52 = vld [vmem:[%s791_s1 + $0x1c8] sm:$0xff]  ;;  %v469_v54 = vpack.c.bf16 %v135_v45, %v134_v44  ;;  %v122_v57 = vld [vmem:[%s791_s1 + $0xd0] sm:$0xff]  ;;  %v441_v2 = vpack.c.bf16 %v105_v49, %v104_v48 }
   0xe   :  { %v136_v53 = vld [vmem:[%s791_s1 + $0x140] sm:$0xff]  ;;  %436 = vmatprep.subr.bf16.mxu0 %v435_v39  ;;  %v137_v56 = vld [vmem:[%s791_s1 + $0x148] sm:$0xff]  ;;  %v123_v58 = vld [vmem:[%s791_s1 + $0xd8] sm:$0xff]  ;;  %v471_v59 = vpack.c.bf16 %v153_v52, %v152_v51 }
   0xf   :  { %466 = vmatpush3.bf16.msra.mxu1 %v465_v38  ;;  %v106_v60 = vld [vmem:[%s791_s1 + $0x50] sm:$0xff]  ;;  %v107_v61 = vld [vmem:[%s791_s1 + $0x58] sm:$0xff]  ;;  %v124_v3 = vld [vmem:[%s791_s1 + $0xe0] sm:$0xff]  ;;  %v473_v6 = vpack.c.bf16 %v137_v56, %v136_v53  ;;  %v443_v7 = vpack.c.bf16 %v123_v58, %v122_v57 }
  0x10   :  { %468 = vmatprep.subr.bf16.mxu1 %v467_v43  ;;  %v154_v62 = vld [vmem:[%s791_s1 + $0x1d0] sm:$0xff]  ;;  %v155_v63 = vld [vmem:[%s791_s1 + $0x1d8] sm:$0xff]  ;;  %v125_v4 = vld [vmem:[%s791_s1 + $0xe8] sm:$0xff]  ;;  %v445_v15 = vpack.c.bf16 %v107_v61, %v106_v60 }
  0x11   :  { %v138_v0 = vld [vmem:[%s791_s1 + $0x150] sm:$0xff]  ;;  %v139_v1 = vld [vmem:[%s791_s1 + $0x158] sm:$0xff]  ;;  %438 = vmatpush3.bf16.msra.mxu0 %v437_v50  ;;  %v694_v5 = vld [vmem:[%s791_s1 + $0x60] sm:$0xff]  ;;  %v475_v11 = vpack.c.bf16 %v155_v63, %v154_v62  ;;  %v447_v20 = vpack.c.bf16 %v125_v4, %v124_v3 }
  0x12   :  { %440 = vmatprep.subr.bf16.mxu0 %v439_v55  ;;  %v699_v8 = vld [vmem:[%s791_s1 + $0x68] sm:$0xff]  ;;  %v156_v9 = vld [vmem:[%s791_s1 + $0x1e0] sm:$0xff]  ;;  %v126_v14 = vld [vmem:[%s791_s1 + $0xf0] sm:$0xff]  ;;  %v477_v16 = vpack.c.bf16 %v139_v1, %v138_v0 }
  0x13   :  { %470 = vmatpush3.bf16.msra.mxu1 %v469_v54  ;;  %v157_v10 = vld [vmem:[%s791_s1 + $0x1e8] sm:$0xff]  ;;  %v710_v12 = vld [vmem:[%s791_s1 + $0x160] sm:$0xff]  ;;  %v127_v17 = vld [vmem:[%s791_s1 + $0xf8] sm:$0xff]  ;;  %v449_v21 = vpack.c.bf16 %v699_v8, %v694_v5 }
  0x14   :  { %472 = vmatprep.subr.bf16.mxu1 %v471_v59  ;;  %v141_v13 = vld [vmem:[%s791_s1 + $0x168] sm:$0xff]  ;;  %v724_v18 = vld [vmem:[%s791_s1 + $0x70] sm:$0xff]  ;;  %v729_v19 = vld [vmem:[%s791_s1 + $0x78] sm:$0xff]  ;;  %v479_v22 = vpack.c.bf16 %v157_v10, %v156_v9  ;;  %v451_v27 = vpack.c.bf16 %v127_v17, %v126_v14 }
  0x15   :  { %442 = vmatpush3.bf16.msra.mxu0 %v441_v2  ;;  %v481_v23 = vpack.c.bf16 %v141_v13, %v710_v12  ;;  %v158_v24 = vld [vmem:[%s791_s1 + $0x1f0] sm:$0xff]  ;;  %v159_v25 = vld [vmem:[%s791_s1 + $0x1f8] sm:$0xff]  ;;  %v453_v28 = vpack.c.bf16 %v729_v19, %v724_v18  ;;  %v15_v31 = vld [vmem:[%s790_s0] sm:$0xff] }
  0x16   :  { %v743_v26 = vld [vmem:[%s791_s1 + $0x170] sm:$0xff]  ;;  %444 = vmatprep.subr.bf16.mxu0 %v443_v7  ;;  %v483_v29 = vpack.c.bf16 %v159_v25, %v158_v24  ;;  %v143_v30 = vld [vmem:[%s791_s1 + $0x178] sm:$0xff]  ;;  %v23_v34 = vcombine.high %v15_v31, %v15_v31  ;;  %v32_v36 = vsel %vm31_vm0, %v15_v31, 0.0  ;;  %v16_v37 = vld [vmem:[%s790_s0 + $0x8] sm:$0xff] }
  0x17   :  { %474 = vmatpush3.bf16.msra.mxu1 %v473_v6  ;;  %v17_v32 = vld [vmem:[%s790_s0 + $0x10] sm:$0xff]  ;;  %v485_v33 = vpack.c.bf16 %v143_v30, %v743_v26  ;;  %v18_v38 = vld [vmem:[%s790_s0 + $0x18] sm:$0xff] }
  0x18   :  { %476 = vmatprep.subr.bf16.mxu1 %v475_v11  ;;  %v25_v35 = vcombine.high %v17_v32, %v17_v32 }
  0x19   :  { %8 = vsyncpa [#allocation3], 0  ;;  %v33_v39 = vrot.slane %v32_v36, 4  ;;  %v60_v40 = vsel %vm31_vm0, %v17_v32, 0.0  ;;  %v24_v41 = vcombine.high %v16_v37, %v16_v37  ;;  %v26_v42 = vcombine.high %v18_v38, %v18_v38  ;;  %446 = vmatpush3.bf16.msra.mxu0 %v445_v15 }
  0x1a   :  { %v39_v43 = vsel %vm31_vm0, %v23_v34, 0.0  ;;  %v67_v44 = vsel %vm31_vm0, %v25_v35, 0.0  ;;  %v61_v45 = vrot.slane %v60_v40, 4  ;;  %v46_v46 = vsel %vm31_vm0, %v16_v37, 0.0  ;;  %448 = vmatprep.subr.bf16.mxu0 %v447_v20 }
  0x1b   :  { %478 = vmatpush3.bf16.msra.mxu1 %v477_v16  ;;  %v40_v47 = vrot.slane %v39_v43, 4  ;;  %v68_v48 = vrot.slane %v67_v44, 4  ;;  %v34_v49 = vadd.f32 %v33_v39, %v32_v36  ;;  %v53_v50 = vsel %vm31_vm0, %v24_v41, 0.0 }
  0x1c   :  { %480 = vmatprep.subr.bf16.mxu1 %v479_v22  ;;  %v62_v51 = vadd.f32 %v61_v45, %v60_v40  ;;  %v54_v52 = vrot.slane %v53_v50, 4  ;;  %v81_v53 = vsel %vm31_vm0, %v26_v42, 0.0  ;;  %v47_v54 = vrot.slane %v46_v46, 4  ;;  %v352_v45 = vld [vmem:[%s792_s2] ss:$0 sm:$0xff]  ;;  %s520_s2 = smov [#allocation2]  }
  0x1d   :  { %v41_v55 = vadd.f32 %v40_v47, %v39_v43  ;;  %v69_v56 = vadd.f32 %v68_v48, %v67_v44  ;;  %vm175_vm1 = vcmask 1041409   ;;  %v35_v57 = vrot.slane %v34_v49, 2  ;;  %450 = vmatpush3.bf16.msra.mxu0 %v449_v21  ;;  %s344_s13 = sshll.u32 %s520_s2, 4  ;;  %s345_s13 = int_to_ptr.vmem [resolvable:$true] %s344_s13 }
  0x1e   :  { %v82_v58 = vrot.slane %v81_v53, 4  ;;  %v63_v59 = vrot.slane %v62_v51, 2  ;;  %v55_v60 = vadd.f32 %v54_v52, %v53_v50  ;;  %v48_v61 = vadd.f32 %v47_v54, %v46_v46  ;;  %452 = vmatprep.subr.bf16.mxu0 %v451_v27  ;;  %s496_s14 = scalar_lea.vmem %s345_s13, 32  ;;  %p501_p1 = scmp.lt.s32.totalorder %s345_s13, %s345_s13 }
  0x1f   :  { %v74_v62 = vsel %vm31_vm0, %v18_v38, 0.0  ;;  %482 = vmatpush3.bf16.msra.mxu1 %v481_v23  ;;  %v42_v63 = vrot.slane %v41_v55, 2  ;;  %v70_v0 = vrot.slane %v69_v56, 2  ;;  %v36_v1 = vadd.f32 %v35_v57, %v34_v49  ;;  %p497_p0 = scmp.ne.s32.totalorder %s345_s13, %s496_s14  ;;  %p502_p2 = scmp.lt.s32.totalorder %s496_s14, %s496_s14 }
  0x20   :  { %v83_v2 = vadd.f32 %v82_v58, %v81_v53  ;;  %484 = vmatprep.subr.bf16.mxu1 %v483_v29  ;;  %v64_v3 = vadd.f32 %v63_v59, %v62_v51  ;;  %v56_v4 = vrot.slane %v55_v60, 2  ;;  %v49_v5 = vrot.slane %v48_v61, 2 }
  0x21   :  { %v75_v6 = vrot.slane %v74_v62, 4  ;;  %v43_v7 = vadd.f32 %v42_v63, %v41_v55  ;;  %v71_v8 = vadd.f32 %v70_v0, %v69_v56  ;;  %v37_v9 = vrot.slane %v36_v1, 1  ;;  %454 = vmatpush3.bf16.msra.mxu0 %v453_v28  ;;  %p503_p3 = por %p502_p2, %p501_p1 }
  0x22   :  { %v84_v10 = vrot.slane %v83_v2, 2  ;;  %v65_v11 = vrot.slane %v64_v3, 1  ;;  %v57_v12 = vadd.f32 %v56_v4, %v55_v60  ;;  %v50_v13 = vadd.f32 %v49_v5, %v48_v61 }
  0x23   :  { %v76_v14 = vadd.f32 %v75_v6, %v74_v62  ;;  %486 = vmatpush3.bf16.msra.mxu1 %v485_v33  ;;  %v44_v15 = vrot.slane %v43_v7, 1  ;;  %v72_v16 = vrot.slane %v71_v8, 1  ;;  %v38_v17 = vadd.f32 %v37_v9, %v36_v1  ;;  %p504_p4 = pnand %p503_p3, %p497_p0 }
  0x24   :  { %v85_v18 = vadd.f32 %v84_v10, %v83_v2  ;;  %v66_v19 = vadd.f32 %v65_v11, %v64_v3  ;;  %v58_v20 = vrot.slane %v57_v12, 1  ;;  %v51_v21 = vrot.slane %v50_v13, 1 }
  0x25   :  { %v77_v22 = vrot.slane %v76_v14, 2  ;;  %v45_v23 = vadd.f32 %v44_v15, %v43_v7  ;;  %v73_v24 = vadd.f32 %v72_v16, %v71_v8  ;;  %v88_v25 = vmul.f32 0.25, %v38_v17 }
  0x26   :  { %v86_v26 = vrot.slane %v85_v18, 1  ;;  %v92_v27 = vmul.f32 0.25, %v66_v19  ;;  %v59_v29 = vadd.f32 %v58_v20, %v57_v12  ;;  %v52_v28 = vadd.f32 %v51_v21, %v50_v13 }
  0x27   :  { %v78_v30 = vadd.f32 %v77_v22, %v76_v14  ;;  %v89_v31 = vmul.f32 0.25, %v45_v23  ;;  %v93_v32 = vmul.f32 0.25, %v73_v24  ;;  %vm324_vm2 = vcmask 1041408  }
  0x28   :  { %v87_v34 = vadd.f32 %v86_v26, %v85_v18  ;;  %v176_v33 = vsel %vm175_vm1, %v92_v27, %v88_v25  ;;  %v91_v35 = vmul.f32 0.25, %v59_v29  ;;  %v90_v40 = vmul.f32 0.25, %v52_v28 }
  0x29   :  { %v79_v36 = vrot.slane %v78_v30, 1  ;;  %v177_v37 = vsel %vm175_vm1, %v93_v32, %v89_v31 }
  0x2a   :  { %v95_v38 = vmul.f32 0.25, %v87_v34  ;;  %248 = vmatprep.mubr.f32.mxu0 %v177_v37 }
  0x2b   :  { %v80_v39 = vadd.f32 %v79_v36, %v78_v30  ;;  %249 = vmatmul.mubr.f32.vlgmr.msra.gmra.mrb[0].mxu0 %v176_v33 }
  0x2c   :  { %v179_v41 = vsel %vm175_vm1, %v95_v38, %v91_v35 }
  0x2d   :  { %318 = vmatprep.mubr.f32.mxu1 %v179_v41  ;;  %v94_v42 = vmul.f32 0.25, %v80_v39 }
  0x2f   :  { %v178_v43 = vsel %vm175_vm1, %v94_v42, %v90_v40 }
  0x30   :  { %319 = vmatmul.mubr.f32.vlgmr.msra.gmra.mrb[0].mxu1 %v178_v43 }
  0xfe   :  { %v385_v44 = vpop.f32.mrb[0].mxu0 }
  0xff   :  { %v386_v46 = vpop.f32.mrb[1].mxu0 }
 0x100   :  { %v387_v47 = vadd.f32 %v386_v46, %v385_v44 }
 0x102   :  { %v251_v48 = vadd.f32 %v387_v47, %v352_v45 }
 0x103   :  { %v420_v49 = vpop.f32.mrb[0].mxu1 }
 0x104   :  { %v421_v50 = vpop.f32.mrb[1].mxu1 }
 0x105   :  { %v422_v51 = vadd.f32 %v421_v50, %v420_v49 }
 0x107   :  { %v321_v52 = vadd.f32 %v422_v51, %v251_v48 }
 0x109   :  { %v325_v53 = vsel %vm324_vm2, %v321_v52, -inf }
 0x10a   :  { %326 = vmax.xlane.f32.xlu0 %v325_v53 }
 0x197   :  { %v327_v54 = vpop.xlane.xlu0 %326 }
 0x198   :  { %v328_v55 = vsub.f32 %v321_v52, %v327_v54 }
 0x19a   :  { %v329_v56 = vmul.f32 1.442695, %v328_v55 }
 0x19c   :  { %492 = vpow2.f32 %v329_v56 }
 0x1a6   :  { %v493_v57 = vpop.eup %492 }
 0x1a7   :  { %v331_v58 = vsel %vm324_vm2, %v493_v57, 0.0 }
 0x1a8   :  { %332 = vadd.xlane.f32.xlu0 %v331_v58 }
 0x235   :  { %v333_v59 = vpop.xlane.xlu0 %332 }
 0x236   :  { %494 = vlog2.f32 %v333_v59 }
 0x240   :  { %v495_v60 = vpop.eup %494 }
 0x241   :  { %v335_v61 = vmul.f32 0.6931472, %v495_v60 }
 0x243   :  { %v336_v62 = vsub.f32 %v328_v55, %v335_v61 }
 0x245   :  { %337 = vst [vmem:[#allocation2] sm:$0x3] %v336_v62 }
 0x246   :  { %507 = shalt.err (!%p504_p4)
}
 0x247   :  { %s508_s17 = scalar_lea.hbm %s793_s3, 32 }
 0x248   :  { %p509_p5 = scmp.ne.s32.totalorder %s793_s3, %s508_s17  ;;  %p512_p6 = scmp.lt.u32.totalorder %s508_s17, %s793_s3 }
 0x24a   :  { %p514_p7 = pnand %p512_p6, %p509_p5 }
 0x24c   :  { %517 = shalt.err (!%p514_p7)
}
 0x24d   :  { %347 = dma.vmem_to_hbm [thread:$0]  %s345_s13, 32, %s793_s3, [#allocation3]  }
 0x24e   :  { %518 = dma.done.wait [#allocation3], 32  }
 0x24f   :  { %519 = vsyncadd [#allocation3], 4294967264 }
 0x250   :  { %351 = vsyncpa [#allocation3], 1 }

</bundles_post_ra>
